<compile_context>
chip_gen: v5e
topology: v5e:2x2
jax: 0.10.0
libtpu: 0.0.40
codegen_flags: <defaults>
</compile_context>

<pallas_src>
import jax
import jax.numpy as jnp
from jax.experimental import pallas as pl
from jax.experimental.pallas import tpu as pltpu


def _round_up(x, m):
    return ((x + m - 1) // m) * m


def _pick_row_tile(n):
    """Largest row tile that divides N, preferring >=2 tiles (megacore)."""
    for t in (256, 128, 64, 32, 16, 8):
        if n % t == 0 and n // t >= 2:
            return t
    for t in (256, 128, 64, 32, 16, 8):
        if n % t == 0:
            return t
    return n


def _pick_col_tile(n):
    """Column (N-axis) chunk for the flash-style pass 2."""
    for t in (512, 256, 128):
        if n % t == 0:
            return t
    return n


# ---------------------------------------------------------------------------
# Kernel A: per row-tile projection
#   R  = relu(H @ W + bW)          (tm, Dout)  -> stored bf16 (pass-2 RHS)
#   t  = R @ wkt + bkt             (tm, 1)
#   s  = R @ wkr + bkr             (tm, 1)
# ---------------------------------------------------------------------------
def _proj_kernel(h_ref, w_ref, bw_ref, wk_ref, bk_ref, r_ref, t_ref, s_ref):
    r = jnp.maximum(
        jnp.dot(h_ref[...].astype(jnp.bfloat16), w_ref[...],
                preferred_element_type=jnp.float32)
        + bw_ref[...],
        0.0,
    )
    r_ref[...] = r.astype(jnp.bfloat16)
    ts = jnp.dot(r, wk_ref[...], preferred_element_type=jnp.float32) + bk_ref[...]
    t_ref[...] = ts[:, 0:1]
    s_ref[...] = ts[:, 1:2]


# ---------------------------------------------------------------------------
# Kernel B: flash-style attention + aggregation over column chunks
#   m[i,j]   = A[i,j]*t[j] + A[j,i]*s[i]
#   e        = exp(sigmoid(m))                # bounded -> no max subtraction
#   out[i,:] = sum_j e[i,j]*R[j,:] / sum_j e[i,j]
# ---------------------------------------------------------------------------
def _attn_kernel(a_ref, at_ref, t_ref, s_ref, r_ref, out_ref, acc_ref, den_ref):
    kj = pl.program_id(1)

    @pl.when(kj == 0)
    def _():
        acc_ref[...] = jnp.zeros_like(acc_ref)
        den_ref[...] = jnp.zeros_like(den_ref)

    a = a_ref[...].astype(jnp.float32)      # (tm, tk)  A[i, j-chunk]
    at = at_ref[...].astype(jnp.float32)    # (tm, tk)  A^T[i, j-chunk] = A[j, i]
    m = a * t_ref[...] + at * s_ref[...]    # (tm, tk)
    sig = 0.5 * (jnp.tanh(0.5 * m) + 1.0)   # sigmoid: single EUP op
    e = jnp.exp(sig)                        # in (1, e): numerically safe
    den_ref[...] += jnp.sum(e, axis=1, keepdims=True)
    acc_ref[...] += jnp.dot(e.astype(jnp.bfloat16), r_ref[...],
                            preferred_element_type=jnp.float32)

    @pl.when(kj == pl.num_programs(1) - 1)
    def _():
        out_ref[...] = acc_ref[...] * pl.reciprocal(den_ref[...], approx=True)


def graphattention_layer_forward(h, a8, at8, w, bw, wk, bk):
    """One graph-attention layer.

    h   : (N, Din)   f32 node features
    a8  : (N, N)     int8 adjacency (0/1)
    at8 : (N, N)     int8 adjacency transpose
    w   : (Din, Dout) bf16 == W.weight.T (Dout padded to multiple of 128)
    bw  : (Dout,)    f32  == W.bias (padded)
    wk  : (Dout, 2)  f32  == [vkt.weight.T | vkr.weight.T] (padded)
    bk  : (2,)       f32  == [vkt.bias, vkr.bias]
    """
    N, Din = h.shape
    Dout = w.shape[1]
    tm = _pick_row_tile(N)
    tk = _pick_col_tile(N)

    cparams1 = pltpu.CompilerParams(
        dimension_semantics=("parallel",),
        vmem_limit_bytes=48 * 1024 * 1024,
    )
    cparams2 = pltpu.CompilerParams(
        dimension_semantics=("parallel", "arbitrary"),
        vmem_limit_bytes=48 * 1024 * 1024,
    )

    # ---- pass 1: R (bf16) and the t / s attention scores --------------------
    r, t_col, s_col = pl.pallas_call(
        _proj_kernel,
        out_shape=(
            jax.ShapeDtypeStruct((N, Dout), jnp.bfloat16),
            jax.ShapeDtypeStruct((N, 1), jnp.float32),
            jax.ShapeDtypeStruct((N, 1), jnp.float32),
        ),
        grid=(N // tm,),
        in_specs=[
            pl.BlockSpec((tm, Din), lambda i: (i, 0)),    # H row tile
            pl.BlockSpec((Din, Dout), lambda i: (0, 0)),  # W        (resident)
            pl.BlockSpec((1, Dout), lambda i: (0, 0)),    # bW       (resident)
            pl.BlockSpec((Dout, 2), lambda i: (0, 0)),    # [wkt|wkr](resident)
            pl.BlockSpec((1, 2), lambda i: (0, 0)),       # [bkt,bkr](resident)
        ],
        out_specs=(
            pl.BlockSpec((tm, Dout), lambda i: (i, 0)),
            pl.BlockSpec((tm, 1), lambda i: (i, 0)),
            pl.BlockSpec((tm, 1), lambda i: (i, 0)),
        ),
        compiler_params=cparams1,
        cost_estimate=pl.CostEstimate(
            flops=2 * N * Din * Dout + 4 * N * Dout + N * Dout,
            transcendentals=0,
            bytes_accessed=4 * N * Din + 2 * Din * Dout + 2 * N * Dout + 8 * N,
        ),
    )(h, w, bw.reshape(1, Dout), wk, bk.reshape(1, 2))

    # t[j] must live along the lane axis in pass 2: one tiny (N,)-element
    # XLA reshape (kept outside the kernels -> no narrow in-kernel transpose).
    t_row = t_col.reshape(1, N)

    # ---- pass 2: attention weights + aggregation (column blocked) -----------
    out = pl.pallas_call(
        _attn_kernel,
        out_shape=jax.ShapeDtypeStruct((N, Dout), jnp.float32),
        grid=(N // tm, N // tk),
        in_specs=[
            pl.BlockSpec((tm, tk), lambda i, j: (i, j)),    # A    row slab, int8
            pl.BlockSpec((tm, tk), lambda i, j: (i, j)),    # A^T  row slab, int8
            pl.BlockSpec((1, tk), lambda i, j: (0, j)),     # t chunk
            pl.BlockSpec((tm, 1), lambda i, j: (i, 0)),     # s for this row tile
            pl.BlockSpec((tk, Dout), lambda i, j: (j, 0)),  # R chunk (bf16)
        ],
        out_specs=pl.BlockSpec((tm, Dout), lambda i, j: (i, 0)),
        scratch_shapes=[
            pltpu.VMEM((tm, Dout), jnp.float32),   # running e @ R
            pltpu.VMEM((tm, 1), jnp.float32),      # running row sums
        ],
        compiler_params=cparams2,
        cost_estimate=pl.CostEstimate(
            flops=2 * N * N * Dout + 8 * N * N,
            transcendentals=2 * N * N,               # tanh + exp per element
            bytes_accessed=2 * N * N + 2 * N * Dout + 4 * N * Dout + 8 * N,
        ),
    )(a8, at8, t_row, s_col, r)
    return out


@jax.jit
def encoder_forward(X, A, params):
    """encoder.forward: three chained graph-attention layers."""
    # 0/1 adjacency: int8 is exact and quarters the dominant pass-2 HBM traffic.
    # A^T is materialized once so pass 2 only does contiguous row-slab DMA.
    a8 = A.astype(jnp.int8)
    at8 = A.T.astype(jnp.int8)
    h = X.astype(jnp.float32)
    last_dout = None
    for (w, bw, wk, bk) in params:
        din, dout = w.shape
        last_dout = dout
        dpad = max(_round_up(dout, 128), 128)     # lane-dense R / output stores
        din_in = h.shape[1]
        wp = jnp.zeros((din_in, dpad), jnp.float32).at[:din, :dout].set(w)
        bwp = jnp.zeros((dpad,), jnp.float32).at[:dout].set(bw)
        wkp = jnp.zeros((dpad, 2), jnp.float32).at[:dout, :].set(wk)
        h = graphattention_layer_forward(
            h, a8, at8, wp.astype(jnp.bfloat16), bwp, wkp, bk)
    return h[:, :last_dout]


# ---------------------------------------------------------------------------
# Pure-JAX reference (mirrors the PyTorch semantics, full f32)
# ---------------------------------------------------------------------------
def _layer_ref(h, a, w, bw, wk, bk):
    r = jnp.maximum(h @ w + bw[None, :], 0.0)
    t = r @ wk[:, 0:1] + bk[0]
    s = r @ wk[:, 1:2] + bk[1]
    m_s = a * t.T
    m_r = (a * s.T).T
    att = jax.nn.softmax(jax.nn.sigmoid(m_s + m_r), axis=1)
    return att @ r


def encoder_reference(X, A, params):
    h = X
    for (w, bw, wk, bk) in params:
        h = _layer_ref(h, A, w, bw, wk, bk)
    return h


if __name__ == "__main__":
    N = 256               # number of graph nodes
    E = 32                # input embedding size
    LAYER_SIZES = [(E, 512), (512, 256), (256, 64)]   # as in the PyTorch encoder

    key = jax.random.PRNGKey(0)
    k_x, k_a, k_p = jax.random.split(key, 3)

    X = jax.random.normal(k_x, (N, E), dtype=jnp.float32)
    # Deterministic 0/1 adjacency with self loops.
    A = (jax.random.uniform(k_a, (N, N)) > 0.7).astype(jnp.float32)
    A = jnp.maximum(A, jnp.eye(N, dtype=jnp.float32))

    params = []
    pk = k_p
    for (din, dout) in LAYER_SIZES:
        pk, kw, kb, kk, kkb = jax.random.split(pk, 5)
        w = jax.random.normal(kw, (din, dout), dtype=jnp.float32) * (1.0 / float(din) ** 0.5)
        bw = jax.random.normal(kb, (dout,), dtype=jnp.float32) * 0.01
        wk = jax.random.normal(kk, (dout, 2), dtype=jnp.float32) * (1.0 / float(dout) ** 0.5)
        bk = jax.random.normal(kkb, (2,), dtype=jnp.float32) * 0.01
        params.append((w, bw, wk, bk))

    out = encoder_forward(X, A, params)
    out = jax.block_until_ready(out)

    ref = encoder_reference(X, A, params)
    assert out.shape == (N, 64)
    # bf16 MXU operands (f32 accumulation) across 3 layers + approx reciprocal
    # -> relaxed tolerance vs the full-f32 reference.
    assert jnp.allclose(out, ref, atol=2e-2, rtol=2e-2), "mismatch vs reference"

    print("KERNEL_OK")
</pallas_src>

<mosaic_0001>
module attributes {stable_mosaic.version = 11 : i64} {
  func.func @_proj_kernel(%arg0: i32, %arg1: memref<128x512xf32, #tpu.memory_space<vmem>>, %arg2: memref<512x256xbf16, #tpu.memory_space<vmem>>, %arg3: memref<1x256xf32, #tpu.memory_space<vmem>>, %arg4: memref<256x2xf32, #tpu.memory_space<vmem>>, %arg5: memref<1x2xf32, #tpu.memory_space<vmem>>, %arg6: memref<128x256xbf16, #tpu.memory_space<vmem>>, %arg7: memref<128x1xf32, #tpu.memory_space<vmem>>, %arg8: memref<128x1xf32, #tpu.memory_space<vmem>>) attributes {dimension_semantics = [#tpu.dimension_semantics<parallel>], iteration_bounds = array<i64: 2>, scalar_prefetch = 0 : i64, scratch_operands = 0 : i64, tpu.core_type = #tpu.core_type<tc>, window_params = [{transform_indices = @transform_0, window_bounds = array<i64: 128, 512>}, {pipeline_mode = #tpu.pipeline_mode<synchronous>, transform_indices = @transform_1, window_bounds = array<i64: 512, 256>}, {pipeline_mode = #tpu.pipeline_mode<synchronous>, transform_indices = @transform_2, window_bounds = array<i64: 1, 256>}, {pipeline_mode = #tpu.pipeline_mode<synchronous>, transform_indices = @transform_3, window_bounds = array<i64: 256, 2>}, {pipeline_mode = #tpu.pipeline_mode<synchronous>, transform_indices = @transform_4, window_bounds = array<i64: 1, 2>}, {transform_indices = @transform_5, window_bounds = array<i64: 128, 256>}, {transform_indices = @transform_6, window_bounds = array<i64: 128, 1>}, {transform_indices = @transform_7, window_bounds = array<i64: 128, 1>}]} {
    %c0 = arith.constant 0 : index
    %c0_0 = arith.constant 0 : index
    %0 = vector.load %arg1[%c0, %c0_0] : memref<128x512xf32, #tpu.memory_space<vmem>>, vector<128x512xf32>
    %1 = arith.truncf %0 : vector<128x512xf32> to vector<128x512xbf16>
    %c0_1 = arith.constant 0 : index
    %c0_2 = arith.constant 0 : index
    %2 = vector.load %arg2[%c0_1, %c0_2] : memref<512x256xbf16, #tpu.memory_space<vmem>>, vector<512x256xbf16>
    %cst = arith.constant dense<0.000000e+00> : vector<128x256xf32>
    %3 = tpu.matmul %1, %2, %cst {dimension_numbers = #tpu.dot_dimension_numbers<[1], [0], [0], [1], [0, 0, 1, 1], [], []>} : vector<128x512xbf16>, vector<512x256xbf16>, vector<128x256xf32> -> vector<128x256xf32>
    %c0_3 = arith.constant 0 : index
    %c0_4 = arith.constant 0 : index
    %4 = vector.load %arg3[%c0_3, %c0_4] : memref<1x256xf32, #tpu.memory_space<vmem>>, vector<1x256xf32>
    %5 = vector.broadcast %4 : vector<1x256xf32> to vector<128x256xf32>
    %6 = arith.addf %3, %5 : vector<128x256xf32>
    %cst_5 = arith.constant 0.000000e+00 : f32
    %7 = vector.broadcast %cst_5 : f32 to vector<128x256xf32>
    %8 = arith.maximumf %6, %7 : vector<128x256xf32>
    %9 = arith.truncf %8 : vector<128x256xf32> to vector<128x256xbf16>
    %c0_6 = arith.constant 0 : index
    %c0_7 = arith.constant 0 : index
    %10 = vector.load %arg6[%c0_6, %c0_7] : memref<128x256xbf16, #tpu.memory_space<vmem>>, vector<128x256xbf16>
    tpu.vector_store %arg6[%c0_6, %c0_7], %9 {strides = array<i32>} : memref<128x256xbf16, #tpu.memory_space<vmem>>, vector<128x256xbf16>,
    %c0_8 = arith.constant 0 : index
    %c0_9 = arith.constant 0 : index
    %11 = vector.load %arg4[%c0_8, %c0_9] : memref<256x2xf32, #tpu.memory_space<vmem>>, vector<256x2xf32>
    %cst_10 = arith.constant dense<0.000000e+00> : vector<128x2xf32>
    %12 = tpu.matmul %8, %11, %cst_10 {dimension_numbers = #tpu.dot_dimension_numbers<[1], [0], [0], [1], [0, 0, 1, 1], [], []>} : vector<128x256xf32>, vector<256x2xf32>, vector<128x2xf32> -> vector<128x2xf32>
    %c0_11 = arith.constant 0 : index
    %c0_12 = arith.constant 0 : index
    %13 = vector.load %arg5[%c0_11, %c0_12] : memref<1x2xf32, #tpu.memory_space<vmem>>, vector<1x2xf32>
    %14 = vector.broadcast %13 : vector<1x2xf32> to vector<128x2xf32>
    %15 = arith.addf %12, %14 : vector<128x2xf32>
    %16 = vector.extract_strided_slice %15 {offsets = [0, 0], sizes = [128, 1], strides = [1, 1]} : vector<128x2xf32> to vector<128x1xf32>
    %c0_13 = arith.constant 0 : index
    %c0_14 = arith.constant 0 : index
    %17 = vector.load %arg7[%c0_13, %c0_14] : memref<128x1xf32, #tpu.memory_space<vmem>>, vector<128x1xf32>
    tpu.vector_store %arg7[%c0_13, %c0_14], %16 {strides = array<i32>} : memref<128x1xf32, #tpu.memory_space<vmem>>, vector<128x1xf32>,
    %18 = vector.extract_strided_slice %15 {offsets = [0, 1], sizes = [128, 1], strides = [1, 1]} : vector<128x2xf32> to vector<128x1xf32>
    %c0_15 = arith.constant 0 : index
    %c0_16 = arith.constant 0 : index
    %19 = vector.load %arg8[%c0_15, %c0_16] : memref<128x1xf32, #tpu.memory_space<vmem>>, vector<128x1xf32>
    tpu.vector_store %arg8[%c0_15, %c0_16], %18 {strides = array<i32>} : memref<128x1xf32, #tpu.memory_space<vmem>>, vector<128x1xf32>,
    return
  }
  func.func @transform_0(%arg0: i32) -> (i32, i32) {
    %c0_i32 = arith.constant 0 : i32
    %c0_i32_0 = arith.constant 0 : i32
    return %arg0, %c0_i32 : i32, i32
  }
  func.func @transform_1(%arg0: i32) -> (i32, i32) {
    %c0_i32 = arith.constant 0 : i32
    %c0_i32_0 = arith.constant 0 : i32
    %c0_i32_1 = arith.constant 0 : i32
    return %c0_i32, %c0_i32_0 : i32, i32
  }
  func.func @transform_2(%arg0: i32) -> (i32, i32) {
    %c0_i32 = arith.constant 0 : i32
    %c0_i32_0 = arith.constant 0 : i32
    %c0_i32_1 = arith.constant 0 : i32
    return %c0_i32, %c0_i32_0 : i32, i32
  }
  func.func @transform_3(%arg0: i32) -> (i32, i32) {
    %c0_i32 = arith.constant 0 : i32
    %c0_i32_0 = arith.constant 0 : i32
    %c0_i32_1 = arith.constant 0 : i32
    return %c0_i32, %c0_i32_0 : i32, i32
  }
  func.func @transform_4(%arg0: i32) -> (i32, i32) {
    %c0_i32 = arith.constant 0 : i32
    %c0_i32_0 = arith.constant 0 : i32
    %c0_i32_1 = arith.constant 0 : i32
    return %c0_i32, %c0_i32_0 : i32, i32
  }
  func.func @transform_5(%arg0: i32) -> (i32, i32) {
    %c0_i32 = arith.constant 0 : i32
    %c0_i32_0 = arith.constant 0 : i32
    return %arg0, %c0_i32 : i32, i32
  }
  func.func @transform_6(%arg0: i32) -> (i32, i32) {
    %c0_i32 = arith.constant 0 : i32
    %c0_i32_0 = arith.constant 0 : i32
    return %arg0, %c0_i32 : i32, i32
  }
  func.func @transform_7(%arg0: i32) -> (i32, i32) {
    %c0_i32 = arith.constant 0 : i32
    %c0_i32_0 = arith.constant 0 : i32
    return %arg0, %c0_i32 : i32, i32
  }
}

module attributes {stable_mosaic.version = 11 : i64} {
  func.func @_attn_kernel(%arg0: i32, %arg1: i32, %arg2: memref<128x256xi8, #tpu.memory_space<vmem>>, %arg3: memref<128x256xi8, #tpu.memory_space<vmem>>, %arg4: memref<1x256xf32, #tpu.memory_space<vmem>>, %arg5: memref<128x1xf32, #tpu.memory_space<vmem>>, %arg6: memref<256x512xbf16, #tpu.memory_space<vmem>>, %arg7: memref<128x512xf32, #tpu.memory_space<vmem>>, %arg8: memref<128x512xf32, #tpu.memory_space<vmem>>, %arg9: memref<128x1xf32, #tpu.memory_space<vmem>>) attributes {dimension_semantics = [#tpu.dimension_semantics<parallel>, #tpu.dimension_semantics<arbitrary>], iteration_bounds = array<i64: 2, 1>, scalar_prefetch = 0 : i64, scratch_operands = 2 : i64, tpu.core_type = #tpu.core_type<tc>, window_params = [{transform_indices = @transform_0, window_bounds = array<i64: 128, 256>}, {transform_indices = @transform_1, window_bounds = array<i64: 128, 256>}, {transform_indices = @transform_2, window_bounds = array<i64: 1, 256>}, {transform_indices = @transform_3, window_bounds = array<i64: 128, 1>}, {transform_indices = @transform_4, window_bounds = array<i64: 256, 512>}, {transform_indices = @transform_5, window_bounds = array<i64: 128, 512>}]} {
    %c0_i32 = arith.constant 0 : i32
    %0 = arith.cmpi eq, %arg1, %c0_i32 : i32
    %1 = arith.extui %0 : i1 to i32
    %c0_i32_0 = arith.constant 0 : i32
    %2 = arith.cmpi ne, %1, %c0_i32_0 : i32
    scf.if %2 {
      %cst_24 = arith.constant 0.000000e+00 : f32
      %36 = vector.broadcast %cst_24 : f32 to vector<128x512xf32>
      %c0_25 = arith.constant 0 : index
      %c0_26 = arith.constant 0 : index
      %37 = vector.load %arg8[%c0_25, %c0_26] : memref<128x512xf32, #tpu.memory_space<vmem>>, vector<128x512xf32>
      tpu.vector_store %arg8[%c0_25, %c0_26], %36 {strides = array<i32>} : memref<128x512xf32, #tpu.memory_space<vmem>>, vector<128x512xf32>,
      %cst_27 = arith.constant 0.000000e+00 : f32
      %38 = vector.broadcast %cst_27 : f32 to vector<128x1xf32>
      %c0_28 = arith.constant 0 : index
      %c0_29 = arith.constant 0 : index
      %39 = vector.load %arg9[%c0_28, %c0_29] : memref<128x1xf32, #tpu.memory_space<vmem>>, vector<128x1xf32>
      tpu.vector_store %arg9[%c0_28, %c0_29], %38 {strides = array<i32>} : memref<128x1xf32, #tpu.memory_space<vmem>>, vector<128x1xf32>,
    } else {
    }
    %c0 = arith.constant 0 : index
    %c0_1 = arith.constant 0 : index
    %3 = vector.load %arg2[%c0, %c0_1] : memref<128x256xi8, #tpu.memory_space<vmem>>, vector<128x256xi8>
    %4 = arith.sitofp %3 : vector<128x256xi8> to vector<128x256xf32>
    %c0_2 = arith.constant 0 : index
    %c0_3 = arith.constant 0 : index
    %5 = vector.load %arg3[%c0_2, %c0_3] : memref<128x256xi8, #tpu.memory_space<vmem>>, vector<128x256xi8>
    %6 = arith.sitofp %5 : vector<128x256xi8> to vector<128x256xf32>
    %c0_4 = arith.constant 0 : index
    %c0_5 = arith.constant 0 : index
    %7 = vector.load %arg4[%c0_4, %c0_5] : memref<1x256xf32, #tpu.memory_space<vmem>>, vector<1x256xf32>
    %8 = vector.broadcast %7 : vector<1x256xf32> to vector<128x256xf32>
    %9 = arith.mulf %4, %8 : vector<128x256xf32>
    %c0_6 = arith.constant 0 : index
    %c0_7 = arith.constant 0 : index
    %10 = vector.load %arg5[%c0_6, %c0_7] : memref<128x1xf32, #tpu.memory_space<vmem>>, vector<128x1xf32>
    %11 = vector.broadcast %10 : vector<128x1xf32> to vector<128x256xf32>
    %12 = arith.mulf %6, %11 : vector<128x256xf32>
    %13 = arith.addf %9, %12 : vector<128x256xf32>
    %cst = arith.constant 5.000000e-01 : f32
    %14 = vector.broadcast %cst : f32 to vector<128x256xf32>
    %15 = arith.mulf %14, %13 : vector<128x256xf32>
    %16 = math.tanh %15 : vector<128x256xf32>
    %cst_8 = arith.constant 1.000000e+00 : f32
    %17 = vector.broadcast %cst_8 : f32 to vector<128x256xf32>
    %18 = arith.addf %16, %17 : vector<128x256xf32>
    %cst_9 = arith.constant 5.000000e-01 : f32
    %19 = vector.broadcast %cst_9 : f32 to vector<128x256xf32>
    %20 = arith.mulf %19, %18 : vector<128x256xf32>
    %21 = math.exp %20 : vector<128x256xf32>
    %c0_10 = arith.constant 0 : index
    %c0_11 = arith.constant 0 : index
    %22 = vector.load %arg9[%c0_10, %c0_11] : memref<128x1xf32, #tpu.memory_space<vmem>>, vector<128x1xf32>
    %cst_12 = arith.constant dense<0.000000e+00> : vector<128xf32>
    %23 = vector.multi_reduction <add>, %21, %cst_12 [1] : vector<128x256xf32> to vector<128xf32>
    %24 = vector.shape_cast %23 : vector<128xf32> to vector<128x1xf32>
    %25 = arith.addf %22, %24 : vector<128x1xf32>
    %c0_13 = arith.constant 0 : index
    %c0_14 = arith.constant 0 : index
    %26 = vector.load %arg9[%c0_13, %c0_14] : memref<128x1xf32, #tpu.memory_space<vmem>>, vector<128x1xf32>
    tpu.vector_store %arg9[%c0_13, %c0_14], %25 {strides = array<i32>} : memref<128x1xf32, #tpu.memory_space<vmem>>, vector<128x1xf32>,
    %c0_15 = arith.constant 0 : index
    %c0_16 = arith.constant 0 : index
    %27 = vector.load %arg8[%c0_15, %c0_16] : memref<128x512xf32, #tpu.memory_space<vmem>>, vector<128x512xf32>
    %28 = arith.truncf %21 : vector<128x256xf32> to vector<128x256xbf16>
    %c0_17 = arith.constant 0 : index
    %c0_18 = arith.constant 0 : index
    %29 = vector.load %arg6[%c0_17, %c0_18] : memref<256x512xbf16, #tpu.memory_space<vmem>>, vector<256x512xbf16>
    %cst_19 = arith.constant dense<0.000000e+00> : vector<128x512xf32>
    %30 = tpu.matmul %28, %29, %cst_19 {dimension_numbers = #tpu.dot_dimension_numbers<[1], [0], [0], [1], [0, 0, 1, 1], [], []>} : vector<128x256xbf16>, vector<256x512xbf16>, vector<128x512xf32> -> vector<128x512xf32>
    %31 = arith.addf %27, %30 : vector<128x512xf32>
    %c0_20 = arith.constant 0 : index
    %c0_21 = arith.constant 0 : index
    %32 = vector.load %arg8[%c0_20, %c0_21] : memref<128x512xf32, #tpu.memory_space<vmem>>, vector<128x512xf32>
    tpu.vector_store %arg8[%c0_20, %c0_21], %31 {strides = array<i32>} : memref<128x512xf32, #tpu.memory_space<vmem>>, vector<128x512xf32>,
    %c0_i32_22 = arith.constant 0 : i32
    %33 = arith.cmpi eq, %arg1, %c0_i32_22 : i32
    %34 = arith.extui %33 : i1 to i32
    %c0_i32_23 = arith.constant 0 : i32
    %35 = arith.cmpi ne, %34, %c0_i32_23 : i32
    scf.if %35 {
      %c0_24 = arith.constant 0 : index
      %c0_25 = arith.constant 0 : index
      %36 = vector.load %arg8[%c0_24, %c0_25] : memref<128x512xf32, #tpu.memory_space<vmem>>, vector<128x512xf32>
      %c0_26 = arith.constant 0 : index
      %c0_27 = arith.constant 0 : index
      %37 = vector.load %arg9[%c0_26, %c0_27] : memref<128x1xf32, #tpu.memory_space<vmem>>, vector<128x1xf32>
      %38 = tpu.reciprocal %37 {approx = true} : vector<128x1xf32> -> vector<128x1xf32>
      %39 = vector.broadcast %38 : vector<128x1xf32> to vector<128x512xf32>
      %40 = arith.mulf %36, %39 : vector<128x512xf32>
      %c0_28 = arith.constant 0 : index
      %c0_29 = arith.constant 0 : index
      %41 = vector.load %arg7[%c0_28, %c0_29] : memref<128x512xf32, #tpu.memory_space<vmem>>, vector<128x512xf32>
      tpu.vector_store %arg7[%c0_28, %c0_29], %40 {strides = array<i32>} : memref<128x512xf32, #tpu.memory_space<vmem>>, vector<128x512xf32>,
    } else {
    }
    return
  }
  func.func @transform_0(%arg0: i32, %arg1: i32) -> (i32, i32) {
    %c0_i32 = arith.constant 0 : i32
    return %arg0, %arg1 : i32, i32
  }
  func.func @transform_1(%arg0: i32, %arg1: i32) -> (i32, i32) {
    %c0_i32 = arith.constant 0 : i32
    return %arg0, %arg1 : i32, i32
  }
  func.func @transform_2(%arg0: i32, %arg1: i32) -> (i32, i32) {
    %c0_i32 = arith.constant 0 : i32
    %c0_i32_0 = arith.constant 0 : i32
    return %c0_i32, %arg1 : i32, i32
  }
  func.func @transform_3(%arg0: i32, %arg1: i32) -> (i32, i32) {
    %c0_i32 = arith.constant 0 : i32
    %c0_i32_0 = arith.constant 0 : i32
    return %arg0, %c0_i32 : i32, i32
  }
  func.func @transform_4(%arg0: i32, %arg1: i32) -> (i32, i32) {
    %c0_i32 = arith.constant 0 : i32
    %c0_i32_0 = arith.constant 0 : i32
    return %arg1, %c0_i32 : i32, i32
  }
  func.func @transform_5(%arg0: i32, %arg1: i32) -> (i32, i32) {
    %c0_i32 = arith.constant 0 : i32
    %c0_i32_0 = arith.constant 0 : i32
    return %arg0, %c0_i32 : i32, i32
  }
}

module attributes {stable_mosaic.version = 11 : i64} {
  func.func @_proj_kernel(%arg0: i32, %arg1: memref<128x32xf32, #tpu.memory_space<vmem>>, %arg2: memref<32x512xbf16, #tpu.memory_space<vmem>>, %arg3: memref<1x512xf32, #tpu.memory_space<vmem>>, %arg4: memref<512x2xf32, #tpu.memory_space<vmem>>, %arg5: memref<1x2xf32, #tpu.memory_space<vmem>>, %arg6: memref<128x512xbf16, #tpu.memory_space<vmem>>, %arg7: memref<128x1xf32, #tpu.memory_space<vmem>>, %arg8: memref<128x1xf32, #tpu.memory_space<vmem>>) attributes {dimension_semantics = [#tpu.dimension_semantics<parallel>], iteration_bounds = array<i64: 2>, scalar_prefetch = 0 : i64, scratch_operands = 0 : i64, tpu.core_type = #tpu.core_type<tc>, window_params = [{transform_indices = @transform_0, window_bounds = array<i64: 128, 32>}, {pipeline_mode = #tpu.pipeline_mode<synchronous>, transform_indices = @transform_1, window_bounds = array<i64: 32, 512>}, {pipeline_mode = #tpu.pipeline_mode<synchronous>, transform_indices = @transform_2, window_bounds = array<i64: 1, 512>}, {pipeline_mode = #tpu.pipeline_mode<synchronous>, transform_indices = @transform_3, window_bounds = array<i64: 512, 2>}, {pipeline_mode = #tpu.pipeline_mode<synchronous>, transform_indices = @transform_4, window_bounds = array<i64: 1, 2>}, {transform_indices = @transform_5, window_bounds = array<i64: 128, 512>}, {transform_indices = @transform_6, window_bounds = array<i64: 128, 1>}, {transform_indices = @transform_7, window_bounds = array<i64: 128, 1>}]} {
    %c0 = arith.constant 0 : index
    %c0_0 = arith.constant 0 : index
    %0 = vector.load %arg1[%c0, %c0_0] : memref<128x32xf32, #tpu.memory_space<vmem>>, vector<128x32xf32>
    %1 = arith.truncf %0 : vector<128x32xf32> to vector<128x32xbf16>
    %c0_1 = arith.constant 0 : index
    %c0_2 = arith.constant 0 : index
    %2 = vector.load %arg2[%c0_1, %c0_2] : memref<32x512xbf16, #tpu.memory_space<vmem>>, vector<32x512xbf16>
    %cst = arith.constant dense<0.000000e+00> : vector<128x512xf32>
    %3 = tpu.matmul %1, %2, %cst {dimension_numbers = #tpu.dot_dimension_numbers<[1], [0], [0], [1], [0, 0, 1, 1], [], []>} : vector<128x32xbf16>, vector<32x512xbf16>, vector<128x512xf32> -> vector<128x512xf32>
    %c0_3 = arith.constant 0 : index
    %c0_4 = arith.constant 0 : index
    %4 = vector.load %arg3[%c0_3, %c0_4] : memref<1x512xf32, #tpu.memory_space<vmem>>, vector<1x512xf32>
    %5 = vector.broadcast %4 : vector<1x512xf32> to vector<128x512xf32>
    %6 = arith.addf %3, %5 : vector<128x512xf32>
    %cst_5 = arith.constant 0.000000e+00 : f32
    %7 = vector.broadcast %cst_5 : f32 to vector<128x512xf32>
    %8 = arith.maximumf %6, %7 : vector<128x512xf32>
    %9 = arith.truncf %8 : vector<128x512xf32> to vector<128x512xbf16>
    %c0_6 = arith.constant 0 : index
    %c0_7 = arith.constant 0 : index
    %10 = vector.load %arg6[%c0_6, %c0_7] : memref<128x512xbf16, #tpu.memory_space<vmem>>, vector<128x512xbf16>
    tpu.vector_store %arg6[%c0_6, %c0_7], %9 {strides = array<i32>} : memref<128x512xbf16, #tpu.memory_space<vmem>>, vector<128x512xbf16>,
    %c0_8 = arith.constant 0 : index
    %c0_9 = arith.constant 0 : index
    %11 = vector.load %arg4[%c0_8, %c0_9] : memref<512x2xf32, #tpu.memory_space<vmem>>, vector<512x2xf32>
    %cst_10 = arith.constant dense<0.000000e+00> : vector<128x2xf32>
    %12 = tpu.matmul %8, %11, %cst_10 {dimension_numbers = #tpu.dot_dimension_numbers<[1], [0], [0], [1], [0, 0, 1, 1], [], []>} : vector<128x512xf32>, vector<512x2xf32>, vector<128x2xf32> -> vector<128x2xf32>
    %c0_11 = arith.constant 0 : index
    %c0_12 = arith.constant 0 : index
    %13 = vector.load %arg5[%c0_11, %c0_12] : memref<1x2xf32, #tpu.memory_space<vmem>>, vector<1x2xf32>
    %14 = vector.broadcast %13 : vector<1x2xf32> to vector<128x2xf32>
    %15 = arith.addf %12, %14 : vector<128x2xf32>
    %16 = vector.extract_strided_slice %15 {offsets = [0, 0], sizes = [128, 1], strides = [1, 1]} : vector<128x2xf32> to vector<128x1xf32>
    %c0_13 = arith.constant 0 : index
    %c0_14 = arith.constant 0 : index
    %17 = vector.load %arg7[%c0_13, %c0_14] : memref<128x1xf32, #tpu.memory_space<vmem>>, vector<128x1xf32>
    tpu.vector_store %arg7[%c0_13, %c0_14], %16 {strides = array<i32>} : memref<128x1xf32, #tpu.memory_space<vmem>>, vector<128x1xf32>,
    %18 = vector.extract_strided_slice %15 {offsets = [0, 1], sizes = [128, 1], strides = [1, 1]} : vector<128x2xf32> to vector<128x1xf32>
    %c0_15 = arith.constant 0 : index
    %c0_16 = arith.constant 0 : index
    %19 = vector.load %arg8[%c0_15, %c0_16] : memref<128x1xf32, #tpu.memory_space<vmem>>, vector<128x1xf32>
    tpu.vector_store %arg8[%c0_15, %c0_16], %18 {strides = array<i32>} : memref<128x1xf32, #tpu.memory_space<vmem>>, vector<128x1xf32>,
    return
  }
  func.func @transform_0(%arg0: i32) -> (i32, i32) {
    %c0_i32 = arith.constant 0 : i32
    %c0_i32_0 = arith.constant 0 : i32
    return %arg0, %c0_i32 : i32, i32
  }
  func.func @transform_1(%arg0: i32) -> (i32, i32) {
    %c0_i32 = arith.constant 0 : i32
    %c0_i32_0 = arith.constant 0 : i32
    %c0_i32_1 = arith.constant 0 : i32
    return %c0_i32, %c0_i32_0 : i32, i32
  }
  func.func @transform_2(%arg0: i32) -> (i32, i32) {
    %c0_i32 = arith.constant 0 : i32
    %c0_i32_0 = arith.constant 0 : i32
    %c0_i32_1 = arith.constant 0 : i32
    return %c0_i32, %c0_i32_0 : i32, i32
  }
  func.func @transform_3(%arg0: i32) -> (i32, i32) {
    %c0_i32 = arith.constant 0 : i32
    %c0_i32_0 = arith.constant 0 : i32
    %c0_i32_1 = arith.constant 0 : i32
    return %c0_i32, %c0_i32_0 : i32, i32
  }
  func.func @transform_4(%arg0: i32) -> (i32, i32) {
    %c0_i32 = arith.constant 0 : i32
    %c0_i32_0 = arith.constant 0 : i32
    %c0_i32_1 = arith.constant 0 : i32
    return %c0_i32, %c0_i32_0 : i32, i32
  }
  func.func @transform_5(%arg0: i32) -> (i32, i32) {
    %c0_i32 = arith.constant 0 : i32
    %c0_i32_0 = arith.constant 0 : i32
    return %arg0, %c0_i32 : i32, i32
  }
  func.func @transform_6(%arg0: i32) -> (i32, i32) {
    %c0_i32 = arith.constant 0 : i32
    %c0_i32_0 = arith.constant 0 : i32
    return %arg0, %c0_i32 : i32, i32
  }
  func.func @transform_7(%arg0: i32) -> (i32, i32) {
    %c0_i32 = arith.constant 0 : i32
    %c0_i32_0 = arith.constant 0 : i32
    return %arg0, %c0_i32 : i32, i32
  }
}

module attributes {stable_mosaic.version = 11 : i64} {
  func.func @_attn_kernel(%arg0: i32, %arg1: i32, %arg2: memref<128x256xi8, #tpu.memory_space<vmem>>, %arg3: memref<128x256xi8, #tpu.memory_space<vmem>>, %arg4: memref<1x256xf32, #tpu.memory_space<vmem>>, %arg5: memref<128x1xf32, #tpu.memory_space<vmem>>, %arg6: memref<256x256xbf16, #tpu.memory_space<vmem>>, %arg7: memref<128x256xf32, #tpu.memory_space<vmem>>, %arg8: memref<128x256xf32, #tpu.memory_space<vmem>>, %arg9: memref<128x1xf32, #tpu.memory_space<vmem>>) attributes {dimension_semantics = [#tpu.dimension_semantics<parallel>, #tpu.dimension_semantics<arbitrary>], iteration_bounds = array<i64: 2, 1>, scalar_prefetch = 0 : i64, scratch_operands = 2 : i64, tpu.core_type = #tpu.core_type<tc>, window_params = [{transform_indices = @transform_0, window_bounds = array<i64: 128, 256>}, {transform_indices = @transform_1, window_bounds = array<i64: 128, 256>}, {transform_indices = @transform_2, window_bounds = array<i64: 1, 256>}, {transform_indices = @transform_3, window_bounds = array<i64: 128, 1>}, {transform_indices = @transform_4, window_bounds = array<i64: 256, 256>}, {transform_indices = @transform_5, window_bounds = array<i64: 128, 256>}]} {
    %c0_i32 = arith.constant 0 : i32
    %0 = arith.cmpi eq, %arg1, %c0_i32 : i32
    %1 = arith.extui %0 : i1 to i32
    %c0_i32_0 = arith.constant 0 : i32
    %2 = arith.cmpi ne, %1, %c0_i32_0 : i32
    scf.if %2 {
      %cst_24 = arith.constant 0.000000e+00 : f32
      %36 = vector.broadcast %cst_24 : f32 to vector<128x256xf32>
      %c0_25 = arith.constant 0 : index
      %c0_26 = arith.constant 0 : index
      %37 = vector.load %arg8[%c0_25, %c0_26] : memref<128x256xf32, #tpu.memory_space<vmem>>, vector<128x256xf32>
      tpu.vector_store %arg8[%c0_25, %c0_26], %36 {strides = array<i32>} : memref<128x256xf32, #tpu.memory_space<vmem>>, vector<128x256xf32>,
      %cst_27 = arith.constant 0.000000e+00 : f32
      %38 = vector.broadcast %cst_27 : f32 to vector<128x1xf32>
      %c0_28 = arith.constant 0 : index
      %c0_29 = arith.constant 0 : index
      %39 = vector.load %arg9[%c0_28, %c0_29] : memref<128x1xf32, #tpu.memory_space<vmem>>, vector<128x1xf32>
      tpu.vector_store %arg9[%c0_28, %c0_29], %38 {strides = array<i32>} : memref<128x1xf32, #tpu.memory_space<vmem>>, vector<128x1xf32>,
    } else {
    }
    %c0 = arith.constant 0 : index
    %c0_1 = arith.constant 0 : index
    %3 = vector.load %arg2[%c0, %c0_1] : memref<128x256xi8, #tpu.memory_space<vmem>>, vector<128x256xi8>
    %4 = arith.sitofp %3 : vector<128x256xi8> to vector<128x256xf32>
    %c0_2 = arith.constant 0 : index
    %c0_3 = arith.constant 0 : index
    %5 = vector.load %arg3[%c0_2, %c0_3] : memref<128x256xi8, #tpu.memory_space<vmem>>, vector<128x256xi8>
    %6 = arith.sitofp %5 : vector<128x256xi8> to vector<128x256xf32>
    %c0_4 = arith.constant 0 : index
    %c0_5 = arith.constant 0 : index
    %7 = vector.load %arg4[%c0_4, %c0_5] : memref<1x256xf32, #tpu.memory_space<vmem>>, vector<1x256xf32>
    %8 = vector.broadcast %7 : vector<1x256xf32> to vector<128x256xf32>
    %9 = arith.mulf %4, %8 : vector<128x256xf32>
    %c0_6 = arith.constant 0 : index
    %c0_7 = arith.constant 0 : index
    %10 = vector.load %arg5[%c0_6, %c0_7] : memref<128x1xf32, #tpu.memory_space<vmem>>, vector<128x1xf32>
    %11 = vector.broadcast %10 : vector<128x1xf32> to vector<128x256xf32>
    %12 = arith.mulf %6, %11 : vector<128x256xf32>
    %13 = arith.addf %9, %12 : vector<128x256xf32>
    %cst = arith.constant 5.000000e-01 : f32
    %14 = vector.broadcast %cst : f32 to vector<128x256xf32>
    %15 = arith.mulf %14, %13 : vector<128x256xf32>
    %16 = math.tanh %15 : vector<128x256xf32>
    %cst_8 = arith.constant 1.000000e+00 : f32
    %17 = vector.broadcast %cst_8 : f32 to vector<128x256xf32>
    %18 = arith.addf %16, %17 : vector<128x256xf32>
    %cst_9 = arith.constant 5.000000e-01 : f32
    %19 = vector.broadcast %cst_9 : f32 to vector<128x256xf32>
    %20 = arith.mulf %19, %18 : vector<128x256xf32>
    %21 = math.exp %20 : vector<128x256xf32>
    %c0_10 = arith.constant 0 : index
    %c0_11 = arith.constant 0 : index
    %22 = vector.load %arg9[%c0_10, %c0_11] : memref<128x1xf32, #tpu.memory_space<vmem>>, vector<128x1xf32>
    %cst_12 = arith.constant dense<0.000000e+00> : vector<128xf32>
    %23 = vector.multi_reduction <add>, %21, %cst_12 [1] : vector<128x256xf32> to vector<128xf32>
    %24 = vector.shape_cast %23 : vector<128xf32> to vector<128x1xf32>
    %25 = arith.addf %22, %24 : vector<128x1xf32>
    %c0_13 = arith.constant 0 : index
    %c0_14 = arith.constant 0 : index
    %26 = vector.load %arg9[%c0_13, %c0_14] : memref<128x1xf32, #tpu.memory_space<vmem>>, vector<128x1xf32>
    tpu.vector_store %arg9[%c0_13, %c0_14], %25 {strides = array<i32>} : memref<128x1xf32, #tpu.memory_space<vmem>>, vector<128x1xf32>,
    %c0_15 = arith.constant 0 : index
    %c0_16 = arith.constant 0 : index
    %27 = vector.load %arg8[%c0_15, %c0_16] : memref<128x256xf32, #tpu.memory_space<vmem>>, vector<128x256xf32>
    %28 = arith.truncf %21 : vector<128x256xf32> to vector<128x256xbf16>
    %c0_17 = arith.constant 0 : index
    %c0_18 = arith.constant 0 : index
    %29 = vector.load %arg6[%c0_17, %c0_18] : memref<256x256xbf16, #tpu.memory_space<vmem>>, vector<256x256xbf16>
    %cst_19 = arith.constant dense<0.000000e+00> : vector<128x256xf32>
    %30 = tpu.matmul %28, %29, %cst_19 {dimension_numbers = #tpu.dot_dimension_numbers<[1], [0], [0], [1], [0, 0, 1, 1], [], []>} : vector<128x256xbf16>, vector<256x256xbf16>, vector<128x256xf32> -> vector<128x256xf32>
    %31 = arith.addf %27, %30 : vector<128x256xf32>
    %c0_20 = arith.constant 0 : index
    %c0_21 = arith.constant 0 : index
    %32 = vector.load %arg8[%c0_20, %c0_21] : memref<128x256xf32, #tpu.memory_space<vmem>>, vector<128x256xf32>
    tpu.vector_store %arg8[%c0_20, %c0_21], %31 {strides = array<i32>} : memref<128x256xf32, #tpu.memory_space<vmem>>, vector<128x256xf32>,
    %c0_i32_22 = arith.constant 0 : i32
    %33 = arith.cmpi eq, %arg1, %c0_i32_22 : i32
    %34 = arith.extui %33 : i1 to i32
    %c0_i32_23 = arith.constant 0 : i32
    %35 = arith.cmpi ne, %34, %c0_i32_23 : i32
    scf.if %35 {
      %c0_24 = arith.constant 0 : index
      %c0_25 = arith.constant 0 : index
      %36 = vector.load %arg8[%c0_24, %c0_25] : memref<128x256xf32, #tpu.memory_space<vmem>>, vector<128x256xf32>
      %c0_26 = arith.constant 0 : index
      %c0_27 = arith.constant 0 : index
      %37 = vector.load %arg9[%c0_26, %c0_27] : memref<128x1xf32, #tpu.memory_space<vmem>>, vector<128x1xf32>
      %38 = tpu.reciprocal %37 {approx = true} : vector<128x1xf32> -> vector<128x1xf32>
      %39 = vector.broadcast %38 : vector<128x1xf32> to vector<128x256xf32>
      %40 = arith.mulf %36, %39 : vector<128x256xf32>
      %c0_28 = arith.constant 0 : index
      %c0_29 = arith.constant 0 : index
      %41 = vector.load %arg7[%c0_28, %c0_29] : memref<128x256xf32, #tpu.memory_space<vmem>>, vector<128x256xf32>
      tpu.vector_store %arg7[%c0_28, %c0_29], %40 {strides = array<i32>} : memref<128x256xf32, #tpu.memory_space<vmem>>, vector<128x256xf32>,
    } else {
    }
    return
  }
  func.func @transform_0(%arg0: i32, %arg1: i32) -> (i32, i32) {
    %c0_i32 = arith.constant 0 : i32
    return %arg0, %arg1 : i32, i32
  }
  func.func @transform_1(%arg0: i32, %arg1: i32) -> (i32, i32) {
    %c0_i32 = arith.constant 0 : i32
    return %arg0, %arg1 : i32, i32
  }
  func.func @transform_2(%arg0: i32, %arg1: i32) -> (i32, i32) {
    %c0_i32 = arith.constant 0 : i32
    %c0_i32_0 = arith.constant 0 : i32
    return %c0_i32, %arg1 : i32, i32
  }
  func.func @transform_3(%arg0: i32, %arg1: i32) -> (i32, i32) {
    %c0_i32 = arith.constant 0 : i32
    %c0_i32_0 = arith.constant 0 : i32
    return %arg0, %c0_i32 : i32, i32
  }
  func.func @transform_4(%arg0: i32, %arg1: i32) -> (i32, i32) {
    %c0_i32 = arith.constant 0 : i32
    %c0_i32_0 = arith.constant 0 : i32
    return %arg1, %c0_i32 : i32, i32
  }
  func.func @transform_5(%arg0: i32, %arg1: i32) -> (i32, i32) {
    %c0_i32 = arith.constant 0 : i32
    %c0_i32_0 = arith.constant 0 : i32
    return %arg0, %c0_i32 : i32, i32
  }
}

module attributes {stable_mosaic.version = 11 : i64} {
  func.func @_attn_kernel(%arg0: i32, %arg1: i32, %arg2: memref<128x256xi8, #tpu.memory_space<vmem>>, %arg3: memref<128x256xi8, #tpu.memory_space<vmem>>, %arg4: memref<1x256xf32, #tpu.memory_space<vmem>>, %arg5: memref<128x1xf32, #tpu.memory_space<vmem>>, %arg6: memref<256x128xbf16, #tpu.memory_space<vmem>>, %arg7: memref<128x128xf32, #tpu.memory_space<vmem>>, %arg8: memref<128x128xf32, #tpu.memory_space<vmem>>, %arg9: memref<128x1xf32, #tpu.memory_space<vmem>>) attributes {dimension_semantics = [#tpu.dimension_semantics<parallel>, #tpu.dimension_semantics<arbitrary>], iteration_bounds = array<i64: 2, 1>, scalar_prefetch = 0 : i64, scratch_operands = 2 : i64, tpu.core_type = #tpu.core_type<tc>, window_params = [{transform_indices = @transform_0, window_bounds = array<i64: 128, 256>}, {transform_indices = @transform_1, window_bounds = array<i64: 128, 256>}, {transform_indices = @transform_2, window_bounds = array<i64: 1, 256>}, {transform_indices = @transform_3, window_bounds = array<i64: 128, 1>}, {transform_indices = @transform_4, window_bounds = array<i64: 256, 128>}, {transform_indices = @transform_5, window_bounds = array<i64: 128, 128>}]} {
    %c0_i32 = arith.constant 0 : i32
    %0 = arith.cmpi eq, %arg1, %c0_i32 : i32
    %1 = arith.extui %0 : i1 to i32
    %c0_i32_0 = arith.constant 0 : i32
    %2 = arith.cmpi ne, %1, %c0_i32_0 : i32
    scf.if %2 {
      %cst_24 = arith.constant 0.000000e+00 : f32
      %36 = vector.broadcast %cst_24 : f32 to vector<128x128xf32>
      %c0_25 = arith.constant 0 : index
      %c0_26 = arith.constant 0 : index
      %37 = vector.load %arg8[%c0_25, %c0_26] : memref<128x128xf32, #tpu.memory_space<vmem>>, vector<128x128xf32>
      tpu.vector_store %arg8[%c0_25, %c0_26], %36 {strides = array<i32>} : memref<128x128xf32, #tpu.memory_space<vmem>>, vector<128x128xf32>,
      %cst_27 = arith.constant 0.000000e+00 : f32
      %38 = vector.broadcast %cst_27 : f32 to vector<128x1xf32>
      %c0_28 = arith.constant 0 : index
      %c0_29 = arith.constant 0 : index
      %39 = vector.load %arg9[%c0_28, %c0_29] : memref<128x1xf32, #tpu.memory_space<vmem>>, vector<128x1xf32>
      tpu.vector_store %arg9[%c0_28, %c0_29], %38 {strides = array<i32>} : memref<128x1xf32, #tpu.memory_space<vmem>>, vector<128x1xf32>,
    } else {
    }
    %c0 = arith.constant 0 : index
    %c0_1 = arith.constant 0 : index
    %3 = vector.load %arg2[%c0, %c0_1] : memref<128x256xi8, #tpu.memory_space<vmem>>, vector<128x256xi8>
    %4 = arith.sitofp %3 : vector<128x256xi8> to vector<128x256xf32>
    %c0_2 = arith.constant 0 : index
    %c0_3 = arith.constant 0 : index
    %5 = vector.load %arg3[%c0_2, %c0_3] : memref<128x256xi8, #tpu.memory_space<vmem>>, vector<128x256xi8>
    %6 = arith.sitofp %5 : vector<128x256xi8> to vector<128x256xf32>
    %c0_4 = arith.constant 0 : index
    %c0_5 = arith.constant 0 : index
    %7 = vector.load %arg4[%c0_4, %c0_5] : memref<1x256xf32, #tpu.memory_space<vmem>>, vector<1x256xf32>
    %8 = vector.broadcast %7 : vector<1x256xf32> to vector<128x256xf32>
    %9 = arith.mulf %4, %8 : vector<128x256xf32>
    %c0_6 = arith.constant 0 : index
    %c0_7 = arith.constant 0 : index
    %10 = vector.load %arg5[%c0_6, %c0_7] : memref<128x1xf32, #tpu.memory_space<vmem>>, vector<128x1xf32>
    %11 = vector.broadcast %10 : vector<128x1xf32> to vector<128x256xf32>
    %12 = arith.mulf %6, %11 : vector<128x256xf32>
    %13 = arith.addf %9, %12 : vector<128x256xf32>
    %cst = arith.constant 5.000000e-01 : f32
    %14 = vector.broadcast %cst : f32 to vector<128x256xf32>
    %15 = arith.mulf %14, %13 : vector<128x256xf32>
    %16 = math.tanh %15 : vector<128x256xf32>
    %cst_8 = arith.constant 1.000000e+00 : f32
    %17 = vector.broadcast %cst_8 : f32 to vector<128x256xf32>
    %18 = arith.addf %16, %17 : vector<128x256xf32>
    %cst_9 = arith.constant 5.000000e-01 : f32
    %19 = vector.broadcast %cst_9 : f32 to vector<128x256xf32>
    %20 = arith.mulf %19, %18 : vector<128x256xf32>
    %21 = math.exp %20 : vector<128x256xf32>
    %c0_10 = arith.constant 0 : index
    %c0_11 = arith.constant 0 : index
    %22 = vector.load %arg9[%c0_10, %c0_11] : memref<128x1xf32, #tpu.memory_space<vmem>>, vector<128x1xf32>
    %cst_12 = arith.constant dense<0.000000e+00> : vector<128xf32>
    %23 = vector.multi_reduction <add>, %21, %cst_12 [1] : vector<128x256xf32> to vector<128xf32>
    %24 = vector.shape_cast %23 : vector<128xf32> to vector<128x1xf32>
    %25 = arith.addf %22, %24 : vector<128x1xf32>
    %c0_13 = arith.constant 0 : index
    %c0_14 = arith.constant 0 : index
    %26 = vector.load %arg9[%c0_13, %c0_14] : memref<128x1xf32, #tpu.memory_space<vmem>>, vector<128x1xf32>
    tpu.vector_store %arg9[%c0_13, %c0_14], %25 {strides = array<i32>} : memref<128x1xf32, #tpu.memory_space<vmem>>, vector<128x1xf32>,
    %c0_15 = arith.constant 0 : index
    %c0_16 = arith.constant 0 : index
    %27 = vector.load %arg8[%c0_15, %c0_16] : memref<128x128xf32, #tpu.memory_space<vmem>>, vector<128x128xf32>
    %28 = arith.truncf %21 : vector<128x256xf32> to vector<128x256xbf16>
    %c0_17 = arith.constant 0 : index
    %c0_18 = arith.constant 0 : index
    %29 = vector.load %arg6[%c0_17, %c0_18] : memref<256x128xbf16, #tpu.memory_space<vmem>>, vector<256x128xbf16>
    %cst_19 = arith.constant dense<0.000000e+00> : vector<128x128xf32>
    %30 = tpu.matmul %28, %29, %cst_19 {dimension_numbers = #tpu.dot_dimension_numbers<[1], [0], [0], [1], [0, 0, 1, 1], [], []>} : vector<128x256xbf16>, vector<256x128xbf16>, vector<128x128xf32> -> vector<128x128xf32>
    %31 = arith.addf %27, %30 : vector<128x128xf32>
    %c0_20 = arith.constant 0 : index
    %c0_21 = arith.constant 0 : index
    %32 = vector.load %arg8[%c0_20, %c0_21] : memref<128x128xf32, #tpu.memory_space<vmem>>, vector<128x128xf32>
    tpu.vector_store %arg8[%c0_20, %c0_21], %31 {strides = array<i32>} : memref<128x128xf32, #tpu.memory_space<vmem>>, vector<128x128xf32>,
    %c0_i32_22 = arith.constant 0 : i32
    %33 = arith.cmpi eq, %arg1, %c0_i32_22 : i32
    %34 = arith.extui %33 : i1 to i32
    %c0_i32_23 = arith.constant 0 : i32
    %35 = arith.cmpi ne, %34, %c0_i32_23 : i32
    scf.if %35 {
      %c0_24 = arith.constant 0 : index
      %c0_25 = arith.constant 0 : index
      %36 = vector.load %arg8[%c0_24, %c0_25] : memref<128x128xf32, #tpu.memory_space<vmem>>, vector<128x128xf32>
      %c0_26 = arith.constant 0 : index
      %c0_27 = arith.constant 0 : index
      %37 = vector.load %arg9[%c0_26, %c0_27] : memref<128x1xf32, #tpu.memory_space<vmem>>, vector<128x1xf32>
      %38 = tpu.reciprocal %37 {approx = true} : vector<128x1xf32> -> vector<128x1xf32>
      %39 = vector.broadcast %38 : vector<128x1xf32> to vector<128x128xf32>
      %40 = arith.mulf %36, %39 : vector<128x128xf32>
      %c0_28 = arith.constant 0 : index
      %c0_29 = arith.constant 0 : index
      %41 = vector.load %arg7[%c0_28, %c0_29] : memref<128x128xf32, #tpu.memory_space<vmem>>, vector<128x128xf32>
      tpu.vector_store %arg7[%c0_28, %c0_29], %40 {strides = array<i32>} : memref<128x128xf32, #tpu.memory_space<vmem>>, vector<128x128xf32>,
    } else {
    }
    return
  }
  func.func @transform_0(%arg0: i32, %arg1: i32) -> (i32, i32) {
    %c0_i32 = arith.constant 0 : i32
    return %arg0, %arg1 : i32, i32
  }
  func.func @transform_1(%arg0: i32, %arg1: i32) -> (i32, i32) {
    %c0_i32 = arith.constant 0 : i32
    return %arg0, %arg1 : i32, i32
  }
  func.func @transform_2(%arg0: i32, %arg1: i32) -> (i32, i32) {
    %c0_i32 = arith.constant 0 : i32
    %c0_i32_0 = arith.constant 0 : i32
    return %c0_i32, %arg1 : i32, i32
  }
  func.func @transform_3(%arg0: i32, %arg1: i32) -> (i32, i32) {
    %c0_i32 = arith.constant 0 : i32
    %c0_i32_0 = arith.constant 0 : i32
    return %arg0, %c0_i32 : i32, i32
  }
  func.func @transform_4(%arg0: i32, %arg1: i32) -> (i32, i32) {
    %c0_i32 = arith.constant 0 : i32
    %c0_i32_0 = arith.constant 0 : i32
    return %arg1, %c0_i32 : i32, i32
  }
  func.func @transform_5(%arg0: i32, %arg1: i32) -> (i32, i32) {
    %c0_i32 = arith.constant 0 : i32
    %c0_i32_0 = arith.constant 0 : i32
    return %arg0, %c0_i32 : i32, i32
  }
}

module attributes {stable_mosaic.version = 11 : i64} {
  func.func @_proj_kernel(%arg0: i32, %arg1: memref<128x256xf32, #tpu.memory_space<vmem>>, %arg2: memref<256x128xbf16, #tpu.memory_space<vmem>>, %arg3: memref<1x128xf32, #tpu.memory_space<vmem>>, %arg4: memref<128x2xf32, #tpu.memory_space<vmem>>, %arg5: memref<1x2xf32, #tpu.memory_space<vmem>>, %arg6: memref<128x128xbf16, #tpu.memory_space<vmem>>, %arg7: memref<128x1xf32, #tpu.memory_space<vmem>>, %arg8: memref<128x1xf32, #tpu.memory_space<vmem>>) attributes {dimension_semantics = [#tpu.dimension_semantics<parallel>], iteration_bounds = array<i64: 2>, scalar_prefetch = 0 : i64, scratch_operands = 0 : i64, tpu.core_type = #tpu.core_type<tc>, window_params = [{transform_indices = @transform_0, window_bounds = array<i64: 128, 256>}, {pipeline_mode = #tpu.pipeline_mode<synchronous>, transform_indices = @transform_1, window_bounds = array<i64: 256, 128>}, {pipeline_mode = #tpu.pipeline_mode<synchronous>, transform_indices = @transform_2, window_bounds = array<i64: 1, 128>}, {pipeline_mode = #tpu.pipeline_mode<synchronous>, transform_indices = @transform_3, window_bounds = array<i64: 128, 2>}, {pipeline_mode = #tpu.pipeline_mode<synchronous>, transform_indices = @transform_4, window_bounds = array<i64: 1, 2>}, {transform_indices = @transform_5, window_bounds = array<i64: 128, 128>}, {transform_indices = @transform_6, window_bounds = array<i64: 128, 1>}, {transform_indices = @transform_7, window_bounds = array<i64: 128, 1>}]} {
    %c0 = arith.constant 0 : index
    %c0_0 = arith.constant 0 : index
    %0 = vector.load %arg1[%c0, %c0_0] : memref<128x256xf32, #tpu.memory_space<vmem>>, vector<128x256xf32>
    %1 = arith.truncf %0 : vector<128x256xf32> to vector<128x256xbf16>
    %c0_1 = arith.constant 0 : index
    %c0_2 = arith.constant 0 : index
    %2 = vector.load %arg2[%c0_1, %c0_2] : memref<256x128xbf16, #tpu.memory_space<vmem>>, vector<256x128xbf16>
    %cst = arith.constant dense<0.000000e+00> : vector<128x128xf32>
    %3 = tpu.matmul %1, %2, %cst {dimension_numbers = #tpu.dot_dimension_numbers<[1], [0], [0], [1], [0, 0, 1, 1], [], []>} : vector<128x256xbf16>, vector<256x128xbf16>, vector<128x128xf32> -> vector<128x128xf32>
    %c0_3 = arith.constant 0 : index
    %c0_4 = arith.constant 0 : index
    %4 = vector.load %arg3[%c0_3, %c0_4] : memref<1x128xf32, #tpu.memory_space<vmem>>, vector<1x128xf32>
    %5 = vector.broadcast %4 : vector<1x128xf32> to vector<128x128xf32>
    %6 = arith.addf %3, %5 : vector<128x128xf32>
    %cst_5 = arith.constant 0.000000e+00 : f32
    %7 = vector.broadcast %cst_5 : f32 to vector<128x128xf32>
    %8 = arith.maximumf %6, %7 : vector<128x128xf32>
    %9 = arith.truncf %8 : vector<128x128xf32> to vector<128x128xbf16>
    %c0_6 = arith.constant 0 : index
    %c0_7 = arith.constant 0 : index
    %10 = vector.load %arg6[%c0_6, %c0_7] : memref<128x128xbf16, #tpu.memory_space<vmem>>, vector<128x128xbf16>
    tpu.vector_store %arg6[%c0_6, %c0_7], %9 {strides = array<i32>} : memref<128x128xbf16, #tpu.memory_space<vmem>>, vector<128x128xbf16>,
    %c0_8 = arith.constant 0 : index
    %c0_9 = arith.constant 0 : index
    %11 = vector.load %arg4[%c0_8, %c0_9] : memref<128x2xf32, #tpu.memory_space<vmem>>, vector<128x2xf32>
    %cst_10 = arith.constant dense<0.000000e+00> : vector<128x2xf32>
    %12 = tpu.matmul %8, %11, %cst_10 {dimension_numbers = #tpu.dot_dimension_numbers<[1], [0], [0], [1], [0, 0, 1, 1], [], []>} : vector<128x128xf32>, vector<128x2xf32>, vector<128x2xf32> -> vector<128x2xf32>
    %c0_11 = arith.constant 0 : index
    %c0_12 = arith.constant 0 : index
    %13 = vector.load %arg5[%c0_11, %c0_12] : memref<1x2xf32, #tpu.memory_space<vmem>>, vector<1x2xf32>
    %14 = vector.broadcast %13 : vector<1x2xf32> to vector<128x2xf32>
    %15 = arith.addf %12, %14 : vector<128x2xf32>
    %16 = vector.extract_strided_slice %15 {offsets = [0, 0], sizes = [128, 1], strides = [1, 1]} : vector<128x2xf32> to vector<128x1xf32>
    %c0_13 = arith.constant 0 : index
    %c0_14 = arith.constant 0 : index
    %17 = vector.load %arg7[%c0_13, %c0_14] : memref<128x1xf32, #tpu.memory_space<vmem>>, vector<128x1xf32>
    tpu.vector_store %arg7[%c0_13, %c0_14], %16 {strides = array<i32>} : memref<128x1xf32, #tpu.memory_space<vmem>>, vector<128x1xf32>,
    %18 = vector.extract_strided_slice %15 {offsets = [0, 1], sizes = [128, 1], strides = [1, 1]} : vector<128x2xf32> to vector<128x1xf32>
    %c0_15 = arith.constant 0 : index
    %c0_16 = arith.constant 0 : index
    %19 = vector.load %arg8[%c0_15, %c0_16] : memref<128x1xf32, #tpu.memory_space<vmem>>, vector<128x1xf32>
    tpu.vector_store %arg8[%c0_15, %c0_16], %18 {strides = array<i32>} : memref<128x1xf32, #tpu.memory_space<vmem>>, vector<128x1xf32>,
    return
  }
  func.func @transform_0(%arg0: i32) -> (i32, i32) {
    %c0_i32 = arith.constant 0 : i32
    %c0_i32_0 = arith.constant 0 : i32
    return %arg0, %c0_i32 : i32, i32
  }
  func.func @transform_1(%arg0: i32) -> (i32, i32) {
    %c0_i32 = arith.constant 0 : i32
    %c0_i32_0 = arith.constant 0 : i32
    %c0_i32_1 = arith.constant 0 : i32
    return %c0_i32, %c0_i32_0 : i32, i32
  }
  func.func @transform_2(%arg0: i32) -> (i32, i32) {
    %c0_i32 = arith.constant 0 : i32
    %c0_i32_0 = arith.constant 0 : i32
    %c0_i32_1 = arith.constant 0 : i32
    return %c0_i32, %c0_i32_0 : i32, i32
  }
  func.func @transform_3(%arg0: i32) -> (i32, i32) {
    %c0_i32 = arith.constant 0 : i32
    %c0_i32_0 = arith.constant 0 : i32
    %c0_i32_1 = arith.constant 0 : i32
    return %c0_i32, %c0_i32_0 : i32, i32
  }
  func.func @transform_4(%arg0: i32) -> (i32, i32) {
    %c0_i32 = arith.constant 0 : i32
    %c0_i32_0 = arith.constant 0 : i32
    %c0_i32_1 = arith.constant 0 : i32
    return %c0_i32, %c0_i32_0 : i32, i32
  }
  func.func @transform_5(%arg0: i32) -> (i32, i32) {
    %c0_i32 = arith.constant 0 : i32
    %c0_i32_0 = arith.constant 0 : i32
    return %arg0, %c0_i32 : i32, i32
  }
  func.func @transform_6(%arg0: i32) -> (i32, i32) {
    %c0_i32 = arith.constant 0 : i32
    %c0_i32_0 = arith.constant 0 : i32
    return %arg0, %c0_i32 : i32, i32
  }
  func.func @transform_7(%arg0: i32) -> (i32, i32) {
    %c0_i32 = arith.constant 0 : i32
    %c0_i32_0 = arith.constant 0 : i32
    return %arg0, %c0_i32 : i32, i32
  }
}

</mosaic_0001>

<bundles_post_ra>
// kernel: encoder_forward.6
= control target key start
LH: loop header
LB: loop body
LE: loop exit
PB: predicated region body
PF: predicated region fallthrough
CT: control target
= control target key end

     0   :  { %s1442_s24 = smov 0   ;;  %s1980_s0 = inlined_call_operand.vmem [shape: f32[256,32], index: 0, kind: input, shape index: {}]   ;;  %s1981_s1 = inlined_call_operand.vmem [shape: bf16[32,512], index: 1, kind: input, shape index: {}]   ;;  %s1982_s2 = inlined_call_operand.vmem [shape: f32[1,512], index: 2, kind: input, shape index: {}]   ;;  %s1983_s3 = inlined_call_operand.vmem [shape: f32[512,2], index: 3, kind: input, shape index: {}]   ;;  %s1984_s4 = inlined_call_operand.vmem [shape: f32[1,2], index: 4, kind: input, shape index: {}]   ;;  %s1985_s5 = inlined_call_operand.vmem [shape: bf16[256,512], index: 5, kind: output, shape index: {0}]   ;;  %s1986_s6 = inlined_call_operand.vmem [shape: f32[256,1], index: 6, kind: output, shape index: {1}]   ;;  %s1987_s7 = inlined_call_operand.vmem [shape: f32[256,1], index: 7, kind: output, shape index: {2}]  }
   0x1 LB: > { %s1294_s25 = sadd.s32 4294967295, %s1399_s24   ;;  %p1298_p0 = scmp.ge.s32.totalorder %s1399_s24, 1  ;;  %s1399_s24 = sphi %s1442_s24, %s18_s24  }
   0x2   : > { %p243_p1 = scmp.lt.s32.totalorder %s1399_s24, 3 }
   0x4   : > { %p244_p2 = pnand %p1298_p0, %p243_p1 }
   0x5   : > { %s1299_s14 = sshll.u32 (!%p244_p2), %s1294_s25, 4  ;;  %s1401_s25 = smov (!%p244_p2), 127  }
   0x6   : > { %247 = sbr.rel (%p244_p2) target bundleno = 537 (0x219), region = 40  ;;  %p287_p3 = scmp.lt.s32.totalorder (!%p244_p2), %s1299_s14, 31 }
   0xb   : > { %v1326_v0 = vld [vmem:[%s1981_s1 + $0x20] sm:$0xf]  ;;  %v1381_v1 = vld [vmem:[%s1981_s1 + $0x2c] sm:$0xf0]  ;;  %v1379_v2 = vld [vmem:[%s1981_s1 + $0x24] sm:$0xf] }
   0xc   : > { %v1327_v3 = vor.u32 %v1381_v1, %v1326_v0  ;;  %v1328_v4 = vld [vmem:[%s1981_s1 + $0x30] sm:$0xf0]  ;;  %v1334_v5 = vld [vmem:[%s1981_s1 + $0x28] sm:$0xf]  ;;  %v1382_v6 = vld [vmem:[%s1981_s1 + $0x34] sm:$0xf0] }
   0xd   : > { %v1331_v7 = vor.u32 %v1379_v2, %v1328_v4  ;;  %v1335_v8 = vor.u32 %v1382_v6, %v1334_v5  ;;  %v1380_v9 = vld [vmem:[%s1981_s1 + $0x2c] sm:$0xf]  ;;  %v1336_v10 = vld [vmem:[%s1981_s1 + $0x38] sm:$0xf0]  ;;  %v1310_v11 = vld [vmem:[%s1981_s1] sm:$0xf] }
   0xe   : > { %425 = vmatpush.bf16.msra.mxu0 %v1327_v3  ;;  %v1339_v12 = vor.u32 %v1380_v9, %v1336_v10  ;;  %v1377_v13 = vld [vmem:[%s1981_s1 + $0xc] sm:$0xf0]  ;;  %v1375_v14 = vld [vmem:[%s1981_s1 + $0x4] sm:$0xf]  ;;  %v1312_v15 = vld [vmem:[%s1981_s1 + $0x10] sm:$0xf0] }
   0xf   : > { %474 = vmatpush.bf16.msra.mxu1 %v1331_v7  ;;  %523 = vmatpush.bf16.msra.mxu2 %v1335_v8  ;;  %v1311_v16 = vor.u32 %v1377_v13, %v1310_v11  ;;  %v1315_v17 = vor.u32 %v1375_v14, %v1312_v15  ;;  %v1318_v18 = vld [vmem:[%s1981_s1 + $0x8] sm:$0xf]  ;;  %v1378_v19 = vld [vmem:[%s1981_s1 + $0x14] sm:$0xf0]  ;;  %v1376_v20 = vld [vmem:[%s1981_s1 + $0xc] sm:$0xf] }
  0x10   : > { %572 = vmatpush.bf16.msra.mxu3 %v1339_v12  ;;  %v1319_v21 = vor.u32 %v1378_v19, %v1318_v18  ;;  %v1320_v22 = vld [vmem:[%s1981_s1 + $0x18] sm:$0xf0]  ;;  %s1989_s14 = smov (!%p287_p3, %s1299_s14), 31  ;;  %v789_v28 = vld [vmem:[%s1983_s3 + $0x170] sm:$0xff]  ;;  %v788_v32 = vld [vmem:[%s1983_s3 + $0x168] sm:$0xff]  ;;  %vm394_vm0 = vcmask 261120  }
  0x11   : > { %v1323_v23 = vor.u32 %v1376_v20, %v1320_v22  ;;  %v790_v24 = vld [vmem:[%s1983_s3 + $0x178] sm:$0xff]  ;;  %v757_v29 = vld [vmem:[%s1983_s3 + $0x70] sm:$0xff]  ;;  %s1524_s30 = sshll.u32 %s1989_s14, 3  ;;  %v756_v33 = vld [vmem:[%s1983_s3 + $0x68] sm:$0xff]  ;;  %vm1071_vm1 = vcmask 7168  }
  0x12   : > { %426 = vmatpush.bf16.msra.mxu0 %v1311_v16  ;;  %v758_v25 = vld [vmem:[%s1983_s3 + $0x78] sm:$0xff]  ;;  %v805_v30 = vld [vmem:[%s1983_s3 + $0x1f0] sm:$0xff]  ;;  %s1536_s15 = scalar_lea.vmem %s1980_s0, %s1524_s30  ;;  %v804_v34 = vld [vmem:[%s1983_s3 + $0x1e8] sm:$0xff]  ;;  %s1874_s20 = scalar_lea.vmem %s1986_s6, %s1524_s30 }
  0x13   : > { %v806_v26 = vld [vmem:[%s1983_s3 + $0x1f8] sm:$0xff]  ;;  %475 = vmatpush.bf16.msra.mxu1 %v1315_v17  ;;  %524 = vmatpush.bf16.msra.mxu2 %v1319_v21  ;;  %v773_v31 = vld [vmem:[%s1983_s3 + $0xf0] sm:$0xff]  ;;  %v312_v35 = vld [vmem:[%s1536_s15] sm:$0xff]  ;;  %s1940_s23 = scalar_lea.vmem %s1987_s7, %s1524_s30 }
  0x14   : > { %v774_v27 = vld [vmem:[%s1983_s3 + $0xf8] sm:$0xff]  ;;  %573 = vmatpush.bf16.msra.mxu3 %v1323_v23  ;;  %v313_v36 = vld [vmem:[%s1536_s15 + $0x8] sm:$0xff]  ;;  %v787_v39 = vld [vmem:[%s1983_s3 + $0x160] sm:$0xff] }
  0x15   : > { %v328_v37 = vpack.c.bf16 %v313_v36, %v312_v35  ;;  %v772_v38 = vld [vmem:[%s1983_s3 + $0xe8] sm:$0xff]  ;;  %v755_v40 = vld [vmem:[%s1983_s3 + $0x60] sm:$0xff]  ;;  %v786_v43 = vld [vmem:[%s1983_s3 + $0x158] sm:$0xff] }
  0x16   : > { %811 = vmatpush.msrb.mxu0 %v758_v25  ;;  %v803_v41 = vld [vmem:[%s1983_s3 + $0x1e0] sm:$0xff]  ;;  %v754_v44 = vld [vmem:[%s1983_s3 + $0x58] sm:$0xff]  ;;  %v314_v47 = vld [vmem:[%s1536_s15 + $0x10] sm:$0xff] }
  0x17   : > { %941 = vmatpush.msrb.mxu2 %v790_v24  ;;  %876 = vmatpush.msrb.mxu1 %v774_v27  ;;  %v771_v42 = vld [vmem:[%s1983_s3 + $0xe0] sm:$0xff]  ;;  %v802_v45 = vld [vmem:[%s1983_s3 + $0x1d8] sm:$0xff]  ;;  %v785_v50 = vld [vmem:[%s1983_s3 + $0x150] sm:$0xff] }
  0x18   : > { %1006 = vmatpush.msrb.mxu3 %v806_v26  ;;  %812 = vmatpush.msrb.mxu0 %v757_v29  ;;  %v770_v46 = vld [vmem:[%s1983_s3 + $0xd8] sm:$0xff]  ;;  %v753_v51 = vld [vmem:[%s1983_s3 + $0x50] sm:$0xff]  ;;  %v784_v54 = vld [vmem:[%s1983_s3 + $0x148] sm:$0xff] }
  0x19   : > { %942 = vmatpush.msrb.mxu2 %v789_v28  ;;  %877 = vmatpush.msrb.mxu1 %v773_v31  ;;  %v315_v48 = vld [vmem:[%s1536_s15 + $0x18] sm:$0xff]  ;;  %v801_v52 = vld [vmem:[%s1983_s3 + $0x1d0] sm:$0xff]  ;;  %v752_v55 = vld [vmem:[%s1983_s3 + $0x48] sm:$0xff] }
  0x1a   : > { %1007 = vmatpush.msrb.mxu3 %v805_v30  ;;  %813 = vmatpush.msrb.mxu0 %v756_v33  ;;  %v329_v49 = vpack.c.bf16 %v315_v48, %v314_v47  ;;  %v769_v53 = vld [vmem:[%s1983_s3 + $0xd0] sm:$0xff]  ;;  %v800_v56 = vld [vmem:[%s1983_s3 + $0x1c8] sm:$0xff]  ;;  %v316_v58 = vld [vmem:[%s1536_s15 + $0x20] sm:$0xff] }
  0x1b   : > { %943 = vmatpush.msrb.mxu2 %v788_v32  ;;  %1340 = vmatmul.msk.bf16.vlgmr.msra.gmra.mxu0 %vm394_vm0, %v328_v37  ;;  %v768_v57 = vld [vmem:[%s1983_s3 + $0xc8] sm:$0xff]  ;;  %v783_v61 = vld [vmem:[%s1983_s3 + $0x140] sm:$0xff]  ;;  %v782_v1 = vld [vmem:[%s1983_s3 + $0x138] sm:$0xff] }
  0x1c   : > { %1008 = vmatpush.msrb.mxu3 %v804_v34  ;;  %1348 = vmatmul.msk.bf16.vlgmr.msra.gmra.mxu1 %vm394_vm0, %v328_v37  ;;  %v317_v59 = vld [vmem:[%s1536_s15 + $0x28] sm:$0xff]  ;;  %v751_v62 = vld [vmem:[%s1983_s3 + $0x40] sm:$0xff]  ;;  %v750_v2 = vld [vmem:[%s1983_s3 + $0x38] sm:$0xff] }
  0x1d   : > { %1356 = vmatmul.msk.bf16.vlgmr.msra.gmra.mxu2 %vm394_vm0, %v328_v37  ;;  %1364 = vmatmul.msk.bf16.vlgmr.msra.gmra.mxu3 %vm394_vm0, %v328_v37  ;;  %v330_v60 = vpack.c.bf16 %v317_v59, %v316_v58  ;;  %v799_v63 = vld [vmem:[%s1983_s3 + $0x1c0] sm:$0xff]  ;;  %v798_v3 = vld [vmem:[%s1983_s3 + $0x1b8] sm:$0xff]  ;;  %v318_v5 = vld [vmem:[%s1536_s15 + $0x30] sm:$0xff] }
  0x1e   : > { %878 = vmatpush.msrb.mxu1 %v772_v38  ;;  %944 = vmatpush.msrb.mxu2 %v787_v39  ;;  %v767_v0 = vld [vmem:[%s1983_s3 + $0xc0] sm:$0xff]  ;;  %v766_v4 = vld [vmem:[%s1983_s3 + $0xb8] sm:$0xff]  ;;  %v781_v8 = vld [vmem:[%s1983_s3 + $0x130] sm:$0xff] }
  0x1f   : > { %814 = vmatpush.msrb.mxu0 %v755_v40  ;;  %1009 = vmatpush.msrb.mxu3 %v803_v41  ;;  %v319_v6 = vld [vmem:[%s1536_s15 + $0x38] sm:$0xff]  ;;  %v749_v9 = vld [vmem:[%s1983_s3 + $0x30] sm:$0xff]  ;;  %v780_v12 = vld [vmem:[%s1983_s3 + $0x128] sm:$0xff] }
  0x20   : > { %879 = vmatpush.msrb.mxu1 %v771_v42  ;;  %945 = vmatpush.msrb.mxu2 %v786_v43  ;;  %v331_v7 = vpack.c.bf16 %v319_v6, %v318_v5  ;;  %v797_v10 = vld [vmem:[%s1983_s3 + $0x1b0] sm:$0xff]  ;;  %v748_v13 = vld [vmem:[%s1983_s3 + $0x28] sm:$0xff]  ;;  %v320_v16 = vld [vmem:[%s1536_s15 + $0x40] sm:$0xff] }
  0x21   : > { %815 = vmatpush.msrb.mxu0 %v754_v44  ;;  %1010 = vmatpush.msrb.mxu3 %v802_v45  ;;  %v765_v11 = vld [vmem:[%s1983_s3 + $0xb0] sm:$0xff]  ;;  %v796_v14 = vld [vmem:[%s1983_s3 + $0x1a8] sm:$0xff]  ;;  %v779_v19 = vld [vmem:[%s1983_s3 + $0x120] sm:$0xff] }
  0x22   : > { %880 = vmatpush.msrb.mxu1 %v770_v46  ;;  %946 = vmatpush.msrb.mxu2 %v785_v50  ;;  %v764_v15 = vld [vmem:[%s1983_s3 + $0xa8] sm:$0xff]  ;;  %v747_v20 = vld [vmem:[%s1983_s3 + $0x20] sm:$0xff]  ;;  %v778_v23 = vld [vmem:[%s1983_s3 + $0x118] sm:$0xff] }
  0x23   : > { %816 = vmatpush.msrb.mxu0 %v753_v51  ;;  %1011 = vmatpush.msrb.mxu3 %v801_v52  ;;  %v321_v17 = vld [vmem:[%s1536_s15 + $0x48] sm:$0xff]  ;;  %v795_v21 = vld [vmem:[%s1983_s3 + $0x1a0] sm:$0xff]  ;;  %v746_v24 = vld [vmem:[%s1983_s3 + $0x18] sm:$0xff] }
  0x24   : > { %881 = vmatpush.msrb.mxu1 %v769_v53  ;;  %947 = vmatpush.msrb.mxu2 %v784_v54  ;;  %v332_v18 = vpack.c.bf16 %v321_v17, %v320_v16  ;;  %v763_v22 = vld [vmem:[%s1983_s3 + $0xa0] sm:$0xff]  ;;  %v794_v25 = vld [vmem:[%s1983_s3 + $0x198] sm:$0xff]  ;;  %v322_v27 = vld [vmem:[%s1536_s15 + $0x50] sm:$0xff] }
  0x25   : > { %817 = vmatpush.msrb.mxu0 %v752_v55  ;;  %1012 = vmatpush.msrb.mxu3 %v800_v56  ;;  %v762_v26 = vld [vmem:[%s1983_s3 + $0x98] sm:$0xff]  ;;  %v777_v30 = vld [vmem:[%s1983_s3 + $0x110] sm:$0xff]  ;;  %v776_v34 = vld [vmem:[%s1983_s3 + $0x108] sm:$0xff] }
  0x26   : > { %882 = vmatpush.msrb.mxu1 %v768_v57  ;;  %948 = vmatpush.msrb.mxu2 %v783_v61  ;;  %v323_v28 = vld [vmem:[%s1536_s15 + $0x58] sm:$0xff]  ;;  %v745_v31 = vld [vmem:[%s1983_s3 + $0x10] sm:$0xff]  ;;  %v744_v35 = vld [vmem:[%s1983_s3 + $0x8] sm:$0xff] }
  0x27   : > { %818 = vmatpush.msrb.mxu0 %v751_v62  ;;  %1013 = vmatpush.msrb.mxu3 %v799_v63  ;;  %v333_v29 = vpack.c.bf16 %v323_v28, %v322_v27  ;;  %v793_v32 = vld [vmem:[%s1983_s3 + $0x190] sm:$0xff]  ;;  %v792_v36 = vld [vmem:[%s1983_s3 + $0x188] sm:$0xff]  ;;  %v324_v38 = vld [vmem:[%s1536_s15 + $0x60] sm:$0xff] }
  0x28   : > { %883 = vmatpush.msrb.mxu1 %v767_v0  ;;  %949 = vmatpush.msrb.mxu2 %v782_v1  ;;  %v761_v33 = vld [vmem:[%s1983_s3 + $0x90] sm:$0xff]  ;;  %v760_v37 = vld [vmem:[%s1983_s3 + $0x88] sm:$0xff]  ;;  %v743_v41 = vld [vmem:[%s1983_s3] sm:$0xff] }
  0x29   : > { %819 = vmatpush.msrb.mxu0 %v750_v2  ;;  %1014 = vmatpush.msrb.mxu3 %v798_v3  ;;  %v325_v39 = vld [vmem:[%s1536_s15 + $0x68] sm:$0xff]  ;;  %v759_v42 = vld [vmem:[%s1983_s3 + $0x80] sm:$0xff]  ;;  %v326_v45 = vld [vmem:[%s1536_s15 + $0x70] sm:$0xff] }
  0x2a   : > { %884 = vmatpush.msrb.mxu1 %v766_v4  ;;  %950 = vmatpush.msrb.mxu2 %v781_v8  ;;  %v334_v40 = vpack.c.bf16 %v325_v39, %v324_v38  ;;  %v775_v43 = vld [vmem:[%s1983_s3 + $0x100] sm:$0xff]  ;;  %v327_v46 = vld [vmem:[%s1536_s15 + $0x78] sm:$0xff]  ;;  %s1374_s15 = sshll.u32 %s1989_s14, 4 }
  0x2b   : > { %1341 = vmatmul.msk.bf16.gmra.mxu0 %vm394_vm0, %v329_v49  ;;  %1015 = vmatpush.msrb.mxu3 %v797_v10  ;;  %v791_v44 = vld [vmem:[%s1983_s3 + $0x180] sm:$0xff]  ;;  %v335_v47 = vpack.c.bf16 %v327_v46, %v326_v45  ;;  %s1768_s16 = scalar_lea.vmem %s1985_s5, %s1374_s15 }
  0x2c   : > { %1349 = vmatmul.msk.bf16.gmra.mxu1 %vm394_vm0, %v329_v49  ;;  %820 = vmatpush.msrb.mxu0 %v749_v9  ;;  %v344_v48 = vld [vmem:[%s1982_s2] sm:$0xf] }
  0x2d   : > { %1357 = vmatmul.msk.bf16.gmra.mxu2 %vm394_vm0, %v329_v49  ;;  %1365 = vmatmul.msk.bf16.gmra.mxu3 %vm394_vm0, %v329_v49  ;;  %v1754_v49 = vperm.slane %v344_v48, 0  ;;  %v1756_v50 = vperm.slane %v344_v48, 1  ;;  %v1761_v57 = vperm.slane %v344_v48, 2  ;;  %v1763_v58 = vperm.slane %v344_v48, 3 }
  0x2e   : > { %885 = vmatpush.msrb.mxu1 %v765_v11  ;;  %951 = vmatpush.msrb.mxu2 %v780_v12 }
  0x2f   : > { %821 = vmatpush.msrb.mxu0 %v748_v13  ;;  %1016 = vmatpush.msrb.mxu3 %v796_v14 }
  0x30   : > { %886 = vmatpush.msrb.mxu1 %v764_v15  ;;  %952 = vmatpush.msrb.mxu2 %v779_v19 }
  0x31   : > { %822 = vmatpush.msrb.mxu0 %v747_v20  ;;  %1017 = vmatpush.msrb.mxu3 %v795_v21 }
  0x32   : > { %887 = vmatpush.msrb.mxu1 %v763_v22  ;;  %953 = vmatpush.msrb.mxu2 %v778_v23 }
  0x33   : > { %823 = vmatpush.msrb.mxu0 %v746_v24  ;;  %1018 = vmatpush.msrb.mxu3 %v794_v25 }
  0x34   : > { %888 = vmatpush.msrb.mxu1 %v762_v26  ;;  %954 = vmatpush.msrb.mxu2 %v777_v30 }
  0x35   : > { %824 = vmatpush.msrb.mxu0 %v745_v31  ;;  %1019 = vmatpush.msrb.mxu3 %v793_v32 }
  0x36   : > { %889 = vmatpush.msrb.mxu1 %v761_v33  ;;  %955 = vmatpush.msrb.mxu2 %v776_v34 }
  0x37   : > { %825 = vmatpush.msrb.mxu0 %v744_v35  ;;  %1020 = vmatpush.msrb.mxu3 %v792_v36 }
  0x38   : > { %890 = vmatpush.msrb.mxu1 %v760_v37  ;;  %956 = vmatpush.msrb.mxu2 %v775_v43 }
  0x39   : > { %826 = vmatpush.msrb.mxu0 %v743_v41  ;;  %1021 = vmatpush.msrb.mxu3 %v791_v44 }
  0x3a   : > { %891 = vmatpush.msrb.mxu1 %v759_v42 }
  0x3b   : > { %1342 = vmatmul.msk.bf16.gmra.mxu0 %vm394_vm0, %v330_v60 }
  0x3c   : > { %1350 = vmatmul.msk.bf16.gmra.mxu1 %vm394_vm0, %v330_v60 }
  0x3d   : > { %1358 = vmatmul.msk.bf16.gmra.mxu2 %vm394_vm0, %v330_v60  ;;  %1366 = vmatmul.msk.bf16.gmra.mxu3 %vm394_vm0, %v330_v60 }
  0x4b   : > { %1343 = vmatmul.msk.bf16.gmra.mxu0 %vm394_vm0, %v331_v7 }
  0x4c   : > { %1351 = vmatmul.msk.bf16.gmra.mxu1 %vm394_vm0, %v331_v7 }
  0x4d   : > { %1359 = vmatmul.msk.bf16.gmra.mxu2 %vm394_vm0, %v331_v7  ;;  %1367 = vmatmul.msk.bf16.gmra.mxu3 %vm394_vm0, %v331_v7 }
  0x5b   : > { %1344 = vmatmul.msk.bf16.gmra.mxu0 %vm394_vm0, %v332_v18 }
  0x5c   : > { %1352 = vmatmul.msk.bf16.gmra.mxu1 %vm394_vm0, %v332_v18 }
  0x5d   : > { %1360 = vmatmul.msk.bf16.gmra.mxu2 %vm394_vm0, %v332_v18  ;;  %1368 = vmatmul.msk.bf16.gmra.mxu3 %vm394_vm0, %v332_v18 }
  0x6b   : > { %1345 = vmatmul.msk.bf16.gmra.mxu0 %vm394_vm0, %v333_v29 }
  0x6c   : > { %1353 = vmatmul.msk.bf16.gmra.mxu1 %vm394_vm0, %v333_v29 }
  0x6d   : > { %1361 = vmatmul.msk.bf16.gmra.mxu2 %vm394_vm0, %v333_v29  ;;  %1369 = vmatmul.msk.bf16.gmra.mxu3 %vm394_vm0, %v333_v29 }
  0x7b   : > { %1346 = vmatmul.msk.bf16.gmra.mxu0 %vm394_vm0, %v334_v40 }
  0x7c   : > { %1354 = vmatmul.msk.bf16.gmra.mxu1 %vm394_vm0, %v334_v40 }
  0x7d   : > { %1362 = vmatmul.msk.bf16.gmra.mxu2 %vm394_vm0, %v334_v40  ;;  %1370 = vmatmul.msk.bf16.gmra.mxu3 %vm394_vm0, %v334_v40 }
  0x8b   : > { %1347 = vmatmul.msk.bf16.gmra.mxu0 %vm394_vm0, %v335_v47 }
  0x8c   : > { %1355 = vmatmul.msk.bf16.gmra.mxu1 %vm394_vm0, %v335_v47 }
  0x8d   : > { %1363 = vmatmul.msk.bf16.gmra.mxu2 %vm394_vm0, %v335_v47  ;;  %1371 = vmatmul.msk.bf16.gmra.mxu3 %vm394_vm0, %v335_v47 }
  0x98   : > { %v428_v51 = vpop.f32.mrf.mxu0 }
  0x99   : > { %v477_v52 = vpop.f32.mrf.mxu1  ;;  %v429_v53 = vadd.f32 %v428_v51, %v1754_v49 }
  0x9a   : > { %v478_v54 = vadd.f32 %v477_v52, %v1756_v50 }
  0x9b   : > { %v615_v55 = vmax.f32 %v429_v53, 0.0 }
  0x9c   : > { %v616_v56 = vmax.f32 %v478_v54, 0.0 }
  0x9d   : > { %827 = vmatmul.f32.vlgmr.msrb.gmra.mxu0 %v615_v55 }
  0x9e   : > { %v679_v59 = vpack.c.bf16 %v616_v56, %v615_v55  ;;  %892 = vmatmul.f32.vlgmr.msrb.gmra.mxu1 %v616_v56 }
  0xa0   : > { %711 = vst [vmem:[%s1768_s16] sm:$0xff] %v679_v59  ;;  %v526_v60 = vpop.f32.mrf.mxu2  ;;  %v575_v61 = vpop.f32.mrf.mxu3 }
  0xa1   : > { %v527_v62 = vadd.f32 %v526_v60, %v1761_v57  ;;  %v576_v63 = vadd.f32 %v575_v61, %v1763_v58  ;;  %v430_v0 = vpop.f32.mrf.mxu0  ;;  %v479_v1 = vpop.f32.mrf.mxu1 }
  0xa2   : > { %v431_v2 = vadd.f32 %v430_v0, %v1754_v49  ;;  %v480_v3 = vadd.f32 %v479_v1, %v1756_v50 }
  0xa3   : > { %v617_v4 = vmax.f32 %v527_v62, 0.0  ;;  %v618_v5 = vmax.f32 %v576_v63, 0.0 }
  0xa4   : > { %v619_v6 = vmax.f32 %v431_v2, 0.0  ;;  %v620_v7 = vmax.f32 %v480_v3, 0.0 }
  0xa5   : > { %v680_v8 = vpack.c.bf16 %v618_v5, %v617_v4  ;;  %957 = vmatmul.f32.vlgmr.msrb.gmra.mxu2 %v617_v4  ;;  %1022 = vmatmul.f32.vlgmr.msrb.gmra.mxu3 %v618_v5 }
  0xa6   : > { %830 = vmatmul.f32.gmra.mxu0 %v619_v6  ;;  %v681_v9 = vpack.c.bf16 %v620_v7, %v619_v6  ;;  %895 = vmatmul.f32.gmra.mxu1 %v620_v7 }
  0xa7   : > { %712 = vst [vmem:[%s1768_s16 + $0x8] sm:$0xff] %v680_v8 }
  0xa8   : > { %v528_v10 = vpop.f32.mrf.mxu2  ;;  %v577_v11 = vpop.f32.mrf.mxu3  ;;  %713 = vst [vmem:[%s1768_s16 + $0x10] sm:$0xff] %v681_v9 }
  0xa9   : > { %v529_v12 = vadd.f32 %v528_v10, %v1761_v57  ;;  %v578_v13 = vadd.f32 %v577_v11, %v1763_v58  ;;  %v433_v14 = vpop.f32.mrf.mxu0  ;;  %v482_v15 = vpop.f32.mrf.mxu1 }
  0xaa   : > { %v434_v16 = vadd.f32 %v433_v14, %v1754_v49  ;;  %v483_v17 = vadd.f32 %v482_v15, %v1756_v50 }
  0xab   : > { %v621_v18 = vmax.f32 %v529_v12, 0.0  ;;  %v622_v19 = vmax.f32 %v578_v13, 0.0 }
  0xac   : > { %v623_v20 = vmax.f32 %v434_v16, 0.0  ;;  %v624_v21 = vmax.f32 %v483_v17, 0.0 }
  0xad   : > { %960 = vmatmul.f32.gmra.mxu2 %v621_v18  ;;  %v682_v22 = vpack.c.bf16 %v622_v19, %v621_v18  ;;  %1025 = vmatmul.f32.gmra.mxu3 %v622_v19 }
  0xae   : > { %833 = vmatmul.f32.gmra.mxu0 %v623_v20  ;;  %v683_v23 = vpack.c.bf16 %v624_v21, %v623_v20  ;;  %898 = vmatmul.f32.gmra.mxu1 %v624_v21 }
  0xaf   : > { %714 = vst [vmem:[%s1768_s16 + $0x18] sm:$0xff] %v682_v22 }
  0xb0   : > { %v531_v24 = vpop.f32.mrf.mxu2  ;;  %v580_v25 = vpop.f32.mrf.mxu3  ;;  %715 = vst [vmem:[%s1768_s16 + $0x20] sm:$0xff] %v683_v23 }
  0xb1   : > { %v532_v26 = vadd.f32 %v531_v24, %v1761_v57  ;;  %v581_v27 = vadd.f32 %v580_v25, %v1763_v58  ;;  %v435_v28 = vpop.f32.mrf.mxu0  ;;  %v484_v29 = vpop.f32.mrf.mxu1 }
  0xb2   : > { %v436_v30 = vadd.f32 %v435_v28, %v1754_v49  ;;  %v485_v31 = vadd.f32 %v484_v29, %v1756_v50 }
  0xb3   : > { %v625_v32 = vmax.f32 %v532_v26, 0.0  ;;  %v626_v33 = vmax.f32 %v581_v27, 0.0 }
  0xb4   : > { %v627_v34 = vmax.f32 %v436_v30, 0.0  ;;  %v628_v35 = vmax.f32 %v485_v31, 0.0 }
  0xb5   : > { %963 = vmatmul.f32.gmra.mxu2 %v625_v32  ;;  %v684_v36 = vpack.c.bf16 %v626_v33, %v625_v32  ;;  %1028 = vmatmul.f32.gmra.mxu3 %v626_v33 }
  0xb6   : > { %836 = vmatmul.f32.gmra.mxu0 %v627_v34  ;;  %v685_v37 = vpack.c.bf16 %v628_v35, %v627_v34  ;;  %901 = vmatmul.f32.gmra.mxu1 %v628_v35 }
  0xb7   : > { %716 = vst [vmem:[%s1768_s16 + $0x28] sm:$0xff] %v684_v36 }
  0xb8   : > { %v533_v38 = vpop.f32.mrf.mxu2  ;;  %v582_v39 = vpop.f32.mrf.mxu3  ;;  %717 = vst [vmem:[%s1768_s16 + $0x30] sm:$0xff] %v685_v37 }
  0xb9   : > { %v534_v40 = vadd.f32 %v533_v38, %v1761_v57  ;;  %v583_v41 = vadd.f32 %v582_v39, %v1763_v58  ;;  %v438_v42 = vpop.f32.mrf.mxu0  ;;  %v487_v43 = vpop.f32.mrf.mxu1 }
  0xba   : > { %v439_v44 = vadd.f32 %v438_v42, %v1754_v49  ;;  %v488_v45 = vadd.f32 %v487_v43, %v1756_v50 }
  0xbb   : > { %v629_v46 = vmax.f32 %v534_v40, 0.0  ;;  %v630_v47 = vmax.f32 %v583_v41, 0.0 }
  0xbc   : > { %v631_v48 = vmax.f32 %v439_v44, 0.0  ;;  %v632_v51 = vmax.f32 %v488_v45, 0.0 }
  0xbd   : > { %966 = vmatmul.f32.gmra.mxu2 %v629_v46  ;;  %v686_v52 = vpack.c.bf16 %v630_v47, %v629_v46  ;;  %1031 = vmatmul.f32.gmra.mxu3 %v630_v47 }
  0xbe   : > { %839 = vmatmul.f32.gmra.mxu0 %v631_v48  ;;  %v687_v53 = vpack.c.bf16 %v632_v51, %v631_v48  ;;  %904 = vmatmul.f32.gmra.mxu1 %v632_v51 }
  0xbf   : > { %718 = vst [vmem:[%s1768_s16 + $0x38] sm:$0xff] %v686_v52 }
  0xc0   : > { %v536_v54 = vpop.f32.mrf.mxu2  ;;  %v585_v55 = vpop.f32.mrf.mxu3  ;;  %719 = vst [vmem:[%s1768_s16 + $0x40] sm:$0xff] %v687_v53 }
  0xc1   : > { %v537_v56 = vadd.f32 %v536_v54, %v1761_v57  ;;  %v586_v59 = vadd.f32 %v585_v55, %v1763_v58  ;;  %v440_v60 = vpop.f32.mrf.mxu0  ;;  %v489_v61 = vpop.f32.mrf.mxu1 }
  0xc2   : > { %v441_v62 = vadd.f32 %v440_v60, %v1754_v49  ;;  %v490_v63 = vadd.f32 %v489_v61, %v1756_v50 }
  0xc3   : > { %v633_v0 = vmax.f32 %v537_v56, 0.0  ;;  %v634_v1 = vmax.f32 %v586_v59, 0.0 }
  0xc4   : > { %v635_v2 = vmax.f32 %v441_v62, 0.0  ;;  %v636_v3 = vmax.f32 %v490_v63, 0.0 }
  0xc5   : > { %969 = vmatmul.f32.gmra.mxu2 %v633_v0  ;;  %v688_v4 = vpack.c.bf16 %v634_v1, %v633_v0  ;;  %1034 = vmatmul.f32.gmra.mxu3 %v634_v1 }
  0xc6   : > { %842 = vmatmul.f32.gmra.mxu0 %v635_v2  ;;  %v689_v5 = vpack.c.bf16 %v636_v3, %v635_v2  ;;  %907 = vmatmul.f32.gmra.mxu1 %v636_v3 }
  0xc7   : > { %720 = vst [vmem:[%s1768_s16 + $0x48] sm:$0xff] %v688_v4 }
  0xc8   : > { %v538_v6 = vpop.f32.mrf.mxu2  ;;  %v587_v7 = vpop.f32.mrf.mxu3  ;;  %721 = vst [vmem:[%s1768_s16 + $0x50] sm:$0xff] %v689_v5 }
  0xc9   : > { %v539_v8 = vadd.f32 %v538_v6, %v1761_v57  ;;  %v588_v9 = vadd.f32 %v587_v7, %v1763_v58  ;;  %v443_v10 = vpop.f32.mrf.mxu0  ;;  %v492_v11 = vpop.f32.mrf.mxu1 }
  0xca   : > { %v444_v12 = vadd.f32 %v443_v10, %v1754_v49  ;;  %v493_v13 = vadd.f32 %v492_v11, %v1756_v50 }
  0xcb   : > { %v637_v14 = vmax.f32 %v539_v8, 0.0  ;;  %v638_v15 = vmax.f32 %v588_v9, 0.0 }
  0xcc   : > { %v639_v16 = vmax.f32 %v444_v12, 0.0  ;;  %v640_v17 = vmax.f32 %v493_v13, 0.0 }
  0xcd   : > { %972 = vmatmul.f32.gmra.mxu2 %v637_v14  ;;  %v690_v18 = vpack.c.bf16 %v638_v15, %v637_v14  ;;  %1037 = vmatmul.f32.gmra.mxu3 %v638_v15 }
  0xce   : > { %845 = vmatmul.f32.gmra.mxu0 %v639_v16  ;;  %v691_v19 = vpack.c.bf16 %v640_v17, %v639_v16  ;;  %910 = vmatmul.f32.gmra.mxu1 %v640_v17 }
  0xcf   : > { %722 = vst [vmem:[%s1768_s16 + $0x58] sm:$0xff] %v690_v18 }
  0xd0   : > { %v541_v20 = vpop.f32.mrf.mxu2  ;;  %v590_v21 = vpop.f32.mrf.mxu3  ;;  %723 = vst [vmem:[%s1768_s16 + $0x60] sm:$0xff] %v691_v19 }
  0xd1   : > { %v542_v22 = vadd.f32 %v541_v20, %v1761_v57  ;;  %v591_v23 = vadd.f32 %v590_v21, %v1763_v58  ;;  %v445_v24 = vpop.f32.mrf.mxu0  ;;  %v494_v25 = vpop.f32.mrf.mxu1 }
  0xd2   : > { %v446_v26 = vadd.f32 %v445_v24, %v1754_v49  ;;  %v495_v27 = vadd.f32 %v494_v25, %v1756_v50 }
  0xd3   : > { %v641_v28 = vmax.f32 %v542_v22, 0.0  ;;  %v642_v29 = vmax.f32 %v591_v23, 0.0 }
  0xd4   : > { %v643_v30 = vmax.f32 %v446_v26, 0.0  ;;  %v644_v31 = vmax.f32 %v495_v27, 0.0 }
  0xd5   : > { %975 = vmatmul.f32.gmra.mxu2 %v641_v28  ;;  %v692_v32 = vpack.c.bf16 %v642_v29, %v641_v28  ;;  %1040 = vmatmul.f32.gmra.mxu3 %v642_v29 }
  0xd6   : > { %848 = vmatmul.f32.gmra.mxu0 %v643_v30  ;;  %v693_v33 = vpack.c.bf16 %v644_v31, %v643_v30  ;;  %913 = vmatmul.f32.gmra.mxu1 %v644_v31 }
  0xd7   : > { %724 = vst [vmem:[%s1768_s16 + $0x68] sm:$0xff] %v692_v32 }
  0xd8   : > { %v543_v34 = vpop.f32.mrf.mxu2  ;;  %v592_v35 = vpop.f32.mrf.mxu3  ;;  %725 = vst [vmem:[%s1768_s16 + $0x70] sm:$0xff] %v693_v33 }
  0xd9   : > { %v544_v36 = vadd.f32 %v543_v34, %v1761_v57  ;;  %v593_v37 = vadd.f32 %v592_v35, %v1763_v58  ;;  %v448_v38 = vpop.f32.mrf.mxu0  ;;  %v497_v39 = vpop.f32.mrf.mxu1 }
  0xda   : > { %v449_v40 = vadd.f32 %v448_v38, %v1754_v49  ;;  %v498_v41 = vadd.f32 %v497_v39, %v1756_v50 }
  0xdb   : > { %v645_v42 = vmax.f32 %v544_v36, 0.0  ;;  %v646_v43 = vmax.f32 %v593_v37, 0.0 }
  0xdc   : > { %v647_v44 = vmax.f32 %v449_v40, 0.0  ;;  %v648_v45 = vmax.f32 %v498_v41, 0.0 }
  0xdd   : > { %978 = vmatmul.f32.gmra.mxu2 %v645_v42  ;;  %v694_v46 = vpack.c.bf16 %v646_v43, %v645_v42  ;;  %1043 = vmatmul.f32.gmra.mxu3 %v646_v43 }
  0xde   : > { %v695_v47 = vpack.c.bf16 %v648_v45, %v647_v44  ;;  %851 = vmatmul.f32.gmra.mxu0 %v647_v44  ;;  %916 = vmatmul.f32.gmra.mxu1 %v648_v45 }
  0xdf   : > { %726 = vst [vmem:[%s1768_s16 + $0x78] sm:$0xff] %v694_v46 }
  0xe0   : > { %727 = vst [vmem:[%s1768_s16 + $0x80] sm:$0xff] %v695_v47  ;;  %v546_v48 = vpop.f32.mrf.mxu2  ;;  %v595_v51 = vpop.f32.mrf.mxu3 }
  0xe1   : > { %v547_v52 = vadd.f32 %v546_v48, %v1761_v57  ;;  %v596_v53 = vadd.f32 %v595_v51, %v1763_v58  ;;  %v450_v54 = vpop.f32.mrf.mxu0  ;;  %v499_v55 = vpop.f32.mrf.mxu1 }
  0xe2   : > { %v451_v56 = vadd.f32 %v450_v54, %v1754_v49  ;;  %v500_v59 = vadd.f32 %v499_v55, %v1756_v50 }
  0xe3   : > { %v649_v60 = vmax.f32 %v547_v52, 0.0  ;;  %v650_v61 = vmax.f32 %v596_v53, 0.0 }
  0xe4   : > { %v651_v62 = vmax.f32 %v451_v56, 0.0  ;;  %v652_v63 = vmax.f32 %v500_v59, 0.0 }
  0xe5   : > { %v696_v0 = vpack.c.bf16 %v650_v61, %v649_v60  ;;  %981 = vmatmul.f32.gmra.mxu2 %v649_v60  ;;  %1046 = vmatmul.f32.gmra.mxu3 %v650_v61 }
  0xe6   : > { %v697_v1 = vpack.c.bf16 %v652_v63, %v651_v62  ;;  %854 = vmatmul.f32.gmra.mxu0 %v651_v62  ;;  %919 = vmatmul.f32.gmra.mxu1 %v652_v63 }
  0xe7   : > { %728 = vst [vmem:[%s1768_s16 + $0x88] sm:$0xff] %v696_v0 }
  0xe8   : > { %729 = vst [vmem:[%s1768_s16 + $0x90] sm:$0xff] %v697_v1  ;;  %v548_v2 = vpop.f32.mrf.mxu2  ;;  %v597_v3 = vpop.f32.mrf.mxu3 }
  0xe9   : > { %v549_v4 = vadd.f32 %v548_v2, %v1761_v57  ;;  %v598_v5 = vadd.f32 %v597_v3, %v1763_v58  ;;  %v453_v6 = vpop.f32.mrf.mxu0  ;;  %v502_v7 = vpop.f32.mrf.mxu1 }
  0xea   : > { %v454_v8 = vadd.f32 %v453_v6, %v1754_v49  ;;  %v503_v9 = vadd.f32 %v502_v7, %v1756_v50 }
  0xeb   : > { %v653_v10 = vmax.f32 %v549_v4, 0.0  ;;  %v654_v11 = vmax.f32 %v598_v5, 0.0 }
  0xec   : > { %v655_v12 = vmax.f32 %v454_v8, 0.0  ;;  %v656_v13 = vmax.f32 %v503_v9, 0.0 }
  0xed   : > { %v698_v14 = vpack.c.bf16 %v654_v11, %v653_v10  ;;  %984 = vmatmul.f32.gmra.mxu2 %v653_v10  ;;  %1049 = vmatmul.f32.gmra.mxu3 %v654_v11 }
  0xee   : > { %v699_v15 = vpack.c.bf16 %v656_v13, %v655_v12  ;;  %857 = vmatmul.f32.gmra.mxu0 %v655_v12  ;;  %922 = vmatmul.f32.gmra.mxu1 %v656_v13 }
  0xef   : > { %730 = vst [vmem:[%s1768_s16 + $0x98] sm:$0xff] %v698_v14 }
  0xf0   : > { %731 = vst [vmem:[%s1768_s16 + $0xa0] sm:$0xff] %v699_v15  ;;  %v551_v16 = vpop.f32.mrf.mxu2  ;;  %v600_v17 = vpop.f32.mrf.mxu3 }
  0xf1   : > { %v552_v18 = vadd.f32 %v551_v16, %v1761_v57  ;;  %v601_v19 = vadd.f32 %v600_v17, %v1763_v58  ;;  %v455_v20 = vpop.f32.mrf.mxu0  ;;  %v504_v21 = vpop.f32.mrf.mxu1 }
  0xf2   : > { %v456_v22 = vadd.f32 %v455_v20, %v1754_v49  ;;  %v505_v23 = vadd.f32 %v504_v21, %v1756_v50 }
  0xf3   : > { %v657_v24 = vmax.f32 %v552_v18, 0.0  ;;  %v658_v25 = vmax.f32 %v601_v19, 0.0 }
  0xf4   : > { %v659_v26 = vmax.f32 %v456_v22, 0.0  ;;  %v660_v27 = vmax.f32 %v505_v23, 0.0 }
  0xf5   : > { %v700_v28 = vpack.c.bf16 %v658_v25, %v657_v24  ;;  %987 = vmatmul.f32.gmra.mxu2 %v657_v24  ;;  %1052 = vmatmul.f32.gmra.mxu3 %v658_v25 }
  0xf6   : > { %v701_v29 = vpack.c.bf16 %v660_v27, %v659_v26  ;;  %860 = vmatmul.f32.gmra.mxu0 %v659_v26  ;;  %925 = vmatmul.f32.gmra.mxu1 %v660_v27 }
  0xf7   : > { %732 = vst [vmem:[%s1768_s16 + $0xa8] sm:$0xff] %v700_v28 }
  0xf8   : > { %733 = vst [vmem:[%s1768_s16 + $0xb0] sm:$0xff] %v701_v29  ;;  %v553_v30 = vpop.f32.mrf.mxu2  ;;  %v602_v31 = vpop.f32.mrf.mxu3 }
  0xf9   : > { %v554_v32 = vadd.f32 %v553_v30, %v1761_v57  ;;  %v603_v33 = vadd.f32 %v602_v31, %v1763_v58  ;;  %v458_v34 = vpop.f32.mrf.mxu0  ;;  %v507_v35 = vpop.f32.mrf.mxu1 }
  0xfa   : > { %v459_v36 = vadd.f32 %v458_v34, %v1754_v49  ;;  %v508_v37 = vadd.f32 %v507_v35, %v1756_v50 }
  0xfb   : > { %v661_v38 = vmax.f32 %v554_v32, 0.0  ;;  %v662_v39 = vmax.f32 %v603_v33, 0.0  ;;  %v1866_v33 = vld [vmem:[%s1984_s4] ss:$0 sm:$0xff] }
  0xfc   : > { %v663_v40 = vmax.f32 %v459_v36, 0.0  ;;  %v664_v41 = vmax.f32 %v508_v37, 0.0 }
  0xfd   : > { %v702_v42 = vpack.c.bf16 %v662_v39, %v661_v38  ;;  %990 = vmatmul.f32.gmra.mxu2 %v661_v38  ;;  %1055 = vmatmul.f32.gmra.mxu3 %v662_v39 }
  0xfe   : > { %v703_v43 = vpack.c.bf16 %v664_v41, %v663_v40  ;;  %863 = vmatmul.f32.gmra.mxu0 %v663_v40  ;;  %928 = vmatmul.f32.gmra.mxu1 %v664_v41 }
  0xff   : > { %734 = vst [vmem:[%s1768_s16 + $0xb8] sm:$0xff] %v702_v42 }
 0x100   : > { %735 = vst [vmem:[%s1768_s16 + $0xc0] sm:$0xff] %v703_v43  ;;  %v556_v44 = vpop.f32.mrf.mxu2  ;;  %v605_v45 = vpop.f32.mrf.mxu3 }
 0x101   : > { %v557_v46 = vadd.f32 %v556_v44, %v1761_v57  ;;  %v606_v47 = vadd.f32 %v605_v45, %v1763_v58  ;;  %v460_v48 = vpop.f32.mrf.mxu0  ;;  %v509_v51 = vpop.f32.mrf.mxu1 }
 0x102   : > { %v461_v52 = vadd.f32 %v460_v48, %v1754_v49  ;;  %v510_v53 = vadd.f32 %v509_v51, %v1756_v50 }
 0x103   : > { %v665_v54 = vmax.f32 %v557_v46, 0.0  ;;  %v666_v55 = vmax.f32 %v606_v47, 0.0 }
 0x104   : > { %v667_v56 = vmax.f32 %v461_v52, 0.0  ;;  %v668_v59 = vmax.f32 %v510_v53, 0.0 }
 0x105   : > { %v704_v60 = vpack.c.bf16 %v666_v55, %v665_v54  ;;  %993 = vmatmul.f32.gmra.mxu2 %v665_v54  ;;  %1058 = vmatmul.f32.gmra.mxu3 %v666_v55 }
 0x106   : > { %v705_v61 = vpack.c.bf16 %v668_v59, %v667_v56  ;;  %866 = vmatmul.f32.gmra.mxu0 %v667_v56  ;;  %931 = vmatmul.f32.gmra.mxu1 %v668_v59 }
 0x107   : > { %736 = vst [vmem:[%s1768_s16 + $0xc8] sm:$0xff] %v704_v60 }
 0x108   : > { %737 = vst [vmem:[%s1768_s16 + $0xd0] sm:$0xff] %v705_v61  ;;  %v558_v62 = vpop.f32.mrf.mxu2  ;;  %v607_v63 = vpop.f32.mrf.mxu3 }
 0x109   : > { %v559_v0 = vadd.f32 %v558_v62, %v1761_v57  ;;  %v608_v1 = vadd.f32 %v607_v63, %v1763_v58  ;;  %v463_v2 = vpop.f32.mrf.mxu0  ;;  %v512_v3 = vpop.f32.mrf.mxu1 }
 0x10a   : > { %v464_v4 = vadd.f32 %v463_v2, %v1754_v49  ;;  %v513_v5 = vadd.f32 %v512_v3, %v1756_v50 }
 0x10b   : > { %v669_v6 = vmax.f32 %v559_v0, 0.0  ;;  %v670_v7 = vmax.f32 %v608_v1, 0.0 }
 0x10c   : > { %v671_v8 = vmax.f32 %v464_v4, 0.0  ;;  %v672_v9 = vmax.f32 %v513_v5, 0.0 }
 0x10d   : > { %v706_v10 = vpack.c.bf16 %v670_v7, %v669_v6  ;;  %996 = vmatmul.f32.gmra.mxu2 %v669_v6  ;;  %1061 = vmatmul.f32.gmra.mxu3 %v670_v7 }
 0x10e   : > { %v707_v11 = vpack.c.bf16 %v672_v9, %v671_v8  ;;  %869 = vmatmul.f32.gmra.mxu0 %v671_v8  ;;  %934 = vmatmul.f32.gmra.mxu1 %v672_v9 }
 0x10f   : > { %738 = vst [vmem:[%s1768_s16 + $0xd8] sm:$0xff] %v706_v10 }
 0x110   : > { %739 = vst [vmem:[%s1768_s16 + $0xe0] sm:$0xff] %v707_v11  ;;  %v561_v12 = vpop.f32.mrf.mxu2  ;;  %v610_v13 = vpop.f32.mrf.mxu3 }
 0x111   : > { %v562_v14 = vadd.f32 %v561_v12, %v1761_v57  ;;  %v611_v15 = vadd.f32 %v610_v13, %v1763_v58  ;;  %v465_v16 = vpop.f32.mrf.mxu0  ;;  %v514_v17 = vpop.f32.mrf.mxu1 }
 0x112   : > { %v466_v18 = vadd.f32 %v465_v16, %v1754_v49  ;;  %v515_v19 = vadd.f32 %v514_v17, %v1756_v50 }
 0x113   : > { %v673_v20 = vmax.f32 %v562_v14, 0.0  ;;  %v674_v21 = vmax.f32 %v611_v15, 0.0 }
 0x114   : > { %v675_v22 = vmax.f32 %v466_v18, 0.0  ;;  %v676_v23 = vmax.f32 %v515_v19, 0.0 }
 0x115   : > { %v708_v24 = vpack.c.bf16 %v674_v21, %v673_v20  ;;  %999 = vmatmul.f32.gmra.mxu2 %v673_v20  ;;  %1064 = vmatmul.f32.gmra.mxu3 %v674_v21 }
 0x116   : > { %v709_v25 = vpack.c.bf16 %v676_v23, %v675_v22  ;;  %872 = vmatmul.f32.gmra.mxu0 %v675_v22  ;;  %937 = vmatmul.f32.gmra.mxu1 %v676_v23 }
 0x117   : > { %740 = vst [vmem:[%s1768_s16 + $0xe8] sm:$0xff] %v708_v24 }
 0x118   : > { %741 = vst [vmem:[%s1768_s16 + $0xf0] sm:$0xff] %v709_v25  ;;  %v563_v26 = vpop.f32.mrf.mxu2  ;;  %v612_v27 = vpop.f32.mrf.mxu3 }
 0x119   : > { %v564_v28 = vadd.f32 %v563_v26, %v1761_v57  ;;  %v613_v49 = vadd.f32 %v612_v27, %v1763_v58 }
 0x11a   : > { %v828_v30 = vpop.f32.mrf.mxu0 }
 0x11b   : > { %v677_v50 = vmax.f32 %v564_v28, 0.0  ;;  %v678_v29 = vmax.f32 %v613_v49, 0.0  ;;  %v893_v31 = vpop.f32.mrf.mxu1  ;;  %v829_v34 = vadd.f32 %v1866_v33, %v828_v30 }
 0x11d   : > { %v710_v32 = vpack.c.bf16 %v678_v29, %v677_v50  ;;  %1002 = vmatmul.f32.gmra.mxu2 %v677_v50  ;;  %1067 = vmatmul.f32.gmra.mxu3 %v678_v29  ;;  %v894_v36 = vadd.f32 %v893_v31, %v829_v34 }
 0x11f   : > { %742 = vst [vmem:[%s1768_s16 + $0xf8] sm:$0xff] %v710_v32 }
 0x123   : > { %v831_v35 = vpop.f32.mrf.mxu0  ;;  %v896_v57 = vpop.f32.mrf.mxu1 }
 0x124   : > { %v832_v39 = vadd.f32 %v1866_v33, %v831_v35 }
 0x126   : > { %v897_v43 = vadd.f32 %v896_v57, %v832_v39 }
 0x128   : > { %v958_v58 = vpop.f32.mrf.mxu2  ;;  %v1023_v37 = vpop.f32.mrf.mxu3 }
 0x129   : > { %v959_v38 = vadd.f32 %v958_v58, %v894_v36 }
 0x12b   : > { %v1024_v40 = vadd.f32 %v1023_v37, %v959_v38  ;;  %v834_v41 = vpop.f32.mrf.mxu0  ;;  %v899_v42 = vpop.f32.mrf.mxu1 }
 0x12c   : > { %v835_v46 = vadd.f32 %v1866_v33, %v834_v41 }
 0x12d   : > { %1072 = vst.msk [vmem:[%s1874_s20] sm:$0xff] %vm1071_vm1, %v1024_v40  ;;  %1104 = vrot.lane.b32.xlu0 %v1024_v40, %s1401_s25 }
 0x12e   : > { %v900_v53 = vadd.f32 %v899_v42, %v835_v46 }
 0x130   : > { %v961_v44 = vpop.f32.mrf.mxu2  ;;  %v1026_v45 = vpop.f32.mrf.mxu3 }
 0x131   : > { %v962_v47 = vadd.f32 %v961_v44, %v897_v43 }
 0x133   : > { %v1027_v48 = vadd.f32 %v1026_v45, %v962_v47  ;;  %v837_v51 = vpop.f32.mrf.mxu0  ;;  %v902_v52 = vpop.f32.mrf.mxu1 }
 0x134   : > { %v838_v59 = vadd.f32 %v1866_v33, %v837_v51 }
 0x135   : > { %1073 = vst.msk [vmem:[%s1874_s20 + $0x8] sm:$0xff] %vm1071_vm1, %v1027_v48  ;;  %1106 = vrot.lane.b32.xlu0 %v1027_v48, %s1401_s25 }
 0x136   : > { %v903_v63 = vadd.f32 %v902_v52, %v838_v59 }
 0x138   : > { %v964_v54 = vpop.f32.mrf.mxu2  ;;  %v1029_v55 = vpop.f32.mrf.mxu3 }
 0x139   : > { %v965_v56 = vadd.f32 %v964_v54, %v900_v53 }
 0x13b   : > { %v1030_v60 = vadd.f32 %v1029_v55, %v965_v56  ;;  %v840_v61 = vpop.f32.mrf.mxu0  ;;  %v905_v62 = vpop.f32.mrf.mxu1 }
 0x13c   : > { %v841_v2 = vadd.f32 %v1866_v33, %v840_v61 }
 0x13d   : > { %1074 = vst.msk [vmem:[%s1874_s20 + $0x10] sm:$0xff] %vm1071_vm1, %v1030_v60  ;;  %1108 = vrot.lane.b32.xlu1 %v1030_v60, %s1401_s25 }
 0x13e   : > { %v906_v7 = vadd.f32 %v905_v62, %v841_v2 }
 0x140   : > { %v967_v0 = vpop.f32.mrf.mxu2  ;;  %v1032_v1 = vpop.f32.mrf.mxu3 }
 0x141   : > { %v968_v3 = vadd.f32 %v967_v0, %v903_v63 }
 0x143   : > { %v1033_v4 = vadd.f32 %v1032_v1, %v968_v3  ;;  %v843_v5 = vpop.f32.mrf.mxu0  ;;  %v908_v6 = vpop.f32.mrf.mxu1 }
 0x144   : > { %v844_v11 = vadd.f32 %v1866_v33, %v843_v5 }
 0x145   : > { %1075 = vst.msk [vmem:[%s1874_s20 + $0x18] sm:$0xff] %vm1071_vm1, %v1033_v4  ;;  %1110 = vrot.lane.b32.xlu1 %v1033_v4, %s1401_s25 }
 0x146   : > { %v909_v15 = vadd.f32 %v908_v6, %v844_v11 }
 0x148   : > { %v970_v8 = vpop.f32.mrf.mxu2  ;;  %v1035_v9 = vpop.f32.mrf.mxu3 }
 0x149   : > { %v971_v10 = vadd.f32 %v970_v8, %v906_v7 }
 0x14b   : > { %v1036_v12 = vadd.f32 %v1035_v9, %v971_v10  ;;  %v846_v13 = vpop.f32.mrf.mxu0  ;;  %v911_v14 = vpop.f32.mrf.mxu1 }
 0x14c   : > { %v847_v18 = vadd.f32 %v1866_v33, %v846_v13 }
 0x14d   : > { %1076 = vst.msk [vmem:[%s1874_s20 + $0x20] sm:$0xff] %vm1071_vm1, %v1036_v12  ;;  %1112 = vrot.lane.b32.xlu2 %v1036_v12, %s1401_s25 }
 0x14e   : > { %v912_v23 = vadd.f32 %v911_v14, %v847_v18 }
 0x150   : > { %v973_v16 = vpop.f32.mrf.mxu2  ;;  %v1038_v17 = vpop.f32.mrf.mxu3 }
 0x151   : > { %v974_v19 = vadd.f32 %v973_v16, %v909_v15 }
 0x153   : > { %v1039_v20 = vadd.f32 %v1038_v17, %v974_v19  ;;  %v849_v21 = vpop.f32.mrf.mxu0  ;;  %v914_v22 = vpop.f32.mrf.mxu1 }
 0x154   : > { %v850_v27 = vadd.f32 %v1866_v33, %v849_v21 }
 0x155   : > { %1077 = vst.msk [vmem:[%s1874_s20 + $0x28] sm:$0xff] %vm1071_vm1, %v1039_v20  ;;  %1114 = vrot.lane.b32.xlu2 %v1039_v20, %s1401_s25 }
 0x156   : > { %v915_v29 = vadd.f32 %v914_v22, %v850_v27 }
 0x158   : > { %v976_v24 = vpop.f32.mrf.mxu2  ;;  %v1041_v25 = vpop.f32.mrf.mxu3 }
 0x159   : > { %v977_v26 = vadd.f32 %v976_v24, %v912_v23 }
 0x15b   : > { %v1042_v28 = vadd.f32 %v1041_v25, %v977_v26  ;;  %v852_v49 = vpop.f32.mrf.mxu0  ;;  %v917_v50 = vpop.f32.mrf.mxu1 }
 0x15c   : > { %v853_v32 = vadd.f32 %v1866_v33, %v852_v49 }
 0x15d   : > { %1078 = vst.msk [vmem:[%s1874_s20 + $0x30] sm:$0xff] %vm1071_vm1, %v1042_v28  ;;  %1116 = vrot.lane.b32.xlu0 %v1042_v28, %s1401_s25 }
 0x15e   : > { %v918_v58 = vadd.f32 %v917_v50, %v853_v32 }
 0x160   : > { %v979_v30 = vpop.f32.mrf.mxu2  ;;  %v1044_v31 = vpop.f32.mrf.mxu3 }
 0x161   : > { %v980_v34 = vadd.f32 %v979_v30, %v915_v29 }
 0x163   : > { %v1045_v35 = vadd.f32 %v1044_v31, %v980_v34  ;;  %v855_v57 = vpop.f32.mrf.mxu0  ;;  %v920_v36 = vpop.f32.mrf.mxu1 }
 0x164   : > { %v856_v40 = vadd.f32 %v1866_v33, %v855_v57 }
 0x165   : > { %1079 = vst.msk [vmem:[%s1874_s20 + $0x38] sm:$0xff] %vm1071_vm1, %v1045_v35  ;;  %1118 = vrot.lane.b32.xlu1 %v1045_v35, %s1401_s25 }
 0x166   : > { %v921_v44 = vadd.f32 %v920_v36, %v856_v40 }
 0x168   : > { %v982_v37 = vpop.f32.mrf.mxu2  ;;  %v1047_v38 = vpop.f32.mrf.mxu3 }
 0x169   : > { %v983_v39 = vadd.f32 %v982_v37, %v918_v58 }
 0x16b   : > { %v1048_v41 = vadd.f32 %v1047_v38, %v983_v39  ;;  %v858_v42 = vpop.f32.mrf.mxu0  ;;  %v923_v43 = vpop.f32.mrf.mxu1 }
 0x16c   : > { %v859_v47 = vadd.f32 %v1866_v33, %v858_v42 }
 0x16d   : > { %1080 = vst.msk [vmem:[%s1874_s20 + $0x40] sm:$0xff] %vm1071_vm1, %v1048_v41  ;;  %1120 = vrot.lane.b32.xlu2 %v1048_v41, %s1401_s25 }
 0x16e   : > { %v924_v54 = vadd.f32 %v923_v43, %v859_v47 }
 0x170   : > { %v985_v45 = vpop.f32.mrf.mxu2  ;;  %v1050_v46 = vpop.f32.mrf.mxu3 }
 0x171   : > { %v986_v48 = vadd.f32 %v985_v45, %v921_v44 }
 0x173   : > { %v1051_v51 = vadd.f32 %v1050_v46, %v986_v48  ;;  %v861_v52 = vpop.f32.mrf.mxu0  ;;  %v926_v53 = vpop.f32.mrf.mxu1 }
 0x174   : > { %v862_v60 = vadd.f32 %v1866_v33, %v861_v52 }
 0x175   : > { %1081 = vst.msk [vmem:[%s1874_s20 + $0x48] sm:$0xff] %vm1071_vm1, %v1051_v51  ;;  %1122 = vrot.lane.b32.xlu0 %v1051_v51, %s1401_s25 }
 0x176   : > { %v927_v0 = vadd.f32 %v926_v53, %v862_v60 }
 0x178   : > { %v988_v55 = vpop.f32.mrf.mxu2  ;;  %v1053_v56 = vpop.f32.mrf.mxu3 }
 0x179   : > { %v989_v59 = vadd.f32 %v988_v55, %v924_v54 }
 0x17b   : > { %v1054_v61 = vadd.f32 %v1053_v56, %v989_v59  ;;  %v864_v62 = vpop.f32.mrf.mxu0  ;;  %v929_v63 = vpop.f32.mrf.mxu1 }
 0x17c   : > { %v865_v3 = vadd.f32 %v1866_v33, %v864_v62 }
 0x17d   : > { %1082 = vst.msk [vmem:[%s1874_s20 + $0x50] sm:$0xff] %vm1071_vm1, %v1054_v61  ;;  %1124 = vrot.lane.b32.xlu1 %v1054_v61, %s1401_s25 }
 0x17e   : > { %v930_v7 = vadd.f32 %v929_v63, %v865_v3 }
 0x180   : > { %v991_v1 = vpop.f32.mrf.mxu2  ;;  %v1056_v2 = vpop.f32.mrf.mxu3 }
 0x181   : > { %v992_v4 = vadd.f32 %v991_v1, %v927_v0 }
 0x183   : > { %v1057_v5 = vadd.f32 %v1056_v2, %v992_v4  ;;  %v867_v6 = vpop.f32.mrf.mxu0  ;;  %v932_v8 = vpop.f32.mrf.mxu1 }
 0x184   : > { %v868_v12 = vadd.f32 %v1866_v33, %v867_v6 }
 0x185   : > { %1083 = vst.msk [vmem:[%s1874_s20 + $0x58] sm:$0xff] %vm1071_vm1, %v1057_v5  ;;  %1126 = vrot.lane.b32.xlu2 %v1057_v5, %s1401_s25 }
 0x186   : > { %v933_v15 = vadd.f32 %v932_v8, %v868_v12 }
 0x188   : > { %v994_v9 = vpop.f32.mrf.mxu2  ;;  %v1059_v10 = vpop.f32.mrf.mxu3 }
 0x189   : > { %v995_v11 = vadd.f32 %v994_v9, %v930_v7 }
 0x18b   : > { %v1060_v13 = vadd.f32 %v1059_v10, %v995_v11  ;;  %v870_v14 = vpop.f32.mrf.mxu0  ;;  %v935_v20 = vpop.f32.mrf.mxu1 }
 0x18c   : > { %v871_v18 = vadd.f32 %v1866_v33, %v870_v14 }
 0x18d   : > { %1084 = vst.msk [vmem:[%s1874_s20 + $0x60] sm:$0xff] %vm1071_vm1, %v1060_v13  ;;  %1128 = vrot.lane.b32.xlu0 %v1060_v13, %s1401_s25 }
 0x18e   : > { %v936_v22 = vadd.f32 %v935_v20, %v871_v18 }
 0x190   : > { %v997_v16 = vpop.f32.mrf.mxu2  ;;  %v1062_v17 = vpop.f32.mrf.mxu3 }
 0x191   : > { %v998_v19 = vadd.f32 %v997_v16, %v933_v15 }
 0x193   : > { %v1063_v21 = vadd.f32 %v1062_v17, %v998_v19  ;;  %v873_v23 = vpop.f32.mrf.mxu0  ;;  %v938_v49 = vpop.f32.mrf.mxu1 }
 0x194   : > { %v874_v27 = vadd.f32 %v1866_v33, %v873_v23 }
 0x195   : > { %1085 = vst.msk [vmem:[%s1874_s20 + $0x68] sm:$0xff] %vm1071_vm1, %v1063_v21  ;;  %1130 = vrot.lane.b32.xlu1 %v1063_v21, %s1401_s25 }
 0x196   : > { %v939_v50 = vadd.f32 %v938_v49, %v874_v27 }
 0x198   : > { %v1000_v24 = vpop.f32.mrf.mxu2  ;;  %v1065_v25 = vpop.f32.mrf.mxu3 }
 0x199   : > { %v1001_v26 = vadd.f32 %v1000_v24, %v936_v22 }
 0x19b   : > { %v1066_v28 = vadd.f32 %v1065_v25, %v1001_v26 }
 0x19d   : > { %1086 = vst.msk [vmem:[%s1874_s20 + $0x70] sm:$0xff] %vm1071_vm1, %v1066_v28  ;;  %1132 = vrot.lane.b32.xlu2 %v1066_v28, %s1401_s25 }
 0x19f   : > { %v1105_v29 = vpop.permute.xlu0 %1104 }
 0x1a0   : > { %1152 = vst.msk [vmem:[%s1940_s23] sm:$0xff] %vm1071_vm1, %v1105_v29  ;;  %v1003_v33 = vpop.f32.mrf.mxu2  ;;  %v1068_v31 = vpop.f32.mrf.mxu3 }
 0x1a1   : > { %v1004_v30 = vadd.f32 %v1003_v33, %v939_v50 }
 0x1a3   : > { %v1069_v32 = vadd.f32 %v1068_v31, %v1004_v30 }
 0x1a5   : > { %1087 = vst.msk [vmem:[%s1874_s20 + $0x78] sm:$0xff] %vm1071_vm1, %v1069_v32  ;;  %1134 = vrot.lane.b32.xlu0 %v1069_v32, %s1401_s25 }
 0x1a7   : > { %v1113_v34 = vpop.permute.xlu2 %1112  ;;  %v1107_v35 = vpop.permute.xlu0 %1106 }
 0x1a8   : > { %1156 = vst.msk [vmem:[%s1940_s23 + $0x20] sm:$0xff] %vm1071_vm1, %v1113_v34 }
 0x1a9   : > { %1153 = vst.msk [vmem:[%s1940_s23 + $0x8] sm:$0xff] %vm1071_vm1, %v1107_v35 }
 0x1af   : > { %v1115_v57 = vpop.permute.xlu2 %1114  ;;  %v1109_v36 = vpop.permute.xlu1 %1108 }
 0x1b0   : > { %1157 = vst.msk [vmem:[%s1940_s23 + $0x28] sm:$0xff] %vm1071_vm1, %v1115_v57 }
 0x1b1   : > { %1154 = vst.msk [vmem:[%s1940_s23 + $0x10] sm:$0xff] %vm1071_vm1, %v1109_v36 }
 0x1b7   : > { %v1111_v58 = vpop.permute.xlu1 %1110 }
 0x1b8   : > { %1155 = vst.msk [vmem:[%s1940_s23 + $0x18] sm:$0xff] %vm1071_vm1, %v1111_v58 }
 0x1c7   : > { %v1121_v37 = vpop.permute.xlu2 %1120 }
 0x1c8   : > { %1160 = vst.msk [vmem:[%s1940_s23 + $0x40] sm:$0xff] %vm1071_vm1, %v1121_v37 }
 0x1cf   : > { %v1117_v38 = vpop.permute.xlu0 %1116 }
 0x1d0   : > { %1158 = vst.msk [vmem:[%s1940_s23 + $0x30] sm:$0xff] %vm1071_vm1, %v1117_v38 }
 0x1d7   : > { %v1119_v39 = vpop.permute.xlu1 %1118 }
 0x1d8   : > { %1159 = vst.msk [vmem:[%s1940_s23 + $0x38] sm:$0xff] %vm1071_vm1, %v1119_v39 }
 0x1df   : > { %v1127_v40 = vpop.permute.xlu2 %1126 }
 0x1e0   : > { %1163 = vst.msk [vmem:[%s1940_s23 + $0x58] sm:$0xff] %vm1071_vm1, %v1127_v40 }
 0x1e7   : > { %v1123_v41 = vpop.permute.xlu0 %1122 }
 0x1e8   : > { %1161 = vst.msk [vmem:[%s1940_s23 + $0x48] sm:$0xff] %vm1071_vm1, %v1123_v41 }
 0x1ef   : > { %v1125_v42 = vpop.permute.xlu1 %1124 }
 0x1f0   : > { %1162 = vst.msk [vmem:[%s1940_s23 + $0x50] sm:$0xff] %vm1071_vm1, %v1125_v42 }
 0x1f7   : > { %v1133_v43 = vpop.permute.xlu2 %1132 }
 0x1f8   : > { %1166 = vst.msk [vmem:[%s1940_s23 + $0x70] sm:$0xff] %vm1071_vm1, %v1133_v43 }
 0x1ff   : > { %v1129_v44 = vpop.permute.xlu0 %1128 }
 0x200   : > { %1164 = vst.msk [vmem:[%s1940_s23 + $0x60] sm:$0xff] %vm1071_vm1, %v1129_v44 }
 0x207   : > { %v1131_v45 = vpop.permute.xlu1 %1130 }
 0x208   : > { %1165 = vst.msk [vmem:[%s1940_s23 + $0x68] sm:$0xff] %vm1071_vm1, %v1131_v45 }
 0x217   : > { %v1135_v46 = vpop.permute.xlu0 %1134 }
 0x218   : > { %1167 = vst.msk [vmem:[%s1940_s23 + $0x78] sm:$0xff] %vm1071_vm1, %v1135_v46 }
 0x219 PF: > { %s18_s24 = sadd.s32 1, %s1399_s24  }
 0x21a   : > { %p15_p4 = scmp.ge.s32.totalorder %s18_s24, 4  }
 0x21c   :  { %17 = sbr.rel (!%p15_p4) target bundleno = 1 (0x1), region = 94 }

// kernel: encoder_forward.8
= control target key start
LH: loop header
LB: loop body
LE: loop exit
PB: predicated region body
PF: predicated region fallthrough
CT: control target
= control target key end

     0   :  { %s2059_s24 = smov 0   ;;  %s3093_s0 = inlined_call_operand.vmem [shape: f32[256,512], index: 0, kind: input, shape index: {}]   ;;  %s3094_s1 = inlined_call_operand.vmem [shape: bf16[512,256], index: 1, kind: input, shape index: {}]   ;;  %s3095_s2 = inlined_call_operand.vmem [shape: f32[1,256], index: 2, kind: input, shape index: {}]   ;;  %s3096_s3 = inlined_call_operand.vmem [shape: f32[256,2], index: 3, kind: input, shape index: {}]   ;;  %s3097_s4 = inlined_call_operand.vmem [shape: f32[1,2], index: 4, kind: input, shape index: {}]   ;;  %s3098_s5 = inlined_call_operand.vmem [shape: bf16[256,256], index: 5, kind: output, shape index: {0}]   ;;  %s3099_s6 = inlined_call_operand.vmem [shape: f32[256,1], index: 6, kind: output, shape index: {1}]   ;;  %s3100_s7 = inlined_call_operand.vmem [shape: f32[256,1], index: 7, kind: output, shape index: {2}]  }
   0x1 LB: > { %s1645_s25 = sadd.s32 4294967295, %s2016_s24   ;;  %p1649_p0 = scmp.ge.s32.totalorder %s2016_s24, 1  ;;  %s2016_s24 = sphi %s2059_s24, %s18_s24  }
   0x2   : > { %p244_p1 = scmp.lt.s32.totalorder %s2016_s24, 3 }
   0x4   : > { %p245_p2 = pnand %p1649_p0, %p244_p1 }
   0x5   : > { %s1650_s14 = sshll.u32 (!%p245_p2), %s1645_s25, 4  ;;  %s2018_s12 = smov (!%p245_p2), 127  }
   0x6   : > { %248 = sbr.rel (%p245_p2) target bundleno = 739 (0x2e3), region = 40  ;;  %p289_p3 = scmp.lt.s32.totalorder (!%p245_p2), %s1650_s14, 31 }
   0xb   : > { %v1718_v0 = vld [vmem:[%s3094_s1 + $0x70] sm:$0xf]  ;;  %v1935_v1 = vld [vmem:[%s3094_s1 + $0x74] sm:$0xf0]  ;;  %v1710_v5 = vld [vmem:[%s3094_s1 + $0x60] sm:$0xf] }
   0xc   : > { %v1782_v2 = vld [vmem:[%s3094_s1 + $0xf0] sm:$0xf]  ;;  %v1719_v3 = vor.u32 %v1935_v1, %v1718_v0  ;;  %v1951_v4 = vld [vmem:[%s3094_s1 + $0xf4] sm:$0xf0]  ;;  %v1933_v6 = vld [vmem:[%s3094_s1 + $0x64] sm:$0xf0] }
   0xd   : > { %v1783_v7 = vor.u32 %v1951_v4, %v1782_v2  ;;  %v1774_v8 = vld [vmem:[%s3094_s1 + $0xe0] sm:$0xf]  ;;  %v1949_v9 = vld [vmem:[%s3094_s1 + $0xe4] sm:$0xf0]  ;;  %v1711_v10 = vor.u32 %v1933_v6, %v1710_v5  ;;  %v1702_v12 = vld [vmem:[%s3094_s1 + $0x50] sm:$0xf] }
   0xe   : > { %1984 = vmatpush.bf16.msra.mxu2 %v1719_v3  ;;  %800 = vmatpush.bf16.msra.mxu0 %v1719_v3  ;;  %v1775_v11 = vor.u32 %v1949_v9, %v1774_v8  ;;  %v1931_v13 = vld [vmem:[%s3094_s1 + $0x54] sm:$0xf0]  ;;  %v1766_v14 = vld [vmem:[%s3094_s1 + $0xd0] sm:$0xf]  ;;  %v1694_v18 = vld [vmem:[%s3094_s1 + $0x40] sm:$0xf] }
   0xf   : > { %1992 = vmatpush.bf16.msra.mxu3 %v1783_v7  ;;  %849 = vmatpush.bf16.msra.mxu1 %v1783_v7  ;;  %v1947_v15 = vld [vmem:[%s3094_s1 + $0xd4] sm:$0xf0]  ;;  %v1703_v16 = vor.u32 %v1931_v13, %v1702_v12  ;;  %v1929_v19 = vld [vmem:[%s3094_s1 + $0x44] sm:$0xf0]  ;;  %v1758_v20 = vld [vmem:[%s3094_s1 + $0xc0] sm:$0xf] }
  0x10   : > { %v1767_v17 = vor.u32 %v1947_v15, %v1766_v14  ;;  %v1945_v21 = vld [vmem:[%s3094_s1 + $0xc4] sm:$0xf0]  ;;  %v1695_v22 = vor.u32 %v1929_v19, %v1694_v18  ;;  %v1686_v24 = vld [vmem:[%s3094_s1 + $0x30] sm:$0xf]  ;;  %v1927_v25 = vld [vmem:[%s3094_s1 + $0x34] sm:$0xf0] }
  0x11   : > { %v1759_v23 = vor.u32 %v1945_v21, %v1758_v20  ;;  %v1750_v26 = vld [vmem:[%s3094_s1 + $0xb0] sm:$0xf]  ;;  %v1943_v27 = vld [vmem:[%s3094_s1 + $0xb4] sm:$0xf0]  ;;  %v1687_v28 = vor.u32 %v1927_v25, %v1686_v24  ;;  %v1678_v30 = vld [vmem:[%s3094_s1 + $0x20] sm:$0xf] }
  0x12   : > { %1985 = vmatpush.bf16.msra.mxu2 %v1711_v10  ;;  %801 = vmatpush.bf16.msra.mxu0 %v1711_v10  ;;  %v1751_v29 = vor.u32 %v1943_v27, %v1750_v26  ;;  %v1925_v31 = vld [vmem:[%s3094_s1 + $0x24] sm:$0xf0]  ;;  %s3102_s14 = smov (!%p289_p3, %s1650_s14), 31  ;;  %v1742_v32 = vld [vmem:[%s3094_s1 + $0xa0] sm:$0xf]  ;;  %vm1422_vm0 = vcmask 7168  }
  0x13   : > { %1993 = vmatpush.bf16.msra.mxu3 %v1775_v11  ;;  %850 = vmatpush.bf16.msra.mxu1 %v1775_v11  ;;  %v1941_v33 = vld [vmem:[%s3094_s1 + $0xa4] sm:$0xf0]  ;;  %v1679_v34 = vor.u32 %v1925_v31, %v1678_v30  ;;  %v1670_v36 = vld [vmem:[%s3094_s1 + $0x10] sm:$0xf]  ;;  %v1923_v37 = vld [vmem:[%s3094_s1 + $0x14] sm:$0xf0] }
  0x14   : > { %v1743_v35 = vor.u32 %v1941_v33, %v1742_v32  ;;  %s1918_s13 = sshll.u32 %s3102_s14, 5  ;;  %v1734_v38 = vld [vmem:[%s3094_s1 + $0x90] sm:$0xf]  ;;  %v1939_v39 = vld [vmem:[%s3094_s1 + $0x94] sm:$0xf0]  ;;  %v1671_v40 = vor.u32 %v1923_v37, %v1670_v36  ;;  %s2901_s27 = sshll.u32 %s3102_s14, 3 }
  0x15   : > { %s2159_s25 = scalar_lea.vmem %s3093_s0, %s1918_s13  ;;  %v1735_v41 = vor.u32 %v1939_v39, %v1734_v38  ;;  %v1662_v42 = vld [vmem:[%s3094_s1] sm:$0xf]  ;;  %v1921_v43 = vld [vmem:[%s3094_s1 + $0x4] sm:$0xf0]  ;;  %v1846_v46 = vld [vmem:[%s3094_s1 + $0x170] sm:$0xf]  ;;  %s2907_s30 = scalar_lea.vmem %s3098_s5, %s2901_s27 }
  0x16   : > { %1986 = vmatpush.bf16.msra.mxu2 %v1703_v16  ;;  %802 = vmatpush.bf16.msra.mxu0 %v1703_v16  ;;  %v1726_v44 = vld [vmem:[%s3094_s1 + $0x80] sm:$0xf]  ;;  %v1937_v45 = vld [vmem:[%s3094_s1 + $0x84] sm:$0xf0]  ;;  %v1967_v47 = vld [vmem:[%s3094_s1 + $0x174] sm:$0xf0]  ;;  %v1663_v51 = vor.u32 %v1921_v43, %v1662_v42  ;;  %s2987_s11 = scalar_lea.vmem %s3099_s6, %s2901_s27  ;;  %s3052_s16 = scalar_lea.vmem %s3100_s7, %s2901_s27 }
  0x17   : > { %1994 = vmatpush.bf16.msra.mxu3 %v1767_v17  ;;  %851 = vmatpush.bf16.msra.mxu1 %v1767_v17  ;;  %v346_v48 = vld [vmem:[%s2159_s25 + $0x100] sm:$0xff]  ;;  %v1910_v49 = vld [vmem:[%s3094_s1 + $0x1f0] sm:$0xf]  ;;  %v1983_v50 = vld [vmem:[%s3094_s1 + $0x1f4] sm:$0xf0]  ;;  %v1727_v55 = vor.u32 %v1937_v45, %v1726_v44  ;;  %v1847_v58 = vor.u32 %v1967_v47, %v1846_v46 }
  0x18   : > { %v350_v52 = vld [vmem:[%s2159_s25 + $0x120] sm:$0xff]  ;;  %v347_v56 = vld [vmem:[%s2159_s25 + $0x108] sm:$0xff]  ;;  %v1911_v59 = vor.u32 %v1983_v50, %v1910_v49  ;;  %v1830_v5 = vld [vmem:[%s3094_s1 + $0x150] sm:$0xf] }
  0x19   : > { %v314_v53 = vld [vmem:[%s2159_s25] sm:$0xff]  ;;  %v351_v57 = vld [vmem:[%s2159_s25 + $0x128] sm:$0xff]  ;;  %v2197_v62 = vpack.c.bf16 %v350_v52, %v346_v48  ;;  %v1963_v6 = vld [vmem:[%s3094_s1 + $0x154] sm:$0xf0] }
  0x1a   : > { %1987 = vmatpush.bf16.msra.mxu2 %v1695_v22  ;;  %803 = vmatpush.bf16.msra.mxu0 %v1695_v22  ;;  %v318_v54 = vld [vmem:[%s2159_s25 + $0x20] sm:$0xff]  ;;  %v1965_v61 = vld [vmem:[%s3094_s1 + $0x164] sm:$0xf0]  ;;  %v2207_v2 = vpack.c.bf16 %v351_v57, %v347_v56  ;;  %v1894_v7 = vld [vmem:[%s3094_s1 + $0x1d0] sm:$0xf]  ;;  %v1831_v9 = vor.u32 %v1963_v6, %v1830_v5 }
  0x1b   : > { %1995 = vmatpush.bf16.msra.mxu3 %v1759_v23  ;;  %852 = vmatpush.bf16.msra.mxu1 %v1759_v23  ;;  %v1838_v60 = vld [vmem:[%s3094_s1 + $0x160] sm:$0xf]  ;;  %v2199_v63 = vpack.c.bf16 %v318_v54, %v314_v53  ;;  %v1981_v1 = vld [vmem:[%s3094_s1 + $0x1e4] sm:$0xf0]  ;;  %v1979_v8 = vld [vmem:[%s3094_s1 + $0x1d4] sm:$0xf0] }
  0x1c   : > { %v1902_v0 = vld [vmem:[%s3094_s1 + $0x1e0] sm:$0xf]  ;;  %v1839_v3 = vor.u32 %v1965_v61, %v1838_v60  ;;  %v1895_v10 = vor.u32 %v1979_v8, %v1894_v7  ;;  %v1961_v12 = vld [vmem:[%s3094_s1 + $0x144] sm:$0xf0]  ;;  %v1934_v15 = vld [vmem:[%s3094_s1 + $0x74] sm:$0xf] }
  0x1d   : > { %v1903_v4 = vor.u32 %v1981_v1, %v1902_v0  ;;  %v1822_v11 = vld [vmem:[%s3094_s1 + $0x140] sm:$0xf]  ;;  %v1977_v14 = vld [vmem:[%s3094_s1 + $0x1c4] sm:$0xf0]  ;;  %v1720_v16 = vld [vmem:[%s3094_s1 + $0x78] sm:$0xf0] }
  0x1e   : > { %1988 = vmatpush.bf16.msra.mxu2 %v1687_v28  ;;  %804 = vmatpush.bf16.msra.mxu0 %v1687_v28  ;;  %v1886_v13 = vld [vmem:[%s3094_s1 + $0x1c0] sm:$0xf]  ;;  %v1723_v17 = vor.u32 %v1934_v15, %v1720_v16  ;;  %v1932_v18 = vld [vmem:[%s3094_s1 + $0x64] sm:$0xf]  ;;  %v1712_v19 = vld [vmem:[%s3094_s1 + $0x68] sm:$0xf0]  ;;  %v1823_v20 = vor.u32 %v1961_v12, %v1822_v11 }
  0x1f   : > { %1996 = vmatpush.bf16.msra.mxu3 %v1751_v29  ;;  %853 = vmatpush.bf16.msra.mxu1 %v1751_v29  ;;  %v1887_v21 = vor.u32 %v1977_v14, %v1886_v13  ;;  %v1814_v22 = vld [vmem:[%s3094_s1 + $0x130] sm:$0xf]  ;;  %v1959_v23 = vld [vmem:[%s3094_s1 + $0x134] sm:$0xf0]  ;;  %v1715_v24 = vor.u32 %v1932_v18, %v1712_v19  ;;  %v354_v25 = vld [vmem:[%s2159_s25 + $0x140] sm:$0xff] }
  0x20   : > { %v1878_v26 = vld [vmem:[%s3094_s1 + $0x1b0] sm:$0xf]  ;;  %v1975_v27 = vld [vmem:[%s3094_s1 + $0x1b4] sm:$0xf0]  ;;  %v358_v28 = vld [vmem:[%s2159_s25 + $0x160] sm:$0xff]  ;;  %v1815_v33 = vor.u32 %v1959_v23, %v1814_v22 }
  0x21   : > { %v322_v29 = vld [vmem:[%s2159_s25 + $0x40] sm:$0xff]  ;;  %v355_v31 = vld [vmem:[%s2159_s25 + $0x148] sm:$0xff]  ;;  %v2272_v37 = vpack.c.bf16 %v358_v28, %v354_v25  ;;  %v1798_v44 = vld [vmem:[%s3094_s1 + $0x110] sm:$0xf] }
  0x22   : > { %1989 = vmatpush.bf16.msra.mxu2 %v1679_v34  ;;  %805 = vmatpush.bf16.msra.mxu0 %v1679_v34  ;;  %v326_v30 = vld [vmem:[%s2159_s25 + $0x60] sm:$0xff]  ;;  %v359_v32 = vld [vmem:[%s2159_s25 + $0x168] sm:$0xff]  ;;  %v1879_v34 = vor.u32 %v1975_v27, %v1878_v26  ;;  %v1955_v45 = vld [vmem:[%s3094_s1 + $0x114] sm:$0xf0] }
  0x23   : > { %1997 = vmatpush.bf16.msra.mxu3 %v1743_v35  ;;  %854 = vmatpush.bf16.msra.mxu1 %v1743_v35  ;;  %v1806_v35 = vld [vmem:[%s3094_s1 + $0x120] sm:$0xf]  ;;  %v1957_v36 = vld [vmem:[%s3094_s1 + $0x124] sm:$0xf0]  ;;  %v2274_v38 = vpack.c.bf16 %v326_v30, %v322_v29  ;;  %v1862_v46 = vld [vmem:[%s3094_s1 + $0x190] sm:$0xf]  ;;  %v1799_v47 = vor.u32 %v1955_v45, %v1798_v44 }
  0x24   : > { %v1870_v39 = vld [vmem:[%s3094_s1 + $0x1a0] sm:$0xf]  ;;  %v1807_v42 = vor.u32 %v1957_v36, %v1806_v35  ;;  %v1971_v48 = vld [vmem:[%s3094_s1 + $0x194] sm:$0xf0]  ;;  %v1930_v49 = vld [vmem:[%s3094_s1 + $0x54] sm:$0xf] }
  0x25   : > { %v1704_v50 = vld [vmem:[%s3094_s1 + $0x58] sm:$0xf0]  ;;  %v1928_v53 = vld [vmem:[%s3094_s1 + $0x44] sm:$0xf]  ;;  %v1696_v54 = vld [vmem:[%s3094_s1 + $0x48] sm:$0xf0] }
  0x26   : > { %1990 = vmatpush.bf16.msra.mxu2 %v1671_v40  ;;  %806 = vmatpush.bf16.msra.mxu0 %v1671_v40  ;;  %v1973_v40 = vld [vmem:[%s3094_s1 + $0x1a4] sm:$0xf0]  ;;  %v1707_v52 = vor.u32 %v1930_v49, %v1704_v50  ;;  %v1699_v57 = vor.u32 %v1928_v53, %v1696_v54  ;;  %v1926_v61 = vld [vmem:[%s3094_s1 + $0x34] sm:$0xf]  ;;  %v1688_v0 = vld [vmem:[%s3094_s1 + $0x38] sm:$0xf0] }
  0x27   : > { %1998 = vmatpush.bf16.msra.mxu3 %v1735_v41  ;;  %855 = vmatpush.bf16.msra.mxu1 %v1735_v41  ;;  %v2282_v41 = vpack.c.bf16 %v359_v32, %v355_v31  ;;  %v1871_v43 = vor.u32 %v1973_v40, %v1870_v39  ;;  %v1953_v56 = vld [vmem:[%s3094_s1 + $0x104] sm:$0xf0]  ;;  %v330_v6 = vld [vmem:[%s2159_s25 + $0x80] sm:$0xff]  ;;  %v1691_v8 = vor.u32 %v1926_v61, %v1688_v0  ;;  %v1680_v11 = vld [vmem:[%s3094_s1 + $0x28] sm:$0xf0] }
  0x28   : > { %v363_v5 = vld [vmem:[%s2159_s25 + $0x188] sm:$0xff]  ;;  %v334_v7 = vld [vmem:[%s2159_s25 + $0xa0] sm:$0xff]  ;;  %v1966_v16 = vld [vmem:[%s3094_s1 + $0x174] sm:$0xf] }
  0x29   : > { %v2343_v13 = vpack.c.bf16 %v334_v7, %v330_v6  ;;  %v1982_v18 = vld [vmem:[%s3094_s1 + $0x1f4] sm:$0xf]  ;;  %v1672_v22 = vld [vmem:[%s3094_s1 + $0x18] sm:$0xf0]  ;;  %v315_v25 = vld [vmem:[%s2159_s25 + $0x8] sm:$0xff] }
  0x2a   : > { %1991 = vmatpush.bf16.msra.mxu2 %v1663_v51  ;;  %807 = vmatpush.bf16.msra.mxu0 %v1663_v51  ;;  %v1863_v51 = vor.u32 %v1971_v48, %v1862_v46  ;;  %v319_v26 = vld [vmem:[%s2159_s25 + $0x28] sm:$0xff]  ;;  %v1920_v27 = vld [vmem:[%s3094_s1 + $0x4] sm:$0xf]  ;;  %v320_v53 = vld [vmem:[%s2159_s25 + $0x30] sm:$0xff] }
  0x2b   : > { %1999 = vmatpush.bf16.msra.mxu3 %v1727_v55  ;;  %856 = vmatpush.bf16.msra.mxu1 %v1727_v55  ;;  %v1790_v55 = vld [vmem:[%s3094_s1 + $0x100] sm:$0xf]  ;;  %v2373_v28 = vpack.c.bf16 %v319_v26, %v315_v25  ;;  %v1664_v29 = vld [vmem:[%s3094_s1 + $0x8] sm:$0xf0]  ;;  %v1980_v45 = vld [vmem:[%s3094_s1 + $0x1e4] sm:$0xf] }
  0x2c   : > { %v1791_v60 = vor.u32 %v1953_v56, %v1790_v55  ;;  %v1667_v30 = vor.u32 %v1920_v27, %v1664_v29  ;;  %v370_v31 = vld [vmem:[%s2159_s25 + $0x1c0] sm:$0xff]  ;;  %v371_v35 = vld [vmem:[%s2159_s25 + $0x1c8] sm:$0xff]  ;;  %v317_v54 = vld [vmem:[%s2159_s25 + $0x18] sm:$0xff] }
  0x2d   : > { %828 = vmatmul.bf16.vlgmr.msra.gmra.mxu2 %v2197_v62  ;;  %808 = vmatmul.bf16.vlgmr.msra.gmra.mxu0 %v2199_v63  ;;  %v374_v32 = vld [vmem:[%s2159_s25 + $0x1e0] sm:$0xff]  ;;  %v375_v36 = vld [vmem:[%s2159_s25 + $0x1e8] sm:$0xff]  ;;  %v321_v55 = vld [vmem:[%s2159_s25 + $0x38] sm:$0xff] }
  0x2e   : > { %898 = vmatpush.bf16.msrb.mxu2 %v1847_v58  ;;  %877 = vmatmul.bf16.vlgmr.msra.gmra.mxu3 %v2207_v2  ;;  %v1854_v58 = vld [vmem:[%s3094_s1 + $0x180] sm:$0xf]  ;;  %v2385_v39 = vpack.c.bf16 %v374_v32, %v370_v31  ;;  %v1840_v44 = vld [vmem:[%s3094_s1 + $0x168] sm:$0xf0]  ;;  %v328_v6 = vld [vmem:[%s2159_s25 + $0x70] sm:$0xff] }
  0x2f   : > { %947 = vmatpush.bf16.msrb.mxu3 %v1911_v59  ;;  %996 = vmatpush.bf16.msrb.mxu0 %v1723_v17  ;;  %v1969_v59 = vld [vmem:[%s3094_s1 + $0x184] sm:$0xf0]  ;;  %v1848_v17 = vld [vmem:[%s3094_s1 + $0x178] sm:$0xf0]  ;;  %v1958_v29 = vld [vmem:[%s3094_s1 + $0x134] sm:$0xf] }
  0x30   : > { %v1855_v1 = vor.u32 %v1969_v59, %v1854_v58  ;;  %v1851_v19 = vor.u32 %v1966_v16, %v1848_v17  ;;  %857 = vmatmul.bf16.vlgmr.msra.gmra.mxu1 %v2373_v28  ;;  %v323_v48 = vld [vmem:[%s2159_s25 + $0x48] sm:$0xff]  ;;  %v1962_v58 = vld [vmem:[%s3094_s1 + $0x154] sm:$0xf]  ;;  %v1832_v59 = vld [vmem:[%s3094_s1 + $0x158] sm:$0xf0] }
  0x31   : > { %v327_v49 = vld [vmem:[%s2159_s25 + $0x68] sm:$0xff]  ;;  %v1835_v61 = vor.u32 %v1962_v58, %v1832_v59  ;;  %v325_v7 = vld [vmem:[%s2159_s25 + $0x58] sm:$0xff]  ;;  %v1976_v16 = vld [vmem:[%s3094_s1 + $0x1c4] sm:$0xf] }
  0x32   : > { %899 = vmatpush.bf16.msrb.mxu2 %v1839_v3  ;;  %v362_v3 = vld [vmem:[%s2159_s25 + $0x180] sm:$0xff]  ;;  %v331_v0 = vld [vmem:[%s2159_s25 + $0x88] sm:$0xff]  ;;  %v337_v25 = vld [vmem:[%s2159_s25 + $0xb8] sm:$0xff] }
  0x33   : > { %948 = vmatpush.bf16.msrb.mxu3 %v1903_v4  ;;  %997 = vmatpush.bf16.msrb.mxu0 %v1715_v24  ;;  %v366_v4 = vld [vmem:[%s2159_s25 + $0x1a0] sm:$0xff]  ;;  %v1974_v31 = vld [vmem:[%s3094_s1 + $0x1b4] sm:$0xf] }
  0x34   : > { %v2341_v12 = vpack.c.bf16 %v366_v4, %v362_v3 }
  0x36   : > { %900 = vmatpush.bf16.msrb.mxu2 %v1831_v9  ;;  %v367_v9 = vld [vmem:[%s2159_s25 + $0x1a8] sm:$0xff] }
  0x37   : > { %949 = vmatpush.bf16.msrb.mxu3 %v1895_v10  ;;  %998 = vmatpush.bf16.msrb.mxu0 %v1707_v52  ;;  %v1924_v10 = vld [vmem:[%s3094_s1 + $0x24] sm:$0xf]  ;;  %v2345_v14 = vpack.c.bf16 %v367_v9, %v363_v5  ;;  %v316_v52 = vld [vmem:[%s2159_s25 + $0x10] sm:$0xff] }
  0x38   : > { %v1683_v15 = vor.u32 %v1924_v10, %v1680_v11  ;;  %v2415_v56 = vpack.c.bf16 %v320_v53, %v316_v52  ;;  %v324_v5 = vld [vmem:[%s2159_s25 + $0x50] sm:$0xff]  ;;  %v1960_v11 = vld [vmem:[%s3094_s1 + $0x144] sm:$0xf] }
  0x39   : > { %v2443_v9 = vpack.c.bf16 %v328_v6, %v324_v5  ;;  %v1956_v53 = vld [vmem:[%s3094_s1 + $0x124] sm:$0xf]  ;;  %v353_v5 = vld [vmem:[%s2159_s25 + $0x138] sm:$0xff] }
  0x3a   : > { %901 = vmatpush.bf16.msrb.mxu2 %v1823_v20  ;;  %v1912_v20 = vld [vmem:[%s3094_s1 + $0x1f8] sm:$0xf0] }
  0x3b   : > { %950 = vmatpush.bf16.msrb.mxu3 %v1887_v21  ;;  %999 = vmatpush.bf16.msrb.mxu0 %v1699_v57  ;;  %v1922_v21 = vld [vmem:[%s3094_s1 + $0x14] sm:$0xf]  ;;  %v1915_v23 = vor.u32 %v1982_v18, %v1912_v20  ;;  %v2417_v57 = vpack.c.bf16 %v321_v55, %v317_v54  ;;  %v339_v18 = vld [vmem:[%s2159_s25 + $0xc8] sm:$0xff]  ;;  %v1972_v55 = vld [vmem:[%s3094_s1 + $0x1a4] sm:$0xf] }
  0x3c   : > { %v1675_v24 = vor.u32 %v1922_v21, %v1672_v22  ;;  %v332_v22 = vld [vmem:[%s2159_s25 + $0x90] sm:$0xff]  ;;  %v1808_v54 = vld [vmem:[%s3094_s1 + $0x128] sm:$0xf0] }
  0x3d   : > { %833 = vmatmul.bf16.gmra.mxu2 %v2272_v37  ;;  %813 = vmatmul.bf16.gmra.mxu0 %v2274_v38  ;;  %v1811_v58 = vor.u32 %v1956_v53, %v1808_v54  ;;  %v1940_v53 = vld [vmem:[%s3094_s1 + $0xa4] sm:$0xf]  ;;  %v1744_v54 = vld [vmem:[%s3094_s1 + $0xa8] sm:$0xf0] }
  0x3e   : > { %902 = vmatpush.bf16.msrb.mxu2 %v1815_v33  ;;  %882 = vmatmul.bf16.gmra.mxu3 %v2282_v41  ;;  %v338_v33 = vld [vmem:[%s2159_s25 + $0xc0] sm:$0xff] }
  0x3f   : > { %951 = vmatpush.bf16.msrb.mxu3 %v1879_v34  ;;  %1000 = vmatpush.bf16.msrb.mxu0 %v1691_v8  ;;  %v342_v34 = vld [vmem:[%s2159_s25 + $0xe0] sm:$0xff]  ;;  %v329_v8 = vld [vmem:[%s2159_s25 + $0x78] sm:$0xff] }
  0x40   : > { %v2387_v40 = vpack.c.bf16 %v342_v34, %v338_v33  ;;  %v2445_v10 = vpack.c.bf16 %v329_v8, %v325_v7  ;;  %v1950_v34 = vld [vmem:[%s3094_s1 + $0xf4] sm:$0xf]  ;;  %v2542_v8 = vld [vmem:[%s3095_s2] sm:$0x3] }
  0x42   : > { %903 = vmatpush.bf16.msrb.mxu2 %v1807_v42  ;;  %v2389_v42 = vpack.c.bf16 %v375_v36, %v371_v35  ;;  %v1784_v35 = vld [vmem:[%s3094_s1 + $0xf8] sm:$0xf0] }
  0x43   : > { %952 = vmatpush.bf16.msrb.mxu3 %v1871_v43  ;;  %1001 = vmatpush.bf16.msrb.mxu0 %v1683_v15  ;;  %v1964_v43 = vld [vmem:[%s3094_s1 + $0x164] sm:$0xf]  ;;  %v1824_v15 = vld [vmem:[%s3094_s1 + $0x148] sm:$0xf0]  ;;  %v1787_v36 = vor.u32 %v1950_v34, %v1784_v35  ;;  %v357_v34 = vld [vmem:[%s2159_s25 + $0x158] sm:$0xff] }
  0x44   : > { %v1843_v46 = vor.u32 %v1964_v43, %v1840_v44  ;;  %v1827_v17 = vor.u32 %v1960_v11, %v1824_v15  ;;  %v340_v43 = vld [vmem:[%s2159_s25 + $0xd0] sm:$0xff]  ;;  %v1944_v11 = vld [vmem:[%s3094_s1 + $0xc4] sm:$0xf]  ;;  %v1760_v15 = vld [vmem:[%s3094_s1 + $0xc8] sm:$0xf0] }
  0x45   : > { %v344_v44 = vld [vmem:[%s2159_s25 + $0xf0] sm:$0xff]  ;;  %1045 = vmatpush.bf16.msrb.mxu1 %v1787_v36  ;;  %v361_v35 = vld [vmem:[%s2159_s25 + $0x178] sm:$0xff] }
  0x46   : > { %904 = vmatpush.bf16.msrb.mxu2 %v1799_v47  ;;  %v1904_v47 = vld [vmem:[%s3094_s1 + $0x1e8] sm:$0xf0] }
  0x47   : > { %953 = vmatpush.bf16.msrb.mxu3 %v1863_v51  ;;  %1002 = vmatpush.bf16.msrb.mxu0 %v1675_v24  ;;  %v1907_v50 = vor.u32 %v1980_v45, %v1904_v47  ;;  %v2408_v51 = vpack.c.bf16 %v327_v49, %v323_v48  ;;  %v333_v24 = vld [vmem:[%s2159_s25 + $0x98] sm:$0xff]  ;;  %v2500_v47 = vpack.c.bf16 %v344_v44, %v340_v43  ;;  %v1948_v49 = vld [vmem:[%s3094_s1 + $0xe4] sm:$0xf] }
  0x48   : > { %v2473_v27 = vpack.c.bf16 %v337_v25, %v333_v24  ;;  %v341_v45 = vld [vmem:[%s2159_s25 + $0xd8] sm:$0xff] }
  0x49   : > { %862 = vmatmul.bf16.gmra.mxu1 %v2408_v51  ;;  %v1271_v43 = vld [vmem:[%s3096_s3 + $0x78] sm:$0xff] }
  0x4a   : > { %905 = vmatpush.bf16.msrb.mxu2 %v1791_v60  ;;  %v1978_v60 = vld [vmem:[%s3094_s1 + $0x1d4] sm:$0xf] }
  0x4b   : > { %954 = vmatpush.bf16.msrb.mxu3 %v1855_v1  ;;  %1003 = vmatpush.bf16.msrb.mxu0 %v1667_v30  ;;  %v335_v1 = vld [vmem:[%s2159_s25 + $0xa8] sm:$0xff]  ;;  %v1816_v30 = vld [vmem:[%s3094_s1 + $0x138] sm:$0xf0] }
  0x4c   : > { %v2436_v4 = vpack.c.bf16 %v335_v1, %v331_v0  ;;  %v1819_v32 = vor.u32 %v1958_v29, %v1816_v30  ;;  %v348_v0 = vld [vmem:[%s2159_s25 + $0x110] sm:$0xff] }
  0x4d   : > { %838 = vmatmul.bf16.gmra.mxu2 %v2341_v12  ;;  %818 = vmatmul.bf16.gmra.mxu0 %v2343_v13  ;;  %v352_v1 = vld [vmem:[%s2159_s25 + $0x130] sm:$0xff] }
  0x4e   : > { %887 = vmatmul.bf16.gmra.mxu3 %v2345_v14  ;;  %1094 = vmatpush.bf16.msra.mxu2 %v1851_v19  ;;  %v343_v19 = vld [vmem:[%s2159_s25 + $0xe8] sm:$0xff]  ;;  %v2535_v6 = vpack.c.bf16 %v352_v1, %v348_v0  ;;  %v1942_v30 = vld [vmem:[%s3094_s1 + $0xb4] sm:$0xf] }
  0x4f   : > { %1143 = vmatpush.bf16.msra.mxu3 %v1915_v23  ;;  %v2464_v21 = vpack.c.bf16 %v343_v19, %v339_v18  ;;  %v336_v23 = vld [vmem:[%s2159_s25 + $0xb0] sm:$0xff]  ;;  %v1800_v18 = vld [vmem:[%s3094_s1 + $0x118] sm:$0xf0]  ;;  %1292 = vmatpush.msra.mxu0 %v1271_v43 }
  0x50   : > { %v2471_v26 = vpack.c.bf16 %v336_v23, %v332_v22  ;;  %v1970_v19 = vld [vmem:[%s3094_s1 + $0x194] sm:$0xf] }
  0x52   : > { %1095 = vmatpush.bf16.msra.mxu2 %v1843_v46  ;;  %v345_v46 = vld [vmem:[%s2159_s25 + $0xf8] sm:$0xff] }
  0x53   : > { %1144 = vmatpush.bf16.msra.mxu3 %v1907_v50  ;;  %v2502_v48 = vpack.c.bf16 %v345_v46, %v341_v45  ;;  %v1776_v50 = vld [vmem:[%s3094_s1 + $0xe8] sm:$0xf0] }
  0x54   : > { %v1779_v52 = vor.u32 %v1948_v49, %v1776_v50  ;;  %v2587_v49 = vpack.c.bf16 %v361_v35, %v357_v34  ;;  %v1270_v50 = vld [vmem:[%s3096_s3 + $0x70] sm:$0xff] }
  0x55   : > { %1293 = vmatpush.msra.mxu0 %v1270_v50  ;;  %v1261_v50 = vld [vmem:[%s3096_s3 + $0x28] sm:$0xff] }
  0x56   : > { %1096 = vmatpush.bf16.msra.mxu2 %v1835_v61  ;;  %1046 = vmatpush.bf16.msrb.mxu1 %v1779_v52  ;;  %v1768_v61 = vld [vmem:[%s3094_s1 + $0xd8] sm:$0xf0] }
  0x59   : > { %867 = vmatmul.bf16.gmra.mxu1 %v2436_v4 }
  0x5a   : > { %1097 = vmatpush.bf16.msra.mxu2 %v1827_v17  ;;  %v2552_v17 = vperm.slane %v2542_v8, 0 }
  0x5d   : > { %843 = vmatmul.bf16.gmra.mxu2 %v2385_v39  ;;  %823 = vmatmul.bf16.gmra.mxu0 %v2387_v40 }
  0x5e   : > { %892 = vmatmul.bf16.gmra.mxu3 %v2389_v42  ;;  %1098 = vmatpush.bf16.msra.mxu2 %v1819_v32 }
  0x62   : > { %1099 = vmatpush.bf16.msra.mxu2 %v1811_v58  ;;  %v1269_v58 = vld [vmem:[%s3096_s3 + $0x68] sm:$0xff] }
  0x63   : > { %1294 = vmatpush.msra.mxu0 %v1269_v58 }
  0x69   : > { %872 = vmatmul.bf16.gmra.mxu1 %v2464_v21 }
  0x6d   : > { %906 = vmatmul.bf16.vlgmr.msrb.gmra.mxu2 %v2415_v56  ;;  %1004 = vmatmul.bf16.vlgmr.msrb.gmra.mxu0 %v2199_v63  ;;  %v1896_v63 = vld [vmem:[%s3094_s1 + $0x1d8] sm:$0xf0] }
  0x6e   : > { %955 = vmatmul.bf16.vlgmr.msrb.gmra.mxu3 %v2417_v57  ;;  %v1899_v3 = vor.u32 %v1978_v60, %v1896_v63  ;;  %v1946_v60 = vld [vmem:[%s3094_s1 + $0xd4] sm:$0xf] }
  0x6f   : > { %v1771_v63 = vor.u32 %v1946_v60, %v1768_v61  ;;  %v1268_v60 = vld [vmem:[%s3096_s3 + $0x60] sm:$0xff] }
  0x70   : > { %1145 = vmatpush.bf16.msra.mxu3 %v1899_v3  ;;  %v349_v3 = vld [vmem:[%s2159_s25 + $0x118] sm:$0xff]  ;;  %1295 = vmatpush.msra.mxu0 %v1268_v60  ;;  %v372_v60 = vld [vmem:[%s2159_s25 + $0x1d0] sm:$0xff] }
  0x71   : > { %1047 = vmatpush.bf16.msrb.mxu1 %v1771_v63  ;;  %v2537_v7 = vpack.c.bf16 %v353_v5, %v349_v3  ;;  %v1856_v63 = vld [vmem:[%s3094_s1 + $0x188] sm:$0xf0]  ;;  %v1267_v3 = vld [vmem:[%s3096_s3 + $0x58] sm:$0xff]  ;;  %v1938_v5 = vld [vmem:[%s3094_s1 + $0x94] sm:$0xf] }
  0x72   : > { %1296 = vmatpush.msra.mxu0 %v1267_v3 }
  0x7d   : > { %911 = vmatmul.bf16.gmra.mxu2 %v2443_v9  ;;  %1009 = vmatmul.bf16.gmra.mxu0 %v2274_v38  ;;  %v1888_v38 = vld [vmem:[%s3094_s1 + $0x1c8] sm:$0xf0] }
  0x7e   : > { %960 = vmatmul.bf16.gmra.mxu3 %v2445_v10  ;;  %v1891_v20 = vor.u32 %v1976_v16, %v1888_v38  ;;  %v1763_v16 = vor.u32 %v1944_v11, %v1760_v15  ;;  %v1954_v38 = vld [vmem:[%s3094_s1 + $0x114] sm:$0xf]  ;;  %v1736_v11 = vld [vmem:[%s3094_s1 + $0x98] sm:$0xf0] }
  0x80   : > { %1146 = vmatpush.bf16.msra.mxu3 %v1891_v20  ;;  %1048 = vmatpush.bf16.msrb.mxu1 %v1763_v16  ;;  %v1803_v20 = vor.u32 %v1954_v38, %v1800_v18  ;;  %v1739_v38 = vor.u32 %v1938_v5, %v1736_v11  ;;  %v1266_v18 = vld [vmem:[%s3096_s3 + $0x50] sm:$0xff] }
  0x81   : > { %1297 = vmatpush.msra.mxu0 %v1266_v18 }
  0x82   : > { %1100 = vmatpush.bf16.msra.mxu2 %v1803_v20  ;;  %v1936_v20 = vld [vmem:[%s3094_s1 + $0x84] sm:$0xf] }
  0x8d   : > { %916 = vmatmul.bf16.gmra.mxu2 %v2471_v26  ;;  %1014 = vmatmul.bf16.gmra.mxu0 %v2343_v13  ;;  %v1880_v13 = vld [vmem:[%s3094_s1 + $0x1b8] sm:$0xf0] }
  0x8e   : > { %965 = vmatmul.bf16.gmra.mxu3 %v2473_v27  ;;  %v1883_v33 = vor.u32 %v1974_v31, %v1880_v13  ;;  %v1752_v31 = vld [vmem:[%s3094_s1 + $0xb8] sm:$0xf0]  ;;  %v356_v13 = vld [vmem:[%s2159_s25 + $0x150] sm:$0xff] }
  0x8f   : > { %v1755_v32 = vor.u32 %v1942_v30, %v1752_v31  ;;  %v1264_v30 = vld [vmem:[%s3096_s3 + $0x40] sm:$0xff]  ;;  %v365_v31 = vld [vmem:[%s2159_s25 + $0x198] sm:$0xff] }
  0x90   : > { %1147 = vmatpush.bf16.msra.mxu3 %v1883_v33  ;;  %v360_v33 = vld [vmem:[%s2159_s25 + $0x170] sm:$0xff] }
  0x91   : > { %1049 = vmatpush.bf16.msrb.mxu1 %v1755_v32  ;;  %v2585_v46 = vpack.c.bf16 %v360_v33, %v356_v13  ;;  %v369_v32 = vld [vmem:[%s2159_s25 + $0x1b8] sm:$0xff] }
  0x92   : > { %v1263_v33 = vld [vmem:[%s3096_s3 + $0x38] sm:$0xff]  ;;  %v2658_v43 = vpack.c.bf16 %v369_v32, %v365_v31  ;;  %v1285_v31 = vld [vmem:[%s3096_s3 + $0xe8] sm:$0xff] }
  0x9d   : > { %921 = vmatmul.bf16.gmra.mxu2 %v2500_v47  ;;  %1019 = vmatmul.bf16.gmra.mxu0 %v2387_v40  ;;  %v1872_v40 = vld [vmem:[%s3094_s1 + $0x1a8] sm:$0xf0] }
  0x9e   : > { %970 = vmatmul.bf16.gmra.mxu3 %v2502_v48  ;;  %v1875_v59 = vor.u32 %v1972_v55, %v1872_v40  ;;  %v1747_v55 = vor.u32 %v1940_v53, %v1744_v54  ;;  %v1952_v40 = vld [vmem:[%s3094_s1 + $0x104] sm:$0xf] }
  0xa0   : > { %1148 = vmatpush.bf16.msra.mxu3 %v1875_v59  ;;  %1050 = vmatpush.bf16.msrb.mxu1 %v1747_v55  ;;  %v1792_v59 = vld [vmem:[%s3094_s1 + $0x108] sm:$0xf0] }
  0xa1   : > { %v1795_v61 = vor.u32 %v1952_v40, %v1792_v59  ;;  %v1258_v40 = vld [vmem:[%s3096_s3 + $0x10] sm:$0xff]  ;;  %v1257_v59 = vld [vmem:[%s3096_s3 + $0x8] sm:$0xff] }
  0xa3   : > { %1101 = vmatpush.bf16.msra.mxu2 %v1795_v61  ;;  %v376_v61 = vld [vmem:[%s2159_s25 + $0x1f0] sm:$0xff] }
  0xa4   : > { %1051 = vmatpush.bf16.msrb.mxu1 %v1739_v38 }
  0xaa   : > { %v809_v5 = vpop.f32.mrf.mxu0 }
  0xab   : > { %v810_v32 = vadd.f32 %v809_v5, %v2552_v17 }
  0xad   : > { %926 = vmatmul.bf16.gmra.mxu2 %v2535_v6  ;;  %1024 = vmatmul.bf16.gmra.mxu0 %v2197_v62  ;;  %v1864_v62 = vld [vmem:[%s3094_s1 + $0x198] sm:$0xf0] }
  0xae   : > { %975 = vmatmul.bf16.gmra.mxu3 %v2537_v7  ;;  %v1867_v23 = vor.u32 %v1970_v19, %v1864_v62  ;;  %v1728_v62 = vld [vmem:[%s3094_s1 + $0x88] sm:$0xf0] }
  0xb0   : > { %v829_v22 = vpop.f32.mrf.mxu2  ;;  %1149 = vmatpush.bf16.msra.mxu3 %v1867_v23  ;;  %v1731_v23 = vor.u32 %v1936_v20, %v1728_v62  ;;  %v858_v20 = vpop.f32.mrf.mxu1  ;;  %v1286_v62 = vld [vmem:[%s3096_s3 + $0xf0] sm:$0xff] }
  0xb1   : > { %v830_v24 = vadd.f32 %v829_v22, %v2552_v17  ;;  %v878_v25 = vpop.f32.mrf.mxu3  ;;  %v1265_v22 = vld [vmem:[%s3096_s3 + $0x48] sm:$0xff] }
  0xb2   : > { %1298 = vmatpush.msra.mxu0 %v1265_v22  ;;  %1052 = vmatpush.bf16.msrb.mxu1 %v1731_v23 }
  0xb3   : > { %v2569_v29 = vadd.f32 %v878_v25, %v830_v24  ;;  %v364_v24 = vld [vmem:[%s2159_s25 + $0x190] sm:$0xff] }
  0xb4   : > { %v368_v25 = vld [vmem:[%s2159_s25 + $0x1b0] sm:$0xff]  ;;  %1299 = vmatpush.msra.mxu0 %v1264_v30 }
  0xb5   : > { %1053 = vmatmul.bf16.vlgmr.msrb.gmra.mxu1 %v2373_v28  ;;  %v1260_v28 = vld [vmem:[%s3096_s3 + $0x20] sm:$0xff] }
  0xb6   : > { %1300 = vmatpush.msra.mxu0 %v1263_v33 }
  0xb8   : > { %v831_v36 = vpop.f32.mrf.mxu2  ;;  %v860_v30 = vpop.f32.mrf.mxu1 }
  0xb9   : > { %v832_v44 = vadd.f32 %v831_v36, %v2552_v17  ;;  %v880_v45 = vpop.f32.mrf.mxu3  ;;  %v2656_v36 = vpack.c.bf16 %v368_v25, %v364_v24  ;;  %v811_v25 = vpop.f32.mrf.mxu0 }
  0xbb   : > { %v2592_v52 = vadd.f32 %v880_v45, %v832_v44  ;;  %v1262_v45 = vld [vmem:[%s3096_s3 + $0x30] sm:$0xff] }
  0xbc   : > { %1301 = vmatpush.msra.mxu0 %v1262_v45  ;;  %v859_v45 = vadd.f32 %v858_v20, %v810_v32 }
  0xbd   : > { %931 = vmatmul.bf16.gmra.mxu2 %v2585_v46  ;;  %1029 = vmatmul.bf16.gmra.mxu0 %v2272_v37  ;;  %v1968_v37 = vld [vmem:[%s3094_s1 + $0x184] sm:$0xf] }
  0xbe   : > { %980 = vmatmul.bf16.gmra.mxu3 %v2587_v49  ;;  %v1859_v1 = vor.u32 %v1968_v37, %v1856_v63  ;;  %1302 = vmatpush.msra.mxu0 %v1261_v50  ;;  %v373_v37 = vld [vmem:[%s2159_s25 + $0x1d8] sm:$0xff]  ;;  %v1284_v50 = vld [vmem:[%s3096_s3 + $0xe0] sm:$0xff] }
  0xbf   : > { %v377_v63 = vld [vmem:[%s2159_s25 + $0x1f8] sm:$0xff] }
  0xc0   : > { %v834_v0 = vpop.f32.mrf.mxu2  ;;  %1150 = vmatpush.bf16.msra.mxu3 %v1859_v1  ;;  %1303 = vmatpush.msra.mxu0 %v1260_v28  ;;  %v1287_v1 = vld [vmem:[%s3096_s3 + $0xf8] sm:$0xff]  ;;  %v2700_v38 = vpack.c.bf16 %v377_v63, %v373_v37 }
  0xc1   : > { %v835_v15 = vadd.f32 %v834_v0, %v2552_v17  ;;  %v883_v16 = vpop.f32.mrf.mxu3  ;;  %v1256_v0 = vld [vmem:[%s3096_s3] sm:$0xff]  ;;  %1357 = vmatpush.msra.mxu1 %v1287_v1 }
  0xc3   : > { %v2634_v19 = vadd.f32 %v883_v16, %v835_v15  ;;  %v2698_v16 = vpack.c.bf16 %v376_v61, %v372_v60  ;;  %1358 = vmatpush.msra.mxu1 %v1286_v62 }
  0xc5   : > { %1058 = vmatmul.bf16.gmra.mxu1 %v2408_v51 }
  0xc6   : > { %1359 = vmatpush.msra.mxu1 %v1285_v31 }
  0xc8   : > { %v836_v13 = vpop.f32.mrf.mxu2  ;;  %1360 = vmatpush.msra.mxu1 %v1284_v50 }
  0xc9   : > { %v837_v34 = vadd.f32 %v836_v13, %v2552_v17  ;;  %v885_v35 = vpop.f32.mrf.mxu3 }
  0xcb   : > { %v2661_v44 = vadd.f32 %v885_v35, %v837_v34  ;;  %v814_v35 = vpop.f32.mrf.mxu0 }
  0xcc   : > { %v815_v61 = vadd.f32 %v814_v35, %v2552_v17 }
  0xcd   : > { %936 = vmatmul.bf16.gmra.mxu2 %v2656_v36  ;;  %1034 = vmatmul.bf16.gmra.mxu0 %v2341_v12  ;;  %v1259_v12 = vld [vmem:[%s3096_s3 + $0x18] sm:$0xff] }
  0xce   : > { %985 = vmatmul.bf16.gmra.mxu3 %v2658_v43  ;;  %1304 = vmatpush.msra.mxu0 %v1259_v12 }
  0xd0   : > { %v839_v53 = vpop.f32.mrf.mxu2  ;;  %1305 = vmatpush.msra.mxu0 %v1258_v40 }
  0xd1   : > { %v840_v54 = vadd.f32 %v839_v53, %v2552_v17  ;;  %v888_v55 = vpop.f32.mrf.mxu3  ;;  %v863_v53 = vpop.f32.mrf.mxu1 }
  0xd2   : > { %1306 = vmatpush.msra.mxu0 %v1257_v59  ;;  %v864_v5 = vadd.f32 %v863_v53, %v815_v61 }
  0xd3   : > { %v2679_v58 = vadd.f32 %v888_v55, %v840_v54  ;;  %v812_v54 = vadd.f32 %v811_v25, %v2552_v17  ;;  %v1281_v25 = vld [vmem:[%s3096_s3 + $0xc8] sm:$0xff] }
  0xd4   : > { %1307 = vmatpush.msra.mxu0 %v1256_v0 }
  0xd5   : > { %1063 = vmatmul.bf16.gmra.mxu1 %v2436_v4  ;;  %v861_v59 = vadd.f32 %v860_v30, %v812_v54 }
  0xd8   : > { %v841_v3 = vpop.f32.mrf.mxu2 }
  0xd9   : > { %v842_v11 = vadd.f32 %v841_v3, %v2552_v17  ;;  %v890_v15 = vpop.f32.mrf.mxu3  ;;  %v865_v0 = vpop.f32.mrf.mxu1 }
  0xdb   : > { %v2703_v18 = vadd.f32 %v890_v15, %v842_v11  ;;  %v1282_v11 = vld [vmem:[%s3096_s3 + $0xd0] sm:$0xff] }
  0xdd   : > { %941 = vmatmul.bf16.gmra.mxu2 %v2698_v16  ;;  %1039 = vmatmul.bf16.gmra.mxu0 %v2385_v39 }
  0xde   : > { %990 = vmatmul.bf16.gmra.mxu3 %v2700_v38 }
  0xe0   : > { %v844_v22 = vpop.f32.mrf.mxu2 }
  0xe1   : > { %v845_v23 = vadd.f32 %v844_v22, %v2552_v17  ;;  %v893_v24 = vpop.f32.mrf.mxu3 }
  0xe3   : > { %v2712_v51 = vadd.f32 %v893_v24, %v845_v23 }
  0xe5   : > { %1068 = vmatmul.bf16.gmra.mxu1 %v2464_v21 }
  0xe8   : > { %v846_v39 = vpop.f32.mrf.mxu2 }
  0xe9   : > { %v847_v13 = vadd.f32 %v846_v39, %v2552_v17  ;;  %v895_v33 = vpop.f32.mrf.mxu3 }
  0xeb   : > { %v2720_v34 = vadd.f32 %v895_v33, %v847_v13 }
  0xed   : > { %1102 = vmatmul.bf16.vlgmr.msra.gmra.mxu2 %v2415_v56  ;;  %v816_v56 = vpop.f32.mrf.mxu0 }
  0xee   : > { %1151 = vmatmul.bf16.vlgmr.msra.gmra.mxu3 %v2417_v57  ;;  %v1283_v57 = vld [vmem:[%s3096_s3 + $0xd8] sm:$0xff]  ;;  %v817_v21 = vadd.f32 %v816_v56, %v2552_v17 }
  0xef   : > { %1361 = vmatpush.msra.mxu1 %v1283_v57  ;;  %v1279_v56 = vld [vmem:[%s3096_s3 + $0xb8] sm:$0xff] }
  0xf0   : > { %v907_v28 = vpop.f32.mrf.mxu2 }
  0xf1   : > { %v908_v55 = vadd.f32 %v907_v28, %v859_v45  ;;  %v956_v12 = vpop.f32.mrf.mxu3  ;;  %1362 = vmatpush.msra.mxu1 %v1282_v11  ;;  %v1280_v28 = vld [vmem:[%s3096_s3 + $0xc0] sm:$0xff] }
  0xf3   : > { %v2728_v4 = vadd.f32 %v956_v12, %v908_v55  ;;  %1363 = vmatpush.msra.mxu1 %v1281_v25  ;;  %v1277_v25 = vld [vmem:[%s3096_s3 + $0xa8] sm:$0xff] }
  0xf5   : > { %v1192_v40 = vmax.f32 %v2728_v4, 0.0  ;;  %v819_v20 = vpop.f32.mrf.mxu0  ;;  %1073 = vmatmul.bf16.gmra.mxu1 %v2207_v2 }
  0xf6   : > { %v820_v31 = vadd.f32 %v819_v20, %v2552_v17  ;;  %1364 = vmatpush.msra.mxu1 %v1280_v28 }
  0xf7   : > { %1308 = vmatmul.f32.vlgmr.msra.gmra.mxu0 %v1192_v40 }
  0xf8   : > { %v909_v60 = vpop.f32.mrf.mxu2  ;;  %1365 = vmatpush.msra.mxu1 %v1279_v56 }
  0xf9   : > { %v910_v37 = vadd.f32 %v909_v60, %v861_v59  ;;  %v958_v63 = vpop.f32.mrf.mxu3 }
  0xfb   : > { %v2738_v1 = vadd.f32 %v958_v63, %v910_v37 }
  0xfd   : > { %v1194_v3 = vmax.f32 %v2738_v1, 0.0  ;;  %1107 = vmatmul.bf16.gmra.mxu2 %v2443_v9  ;;  %v868_v9 = vpop.f32.mrf.mxu1  ;;  %v821_v13 = vpop.f32.mrf.mxu0 }
  0xfe   : > { %1156 = vmatmul.bf16.gmra.mxu3 %v2445_v10  ;;  %v866_v10 = vadd.f32 %v865_v0, %v817_v21  ;;  %v869_v45 = vadd.f32 %v868_v9, %v820_v31  ;;  %v822_v2 = vadd.f32 %v821_v13, %v2552_v17  ;;  %v1278_v21 = vld [vmem:[%s3096_s3 + $0xb0] sm:$0xff] }
  0xff   : > { %1311 = vmatmul.f32.gmra.mxu0 %v1194_v3  ;;  %1366 = vmatpush.msra.mxu1 %v1278_v21 }
 0x100   : > { %v912_v15 = vpop.f32.mrf.mxu2 }
 0x101   : > { %v913_v62 = vadd.f32 %v912_v15, %v864_v5  ;;  %v961_v22 = vpop.f32.mrf.mxu3  ;;  %1367 = vmatpush.msra.mxu1 %v1277_v25 }
 0x103   : > { %v2749_v23 = vadd.f32 %v961_v22, %v913_v62 }
 0x105   : > { %v1196_v24 = vmax.f32 %v2749_v23, 0.0  ;;  %v870_v50 = vpop.f32.mrf.mxu1  ;;  %1078 = vmatmul.bf16.gmra.mxu1 %v2282_v41 }
 0x107   : > { %1314 = vmatmul.f32.gmra.mxu0 %v1196_v24 }
 0x108   : > { %v914_v30 = vpop.f32.mrf.mxu2 }
 0x109   : > { %v915_v39 = vadd.f32 %v914_v30, %v866_v10  ;;  %v963_v32 = vpop.f32.mrf.mxu3 }
 0x10b   : > { %v2759_v33 = vadd.f32 %v963_v32, %v915_v39 }
 0x10d   : > { %v1198_v35 = vmax.f32 %v2759_v33, 0.0  ;;  %1112 = vmatmul.bf16.gmra.mxu2 %v2471_v26  ;;  %v824_v26 = vpop.f32.mrf.mxu0  ;;  %v873_v60 = vpop.f32.mrf.mxu1 }
 0x10e   : > { %1161 = vmatmul.bf16.gmra.mxu3 %v2473_v27  ;;  %v871_v27 = vadd.f32 %v870_v50, %v822_v2  ;;  %v825_v61 = vadd.f32 %v824_v26, %v2552_v17 }
 0x10f   : > { %1317 = vmatmul.f32.gmra.mxu0 %v1198_v35 }
 0x110   : > { %v917_v53 = vpop.f32.mrf.mxu2  ;;  %v874_v11 = vadd.f32 %v873_v60, %v825_v61 }
 0x111   : > { %v918_v54 = vadd.f32 %v917_v53, %v869_v45  ;;  %v966_v55 = vpop.f32.mrf.mxu3  ;;  %v1276_v45 = vld [vmem:[%s3096_s3 + $0xa0] sm:$0xff] }
 0x112   : > { %1368 = vmatpush.msra.mxu1 %v1276_v45 }
 0x113   : > { %v2770_v12 = vadd.f32 %v966_v55, %v918_v54 }
 0x115   : > { %v1200_v59 = vmax.f32 %v2770_v12, 0.0  ;;  %v826_v15 = vpop.f32.mrf.mxu0  ;;  %v875_v9 = vpop.f32.mrf.mxu1  ;;  %1083 = vmatmul.bf16.gmra.mxu1 %v2345_v14 }
 0x116   : > { %v827_v41 = vadd.f32 %v826_v15, %v2552_v17 }
 0x117   : > { %1320 = vmatmul.f32.gmra.mxu0 %v1200_v59 }
 0x118   : > { %v919_v57 = vpop.f32.mrf.mxu2 }
 0x119   : > { %v920_v37 = vadd.f32 %v919_v57, %v871_v27  ;;  %v968_v63 = vpop.f32.mrf.mxu3 }
 0x11b   : > { %v2780_v0 = vadd.f32 %v968_v63, %v920_v37 }
 0x11d   : > { %v1202_v5 = vmax.f32 %v2780_v0, 0.0  ;;  %1117 = vmatmul.bf16.gmra.mxu2 %v2500_v47  ;;  %v2799_v31 = vpop.f32.mrf.mxu0 }
 0x11e   : > { %1166 = vmatmul.bf16.gmra.mxu3 %v2502_v48  ;;  %v876_v48 = vadd.f32 %v875_v9, %v827_v41  ;;  %v1272_v41 = vld [vmem:[%s3096_s3 + $0x80] sm:$0xff] }
 0x11f   : > { %1323 = vmatmul.f32.gmra.mxu0 %v1202_v5 }
 0x120   : > { %v922_v20 = vpop.f32.mrf.mxu2 }
 0x121   : > { %v923_v62 = vadd.f32 %v922_v20, %v874_v11  ;;  %v971_v22 = vpop.f32.mrf.mxu3 }
 0x123   : > { %v2791_v10 = vadd.f32 %v971_v22, %v923_v62 }
 0x125   : > { %v1204_v47 = vmax.f32 %v2791_v10, 0.0  ;;  %v2813_v53 = vpop.f32.mrf.mxu0  ;;  %1088 = vmatmul.bf16.gmra.mxu1 %v2389_v42 }
 0x127   : > { %1326 = vmatmul.f32.gmra.mxu0 %v1204_v47 }
 0x128   : > { %v924_v30 = vpop.f32.mrf.mxu2 }
 0x129   : > { %v925_v17 = vadd.f32 %v924_v30, %v876_v48  ;;  %v973_v39 = vpop.f32.mrf.mxu3 }
 0x12b   : > { %v2802_v32 = vadd.f32 %v973_v39, %v925_v17 }
 0x12d   : > { %v1206_v13 = vmax.f32 %v2802_v32, 0.0  ;;  %1122 = vmatmul.bf16.gmra.mxu2 %v2535_v6  ;;  %v2827_v27 = vpop.f32.mrf.mxu0 }
 0x12e   : > { %1171 = vmatmul.bf16.gmra.mxu3 %v2537_v7  ;;  %v1275_v7 = vld [vmem:[%s3096_s3 + $0x98] sm:$0xff] }
 0x12f   : > { %1329 = vmatmul.f32.gmra.mxu0 %v1206_v13  ;;  %1369 = vmatpush.msra.mxu1 %v1275_v7 }
 0x130   : > { %v927_v50 = vpop.f32.mrf.mxu2 }
 0x131   : > { %v928_v28 = vadd.f32 %v927_v50, %v2569_v29  ;;  %v976_v14 = vpop.f32.mrf.mxu3 }
 0x132   : > { %v1054_v20 = vpop.f32.mrf.mxu1 }
 0x133   : > { %v2815_v2 = vadd.f32 %v976_v14, %v928_v28 }
 0x135   : > { %v1208_v6 = vmax.f32 %v2815_v2, 0.0  ;;  %v2841_v63 = vpop.f32.mrf.mxu0 }
 0x137   : > { %1332 = vmatmul.f32.gmra.mxu0 %v1208_v6 }
 0x138   : > { %v929_v54 = vpop.f32.mrf.mxu2 }
 0x139   : > { %v930_v55 = vadd.f32 %v929_v54, %v2592_v52  ;;  %v978_v26 = vpop.f32.mrf.mxu3  ;;  %v1274_v52 = vld [vmem:[%s3096_s3 + $0x90] sm:$0xff]  ;;  %v2881_v54 = vperm.slane %v2542_v8, 1 }
 0x13a   : > { %1370 = vmatpush.msra.mxu1 %v1274_v52  ;;  %v1056_v25 = vpop.f32.mrf.mxu1 }
 0x13b   : > { %v2825_v29 = vadd.f32 %v978_v26, %v930_v55 }
 0x13d   : > { %v1210_v56 = vmax.f32 %v2825_v29, 0.0  ;;  %1127 = vmatmul.bf16.gmra.mxu2 %v2585_v46  ;;  %v1273_v46 = vld [vmem:[%s3096_s3 + $0x88] sm:$0xff] }
 0x13e   : > { %1176 = vmatmul.bf16.gmra.mxu3 %v2587_v49  ;;  %1371 = vmatpush.msra.mxu1 %v1273_v46 }
 0x13f   : > { %1335 = vmatmul.f32.gmra.mxu0 %v1210_v56 }
 0x140   : > { %v932_v57 = vpop.f32.mrf.mxu2  ;;  %1372 = vmatpush.msra.mxu1 %v1272_v41 }
 0x141   : > { %v933_v42 = vadd.f32 %v932_v57, %v2634_v19  ;;  %v981_v60 = vpop.f32.mrf.mxu3 }
 0x142   : > { %v1059_v7 = vpop.f32.mrf.mxu1 }
 0x143   : > { %v2838_v61 = vadd.f32 %v981_v60, %v933_v42 }
 0x145   : > { %v1212_v37 = vmax.f32 %v2838_v61, 0.0 }
 0x147   : > { %1338 = vmatmul.f32.gmra.mxu0 %v1212_v37 }
 0x148   : > { %v934_v49 = vpop.f32.mrf.mxu2 }
 0x149   : > { %v935_v11 = vadd.f32 %v934_v49, %v2661_v44  ;;  %v983_v15 = vpop.f32.mrf.mxu3  ;;  %v2859_v44 = vpop.f32.mrf.mxu0 }
 0x14a   : > { %v1061_v42 = vpop.f32.mrf.mxu1 }
 0x14b   : > { %v2849_v19 = vadd.f32 %v983_v15, %v935_v11 }
 0x14d   : > { %v1214_v21 = vmax.f32 %v2849_v19, 0.0  ;;  %1132 = vmatmul.bf16.gmra.mxu2 %v2656_v36 }
 0x14e   : > { %1181 = vmatmul.bf16.gmra.mxu3 %v2658_v43 }
 0x14f   : > { %1341 = vmatmul.f32.gmra.mxu0 %v1214_v21 }
 0x150   : > { %v937_v62 = vpop.f32.mrf.mxu2 }
 0x151   : > { %v938_v22 = vadd.f32 %v937_v62, %v2679_v58  ;;  %v986_v9 = vpop.f32.mrf.mxu3  ;;  %v2868_v39 = vpop.f32.mrf.mxu0 }
 0x153   : > { %v2862_v48 = vadd.f32 %v986_v9, %v938_v22 }
 0x155   : > { %v1216_v36 = vmax.f32 %v2862_v48, 0.0 }
 0x157   : > { %1344 = vmatmul.f32.gmra.mxu0 %v1216_v36 }
 0x158   : > { %v939_v43 = vpop.f32.mrf.mxu2 }
 0x159   : > { %v940_v30 = vadd.f32 %v939_v43, %v2703_v18  ;;  %v988_v17 = vpop.f32.mrf.mxu3  ;;  %v2883_v55 = vpop.f32.mrf.mxu0 }
 0x15b   : > { %v2870_v45 = vadd.f32 %v988_v17, %v940_v30 }
 0x15d   : > { %v1218_v50 = vmax.f32 %v2870_v45, 0.0  ;;  %1137 = vmatmul.bf16.gmra.mxu2 %v2698_v16 }
 0x15e   : > { %1186 = vmatmul.bf16.gmra.mxu3 %v2700_v38  ;;  %v1006_v38 = vadd.f32 %v2799_v31, %v2881_v54  ;;  %v1008_v31 = vadd.f32 %v2813_v53, %v2881_v54  ;;  %v1011_v53 = vadd.f32 %v2827_v27, %v2881_v54  ;;  %v1013_v27 = vadd.f32 %v2841_v63, %v2881_v54 }
 0x15f   : > { %1347 = vmatmul.f32.gmra.mxu0 %v1218_v50 }
 0x160   : > { %v942_v58 = vpop.f32.mrf.mxu2  ;;  %v1055_v8 = vadd.f32 %v1054_v20, %v1006_v38  ;;  %v1064_v20 = vpop.f32.mrf.mxu1  ;;  %v1057_v62 = vadd.f32 %v1056_v25, %v1008_v31 }
 0x161   : > { %v943_v28 = vadd.f32 %v942_v58, %v2712_v51  ;;  %v991_v14 = vpop.f32.mrf.mxu3  ;;  %v2894_v46 = vpop.f32.mrf.mxu0  ;;  %v1060_v58 = vadd.f32 %v1059_v7, %v1011_v53 }
 0x163   : > { %v2878_v18 = vadd.f32 %v991_v14, %v943_v28 }
 0x165   : > { %v1220_v26 = vmax.f32 %v2878_v18, 0.0 }
 0x167   : > { %1350 = vmatmul.f32.gmra.mxu0 %v1220_v26 }
 0x168   : > { %v944_v16 = vpop.f32.mrf.mxu2 }
 0x169   : > { %v945_v51 = vadd.f32 %v944_v16, %v2720_v34  ;;  %v993_v52 = vpop.f32.mrf.mxu3  ;;  %v1066_v16 = vpop.f32.mrf.mxu1 }
 0x16a   : > { %v1025_v38 = vpop.f32.mrf.mxu0 }
 0x16b   : > { %v2891_v57 = vadd.f32 %v993_v52, %v945_v51 }
 0x16d   : > { %v1222_v60 = vmax.f32 %v2891_v57, 0.0 }
 0x16f   : > { %1353 = vmatmul.f32.gmra.mxu0 %v1222_v60 }
 0x170   : > { %v1103_v49 = vpop.f32.mrf.mxu2 }
 0x171   : > { %v1104_v11 = vadd.f32 %v1103_v49, %v1055_v8  ;;  %v1152_v15 = vpop.f32.mrf.mxu3  ;;  %v1062_v8 = vadd.f32 %v1061_v42, %v1013_v27 }
 0x173   : > { %v1153_v34 = vadd.f32 %v1152_v15, %v1104_v11  ;;  %v1069_v15 = vpop.f32.mrf.mxu1 }
 0x175   : > { %v1193_v41 = vmax.f32 %v1153_v34, 0.0  ;;  %v1027_v34 = vpop.f32.mrf.mxu0 }
 0x177   : > { %v1224_v22 = vpack.c.bf16 %v1193_v41, %v1192_v40  ;;  %1373 = vmatmul.f32.vlgmr.msra.gmra.mxu1 %v1193_v41 }
 0x178   : > { %v1105_v9 = vpop.f32.mrf.mxu2 }
 0x179   : > { %1240 = vst [vmem:[%s2907_s30] sm:$0xff] %v1224_v22  ;;  %v1106_v43 = vadd.f32 %v1105_v9, %v1057_v62  ;;  %v1154_v30 = vpop.f32.mrf.mxu3 }
 0x17b   : > { %v1155_v17 = vadd.f32 %v1154_v30, %v1106_v43  ;;  %v1071_v9 = vpop.f32.mrf.mxu1 }
 0x17d   : > { %v1195_v28 = vmax.f32 %v1155_v17, 0.0  ;;  %v1030_v43 = vpop.f32.mrf.mxu0 }
 0x17f   : > { %v1225_v14 = vpack.c.bf16 %v1195_v28, %v1194_v3  ;;  %1376 = vmatmul.f32.gmra.mxu1 %v1195_v28  ;;  %v1016_v3 = vadd.f32 %v2859_v44, %v2881_v54  ;;  %v1018_v44 = vadd.f32 %v2868_v39, %v2881_v54 }
 0x180   : > { %v1108_v25 = vpop.f32.mrf.mxu2 }
 0x181   : > { %1241 = vst [vmem:[%s2907_s30 + $0x8] sm:$0xff] %v1225_v14  ;;  %v1109_v4 = vadd.f32 %v1108_v25, %v1060_v58  ;;  %v1157_v40 = vpop.f32.mrf.mxu3  ;;  %v1065_v41 = vadd.f32 %v1064_v20, %v1016_v3  ;;  %v1067_v30 = vadd.f32 %v1066_v16, %v1018_v44 }
 0x183   : > { %v1158_v51 = vadd.f32 %v1157_v40, %v1109_v4  ;;  %v1074_v25 = vpop.f32.mrf.mxu1 }
 0x185   : > { %v1197_v52 = vmax.f32 %v1158_v51, 0.0  ;;  %v1032_v12 = vpop.f32.mrf.mxu0 }
 0x187   : > { %v1226_v7 = vpack.c.bf16 %v1197_v52, %v1196_v24  ;;  %1379 = vmatmul.f32.gmra.mxu1 %v1197_v52 }
 0x188   : > { %v1110_v1 = vpop.f32.mrf.mxu2 }
 0x189   : > { %1242 = vst [vmem:[%s2907_s30 + $0x10] sm:$0xff] %v1226_v7  ;;  %v1111_v49 = vadd.f32 %v1110_v1, %v1062_v8  ;;  %v1159_v11 = vpop.f32.mrf.mxu3  ;;  %v1026_v7 = vadd.f32 %v1025_v38, %v2881_v54 }
 0x18b   : > { %v1160_v31 = vadd.f32 %v1159_v11, %v1111_v49 }
 0x18d   : > { %v1199_v63 = vmax.f32 %v1160_v31, 0.0  ;;  %v1035_v49 = vpop.f32.mrf.mxu0 }
 0x18f   : > { %v1227_v42 = vpack.c.bf16 %v1199_v63, %v1198_v35  ;;  %1382 = vmatmul.f32.gmra.mxu1 %v1199_v63  ;;  %v1021_v35 = vadd.f32 %v2883_v55, %v2881_v54  ;;  %v1023_v55 = vadd.f32 %v2894_v46, %v2881_v54 }
 0x190   : > { %v1113_v23 = vpop.f32.mrf.mxu2 }
 0x191   : > { %1243 = vst [vmem:[%s2907_s30 + $0x18] sm:$0xff] %v1227_v42  ;;  %v1114_v24 = vadd.f32 %v1113_v23, %v1065_v41  ;;  %v1162_v62 = vpop.f32.mrf.mxu3  ;;  %v1070_v14 = vadd.f32 %v1069_v15, %v1021_v35  ;;  %v1072_v52 = vadd.f32 %v1071_v9, %v1023_v55  ;;  %v1075_v15 = vadd.f32 %v1074_v25, %v1026_v7 }
 0x192   : > { %v1028_v42 = vadd.f32 %v1027_v34, %v2881_v54 }
 0x193   : > { %v1163_v22 = vadd.f32 %v1162_v62, %v1114_v24 }
 0x195   : > { %v1201_v53 = vmax.f32 %v1163_v22, 0.0  ;;  %v1037_v23 = vpop.f32.mrf.mxu0 }
 0x197   : > { %v1228_v20 = vpack.c.bf16 %v1201_v53, %v1200_v59  ;;  %1385 = vmatmul.f32.gmra.mxu1 %v1201_v53 }
 0x198   : > { %v1115_v33 = vpop.f32.mrf.mxu2 }
 0x199   : > { %1244 = vst [vmem:[%s2907_s30 + $0x20] sm:$0xff] %v1228_v20  ;;  %v1116_v17 = vadd.f32 %v1115_v33, %v1067_v30  ;;  %v1164_v58 = vpop.f32.mrf.mxu3 }
 0x19b   : > { %v1165_v28 = vadd.f32 %v1164_v58, %v1116_v17  ;;  %v1033_v58 = vadd.f32 %v1032_v12, %v2881_v54 }
 0x19d   : > { %v1203_v39 = vmax.f32 %v1165_v28, 0.0  ;;  %v1040_v34 = vpop.f32.mrf.mxu0 }
 0x19f   : > { %v1229_v4 = vpack.c.bf16 %v1203_v39, %v1202_v5  ;;  %1388 = vmatmul.f32.gmra.mxu1 %v1203_v39  ;;  %v1076_v5 = vpop.f32.mrf.mxu1 }
 0x1a0   : > { %v1118_v16 = vpop.f32.mrf.mxu2  ;;  %v1077_v62 = vadd.f32 %v1076_v5, %v1028_v42 }
 0x1a1   : > { %1245 = vst [vmem:[%s2907_s30 + $0x28] sm:$0xff] %v1229_v4  ;;  %v1119_v59 = vadd.f32 %v1118_v16, %v1070_v14  ;;  %v1167_v40 = vpop.f32.mrf.mxu3 }
 0x1a3   : > { %v1168_v27 = vadd.f32 %v1167_v40, %v1119_v59 }
 0x1a5   : > { %v1205_v51 = vmax.f32 %v1168_v27, 0.0  ;;  %v1042_v4 = vpop.f32.mrf.mxu0 }
 0x1a6   : > { %v1043_v42 = vadd.f32 %v1042_v4, %v2881_v54 }
 0x1a7   : > { %v1230_v8 = vpack.c.bf16 %v1205_v51, %v1204_v47  ;;  %1391 = vmatmul.f32.gmra.mxu1 %v1205_v51  ;;  %v1079_v63 = vpop.f32.mrf.mxu1 }
 0x1a8   : > { %v1120_v0 = vpop.f32.mrf.mxu2 }
 0x1a9   : > { %1246 = vst [vmem:[%s2907_s30 + $0x30] sm:$0xff] %v1230_v8  ;;  %v1121_v1 = vadd.f32 %v1120_v0, %v1072_v52  ;;  %v1169_v3 = vpop.f32.mrf.mxu3  ;;  %v1038_v0 = vadd.f32 %v1037_v23, %v2881_v54 }
 0x1ab   : > { %v1170_v11 = vadd.f32 %v1169_v3, %v1121_v1 }
 0x1ad   : > { %v1207_v31 = vmax.f32 %v1170_v11, 0.0  ;;  %v1309_v8 = vpop.f32.mrf.mxu0 }
 0x1af   : > { %v1231_v46 = vpack.c.bf16 %v1207_v31, %v1206_v13  ;;  %1394 = vmatmul.f32.gmra.mxu1 %v1207_v31  ;;  %v1031_v13 = vadd.f32 %v1030_v43, %v2881_v54  ;;  %v1081_v30 = vpop.f32.mrf.mxu1 }
 0x1b0   : > { %v1123_v10 = vpop.f32.mrf.mxu2  ;;  %v1082_v39 = vadd.f32 %v1081_v30, %v1033_v58 }
 0x1b1   : > { %1247 = vst [vmem:[%s2907_s30 + $0x38] sm:$0xff] %v1231_v46  ;;  %v1124_v47 = vadd.f32 %v1123_v10, %v1075_v15  ;;  %v1172_v41 = vpop.f32.mrf.mxu3  ;;  %v1080_v20 = vadd.f32 %v1079_v63, %v1031_v13 }
 0x1b3   : > { %v1173_v38 = vadd.f32 %v1172_v41, %v1124_v47 }
 0x1b5   : > { %v1209_v24 = vmax.f32 %v1173_v38, 0.0  ;;  %v1312_v46 = vpop.f32.mrf.mxu0 }
 0x1b7   : > { %v1232_v44 = vpack.c.bf16 %v1209_v24, %v1208_v6  ;;  %1397 = vmatmul.f32.gmra.mxu1 %v1209_v24  ;;  %v1084_v14 = vpop.f32.mrf.mxu1 }
 0x1b8   : > { %v1125_v32 = vpop.f32.mrf.mxu2 }
 0x1b9   : > { %1248 = vst [vmem:[%s2907_s30 + $0x40] sm:$0xff] %v1232_v44  ;;  %v1126_v22 = vadd.f32 %v1125_v32, %v1077_v62  ;;  %v1174_v9 = vpop.f32.mrf.mxu3 }
 0x1bb   : > { %v1175_v53 = vadd.f32 %v1174_v9, %v1126_v22 }
 0x1bd   : > { %v1211_v33 = vmax.f32 %v1175_v53, 0.0  ;;  %v1315_v62 = vpop.f32.mrf.mxu0 }
 0x1bf   : > { %v1233_v35 = vpack.c.bf16 %v1211_v33, %v1210_v56  ;;  %1400 = vmatmul.f32.gmra.mxu1 %v1211_v33  ;;  %v1036_v56 = vadd.f32 %v1035_v49, %v2881_v54  ;;  %v1086_v51 = vpop.f32.mrf.mxu1 }
 0x1c0   : > { %v1128_v2 = vpop.f32.mrf.mxu2  ;;  %v1087_v1 = vadd.f32 %v1086_v51, %v1038_v0 }
 0x1c1   : > { %1249 = vst [vmem:[%s2907_s30 + $0x48] sm:$0xff] %v1233_v35  ;;  %v1129_v6 = vadd.f32 %v1128_v2, %v1080_v20  ;;  %v1177_v17 = vpop.f32.mrf.mxu3  ;;  %v1085_v55 = vadd.f32 %v1084_v14, %v1036_v56 }
 0x1c3   : > { %v1178_v43 = vadd.f32 %v1177_v17, %v1129_v6 }
 0x1c5   : > { %v1213_v28 = vmax.f32 %v1178_v43, 0.0  ;;  %v1318_v30 = vpop.f32.mrf.mxu0 }
 0x1c7   : > { %v1234_v25 = vpack.c.bf16 %v1213_v28, %v1212_v37  ;;  %1403 = vmatmul.f32.gmra.mxu1 %v1213_v28  ;;  %v1089_v15 = vpop.f32.mrf.mxu1 }
 0x1c8   : > { %v1130_v29 = vpop.f32.mrf.mxu2 }
 0x1c9   : > { %1250 = vst [vmem:[%s2907_s30 + $0x50] sm:$0xff] %v1234_v25  ;;  %v1131_v16 = vadd.f32 %v1130_v29, %v1082_v39  ;;  %v1179_v59 = vpop.f32.mrf.mxu3 }
 0x1cb   : > { %v1180_v40 = vadd.f32 %v1179_v59, %v1131_v16 }
 0x1cd   : > { %v1215_v27 = vmax.f32 %v1180_v40, 0.0  ;;  %v1321_v57 = vpop.f32.mrf.mxu0 }
 0x1cf   : > { %v1235_v12 = vpack.c.bf16 %v1215_v27, %v1214_v21  ;;  %1406 = vmatmul.f32.gmra.mxu1 %v1215_v27  ;;  %v1041_v21 = vadd.f32 %v1040_v34, %v2881_v54  ;;  %v1091_v23 = vpop.f32.mrf.mxu1  ;;  %v2977_v54 = vld [vmem:[%s3097_s4] ss:$0 sm:$0xff] }
 0x1d0   : > { %v1133_v61 = vpop.f32.mrf.mxu2  ;;  %v1092_v44 = vadd.f32 %v1091_v23, %v1043_v42  ;;  %v1310_v18 = vadd.f32 %v2977_v54, %v1309_v8  ;;  %v1316_v35 = vadd.f32 %v2977_v54, %v1315_v62  ;;  %v1319_v58 = vadd.f32 %v2977_v54, %v1318_v30 }
 0x1d1   : > { %1251 = vst [vmem:[%s2907_s30 + $0x58] sm:$0xff] %v1235_v12  ;;  %v1134_v37 = vadd.f32 %v1133_v61, %v1085_v55  ;;  %v1182_v52 = vpop.f32.mrf.mxu3  ;;  %v1090_v10 = vadd.f32 %v1089_v15, %v1041_v21  ;;  %v1322_v39 = vadd.f32 %v2977_v54, %v1321_v57 }
 0x1d3   : > { %v1183_v5 = vadd.f32 %v1182_v52, %v1134_v37 }
 0x1d5   : > { %v1217_v7 = vmax.f32 %v1183_v5, 0.0  ;;  %v1324_v2 = vpop.f32.mrf.mxu0 }
 0x1d6   : > { %v1325_v56 = vadd.f32 %v2977_v54, %v1324_v2 }
 0x1d7   : > { %v1236_v3 = vpack.c.bf16 %v1217_v7, %v1216_v36  ;;  %1409 = vmatmul.f32.gmra.mxu1 %v1217_v7 }
 0x1d8   : > { %v1135_v19 = vpop.f32.mrf.mxu2 }
 0x1d9   : > { %1252 = vst [vmem:[%s2907_s30 + $0x60] sm:$0xff] %v1236_v3  ;;  %v1136_v49 = vadd.f32 %v1135_v19, %v1087_v1  ;;  %v1184_v11 = vpop.f32.mrf.mxu3 }
 0x1db   : > { %v1185_v31 = vadd.f32 %v1184_v11, %v1136_v49 }
 0x1dd   : > { %v1219_v47 = vmax.f32 %v1185_v31, 0.0  ;;  %v1327_v14 = vpop.f32.mrf.mxu0 }
 0x1de   : > { %v1328_v55 = vadd.f32 %v2977_v54, %v1327_v14 }
 0x1df   : > { %v1237_v41 = vpack.c.bf16 %v1219_v47, %v1218_v50  ;;  %1412 = vmatmul.f32.gmra.mxu1 %v1219_v47 }
 0x1e0   : > { %v1138_v48 = vpop.f32.mrf.mxu2 }
 0x1e1   : > { %1253 = vst [vmem:[%s2907_s30 + $0x68] sm:$0xff] %v1237_v41  ;;  %v1139_v36 = vadd.f32 %v1138_v48, %v1090_v10  ;;  %v1187_v63 = vpop.f32.mrf.mxu3 }
 0x1e3   : > { %v1188_v38 = vadd.f32 %v1187_v63, %v1139_v36 }
 0x1e5   : > { %v1221_v24 = vmax.f32 %v1188_v38, 0.0  ;;  %v1330_v29 = vpop.f32.mrf.mxu0 }
 0x1e6   : > { %v1331_v51 = vadd.f32 %v2977_v54, %v1330_v29 }
 0x1e7   : > { %v1238_v32 = vpack.c.bf16 %v1221_v24, %v1220_v26  ;;  %1415 = vmatmul.f32.gmra.mxu1 %v1221_v24 }
 0x1e8   : > { %v1140_v45 = vpop.f32.mrf.mxu2 }
 0x1e9   : > { %1254 = vst [vmem:[%s2907_s30 + $0x70] sm:$0xff] %v1238_v32  ;;  %v1141_v50 = vadd.f32 %v1140_v45, %v1092_v44  ;;  %v1189_v13 = vpop.f32.mrf.mxu3 }
 0x1eb   : > { %v1190_v22 = vadd.f32 %v1189_v13, %v1141_v50 }
 0x1ed   : > { %v1223_v9 = vmax.f32 %v1190_v22, 0.0  ;;  %v1333_v40 = vpop.f32.mrf.mxu0 }
 0x1ee   : > { %v1334_v8 = vadd.f32 %v2977_v54, %v1333_v40 }
 0x1ef   : > { %v1239_v53 = vpack.c.bf16 %v1223_v9, %v1222_v60  ;;  %1418 = vmatmul.f32.gmra.mxu1 %v1223_v9  ;;  %v1313_v60 = vadd.f32 %v2977_v54, %v1312_v46 }
 0x1f1   : > { %1255 = vst [vmem:[%s2907_s30 + $0x78] sm:$0xff] %v1239_v53 }
 0x1f4   : > { %v1374_v26 = vpop.f32.mrf.mxu1 }
 0x1f5   : > { %v1375_v20 = vadd.f32 %v1374_v26, %v1310_v18  ;;  %v1336_v61 = vpop.f32.mrf.mxu0 }
 0x1f6   : > { %v1337_v1 = vadd.f32 %v2977_v54, %v1336_v61 }
 0x1f7   : > { %1423 = vst.msk [vmem:[%s2987_s11] sm:$0xff] %vm1422_vm0, %v1375_v20  ;;  %1455 = vrot.lane.b32.xlu0 %v1375_v20, %s2018_s12 }
 0x1fc   : > { %v1377_v33 = vpop.f32.mrf.mxu1 }
 0x1fd   : > { %v1378_v34 = vadd.f32 %v1377_v33, %v1313_v60  ;;  %v1339_v7 = vpop.f32.mrf.mxu0 }
 0x1fe   : > { %v1340_v49 = vadd.f32 %v2977_v54, %v1339_v7 }
 0x1ff   : > { %1424 = vst.msk [vmem:[%s2987_s11 + $0x8] sm:$0xff] %vm1422_vm0, %v1378_v34  ;;  %1457 = vrot.lane.b32.xlu0 %v1378_v34, %s2018_s12 }
 0x204   : > { %v1380_v6 = vpop.f32.mrf.mxu1 }
 0x205   : > { %v1381_v17 = vadd.f32 %v1380_v6, %v1316_v35  ;;  %v1342_v21 = vpop.f32.mrf.mxu0 }
 0x206   : > { %v1343_v46 = vadd.f32 %v2977_v54, %v1342_v21 }
 0x207   : > { %1425 = vst.msk [vmem:[%s2987_s11 + $0x10] sm:$0xff] %vm1422_vm0, %v1381_v17  ;;  %1459 = vrot.lane.b32.xlu1 %v1381_v17, %s2018_s12 }
 0x20c   : > { %v1383_v43 = vpop.f32.mrf.mxu1 }
 0x20d   : > { %v1384_v28 = vadd.f32 %v1383_v43, %v1319_v58  ;;  %v1345_v31 = vpop.f32.mrf.mxu0 }
 0x20e   : > { %v1346_v41 = vadd.f32 %v2977_v54, %v1345_v31 }
 0x20f   : > { %1426 = vst.msk [vmem:[%s2987_s11 + $0x18] sm:$0xff] %vm1422_vm0, %v1384_v28  ;;  %1461 = vrot.lane.b32.xlu1 %v1384_v28, %s2018_s12 }
 0x214   : > { %v1386_v25 = vpop.f32.mrf.mxu1 }
 0x215   : > { %v1387_v4 = vadd.f32 %v1386_v25, %v1322_v39  ;;  %v1348_v48 = vpop.f32.mrf.mxu0 }
 0x216   : > { %v1349_v42 = vadd.f32 %v2977_v54, %v1348_v48 }
 0x217   : > { %1427 = vst.msk [vmem:[%s2987_s11 + $0x20] sm:$0xff] %vm1422_vm0, %v1387_v4  ;;  %1463 = vrot.lane.b32.xlu2 %v1387_v4, %s2018_s12 }
 0x21c   : > { %v1389_v16 = vpop.f32.mrf.mxu1 }
 0x21d   : > { %v1390_v59 = vadd.f32 %v1389_v16, %v1325_v56  ;;  %v1351_v24 = vpop.f32.mrf.mxu0 }
 0x21e   : > { %v1352_v62 = vadd.f32 %v2977_v54, %v1351_v24 }
 0x21f   : > { %1428 = vst.msk [vmem:[%s2987_s11 + $0x28] sm:$0xff] %vm1422_vm0, %v1390_v59  ;;  %1465 = vrot.lane.b32.xlu2 %v1390_v59, %s2018_s12 }
 0x224   : > { %v1392_v27 = vpop.f32.mrf.mxu1 }
 0x225   : > { %v1393_v12 = vadd.f32 %v1392_v27, %v1328_v55  ;;  %v1354_v45 = vpop.f32.mrf.mxu0 }
 0x226   : > { %v1355_v13 = vadd.f32 %v2977_v54, %v1354_v45 }
 0x227   : > { %1429 = vst.msk [vmem:[%s2987_s11 + $0x30] sm:$0xff] %vm1422_vm0, %v1393_v12  ;;  %1467 = vrot.lane.b32.xlu0 %v1393_v12, %s2018_s12 }
 0x22c   : > { %v1395_v37 = vpop.f32.mrf.mxu1 }
 0x22d   : > { %v1396_v52 = vadd.f32 %v1395_v37, %v1331_v51 }
 0x22f   : > { %1430 = vst.msk [vmem:[%s2987_s11 + $0x38] sm:$0xff] %vm1422_vm0, %v1396_v52  ;;  %1469 = vrot.lane.b32.xlu1 %v1396_v52, %s2018_s12 }
 0x234   : > { %v1398_v0 = vpop.f32.mrf.mxu1 }
 0x235   : > { %v1399_v5 = vadd.f32 %v1398_v0, %v1334_v8 }
 0x237   : > { %1431 = vst.msk [vmem:[%s2987_s11 + $0x40] sm:$0xff] %vm1422_vm0, %v1399_v5  ;;  %1471 = vrot.lane.b32.xlu2 %v1399_v5, %s2018_s12 }
 0x23c   : > { %v1401_v3 = vpop.f32.mrf.mxu1 }
 0x23d   : > { %v1402_v19 = vadd.f32 %v1401_v3, %v1337_v1 }
 0x23f   : > { %1432 = vst.msk [vmem:[%s2987_s11 + $0x48] sm:$0xff] %vm1422_vm0, %v1402_v19  ;;  %1473 = vrot.lane.b32.xlu0 %v1402_v19, %s2018_s12 }
 0x244   : > { %v1404_v11 = vpop.f32.mrf.mxu1 }
 0x245   : > { %v1405_v15 = vadd.f32 %v1404_v11, %v1340_v49 }
 0x247   : > { %1433 = vst.msk [vmem:[%s2987_s11 + $0x50] sm:$0xff] %vm1422_vm0, %v1405_v15  ;;  %1475 = vrot.lane.b32.xlu1 %v1405_v15, %s2018_s12 }
 0x24c   : > { %v1407_v10 = vpop.f32.mrf.mxu1 }
 0x24d   : > { %v1408_v47 = vadd.f32 %v1407_v10, %v1343_v46 }
 0x24f   : > { %1434 = vst.msk [vmem:[%s2987_s11 + $0x58] sm:$0xff] %vm1422_vm0, %v1408_v47  ;;  %1477 = vrot.lane.b32.xlu2 %v1408_v47, %s2018_s12 }
 0x254   : > { %v1410_v36 = vpop.f32.mrf.mxu1 }
 0x255   : > { %v1411_v63 = vadd.f32 %v1410_v36, %v1346_v41 }
 0x257   : > { %1435 = vst.msk [vmem:[%s2987_s11 + $0x60] sm:$0xff] %vm1422_vm0, %v1411_v63  ;;  %1479 = vrot.lane.b32.xlu0 %v1411_v63, %s2018_s12 }
 0x25c   : > { %v1413_v38 = vpop.f32.mrf.mxu1 }
 0x25d   : > { %v1414_v23 = vadd.f32 %v1413_v38, %v1349_v42 }
 0x25f   : > { %1436 = vst.msk [vmem:[%s2987_s11 + $0x68] sm:$0xff] %vm1422_vm0, %v1414_v23  ;;  %1481 = vrot.lane.b32.xlu1 %v1414_v23, %s2018_s12 }
 0x264   : > { %v1416_v44 = vpop.f32.mrf.mxu1 }
 0x265   : > { %v1417_v32 = vadd.f32 %v1416_v44, %v1352_v62 }
 0x267   : > { %1437 = vst.msk [vmem:[%s2987_s11 + $0x70] sm:$0xff] %vm1422_vm0, %v1417_v32  ;;  %1483 = vrot.lane.b32.xlu2 %v1417_v32, %s2018_s12 }
 0x269   : > { %v1456_v50 = vpop.permute.xlu0 %1455 }
 0x26a   : > { %1503 = vst.msk [vmem:[%s3052_s16] sm:$0xff] %vm1422_vm0, %v1456_v50 }
 0x26c   : > { %v1419_v22 = vpop.f32.mrf.mxu1 }
 0x26d   : > { %v1420_v9 = vadd.f32 %v1419_v22, %v1355_v13 }
 0x26f   : > { %1438 = vst.msk [vmem:[%s2987_s11 + $0x78] sm:$0xff] %vm1422_vm0, %v1420_v9  ;;  %1485 = vrot.lane.b32.xlu0 %v1420_v9, %s2018_s12 }
 0x271   : > { %v1464_v53 = vpop.permute.xlu2 %1463  ;;  %v1458_v30 = vpop.permute.xlu0 %1457 }
 0x272   : > { %1507 = vst.msk [vmem:[%s3052_s16 + $0x20] sm:$0xff] %vm1422_vm0, %v1464_v53 }
 0x273   : > { %1504 = vst.msk [vmem:[%s3052_s16 + $0x8] sm:$0xff] %vm1422_vm0, %v1458_v30 }
 0x279   : > { %v1466_v18 = vpop.permute.xlu2 %1465  ;;  %v1460_v26 = vpop.permute.xlu1 %1459 }
 0x27a   : > { %1508 = vst.msk [vmem:[%s3052_s16 + $0x28] sm:$0xff] %vm1422_vm0, %v1466_v18 }
 0x27b   : > { %1505 = vst.msk [vmem:[%s3052_s16 + $0x10] sm:$0xff] %vm1422_vm0, %v1460_v26 }
 0x281   : > { %v1462_v54 = vpop.permute.xlu1 %1461 }
 0x282   : > { %1506 = vst.msk [vmem:[%s3052_s16 + $0x18] sm:$0xff] %vm1422_vm0, %v1462_v54 }
 0x291   : > { %v1472_v20 = vpop.permute.xlu2 %1471 }
 0x292   : > { %1511 = vst.msk [vmem:[%s3052_s16 + $0x40] sm:$0xff] %vm1422_vm0, %v1472_v20 }
 0x299   : > { %v1468_v57 = vpop.permute.xlu0 %1467 }
 0x29a   : > { %1509 = vst.msk [vmem:[%s3052_s16 + $0x30] sm:$0xff] %vm1422_vm0, %v1468_v57 }
 0x2a1   : > { %v1470_v60 = vpop.permute.xlu1 %1469 }
 0x2a2   : > { %1510 = vst.msk [vmem:[%s3052_s16 + $0x38] sm:$0xff] %vm1422_vm0, %v1470_v60 }
 0x2a9   : > { %v1478_v33 = vpop.permute.xlu2 %1477 }
 0x2aa   : > { %1514 = vst.msk [vmem:[%s3052_s16 + $0x58] sm:$0xff] %vm1422_vm0, %v1478_v33 }
 0x2b1   : > { %v1474_v34 = vpop.permute.xlu0 %1473 }
 0x2b2   : > { %1512 = vst.msk [vmem:[%s3052_s16 + $0x48] sm:$0xff] %vm1422_vm0, %v1474_v34 }
 0x2b9   : > { %v1476_v35 = vpop.permute.xlu1 %1475 }
 0x2ba   : > { %1513 = vst.msk [vmem:[%s3052_s16 + $0x50] sm:$0xff] %vm1422_vm0, %v1476_v35 }
 0x2c1   : > { %v1484_v2 = vpop.permute.xlu2 %1483 }
 0x2c2   : > { %1517 = vst.msk [vmem:[%s3052_s16 + $0x70] sm:$0xff] %vm1422_vm0, %v1484_v2 }
 0x2c9   : > { %v1480_v6 = vpop.permute.xlu0 %1479 }
 0x2ca   : > { %1515 = vst.msk [vmem:[%s3052_s16 + $0x60] sm:$0xff] %vm1422_vm0, %v1480_v6 }
 0x2d1   : > { %v1482_v17 = vpop.permute.xlu1 %1481 }
 0x2d2   : > { %1516 = vst.msk [vmem:[%s3052_s16 + $0x68] sm:$0xff] %vm1422_vm0, %v1482_v17 }
 0x2e1   : > { %v1486_v58 = vpop.permute.xlu0 %1485 }
 0x2e2   : > { %1518 = vst.msk [vmem:[%s3052_s16 + $0x78] sm:$0xff] %vm1422_vm0, %v1486_v58 }
 0x2e3 PF: > { %s18_s24 = sadd.s32 1, %s2016_s24  }
 0x2e4   : > { %p15_p4 = scmp.ge.s32.totalorder %s18_s24, 4  }
 0x2e6   :  { %17 = sbr.rel (!%p15_p4) target bundleno = 1 (0x1), region = 94 }

// kernel: encoder_forward.9
= control target key start
LH: loop header
LB: loop body
LE: loop exit
PB: predicated region body
PF: predicated region fallthrough
CT: control target
= control target key end

     0   :  { %s2321_s18 = smov 0   ;;  %s2323_s19 = smov 0   ;;  %s3082_s0 = inlined_call_operand.vmem [shape: s8[256,256], index: 0, kind: input, shape index: {}]   ;;  %s3083_s1 = inlined_call_operand.vmem [shape: s8[256,256], index: 1, kind: input, shape index: {}]   ;;  %s3084_s2 = inlined_call_operand.vmem [shape: f32[1,256], index: 2, kind: input, shape index: {}]   ;;  %s3085_s3 = inlined_call_operand.vmem [shape: f32[256,1], index: 3, kind: input, shape index: {}]   ;;  %s3086_s4 = inlined_call_operand.vmem [shape: bf16[256,256], index: 4, kind: input, shape index: {}]   ;;  %s3087_s5 = inlined_call_operand.vmem [shape: f32[256,256], index: 5, kind: output, shape index: {}]  }
   0x1   :  { %s2325_s20 = smov 0  }
   0x2 LB: > { %s27_s21 = sadd.s32 1, %s2283_s19  ;;  %p1899_p0 = scmp.ge.s32.totalorder %s2287_s20, 1  ;;  %s2287_s20 = sphi %s2325_s20, %s15_s20   ;;  %s2283_s19 = sphi %s2323_s19, %s3089_s19   ;;  %s2279_s18 = sphi %s2321_s18, %s3088_s18  }
   0x3   : > { %p29_p1 = scmp.ge.s32.totalorder %s27_s21, 2  ;;  %p260_p2 = scmp.lt.s32.totalorder %s2287_s20, 3 }
   0x5   : > { %s3091_s21 = smov (%p29_p1, %s27_s21), 0  ;;  %p261_p3 = pnand %p1899_p0, %p260_p2 }
   0x6   : > { %s1906_s22 = sshll.u32 (!%p261_p3), %s2279_s18, 4  ;;  %s1900_s27 = sshll.u32 (!%p261_p3), %s2279_s18, 2 }
   0x7   : > { %264 = sbr.rel (%p261_p3) target bundleno = 488 (0x1e8), region = 40  ;;  %p349_p4 = scmp.lt.s32.totalorder (!%p261_p3), %s1906_s22, 31 }
   0x8   : > { %p321_p5 = scmp.lt.s32.totalorder (!%p261_p3), %s1900_s27, 7 }
   0xc   : > { %v2289_v0 = vmov 0   ;;  %s3093_s22 = smov (!%p349_p4, %s1906_s22), 31  ;;  %s3095_s27 = smov (!%p321_p5, %s1900_s27), 7  ;;  %v565_v24 = vld [vmem:[%s3084_s2] sm:$0x3]  ;;  %vm404_vm0 = vcmask 7168  }
   0xd   : > { %2103 = vset.pattern.permute.xlu1 %v2289_v0  ;;  %2102 = vset.pattern.permute.xlu0 %v2289_v0  ;;  %s1907_s23 = sshll.u32 %s3093_s22, 3  ;;  %s2041_s28 = sshll.u32 %s3095_s27, 4  ;;  %v2407_v32 = vperm.slane %v565_v24, 0  ;;  %v2413_v36 = vperm.slane %v565_v24, 1  ;;  %v1969_v44 = vld [vmem:[%s3086_s4 + $0x70] sm:$0xf] }
   0xe   : > { %2104 = vset.pattern.permute.xlu2 %v2289_v0  ;;  %s2348_s26 = scalar_lea.vmem %s3085_s3, %s1907_s23  ;;  %s2370_s6 = scalar_lea.vmem %s3082_s0, %s2041_s28  ;;  %v2059_v45 = vld [vmem:[%s3086_s4 + $0x74] sm:$0xf0]  ;;  %v2033_v46 = vld [vmem:[%s3086_s4 + $0xf0] sm:$0xf]  ;;  %v2058_v52 = vld [vmem:[%s3086_s4 + $0x74] sm:$0xf] }
   0xf   : > { %v605_v1 = vld [vmem:[%s2348_s26 + $0x10] sm:$0xff]  ;;  %v603_v2 = vld [vmem:[%s2348_s26] sm:$0xff]  ;;  %v606_v4 = vld [vmem:[%s2348_s26 + $0x18] sm:$0xff]  ;;  %s2378_s9 = scalar_lea.vmem %s3083_s1, %s2041_s28  ;;  %v1970_v50 = vor.u32 %v2059_v45, %v1969_v44  ;;  %s2043_s24 = sshll.u32 %s3093_s22, 4 }
  0x10   : > { %631 = vperm.xlu1 %2103, %v605_v1   ;;  %621 = vperm.xlu0 %2102, %v603_v2   ;;  %v607_v3 = vld [vmem:[%s2348_s26 + $0x20] sm:$0xff]  ;;  %v604_v5 = vld [vmem:[%s2348_s26 + $0x8] sm:$0xff]  ;;  %v610_v7 = vld [vmem:[%s2348_s26 + $0x38] sm:$0xff]  ;;  %s3001_s27 = scalar_lea.vmem %s3087_s5, %s2043_s24 }
  0x11   : > { %641 = vperm.xlu2 %2104, %v607_v3   ;;  %v608_v6 = vld [vmem:[%s2348_s26 + $0x28] sm:$0xff]  ;;  %v609_v8 = vld [vmem:[%s2348_s26 + $0x30] sm:$0xff]  ;;  %v611_v9 = vld [vmem:[%s2348_s26 + $0x40] sm:$0xff]  ;;  %1292 = vmatpush.bf16.msra.mxu0 %v1970_v50 }
  0x12   : > { %v613_v10 = vld [vmem:[%s2348_s26 + $0x50] sm:$0xff]  ;;  %v612_v11 = vld [vmem:[%s2348_s26 + $0x48] sm:$0xff]  ;;  %v614_v12 = vld [vmem:[%s2348_s26 + $0x58] sm:$0xff] }
  0x13   : > { %v616_v13 = vld [vmem:[%s2348_s26 + $0x68] sm:$0xff]  ;;  %v615_v14 = vld [vmem:[%s2348_s26 + $0x60] sm:$0xff]  ;;  %v617_v15 = vld [vmem:[%s2348_s26 + $0x70] sm:$0xff] }
  0x14   : > { %v618_v16 = vld [vmem:[%s2348_s26 + $0x78] sm:$0xff]  ;;  %v2373_v17 = vld [vmem:[%s2370_s6 + $0x10] sm:$0xff]  ;;  %v2392_v23 = vld [vmem:[%s2370_s6] sm:$0xff] }
  0x15   : > { %v2381_v18 = vld [vmem:[%s2370_s6 + $0x18] sm:$0xff]  ;;  %v437_v19 = vunpack.c.0.s8 %v2373_v17  ;;  %v2385_v20 = vld [vmem:[%s2378_s9 + $0x10] sm:$0xff]  ;;  %v2400_v28 = vld [vmem:[%s2370_s6 + $0x8] sm:$0xff]  ;;  %v439_v30 = vunpack.c.1.s8 %v2373_v17  ;;  %v433_v31 = vunpack.c.2.s8 %v2392_v23  ;;  %v429_v63 = vunpack.c.0.s8 %v2392_v23 }
  0x16   : > { %v2388_v21 = vld [vmem:[%s2378_s9 + $0x18] sm:$0xff]  ;;  %v438_v22 = vunpack.c.0.s8 %v2381_v18  ;;  %v509_v25 = vunpack.c.0.s8 %v2385_v20  ;;  %v2403_v29 = vld [vmem:[%s2378_s9] sm:$0xff]  ;;  %v440_v34 = vunpack.c.1.s8 %v2381_v18  ;;  %v2411_v35 = vld [vmem:[%s2378_s9 + $0x8] sm:$0xff]  ;;  %v434_v38 = vunpack.c.2.s8 %v2400_v28 }
  0x17   : > { %v469_v26 = vcvt.s32.f32 %v437_v19  ;;  %v510_v27 = vunpack.c.0.s8 %v2388_v21  ;;  %v505_v39 = vunpack.c.2.s8 %v2403_v29  ;;  %v511_v42 = vunpack.c.1.s8 %v2385_v20  ;;  %v2075_v51 = vld [vmem:[%s3086_s4 + $0xf4] sm:$0xf0]  ;;  %v1971_v53 = vld [vmem:[%s3086_s4 + $0x78] sm:$0xf0]  ;;  %v2074_v58 = vld [vmem:[%s3086_s4 + $0xf4] sm:$0xf] }
  0x18   : > { %636 = vperm.xlu1 %2103, %v606_v4   ;;  %626 = vperm.xlu0 %2102, %v604_v5   ;;  %v470_v33 = vcvt.s32.f32 %v438_v22  ;;  %v541_v37 = vcvt.s32.f32 %v509_v25  ;;  %v512_v43 = vunpack.c.1.s8 %v2388_v21  ;;  %v471_v47 = vcvt.s32.f32 %v439_v30  ;;  %v2035_v59 = vld [vmem:[%s3086_s4 + $0xf8] sm:$0xf0]  ;;  %v2056_v19 = vld [vmem:[%s3086_s4 + $0x64] sm:$0xf]  ;;  %v1963_v22 = vld [vmem:[%s3086_s4 + $0x68] sm:$0xf0] }
  0x19   : > { %646 = vperm.xlu2 %2104, %v608_v6   ;;  %v542_v40 = vcvt.s32.f32 %v510_v27  ;;  %v579_v41 = vmul.f32 %v2407_v32, %v469_v26  ;;  %v465_v48 = vcvt.s32.f32 %v433_v31  ;;  %v506_v49 = vunpack.c.2.s8 %v2411_v35  ;;  %v2072_v30 = vld [vmem:[%s3086_s4 + $0xe4] sm:$0xf]  ;;  %v2027_v31 = vld [vmem:[%s3086_s4 + $0xe8] sm:$0xf0]  ;;  %v2055_v44 = vld [vmem:[%s3086_s4 + $0x54] sm:$0xf0] }
  0x1a   : > { %v580_v54 = vmul.f32 %v2413_v36, %v470_v33  ;;  %v472_v55 = vcvt.s32.f32 %v440_v34  ;;  %v2034_v56 = vor.u32 %v2075_v51, %v2033_v46  ;;  %v1974_v57 = vor.u32 %v2058_v52, %v1971_v53  ;;  %v2017_v45 = vld [vmem:[%s3086_s4 + $0xd0] sm:$0xf]  ;;  %v2054_v50 = vld [vmem:[%s3086_s4 + $0x54] sm:$0xf]  ;;  %v1955_v51 = vld [vmem:[%s3086_s4 + $0x58] sm:$0xf0] }
  0x1b   : > { %v2446_v61 = vcvt.s32.f32 %v434_v38  ;;  %v2448_v62 = vcvt.s32.f32 %v505_v39  ;;  %v2038_v0 = vor.u32 %v2074_v58, %v2035_v59  ;;  %v543_v3 = vcvt.s32.f32 %v511_v42 }
  0x1c   : > { %v544_v4 = vcvt.s32.f32 %v512_v43  ;;  %1341 = vmatpush.bf16.msra.mxu1 %v2034_v56  ;;  %1390 = vmatpush.bf16.msra.mxu2 %v1974_v57  ;;  %v581_v5 = vmul.f32 %v2407_v32, %v471_v47  ;;  %v2452_v6 = vcvt.s32.f32 %v506_v49  ;;  %v461_v24 = vcvt.s32.f32 %v429_v63  ;;  %v1953_v43 = vld [vmem:[%s3086_s4 + $0x50] sm:$0xf]  ;;  %v2071_v49 = vld [vmem:[%s3086_s4 + $0xd4] sm:$0xf0]  ;;  %v2019_v56 = vld [vmem:[%s3086_s4 + $0xd8] sm:$0xf0] }
  0x1d   : > { %1439 = vmatpush.bf16.msra.mxu3 %v2038_v0  ;;  %v502_v25 = vunpack.c.0.s8 %v2411_v35  ;;  %v435_v26 = vunpack.c.3.s8 %v2392_v23  ;;  %v436_v27 = vunpack.c.3.s8 %v2400_v28  ;;  %v1966_v42 = vor.u32 %v2056_v19, %v1963_v22 }
  0x1e   : > { %v431_v46 = vunpack.c.1.s8 %v2392_v23  ;;  %v2030_v47 = vor.u32 %v2072_v30, %v2027_v31  ;;  %v2018_v23 = vor.u32 %v2071_v49, %v2017_v45  ;;  %v2516_v63 = vmul.f32 %v2413_v36, %v2446_v61 }
  0x1f   : > { %v467_v53 = vcvt.s32.f32 %v435_v26  ;;  %v468_v59 = vcvt.s32.f32 %v436_v27  ;;  %v2546_v26 = vld [vmem:[%s2370_s6 + $0x28] sm:$0xff] }
  0x20   : > { %656 = vperm.xlu1 %2103, %v610_v7   ;;  %651 = vperm.xlu0 %2102, %v609_v8   ;;  %v2455_v7 = vmul.f32 %v2407_v32, %v465_v48  ;;  %v430_v8 = vunpack.c.0.s8 %v2400_v28  ;;  %v1954_v48 = vor.u32 %v2055_v44, %v1953_v43 }
  0x21   : > { %661 = vperm.xlu2 %2104, %v611_v9   ;;  %v1961_v9 = vld [vmem:[%s3086_s4 + $0x60] sm:$0xf]  ;;  %1391 = vmatpush.bf16.msra.mxu2 %v1966_v42 }
  0x22   : > { %v462_v39 = vcvt.s32.f32 %v430_v8  ;;  %1440 = vmatpush.bf16.msra.mxu3 %v2030_v47 }
  0x28   : > { %671 = vperm.xlu1 %2103, %v613_v10   ;;  %666 = vperm.xlu0 %2102, %v612_v11   ;;  %v2057_v10 = vld [vmem:[%s3086_s4 + $0x64] sm:$0xf0]  ;;  %v2025_v11 = vld [vmem:[%s3086_s4 + $0xe0] sm:$0xf] }
  0x29   : > { %676 = vperm.xlu2 %2104, %v614_v12  }
  0x30   : > { %686 = vperm.xlu1 %2103, %v616_v13   ;;  %681 = vperm.xlu0 %2102, %v615_v14   ;;  %v582_v14 = vmul.f32 %v2413_v36, %v472_v55  ;;  %v2070_v55 = vld [vmem:[%s3086_s4 + $0xd4] sm:$0xf] }
  0x31   : > { %691 = vperm.xlu2 %2104, %v617_v15   ;;  %v501_v15 = vunpack.c.0.s8 %v2403_v29 }
  0x33   : > { %v2518_v0 = vcvt.s32.f32 %v501_v15  ;;  %v504_v15 = vunpack.c.1.s8 %v2411_v35 }
  0x35   : > { %v2566_v43 = vcvt.s32.f32 %v504_v15 }
  0x38   : > { %696 = vperm.xlu0 %2102, %v618_v16   ;;  %v2073_v16 = vld [vmem:[%s3086_s4 + $0xe4] sm:$0xf0] }
  0x39   : > { %v2026_v38 = vor.u32 %v2073_v16, %v2025_v11  ;;  %v2534_v11 = vmul.f32 %v2407_v32, %v467_v53  ;;  %v443_v16 = vunpack.c.3.s8 %v2373_v17 }
  0x3b   : > { %1342 = vmatpush.bf16.msra.mxu1 %v2026_v38  ;;  %v475_v44 = vcvt.s32.f32 %v443_v16 }
  0x3f   : > { %1343 = vmatpush.bf16.msra.mxu1 %v2018_v23 }
  0x6b   : > { %v642_v60 = vpop.permute.xlu2 %641 }
  0x6c   : > { %v707_v1 = vmul.f32 %v642_v60, %v541_v37  ;;  %v708_v2 = vmul.f32 %v642_v60, %v542_v40  ;;  %v1962_v37 = vor.u32 %v2057_v10, %v1961_v9  ;;  %v507_v40 = vunpack.c.3.s8 %v2403_v29 }
  0x6d   : > { %v2022_v60 = vor.u32 %v2070_v55, %v2019_v56  ;;  %v2524_v9 = vmul.f32 %v2407_v32, %v461_v24  ;;  %v452_v56 = vunpack.c.3.s8 %v2546_v26 }
  0x6e   : > { %v739_v12 = vadd.f32 %v707_v1, %v579_v41  ;;  %v740_v13 = vadd.f32 %v708_v2, %v580_v54  ;;  %v508_v41 = vunpack.c.3.s8 %v2411_v35  ;;  %1293 = vmatpush.bf16.msra.mxu0 %v1962_v37  ;;  %v1958_v54 = vor.u32 %v2054_v50, %v1955_v51 }
  0x6f   : > { %v2520_v1 = vcvt.s32.f32 %v502_v25  ;;  %v432_v2 = vunpack.c.1.s8 %v2400_v28  ;;  %v2529_v61 = vcvt.s32.f32 %v507_v40  ;;  %v503_v28 = vunpack.c.1.s8 %v2403_v29  ;;  %1441 = vmatpush.bf16.msra.mxu3 %v2022_v60  ;;  %v2543_v25 = vld [vmem:[%s2370_s6 + $0x20] sm:$0xff] }
  0x70   : > { %v771_v33 = vmul.f32 0.5, %v739_v12  ;;  %v772_v34 = vmul.f32 0.5, %v740_v13  ;;  %v2531_v10 = vcvt.s32.f32 %v508_v41  ;;  %1392 = vmatpush.bf16.msra.mxu2 %v1958_v54  ;;  %v2538_v13 = vmul.f32 %v2413_v36, %v468_v59  ;;  %v2549_v29 = vld [vmem:[%s2378_s9 + $0x20] sm:$0xff] }
  0x71   : > { %v464_v27 = vcvt.s32.f32 %v432_v2  ;;  %v445_v31 = vunpack.c.0.s8 %v2543_v25  ;;  %v446_v35 = vunpack.c.0.s8 %v2546_v26  ;;  %v517_v37 = vunpack.c.0.s8 %v2549_v29 }
  0x72   : > { %2105 = vtanh.f32 %v771_v33  ;;  %1294 = vmatpush.bf16.msra.mxu0 %v1954_v48  ;;  %v2555_v33 = vld [vmem:[%s2378_s9 + $0x28] sm:$0xff]  ;;  %v2561_v38 = vcvt.s32.f32 %v503_v28  ;;  %v516_v40 = vunpack.c.3.s8 %v2388_v21  ;;  %v441_v54 = vunpack.c.2.s8 %v2373_v17 }
  0x73   : > { %2107 = vtanh.f32 %v772_v34  ;;  %v647_v52 = vpop.permute.xlu2 %646  ;;  %v518_v42 = vunpack.c.0.s8 %v2555_v33  ;;  %v477_v49 = vcvt.s32.f32 %v445_v31  ;;  %v478_v50 = vcvt.s32.f32 %v446_v35 }
  0x74   : > { %v709_v57 = vmul.f32 %v647_v52, %v543_v3  ;;  %v710_v58 = vmul.f32 %v647_v52, %v544_v4  ;;  %v2527_v3 = vmul.f32 %v2413_v36, %v462_v39  ;;  %v463_v4 = vcvt.s32.f32 %v431_v46 }
  0x75   : > { %v515_v39 = vunpack.c.3.s8 %v2385_v20  ;;  %v2569_v46 = vmul.f32 %v2413_v36, %v464_v27  ;;  %v549_v51 = vcvt.s32.f32 %v517_v37  ;;  %v451_v52 = vunpack.c.3.s8 %v2543_v25 }
  0x76   : > { %v741_v8 = vadd.f32 %v709_v57, %v581_v5  ;;  %v742_v12 = vadd.f32 %v710_v58, %v582_v14  ;;  %v444_v14 = vunpack.c.3.s8 %v2381_v18  ;;  %v2558_v34 = vmul.f32 %v2407_v32, %v463_v4 }
  0x77   : > { %v2572_v53 = vcvt.s32.f32 %v515_v39  ;;  %v2574_v23 = vcvt.s32.f32 %v516_v40  ;;  %v550_v55 = vcvt.s32.f32 %v518_v42  ;;  %v2579_v57 = vmul.f32 %v2407_v32, %v475_v44 }
  0x78   : > { %v2106_v5 = vpop.eup %2105  ;;  %v773_v24 = vmul.f32 0.5, %v741_v8  ;;  %v774_v41 = vmul.f32 0.5, %v742_v12  ;;  %v476_v47 = vcvt.s32.f32 %v444_v14  ;;  %v442_v2 = vunpack.c.2.s8 %v2381_v18 }
  0x79   : > { %v2108_v19 = vpop.eup %2107  ;;  %v835_v22 = vadd.f32 1.0, %v2106_v5  ;;  %v513_v8 = vunpack.c.2.s8 %v2385_v20  ;;  %v587_v12 = vmul.f32 %v2407_v32, %v477_v49  ;;  %v588_v15 = vmul.f32 %v2413_v36, %v478_v50  ;;  %v2050_v20 = vld [vmem:[%s3086_s4 + $0x34] sm:$0xf] }
  0x7a   : > { %v836_v30 = vadd.f32 1.0, %v2108_v19  ;;  %2109 = vtanh.f32 %v773_v24  ;;  %v2582_v60 = vmul.f32 %v2413_v36, %v476_v47  ;;  %v483_v14 = vcvt.s32.f32 %v451_v52 }
  0x7b   : > { %v867_v45 = vmul.f32 0.5, %v835_v22  ;;  %2111 = vtanh.f32 %v774_v41  ;;  %v662_v59 = vpop.permute.xlu2 %661  ;;  %v484_v35 = vcvt.s32.f32 %v452_v56  ;;  %v523_v37 = vunpack.c.3.s8 %v2549_v29  ;;  %v2069_v56 = vld [vmem:[%s3086_s4 + $0xc4] sm:$0xf0] }
  0x7c   : > { %v868_v48 = vmul.f32 0.5, %v836_v30  ;;  %v715_v16 = vmul.f32 %v662_v59, %v549_v51  ;;  %v716_v31 = vmul.f32 %v662_v59, %v550_v55  ;;  %v524_v42 = vunpack.c.3.s8 %v2555_v33  ;;  %v2009_v55 = vld [vmem:[%s3086_s4 + $0xc0] sm:$0xf] }
  0x7d   : > { %v907_v58 = vmul.f32 1.442695, %v867_v45  ;;  %v593_v49 = vmul.f32 %v2407_v32, %v483_v14  ;;  %v594_v50 = vmul.f32 %v2413_v36, %v484_v35  ;;  %v555_v51 = vcvt.s32.f32 %v523_v37 }
  0x7e   : > { %v909_v4 = vmul.f32 1.442695, %v868_v48  ;;  %v747_v44 = vadd.f32 %v715_v16, %v587_v12  ;;  %v748_v48 = vadd.f32 %v716_v31, %v588_v15  ;;  %v556_v52 = vcvt.s32.f32 %v524_v42 }
  0x7f   : > { %2113 = vpow2.f32 %v907_v58 }
  0x80   : > { %v2110_v19 = vpop.eup %2109  ;;  %2115 = vpow2.f32 %v909_v4  ;;  %v779_v59 = vmul.f32 0.5, %v747_v44 }
  0x82   : > { %v632_v28 = vpop.permute.xlu1 %631  ;;  %v622_v5 = vpop.permute.xlu0 %621 }
  0x83   : > { %v703_v22 = vmul.f32 %v632_v28, %v2448_v62  ;;  %v704_v24 = vmul.f32 %v632_v28, %v2452_v6  ;;  %v699_v27 = vmul.f32 %v622_v5, %v2518_v0  ;;  %v700_v30 = vmul.f32 %v622_v5, %v2520_v1  ;;  %v2112_v62 = vpop.eup %2111  ;;  %v1945_v1 = vld [vmem:[%s3086_s4 + $0x40] sm:$0xf] }
  0x84   : > { %v837_v6 = vadd.f32 1.0, %v2110_v19  ;;  %v2052_v19 = vld [vmem:[%s3086_s4 + $0x44] sm:$0xf] }
  0x85   : > { %v735_v39 = vadd.f32 %v703_v22, %v2455_v7  ;;  %v736_v40 = vadd.f32 %v704_v24, %v2516_v63  ;;  %v731_v41 = vadd.f32 %v699_v27, %v2524_v9  ;;  %v732_v0 = vadd.f32 %v700_v30, %v2527_v3  ;;  %v2053_v63 = vld [vmem:[%s3086_s4 + $0x44] sm:$0xf0]  ;;  %v1947_v22 = vld [vmem:[%s3086_s4 + $0x48] sm:$0xf0]  ;;  %v2621_v24 = vpop.eup %2113  ;;  %v677_v30 = vpop.permute.xlu2 %676 }
  0x86   : > { %v838_v3 = vadd.f32 1.0, %v2112_v62  ;;  %v869_v58 = vmul.f32 0.5, %v837_v6  ;;  %v1946_v5 = vor.u32 %v2053_v63, %v1945_v1  ;;  %v780_v27 = vmul.f32 0.5, %v748_v48  ;;  %v2001_v6 = vld [vmem:[%s3086_s4 + $0xb0] sm:$0xf] }
  0x87   : > { %v767_v45 = vmul.f32 0.5, %v735_v39  ;;  %v768_v47 = vmul.f32 0.5, %v736_v40  ;;  %v763_v7 = vmul.f32 0.5, %v731_v41  ;;  %v764_v9 = vmul.f32 0.5, %v732_v0  ;;  %v2068_v39 = vld [vmem:[%s3086_s4 + $0xc4] sm:$0xf] }
  0x88   : > { %1295 = vmatpush.bf16.msra.mxu0 %v1946_v5  ;;  %v721_v37 = vmul.f32 %v677_v30, %v555_v51  ;;  %v2011_v40 = vld [vmem:[%s3086_s4 + $0xc8] sm:$0xf0]  ;;  %v722_v42 = vmul.f32 %v677_v30, %v556_v52  ;;  %v1950_v62 = vor.u32 %v2052_v19, %v1947_v22  ;;  %v911_v44 = vmul.f32 1.442695, %v869_v58  ;;  %v2067_v1 = vld [vmem:[%s3086_s4 + $0xb4] sm:$0xf0] }
  0x89   : > { %2117 = vtanh.f32 %v767_v45  ;;  %v2014_v63 = vor.u32 %v2068_v39, %v2011_v40 }
  0x8a   : > { %2119 = vtanh.f32 %v768_v47  ;;  %v637_v4 = vpop.permute.xlu1 %636  ;;  %v627_v28 = vpop.permute.xlu0 %626  ;;  %1393 = vmatpush.bf16.msra.mxu2 %v1950_v62  ;;  %v754_v58 = vadd.f32 %v722_v42, %v594_v50 }
  0x8b   : > { %2121 = vtanh.f32 %v763_v7  ;;  %v705_v12 = vmul.f32 %v637_v4, %v2529_v61  ;;  %v706_v15 = vmul.f32 %v637_v4, %v2531_v10  ;;  %v701_v16 = vmul.f32 %v627_v28, %v2561_v38  ;;  %v2624_v10 = vpop.eup %2115  ;;  %1442 = vmatpush.bf16.msra.mxu3 %v2014_v63 }
  0x8c   : > { %2123 = vtanh.f32 %v764_v9  ;;  %v702_v14 = vmul.f32 %v627_v28, %v2566_v43  ;;  %v2010_v61 = vor.u32 %v2069_v56, %v2009_v55  ;;  %v870_v38 = vmul.f32 0.5, %v838_v3 }
  0x8d   : > { %v737_v31 = vadd.f32 %v705_v12, %v2534_v11  ;;  %v738_v35 = vadd.f32 %v706_v15, %v2538_v13  ;;  %v733_v43 = vadd.f32 %v701_v16, %v2558_v34  ;;  %v1937_v11 = vld [vmem:[%s3086_s4 + $0x30] sm:$0xf]  ;;  %v2051_v13 = vld [vmem:[%s3086_s4 + $0x34] sm:$0xf0]  ;;  %2125 = vtanh.f32 %v779_v59 }
  0x8e   : > { %v734_v41 = vadd.f32 %v702_v14, %v2569_v46  ;;  %1344 = vmatpush.bf16.msra.mxu1 %v2010_v61  ;;  %2127 = vtanh.f32 %v780_v27  ;;  %v753_v3 = vadd.f32 %v721_v37, %v593_v49  ;;  %v1938_v51 = vor.u32 %v2051_v13, %v1937_v11  ;;  %v1939_v11 = vld [vmem:[%s3086_s4 + $0x38] sm:$0xf0] }
  0x8f   : > { %v2118_v0 = vpop.eup %2117  ;;  %v769_v34 = vmul.f32 0.5, %v737_v31  ;;  %v770_v46 = vmul.f32 0.5, %v738_v35  ;;  %v765_v7 = vmul.f32 0.5, %v733_v43  ;;  %v2002_v4 = vor.u32 %v2067_v1, %v2001_v6 }
  0x90   : > { %v2120_v45 = vpop.eup %2119  ;;  %v831_v47 = vadd.f32 1.0, %v2118_v0  ;;  %v766_v56 = vmul.f32 0.5, %v734_v41  ;;  %v913_v28 = vmul.f32 1.442695, %v870_v38  ;;  %1296 = vmatpush.bf16.msra.mxu0 %v1938_v51  ;;  %v473_v16 = vcvt.s32.f32 %v441_v54 }
  0x91   : > { %v2122_v9 = vpop.eup %2121  ;;  %v832_v48 = vadd.f32 1.0, %v2120_v45  ;;  %2129 = vtanh.f32 %v769_v34  ;;  %v514_v49 = vunpack.c.2.s8 %v2388_v21  ;;  %v785_v22 = vmul.f32 0.5, %v753_v3  ;;  %v2003_v45 = vld [vmem:[%s3086_s4 + $0xb8] sm:$0xf0] }
  0x92   : > { %v2124_v52 = vpop.eup %2123  ;;  %v827_v55 = vadd.f32 1.0, %v2122_v9  ;;  %v657_v59 = vpop.permute.xlu1 %656  ;;  %v863_v5 = vmul.f32 0.5, %v831_v47  ;;  %2131 = vtanh.f32 %v770_v46  ;;  %1345 = vmatpush.bf16.msra.mxu1 %v2002_v4  ;;  %v474_v27 = vcvt.s32.f32 %v442_v2 }
  0x93   : > { %v828_v12 = vadd.f32 1.0, %v2124_v52  ;;  %v864_v15 = vmul.f32 0.5, %v832_v48  ;;  %2133 = vtanh.f32 %v765_v7  ;;  %v2126_v19 = vpop.eup %2125  ;;  %v713_v50 = vmul.f32 %v657_v59, %v2572_v53  ;;  %v652_v62 = vpop.permute.xlu0 %651  ;;  %v2682_v48 = vld [vmem:[%s2370_s6 + $0x30] sm:$0xff] }
  0x94   : > { %2135 = vpow2.f32 %v911_v44  ;;  %v2128_v14 = vpop.eup %2127  ;;  %v859_v30 = vmul.f32 0.5, %v827_v55  ;;  %v786_v61 = vmul.f32 0.5, %v754_v58  ;;  %v545_v38 = vcvt.s32.f32 %v513_v8  ;;  %v2066_v44 = vld [vmem:[%s3086_s4 + $0xb4] sm:$0xf]  ;;  %v2685_v55 = vld [vmem:[%s2370_s6 + $0x38] sm:$0xff] }
  0x95   : > { %2137 = vtanh.f32 %v766_v56  ;;  %v899_v54 = vmul.f32 1.442695, %v863_v5  ;;  %v860_v21 = vmul.f32 0.5, %v828_v12  ;;  %v714_v31 = vmul.f32 %v657_v59, %v2574_v23  ;;  %v2688_v56 = vld [vmem:[%s2378_s9 + $0x30] sm:$0xff]  ;;  %v2693_v5 = vld [vmem:[%s2378_s9 + $0x38] sm:$0xff] }
  0x96   : > { %2139 = vpow2.f32 %v913_v28  ;;  %v901_v35 = vmul.f32 1.442695, %v864_v15  ;;  %v843_v37 = vadd.f32 1.0, %v2126_v19  ;;  %v546_v53 = vcvt.s32.f32 %v514_v49 }
  0x97   : > { %v2130_v17 = vpop.eup %2129  ;;  %v844_v18 = vadd.f32 1.0, %v2128_v14  ;;  %2141 = vtanh.f32 %v785_v22  ;;  %v745_v2 = vadd.f32 %v713_v50, %v2579_v57  ;;  %v583_v43 = vmul.f32 %v2407_v32, %v473_v16 }
  0x98   : > { %v833_v39 = vadd.f32 1.0, %v2130_v17  ;;  %v2132_v40 = vpop.eup %2131  ;;  %v891_v41 = vmul.f32 1.442695, %v859_v30  ;;  %2143 = vtanh.f32 %v786_v61  ;;  %v746_v23 = vadd.f32 %v714_v31, %v2582_v60 }
  0x99   : > { %v2134_v8 = vpop.eup %2133  ;;  %2145 = vpow2.f32 %v899_v54  ;;  %v893_v57 = vmul.f32 1.442695, %v860_v21  ;;  %v777_v6 = vmul.f32 0.5, %v745_v2  ;;  %v584_v0 = vmul.f32 %v2413_v36, %v474_v27 }
  0x9a   : > { %v865_v42 = vmul.f32 0.5, %v833_v39  ;;  %v2666_v13 = vpop.eup %2135  ;;  %2147 = vpow2.f32 %v901_v35  ;;  %v2672_v60 = vmul.f32 0.5, %v843_v37  ;;  %v834_v46 = vadd.f32 1.0, %v2132_v40 }
  0x9b   : > { %v2138_v34 = vpop.eup %2137  ;;  %v778_v1 = vmul.f32 0.5, %v746_v23  ;;  %v2679_v7 = vmul.f32 0.5, %v844_v18  ;;  %v829_v63 = vadd.f32 1.0, %v2134_v8  ;;  %2149 = vtanh.f32 %v777_v6 }
  0x9c   : > { %v2677_v47 = vpop.eup %2139  ;;  %v711_v9 = vmul.f32 %v652_v62, %v545_v38  ;;  %2151 = vpow2.f32 %v891_v41  ;;  %v903_v3 = vmul.f32 1.442695, %v865_v42  ;;  %v712_v51 = vmul.f32 %v652_v62, %v546_v53  ;;  %v692_v38 = vpop.permute.xlu2 %691 }
  0x9d   : > { %v1942_v52 = vor.u32 %v2050_v20, %v1939_v11  ;;  %v2690_v58 = vpop.eup %2141  ;;  %2153 = vpow2.f32 %v893_v57  ;;  %v830_v59 = vadd.f32 1.0, %v2138_v34  ;;  %v2006_v28 = vor.u32 %v2066_v44, %v2003_v45  ;;  %v672_v34 = vpop.permute.xlu1 %671 }
  0x9e   : > { %v743_v4 = vadd.f32 %v711_v9, %v583_v43  ;;  %v2695_v12 = vpop.eup %2143  ;;  %v866_v15 = vmul.f32 0.5, %v834_v46  ;;  %2155 = vtanh.f32 %v778_v1  ;;  %v744_v16 = vadd.f32 %v712_v51, %v584_v0 }
  0x9f   : > { %1394 = vmatpush.bf16.msra.mxu2 %v1942_v52  ;;  %v457_v49 = vunpack.c.2.s8 %v2682_v48  ;;  %v2698_v19 = vpop.eup %2145  ;;  %v861_v22 = vmul.f32 0.5, %v829_v63  ;;  %1443 = vmatpush.bf16.msra.mxu3 %v2006_v28  ;;  %v458_v27 = vunpack.c.2.s8 %v2685_v55  ;;  %v529_v14 = vunpack.c.2.s8 %v2688_v56 }
  0xa0   : > { %v775_v50 = vmul.f32 0.5, %v743_v4  ;;  %v2702_v30 = vpop.eup %2147  ;;  %2157 = vpow2.f32 %v903_v3  ;;  %v776_v61 = vmul.f32 0.5, %v744_v16  ;;  %v530_v54 = vunpack.c.2.s8 %v2693_v5 }
  0xa1   : > { %v489_v17 = vcvt.s32.f32 %v457_v49  ;;  %v2150_v21 = vpop.eup %2149  ;;  %v862_v31 = vmul.f32 0.5, %v830_v59  ;;  %v490_v35 = vcvt.s32.f32 %v458_v27  ;;  %v561_v37 = vcvt.s32.f32 %v529_v14  ;;  %v1929_v27 = vld [vmem:[%s3086_s4 + $0x20] sm:$0xf] }
  0xa2   : > { %v449_v39 = vunpack.c.2.s8 %v2543_v25  ;;  %v2706_v53 = vpop.eup %2151  ;;  %v905_v40 = vmul.f32 1.442695, %v866_v15  ;;  %v841_v18 = vadd.f32 1.0, %v2150_v21  ;;  %2159 = vtanh.f32 %v775_v50 }
  0xa3   : > { %v599_v2 = vmul.f32 %v2407_v32, %v489_v17  ;;  %v2709_v43 = vpop.eup %2153  ;;  %v562_v20 = vcvt.s32.f32 %v530_v54  ;;  %v727_v8 = vmul.f32 %v692_v38, %v561_v37  ;;  %v450_v41 = vunpack.c.2.s8 %v2546_v26 }
  0xa4   : > { %v481_v42 = vcvt.s32.f32 %v449_v39  ;;  %v2156_v23 = vpop.eup %2155  ;;  %v873_v62 = vmul.f32 0.5, %v841_v18  ;;  %2161 = vtanh.f32 %v776_v61  ;;  %v521_v11 = vunpack.c.2.s8 %v2549_v29  ;;  %v1931_v18 = vld [vmem:[%s3086_s4 + $0x28] sm:$0xf0] }
  0xa5   : > { %v522_v57 = vunpack.c.2.s8 %v2555_v33  ;;  %v895_v6 = vmul.f32 1.442695, %v861_v22  ;;  %v897_v0 = vmul.f32 1.442695, %v862_v31  ;;  %v600_v44 = vmul.f32 %v2413_v36, %v490_v35  ;;  %v2065_v35 = vld [vmem:[%s3086_s4 + $0xa4] sm:$0xf0] }
  0xa6   : > { %v482_v46 = vcvt.s32.f32 %v450_v41  ;;  %v2715_v1 = vpop.eup %2157  ;;  %v759_v45 = vadd.f32 %v727_v8, %v599_v2  ;;  %v553_v63 = vcvt.s32.f32 %v521_v11  ;;  %v591_v3 = vmul.f32 %v2407_v32, %v481_v42  ;;  %v2064_v2 = vld [vmem:[%s3086_s4 + $0xa4] sm:$0xf]  ;;  %v667_v42 = vpop.permute.xlu0 %666 }
  0xa7   : > { %v554_v9 = vcvt.s32.f32 %v522_v57  ;;  %v842_v51 = vadd.f32 1.0, %v2156_v23  ;;  %v728_v52 = vmul.f32 %v692_v38, %v562_v20  ;;  %v447_v4 = vunpack.c.1.s8 %v2543_v25 }
  0xa8   : > { %v592_v59 = vmul.f32 %v2413_v36, %v482_v46  ;;  %v2160_v28 = vpop.eup %2159  ;;  %2163 = vpow2.f32 %v905_v40  ;;  %v919_v15 = vmul.f32 1.442695, %v873_v62  ;;  %v719_v16 = vmul.f32 %v672_v34, %v553_v63  ;;  %v1995_v62 = vld [vmem:[%s3086_s4 + $0xa8] sm:$0xf0]  ;;  %v2047_v63 = vld [vmem:[%s3086_s4 + $0x14] sm:$0xf0] }
  0xa9   : > { %v2721_v49 = vmul.f32 1.442695, %v2672_v60  ;;  %v2724_v22 = vmul.f32 1.442695, %v2679_v7  ;;  %2165 = vpow2.f32 %v895_v6  ;;  %v720_v50 = vmul.f32 %v672_v34, %v554_v9  ;;  %v2049_v60 = vld [vmem:[%s3086_s4 + $0x24] sm:$0xf0] }
  0xaa   : > { %v2162_v14 = vpop.eup %2161  ;;  %2167 = vpow2.f32 %v897_v0  ;;  %v791_v61 = vmul.f32 0.5, %v759_v45  ;;  %v751_v25 = vadd.f32 %v719_v16, %v591_v3  ;;  %v448_v38 = vunpack.c.1.s8 %v2546_v26  ;;  %v1993_v7 = vld [vmem:[%s3086_s4 + $0xa0] sm:$0xf]  ;;  %v2048_v26 = vld [vmem:[%s3086_s4 + $0x24] sm:$0xf] }
  0xab   : > { %v874_v17 = vmul.f32 0.5, %v842_v51  ;;  %v760_v54 = vadd.f32 %v728_v52, %v600_v44  ;;  %v752_v21 = vadd.f32 %v720_v50, %v592_v59  ;;  %v479_v31 = vcvt.s32.f32 %v447_v4  ;;  %v1921_v0 = vld [vmem:[%s3086_s4 + $0x10] sm:$0xf]  ;;  %v2063_v3 = vld [vmem:[%s3086_s4 + $0x94] sm:$0xf0] }
  0xac   : > { %2169 = vpow2.f32 %v919_v15  ;;  %v783_v37 = vmul.f32 0.5, %v751_v25  ;;  %v480_v39 = vcvt.s32.f32 %v448_v38  ;;  %v519_v40 = vunpack.c.1.s8 %v2549_v29  ;;  %v1985_v9 = vld [vmem:[%s3086_s4 + $0x90] sm:$0xf]  ;;  %v1923_v15 = vld [vmem:[%s3086_s4 + $0x18] sm:$0xf0] }
  0xad   : > { %v839_v20 = vadd.f32 1.0, %v2160_v28  ;;  %v840_v8 = vadd.f32 1.0, %v2162_v14  ;;  %v784_v41 = vmul.f32 0.5, %v752_v21  ;;  %v520_v23 = vunpack.c.1.s8 %v2555_v33  ;;  %v2046_v28 = vld [vmem:[%s3086_s4 + $0x14] sm:$0xf] }
  0xae   : > { %v2753_v11 = vpop.eup %2163  ;;  %2171 = vtanh.f32 %v791_v61  ;;  %v551_v29 = vcvt.s32.f32 %v519_v40  ;;  %v589_v57 = vmul.f32 %v2407_v32, %v479_v31  ;;  %v1930_v6 = vor.u32 %v2049_v60, %v1929_v27  ;;  %v2062_v14 = vld [vmem:[%s3086_s4 + $0x94] sm:$0xf]  ;;  %v1987_v61 = vld [vmem:[%s3086_s4 + $0x98] sm:$0xf0] }
  0xaf   : > { %v2759_v44 = vpop.eup %2165  ;;  %v552_v34 = vcvt.s32.f32 %v520_v23  ;;  %v590_v33 = vmul.f32 %v2413_v36, %v480_v39  ;;  %v1994_v46 = vor.u32 %v2065_v35, %v1993_v7  ;;  %v1934_v45 = vor.u32 %v2048_v26, %v1931_v18 }
  0xb0   : > { %v2771_v51 = vpop.eup %2167  ;;  %v792_v52 = vmul.f32 0.5, %v760_v54  ;;  %2173 = vtanh.f32 %v783_v37  ;;  %v717_v59 = vmul.f32 %v667_v42, %v551_v29  ;;  %1297 = vmatpush.bf16.msra.mxu0 %v1930_v6  ;;  %v1998_v4 = vor.u32 %v2064_v2, %v1995_v62 }
  0xb1   : > { %v921_v16 = vmul.f32 1.442695, %v874_v17  ;;  %2175 = vtanh.f32 %v784_v41  ;;  %v718_v50 = vmul.f32 %v667_v42, %v552_v34  ;;  %1346 = vmatpush.bf16.msra.mxu1 %v1994_v46  ;;  %1395 = vmatpush.bf16.msra.mxu2 %v1934_v45  ;;  %v977_v27 = vadd.f32 %v2702_v30, %v2698_v19  ;;  %v687_v42 = vpop.permute.xlu1 %686 }
  0xb2   : > { %v2787_v25 = vpop.eup %2169  ;;  %v871_v38 = vmul.f32 0.5, %v839_v20  ;;  %v749_v60 = vadd.f32 %v717_v59, %v589_v57  ;;  %1444 = vmatpush.bf16.msra.mxu3 %v1998_v4  ;;  %v971_v7 = vadd.f32 %v2709_v43, %v2706_v53  ;;  %v1922_v17 = vor.u32 %v2047_v63, %v1921_v0 }
  0xb3   : > { %v872_v54 = vmul.f32 0.5, %v840_v8  ;;  %v750_v21 = vadd.f32 %v718_v50, %v590_v33  ;;  %978 = vadd.xlane.f32.xlu0 %v977_v27  ;;  %v1986_v31 = vor.u32 %v2063_v3, %v1985_v9  ;;  %v1926_v35 = vor.u32 %v2046_v28, %v1923_v15 }
  0xb4   : > { %v2791_v26 = vpop.eup %2171  ;;  %2177 = vtanh.f32 %v792_v52  ;;  %v781_v37 = vmul.f32 0.5, %v749_v60  ;;  %972 = vadd.xlane.f32.xlu1 %v971_v7  ;;  %1298 = vmatpush.bf16.msra.mxu0 %v1922_v17  ;;  %v1990_v39 = vor.u32 %v2062_v14, %v1987_v61  ;;  %v455_v40 = vunpack.c.1.s8 %v2682_v48  ;;  %v2045_v60 = vld [vmem:[%s3086_s4 + $0x4] sm:$0xf0] }
  0xb5   : > { %2179 = vpow2.f32 %v921_v16  ;;  %v782_v18 = vmul.f32 0.5, %v750_v21  ;;  %1347 = vmatpush.bf16.msra.mxu1 %v1986_v31  ;;  %1396 = vmatpush.bf16.msra.mxu2 %v1926_v35  ;;  %v456_v2 = vunpack.c.1.s8 %v2685_v55  ;;  %v527_v20 = vunpack.c.1.s8 %v2688_v56  ;;  %v1977_v31 = vld [vmem:[%s3086_s4 + $0x80] sm:$0xf]  ;;  %v2061_v35 = vld [vmem:[%s3086_s4 + $0x84] sm:$0xf0] }
  0xb6   : > { %v2174_v8 = vpop.eup %2173  ;;  %v915_v41 = vmul.f32 1.442695, %v871_v38  ;;  %1445 = vmatpush.bf16.msra.mxu3 %v1990_v39  ;;  %v487_v23 = vcvt.s32.f32 %v455_v40  ;;  %v528_v62 = vunpack.c.1.s8 %v2693_v5  ;;  %v453_v29 = vunpack.c.0.s8 %v2682_v48  ;;  %v1913_v38 = vld [vmem:[%s3086_s4] sm:$0xf] }
  0xb7   : > { %v2176_v57 = vpop.eup %2175  ;;  %v917_v6 = vmul.f32 1.442695, %v872_v54  ;;  %v847_v0 = vadd.f32 1.0, %v2174_v8  ;;  %v488_v34 = vcvt.s32.f32 %v456_v2  ;;  %v559_v33 = vcvt.s32.f32 %v527_v20  ;;  %v682_v54 = vpop.permute.xlu0 %681  ;;  %v2044_v2 = vld [vmem:[%s3086_s4 + $0x4] sm:$0xf] }
  0xb8   : > { %v848_v46 = vadd.f32 1.0, %v2176_v57  ;;  %2181 = vtanh.f32 %v781_v37  ;;  %v560_v45 = vcvt.s32.f32 %v528_v62  ;;  %v597_v63 = vmul.f32 %v2407_v32, %v487_v23  ;;  %v1915_v20 = vld [vmem:[%s3086_s4 + $0x8] sm:$0xf0]  ;;  %v2060_v62 = vld [vmem:[%s3086_s4 + $0x84] sm:$0xf] }
  0xb9   : > { %v879_v9 = vmul.f32 0.5, %v847_v0  ;;  %2183 = vtanh.f32 %v782_v18  ;;  %v598_v3 = vmul.f32 %v2413_v36, %v488_v34  ;;  %v725_v52 = vmul.f32 %v687_v42, %v559_v33 }
  0xba   : > { %v2800_v59 = vpop.eup %2177  ;;  %2185 = vpow2.f32 %v915_v41  ;;  %v726_v4 = vmul.f32 %v687_v42, %v560_v45  ;;  %v454_v28 = vunpack.c.0.s8 %v2685_v55  ;;  %v485_v15 = vcvt.s32.f32 %v453_v29  ;;  %v1979_v29 = vld [vmem:[%s3086_s4 + $0x88] sm:$0xf0] }
  0xbb   : > { %v2803_v16 = vpop.eup %2179  ;;  %v931_v50 = vmul.f32 1.442695, %v879_v9  ;;  %v757_v27 = vadd.f32 %v725_v52, %v597_v63  ;;  %v525_v14 = vunpack.c.0.s8 %v2688_v56  ;;  %v526_v61 = vunpack.c.0.s8 %v2693_v5 }
  0xbc   : > { %2187 = vpow2.f32 %v917_v6  ;;  %v880_v7 = vmul.f32 0.5, %v848_v46  ;;  %v758_v17 = vadd.f32 %v726_v4, %v598_v3  ;;  %v486_v21 = vcvt.s32.f32 %v454_v28 }
  0xbd   : > { %v789_v37 = vmul.f32 0.5, %v757_v27  ;;  %v557_v39 = vcvt.s32.f32 %v525_v14  ;;  %v558_v40 = vcvt.s32.f32 %v526_v61  ;;  %v595_v18 = vmul.f32 %v2407_v32, %v485_v15 }
  0xbe   : > { %v2182_v8 = vpop.eup %2181  ;;  %2189 = vpow2.f32 %v931_v50  ;;  %v790_v41 = vmul.f32 0.5, %v758_v17  ;;  %v596_v42 = vmul.f32 %v2413_v36, %v486_v21  ;;  %v1914_v23 = vor.u32 %v2045_v60, %v1913_v38 }
  0xbf   : > { %v2184_v57 = vpop.eup %2183  ;;  %v845_v6 = vadd.f32 1.0, %v2182_v8  ;;  %2191 = vtanh.f32 %v789_v37  ;;  %v723_v0 = vmul.f32 %v682_v54, %v557_v39  ;;  %v724_v34 = vmul.f32 %v682_v54, %v558_v40 }
  0xc0   : > { %v2833_v33 = vpop.eup %2185  ;;  %v846_v46 = vadd.f32 1.0, %v2184_v57  ;;  %2193 = vtanh.f32 %v790_v41  ;;  %1299 = vmatpush.bf16.msra.mxu0 %v1914_v23  ;;  %v1978_v45 = vor.u32 %v2061_v35, %v1977_v31  ;;  %v1918_v63 = vor.u32 %v2044_v2, %v1915_v20 }
  0xc1   : > { %v877_v9 = vmul.f32 0.5, %v845_v6  ;;  %v755_v3 = vadd.f32 %v723_v0, %v595_v18  ;;  %v756_v52 = vadd.f32 %v724_v34, %v596_v42  ;;  %v1982_v4 = vor.u32 %v2060_v62, %v1979_v29 }
  0xc2   : > { %v2835_v28 = vpop.eup %2187  ;;  %v878_v15 = vmul.f32 0.5, %v846_v46  ;;  %1348 = vmatpush.bf16.msra.mxu1 %v1978_v45  ;;  %1397 = vmatpush.bf16.msra.mxu2 %v1918_v63  ;;  %v1085_v50 = vpack.c.bf16 %v2771_v51, %v2709_v43  ;;  %v974_v27 = vadd.f32 %v2771_v51, %v2759_v44  ;;  %v1084_v14 = vpack.c.bf16 %v2759_v44, %v2706_v53 }
  0xc3   : > { %v927_v61 = vmul.f32 1.442695, %v877_v9  ;;  %v787_v38 = vmul.f32 0.5, %v755_v3  ;;  %v788_v60 = vmul.f32 0.5, %v756_v52  ;;  %1446 = vmatpush.bf16.msra.mxu3 %v1982_v4  ;;  %v983_v17 = vadd.f32 %v2624_v10, %v2621_v24 }
  0xc4   : > { %v2845_v54 = vpop.eup %2189  ;;  %v929_v21 = vmul.f32 1.442695, %v878_v15  ;;  %975 = vadd.xlane.f32.xlu2 %v974_v27  ;;  %1300 = vmatmul.bf16.vlgmr.msra.gmra.mxu0 %v1084_v14  ;;  %v459_v43 = vunpack.c.3.s8 %v2682_v48  ;;  %v460_v31 = vunpack.c.3.s8 %v2685_v55  ;;  %v531_v51 = vunpack.c.3.s8 %v2688_v56  ;;  %v697_v48 = vpop.permute.xlu0 %696 }
  0xc5   : > { %v2192_v35 = vpop.eup %2191  ;;  %v933_v53 = vmul.f32 1.442695, %v880_v7  ;;  %2195 = vpow2.f32 %v927_v61  ;;  %1349 = vmatmul.bf16.vlgmr.msra.gmra.mxu1 %v1085_v50  ;;  %1398 = vmatmul.bf16.vlgmr.msra.gmra.mxu2 %v1084_v14  ;;  %v532_v44 = vunpack.c.3.s8 %v2693_v5  ;;  %v989_v37 = vadd.f32 %v2835_v28, %v2833_v33 }
  0xc6   : > { %v2194_v39 = vpop.eup %2193  ;;  %2197 = vpow2.f32 %v929_v21  ;;  %v853_v40 = vadd.f32 1.0, %v2192_v35  ;;  %1447 = vmatmul.bf16.vlgmr.msra.gmra.mxu3 %v1085_v50  ;;  %984 = vadd.xlane.f32.xlu1 %v983_v17  ;;  %v491_v18 = vcvt.s32.f32 %v459_v43  ;;  %v492_v55 = vcvt.s32.f32 %v460_v31 }
  0xc7   : > { %v854_v2 = vadd.f32 1.0, %v2194_v39  ;;  %2199 = vtanh.f32 %v787_v38  ;;  %v563_v56 = vcvt.s32.f32 %v531_v51  ;;  %v564_v7 = vcvt.s32.f32 %v532_v44  ;;  %990 = vadd.xlane.f32.xlu0 %v989_v37 }
  0xc8   : > { %v885_v20 = vmul.f32 0.5, %v853_v40  ;;  %2201 = vtanh.f32 %v788_v60  ;;  %v601_v5 = vmul.f32 %v2407_v32, %v491_v18  ;;  %v602_v8 = vmul.f32 %v2413_v36, %v492_v55 }
  0xc9   : > { %2203 = vpow2.f32 %v933_v53  ;;  %v886_v41 = vmul.f32 0.5, %v854_v2  ;;  %v729_v42 = vmul.f32 %v697_v48, %v563_v56  ;;  %v730_v23 = vmul.f32 %v697_v48, %v564_v7 }
  0xca   : > { %v943_v62 = vmul.f32 1.442695, %v885_v20  ;;  %v980_v29 = vadd.f32 %v2753_v11, %v2715_v1  ;;  %v992_v57 = vadd.f32 %v2803_v16, %v2787_v25  ;;  %2205 = vpow2.f32 %v2721_v49 }
  0xcb   : > { %v2859_v6 = vpop.eup %2195  ;;  %v761_v0 = vadd.f32 %v729_v42, %v601_v5  ;;  %v762_v34 = vadd.f32 %v730_v23, %v602_v8  ;;  %2207 = vpow2.f32 %v2724_v22  ;;  %v849_v36 = vadd.f32 1.0, %v2690_v58 }
  0xcc   : > { %v2862_v32 = vpop.eup %2197  ;;  %v850_v46 = vadd.f32 1.0, %v2695_v12  ;;  %981 = vadd.xlane.f32.xlu2 %v980_v29  ;;  %v945_v63 = vmul.f32 1.442695, %v886_v41  ;;  %v855_v49 = vadd.f32 1.0, %v2791_v26  ;;  %2209 = vpow2.f32 %v943_v62 }
  0xcd   : > { %v2200_v45 = vpop.eup %2199  ;;  %v793_v9 = vmul.f32 0.5, %v761_v0  ;;  %v794_v3 = vmul.f32 0.5, %v762_v34  ;;  %v998_v52 = vadd.f32 %v2862_v32, %v2859_v6  ;;  %v856_v58 = vadd.f32 1.0, %v2800_v59 }
  0xce   : > { %v2202_v4 = vpop.eup %2201  ;;  %v851_v15 = vadd.f32 1.0, %v2200_v45  ;;  %993 = vadd.xlane.f32.xlu1 %v992_v57  ;;  %v881_v12 = vmul.f32 0.5, %v849_v36  ;;  %v986_v14 = vadd.f32 %v2677_v47, %v2666_v13  ;;  %v882_v38 = vmul.f32 0.5, %v850_v46 }
  0xcf   : > { %v2870_v50 = vpop.eup %2203  ;;  %v852_v22 = vadd.f32 1.0, %v2202_v4  ;;  %2211 = vtanh.f32 %v793_v9  ;;  %999 = vadd.xlane.f32.xlu0 %v998_v52  ;;  %v887_v17 = vmul.f32 0.5, %v855_v49  ;;  %v1086_v59 = vpack.c.bf16 %v2715_v1, %v2698_v19 }
  0xd0   : > { %v883_v27 = vmul.f32 0.5, %v851_v15  ;;  %2213 = vtanh.f32 %v794_v3  ;;  %v2875_v61 = vpop.eup %2205  ;;  %v1001_v43 = vadd.f32 %v2870_v50, %v2845_v54  ;;  %v888_v31 = vmul.f32 0.5, %v856_v58 }
  0xd1   : > { %2215 = vpow2.f32 %v945_v63  ;;  %v884_v26 = vmul.f32 0.5, %v852_v22  ;;  %v2877_v60 = vpop.eup %2207  ;;  %v1087_v35 = vpack.c.bf16 %v2753_v11, %v2702_v30  ;;  %v935_v44 = vmul.f32 1.442695, %v881_v12 }
  0xd2   : > { %v939_v21 = vmul.f32 1.442695, %v883_v27  ;;  %v2210_v53 = vpop.eup %2209  ;;  %v937_v39 = vmul.f32 1.442695, %v882_v38  ;;  %v947_v19 = vmul.f32 1.442695, %v887_v17  ;;  %v995_v7 = vadd.f32 %v2877_v60, %v2875_v61 }
  0xd3   : > { %v941_v51 = vmul.f32 1.442695, %v884_v26  ;;  %v949_v18 = vmul.f32 1.442695, %v888_v31  ;;  %v1088_v46 = vpack.c.bf16 %v2666_v13, %v2621_v24  ;;  %v1089_v63 = vpack.c.bf16 %v2677_v47, %v2624_v10 }
  0xd4   : > { %2217 = vpow2.f32 %v939_v21  ;;  %987 = vadd.xlane.f32.xlu2 %v986_v14  ;;  %1305 = vmatmul.bf16.gmra.mxu0 %v1086_v59  ;;  %v1090_v49 = vpack.c.bf16 %v2787_v25, %v2833_v33  ;;  %v1091_v24 = vpack.c.bf16 %v2803_v16, %v2835_v28  ;;  %v1092_v10 = vpack.c.bf16 %v2859_v6, %v2875_v61 }
  0xd5   : > { %v2212_v37 = vpop.eup %2211  ;;  %2219 = vpow2.f32 %v941_v51  ;;  %1354 = vmatmul.bf16.gmra.mxu1 %v1087_v35  ;;  %1403 = vmatmul.bf16.gmra.mxu2 %v1086_v59  ;;  %v1093_v13 = vpack.c.bf16 %v2862_v32, %v2877_v60  ;;  %v2290_v47 = vmov 0.0  }
  0xd6   : > { %v2214_v40 = vpop.eup %2213  ;;  %v857_v1 = vadd.f32 1.0, %v2212_v37  ;;  %1452 = vmatmul.bf16.gmra.mxu3 %v1087_v35  ;;  %1002 = vadd.xlane.f32.xlu1 %v1001_v43  ;;  %2221 = vpow2.f32 %v935_v44  ;;  %407 = vst.msk [vmem:[#allocation3 + $0x10] sm:$0xff] %vm404_vm0, %v2290_v47 }
  0xd7   : > { %v2216_v48 = vpop.eup %2215  ;;  %v858_v55 = vadd.f32 1.0, %v2214_v40  ;;  %2223 = vpow2.f32 %v937_v39  ;;  %405 = vst.msk [vmem:[#allocation3] sm:$0xff] %vm404_vm0, %v2290_v47 }
  0xd8   : > { %v889_v30 = vmul.f32 0.5, %v857_v1  ;;  %2225 = vpow2.f32 %v947_v19  ;;  %v1010_v20 = vadd.f32 %v2216_v48, %v2210_v53  ;;  %406 = vst.msk [vmem:[#allocation3 + $0x8] sm:$0xff] %vm404_vm0, %v2290_v47 }
  0xd9   : > { %v890_v11 = vmul.f32 0.5, %v858_v55  ;;  %2227 = vpow2.f32 %v949_v18  ;;  %408 = vst.msk [vmem:[#allocation3 + $0x18] sm:$0xff] %vm404_vm0, %v2290_v47 }
  0xda   : > { %v2218_v2 = vpop.eup %2217  ;;  %v951_v56 = vmul.f32 1.442695, %v889_v30  ;;  %409 = vst.msk [vmem:[#allocation3 + $0x20] sm:$0xff] %vm404_vm0, %v2290_v47 }
  0xdb   : > { %v2220_v5 = vpop.eup %2219  ;;  %v953_v8 = vmul.f32 1.442695, %v890_v11  ;;  %v2887_v41 = vpack.c.bf16 %v2210_v53, %v2218_v2  ;;  %410 = vst.msk [vmem:[#allocation3 + $0x28] sm:$0xff] %vm404_vm0, %v2290_v47 }
  0xdc   : > { %2229 = vpow2.f32 %v951_v56  ;;  %v1007_v42 = vadd.f32 %v2220_v5, %v2218_v2  ;;  %996 = vadd.xlane.f32.xlu2 %v995_v7  ;;  %v2889_v23 = vpack.c.bf16 %v2216_v48, %v2220_v5  ;;  %v2222_v62 = vpop.eup %2221  ;;  %411 = vst.msk [vmem:[#allocation3 + $0x30] sm:$0xff] %vm404_vm0, %v2290_v47 }
  0xdd   : > { %2231 = vpow2.f32 %v953_v8  ;;  %v2224_v29 = vpop.eup %2223  ;;  %412 = vst.msk [vmem:[#allocation3 + $0x38] sm:$0xff] %vm404_vm0, %v2290_v47  ;;  %v1094_v25 = vpack.c.bf16 %v2222_v62, %v2845_v54  ;;  %v957_v33 = vld [vmem:[#allocation3 + $0x10] sm:$0xff] }
  0xde   : > { %1008 = vadd.xlane.f32.xlu0 %v1007_v42  ;;  %1011 = vadd.xlane.f32.xlu1 %v1010_v20  ;;  %v2226_v57 = vpop.eup %2225  ;;  %v1004_v36 = vadd.f32 %v2224_v29, %v2222_v62  ;;  %413 = vst.msk [vmem:[#allocation3 + $0x40] sm:$0xff] %vm404_vm0, %v2290_v47  ;;  %v1095_v16 = vpack.c.bf16 %v2224_v29, %v2870_v50  ;;  %v955_v28 = vld [vmem:[#allocation3] sm:$0xff] }
  0xdf   : > { %v2228_v0 = vpop.eup %2227  ;;  %414 = vst.msk [vmem:[#allocation3 + $0x48] sm:$0xff] %vm404_vm0, %v2290_v47  ;;  %v956_v22 = vld [vmem:[#allocation3 + $0x8] sm:$0xff] }
  0xe0   : > { %v1013_v4 = vadd.f32 %v2228_v0, %v2226_v57  ;;  %415 = vst.msk [vmem:[#allocation3 + $0x50] sm:$0xff] %vm404_vm0, %v2290_v47  ;;  %v958_v43 = vld [vmem:[#allocation3 + $0x18] sm:$0xff] }
  0xe1   : > { %416 = vst.msk [vmem:[#allocation3 + $0x58] sm:$0xff] %vm404_vm0, %v2290_v47  ;;  %v959_v14 = vld [vmem:[#allocation3 + $0x20] sm:$0xff] }
  0xe2   : > { %v2230_v34 = vpop.eup %2229  ;;  %417 = vst.msk [vmem:[#allocation3 + $0x60] sm:$0xff] %vm404_vm0, %v2290_v47  ;;  %v960_v30 = vld [vmem:[#allocation3 + $0x28] sm:$0xff] }
  0xe3   : > { %v2232_v45 = vpop.eup %2231  ;;  %v2895_v9 = vpack.c.bf16 %v2230_v34, %v2226_v57  ;;  %418 = vst.msk [vmem:[#allocation3 + $0x68] sm:$0xff] %vm404_vm0, %v2290_v47  ;;  %v961_v26 = vld [vmem:[#allocation3 + $0x30] sm:$0xff] }
  0xe4   : > { %v1016_v3 = vadd.f32 %v2232_v45, %v2230_v34  ;;  %1005 = vadd.xlane.f32.xlu2 %v1004_v36  ;;  %1310 = vmatmul.bf16.gmra.mxu0 %v1088_v46  ;;  %v1099_v52 = vpack.c.bf16 %v2232_v45, %v2228_v0  ;;  %419 = vst.msk [vmem:[#allocation3 + $0x70] sm:$0xff] %vm404_vm0, %v2290_v47  ;;  %v962_v51 = vld [vmem:[#allocation3 + $0x38] sm:$0xff] }
  0xe5   : > { %1359 = vmatmul.bf16.gmra.mxu1 %v1089_v63  ;;  %1408 = vmatmul.bf16.gmra.mxu2 %v1088_v46  ;;  %420 = vst.msk [vmem:[#allocation3 + $0x78] sm:$0xff] %vm404_vm0, %v2290_v47  ;;  %v963_v36 = vld [vmem:[#allocation3 + $0x40] sm:$0xff] }
  0xe6   : > { %1457 = vmatmul.bf16.gmra.mxu3 %v1089_v63  ;;  %1017 = vadd.xlane.f32.xlu0 %v1016_v3  ;;  %v964_v53 = vld [vmem:[#allocation3 + $0x48] sm:$0xff] }
  0xe7   : > { %v965_v2 = vld [vmem:[#allocation3 + $0x50] sm:$0xff] }
  0xe9   : > { %v967_v45 = vld [vmem:[#allocation3 + $0x60] sm:$0xff] }
  0xec   : > { %1014 = vadd.xlane.f32.xlu2 %v1013_v4  ;;  %v968_v4 = vld [vmem:[#allocation3 + $0x68] sm:$0xff] }
  0xf4   : > { %1315 = vmatmul.bf16.gmra.mxu0 %v1090_v49 }
  0xf5   : > { %1364 = vmatmul.bf16.gmra.mxu1 %v1091_v24  ;;  %1413 = vmatmul.bf16.gmra.mxu2 %v1090_v49 }
  0xf6   : > { %1462 = vmatmul.bf16.gmra.mxu3 %v1091_v24 }
 0x104   : > { %1320 = vmatmul.bf16.gmra.mxu0 %v1092_v10 }
 0x105   : > { %1369 = vmatmul.bf16.gmra.mxu1 %v1093_v13  ;;  %1418 = vmatmul.bf16.gmra.mxu2 %v1092_v10 }
 0x106   : > { %1467 = vmatmul.bf16.gmra.mxu3 %v1093_v13 }
 0x114   : > { %1325 = vmatmul.bf16.gmra.mxu0 %v1094_v25 }
 0x115   : > { %1374 = vmatmul.bf16.gmra.mxu1 %v1095_v16  ;;  %1423 = vmatmul.bf16.gmra.mxu2 %v1094_v25 }
 0x116   : > { %1472 = vmatmul.bf16.gmra.mxu3 %v1095_v16 }
 0x124   : > { %1330 = vmatmul.bf16.gmra.mxu0 %v2887_v41 }
 0x125   : > { %1379 = vmatmul.bf16.gmra.mxu1 %v2889_v23  ;;  %1428 = vmatmul.bf16.gmra.mxu2 %v2887_v41 }
 0x126   : > { %1477 = vmatmul.bf16.gmra.mxu3 %v2889_v23  ;;  %v979_v54 = vpop.xlane.xlu0 %978 }
 0x127   : > { %v1021_v6 = vadd.f32 %v979_v54, %v957_v33  ;;  %v973_v32 = vpop.xlane.xlu1 %972 }
 0x128   : > { %v1019_v15 = vadd.f32 %v973_v32, %v955_v28  ;;  %v966_v32 = vld [vmem:[#allocation3 + $0x58] sm:$0xff] }
 0x129   : > { %1038 = vst.msk [vmem:[#allocation3 + $0x10] sm:$0xff] %vm404_vm0, %v1021_v6 }
 0x12a   : > { %1036 = vst.msk [vmem:[#allocation3] sm:$0xff] %vm404_vm0, %v1019_v15 }
 0x130   : > { %v1589_v50 = vld [vmem:[#allocation3 + $0x10] sm:$0xff] }
 0x131   : > { %2233 = vrcp.f32 %v1589_v50  ;;  %v1587_v58 = vld [vmem:[#allocation3] sm:$0xff] }
 0x132   : > { %2235 = vrcp.f32 %v1587_v58  ;;  %v970_v58 = vld [vmem:[#allocation3 + $0x78] sm:$0xff] }
 0x134   : > { %1335 = vmatmul.bf16.gmra.mxu0 %v2895_v9 }
 0x135   : > { %1384 = vmatmul.bf16.gmra.mxu1 %v1099_v52  ;;  %1433 = vmatmul.bf16.gmra.mxu2 %v2895_v9 }
 0x136   : > { %1482 = vmatmul.bf16.gmra.mxu3 %v1099_v52 }
 0x137   : > { %v2234_v12 = vpop.eup %2233  ;;  %v976_v27 = vpop.xlane.xlu2 %975 }
 0x138   : > { %v2236_v61 = vpop.eup %2235  ;;  %v1020_v38 = vadd.f32 %v976_v27, %v956_v22  ;;  %1631 = vperm.xlu0 %2102, %v2234_v12  }
 0x139   : > { %v985_v60 = vpop.xlane.xlu1 %984  ;;  %1621 = vperm.xlu1 %2103, %v2236_v61  }
 0x13a   : > { %1037 = vst.msk [vmem:[#allocation3 + $0x8] sm:$0xff] %vm404_vm0, %v1020_v38  ;;  %v1023_v17 = vadd.f32 %v985_v60, %v959_v14  ;;  %v991_v21 = vpop.xlane.xlu0 %990 }
 0x13b   : > { %v1025_v59 = vadd.f32 %v991_v21, %v961_v26 }
 0x13c   : > { %1040 = vst.msk [vmem:[#allocation3 + $0x20] sm:$0xff] %vm404_vm0, %v1023_v17 }
 0x13d   : > { %1042 = vst.msk [vmem:[#allocation3 + $0x30] sm:$0xff] %vm404_vm0, %v1025_v59 }
 0x13f   : > { %v982_v31 = vpop.xlane.xlu2 %981 }
 0x140   : > { %v1022_v35 = vadd.f32 %v982_v31, %v958_v43 }
 0x141   : > { %v994_v44 = vpop.xlane.xlu1 %993  ;;  %v1301_v37 = vpop.f32.mrf.mxu0  ;;  %v1588_v39 = vld [vmem:[#allocation3 + $0x8] sm:$0xff] }
 0x142   : > { %1039 = vst.msk [vmem:[#allocation3 + $0x18] sm:$0xff] %vm404_vm0, %v1022_v35  ;;  %v1026_v40 = vadd.f32 %v994_v44, %v962_v51  ;;  %v1350_v19 = vpop.f32.mrf.mxu1  ;;  %v1000_v1 = vpop.xlane.xlu0 %999  ;;  %2237 = vrcp.f32 %v1588_v39  ;;  %v969_v51 = vld [vmem:[#allocation3 + $0x70] sm:$0xff] }
 0x143   : > { %v2935_v48 = vadd.f32 %v1350_v19, %v1301_v37  ;;  %v1028_v18 = vadd.f32 %v1000_v1, %v964_v53  ;;  %v1591_v55 = vld [vmem:[#allocation3 + $0x20] sm:$0xff] }
 0x144   : > { %1043 = vst.msk [vmem:[#allocation3 + $0x38] sm:$0xff] %vm404_vm0, %v1026_v40  ;;  %2239 = vrcp.f32 %v1591_v55  ;;  %v1593_v46 = vld [vmem:[#allocation3 + $0x30] sm:$0xff] }
 0x145   : > { %1045 = vst.msk [vmem:[#allocation3 + $0x48] sm:$0xff] %vm404_vm0, %v1028_v18 }
 0x147   : > { %v988_v11 = vpop.xlane.xlu2 %987 }
 0x148   : > { %v2238_v56 = vpop.eup %2237  ;;  %v1024_v7 = vadd.f32 %v988_v11, %v960_v30  ;;  %v1399_v20 = vpop.f32.mrf.mxu2 }
 0x149   : > { %v1448_v5 = vpop.f32.mrf.mxu3  ;;  %v1003_v8 = vpop.xlane.xlu1 %1002  ;;  %1626 = vperm.xlu2 %2104, %v2238_v56   ;;  %v1590_v41 = vld [vmem:[#allocation3 + $0x18] sm:$0xff] }
 0x14a   : > { %v2240_v42 = vpop.eup %2239  ;;  %1041 = vst.msk [vmem:[#allocation3 + $0x28] sm:$0xff] %vm404_vm0, %v1024_v7  ;;  %v2940_v23 = vadd.f32 %v1448_v5, %v1399_v20  ;;  %v1029_v62 = vadd.f32 %v1003_v8, %v965_v2  ;;  %v1352_v29 = vpop.f32.mrf.mxu1  ;;  %2241 = vrcp.f32 %v1590_v41 }
 0x14b   : > { %v1303_v57 = vpop.f32.mrf.mxu0  ;;  %1641 = vperm.xlu0 %2102, %v2240_v42   ;;  %v1594_v34 = vld [vmem:[#allocation3 + $0x38] sm:$0xff] }
 0x14c   : > { %v2942_v0 = vadd.f32 %v1352_v29, %v1303_v57  ;;  %1046 = vst.msk [vmem:[#allocation3 + $0x50] sm:$0xff] %vm404_vm0, %v1029_v62  ;;  %2243 = vrcp.f32 %v1594_v34  ;;  %v1596_v15 = vld [vmem:[#allocation3 + $0x48] sm:$0xff] }
 0x14d   : > { %2245 = vrcp.f32 %v1593_v46 }
 0x14f   : > { %v997_v63 = vpop.xlane.xlu2 %996 }
 0x150   : > { %v2242_v9 = vpop.eup %2241  ;;  %v1027_v3 = vadd.f32 %v997_v63, %v963_v36  ;;  %v1401_v52 = vpop.f32.mrf.mxu2 }
 0x151   : > { %v1450_v49 = vpop.f32.mrf.mxu3  ;;  %v1009_v24 = vpop.xlane.xlu0 %1008  ;;  %1636 = vperm.xlu1 %2103, %v2242_v9   ;;  %v1592_v10 = vld [vmem:[#allocation3 + $0x28] sm:$0xff] }
 0x152   : > { %v2244_v13 = vpop.eup %2243  ;;  %v1031_v47 = vadd.f32 %v1009_v24, %v967_v45  ;;  %1044 = vst.msk [vmem:[#allocation3 + $0x40] sm:$0xff] %vm404_vm0, %v1027_v3  ;;  %v2946_v25 = vadd.f32 %v1450_v49, %v1401_v52  ;;  %v1012_v16 = vpop.xlane.xlu1 %1011  ;;  %2247 = vrcp.f32 %v1592_v10 }
 0x153   : > { %v2948_v33 = vpop.f32.mrf.mxu0  ;;  %v1032_v28 = vadd.f32 %v1012_v16, %v968_v4  ;;  %v2950_v54 = vpop.f32.mrf.mxu1  ;;  %1656 = vperm.xlu0 %2102, %v2244_v13   ;;  %v1597_v6 = vld [vmem:[#allocation3 + $0x50] sm:$0xff] }
 0x154   : > { %1048 = vst.msk [vmem:[#allocation3 + $0x60] sm:$0xff] %vm404_vm0, %v1031_v47  ;;  %2249 = vrcp.f32 %v1597_v6  ;;  %v2246_v50 = vpop.eup %2245 }
 0x155   : > { %1049 = vst.msk [vmem:[#allocation3 + $0x68] sm:$0xff] %vm404_vm0, %v1032_v28  ;;  %2251 = vrcp.f32 %v1596_v15 }
 0x157   : > { %v1006_v22 = vpop.xlane.xlu2 %1005 }
 0x158   : > { %v2248_v12 = vpop.eup %2247  ;;  %v1030_v27 = vadd.f32 %v1006_v22, %v966_v32  ;;  %v2954_v14 = vpop.f32.mrf.mxu2 }
 0x159   : > { %v2956_v61 = vpop.f32.mrf.mxu3  ;;  %v1018_v38 = vpop.xlane.xlu0 %1017  ;;  %1646 = vperm.xlu2 %2104, %v2248_v12   ;;  %1651 = vperm.xlu1 %2103, %v2246_v50   ;;  %v1595_v26 = vld [vmem:[#allocation3 + $0x40] sm:$0xff] }
 0x15a   : > { %v2250_v60 = vpop.eup %2249  ;;  %v1034_v17 = vadd.f32 %v1018_v38, %v970_v58  ;;  %1047 = vst.msk [vmem:[#allocation3 + $0x58] sm:$0xff] %vm404_vm0, %v1030_v27  ;;  %2253 = vrcp.f32 %v1595_v26 }
 0x15b   : > { %v1308_v21 = vpop.f32.mrf.mxu0  ;;  %v1357_v59 = vpop.f32.mrf.mxu1  ;;  %1671 = vperm.xlu0 %2102, %v2250_v60   ;;  %v1599_v35 = vld [vmem:[#allocation3 + $0x60] sm:$0xff] }
 0x15c   : > { %1051 = vst.msk [vmem:[#allocation3 + $0x78] sm:$0xff] %vm404_vm0, %v1034_v17  ;;  %v2960_v43 = vadd.f32 %v1357_v59, %v1308_v21  ;;  %v1600_v31 = vld [vmem:[#allocation3 + $0x68] sm:$0xff]  ;;  %v2252_v53 = vpop.eup %2251 }
 0x15d   : > { %2255 = vrcp.f32 %v1600_v31 }
 0x15e   : > { %2257 = vrcp.f32 %v1599_v35  ;;  %v1454_v35 = vadd.f32 %v2956_v61, %v2954_v14 }
 0x15f   : > { %v1015_v44 = vpop.xlane.xlu2 %1014 }
 0x160   : > { %v2254_v37 = vpop.eup %2253  ;;  %v1033_v39 = vadd.f32 %v1015_v44, %v969_v51  ;;  %v1406_v40 = vpop.f32.mrf.mxu2  ;;  %v1356_v51 = vadd.f32 %v2950_v54, %v2948_v33 }
 0x161   : > { %v1455_v19 = vpop.f32.mrf.mxu3  ;;  %1661 = vperm.xlu2 %2104, %v2254_v37   ;;  %1666 = vperm.xlu1 %2103, %v2252_v53   ;;  %v1598_v1 = vld [vmem:[#allocation3 + $0x58] sm:$0xff] }
 0x162   : > { %1050 = vst.msk [vmem:[#allocation3 + $0x70] sm:$0xff] %vm404_vm0, %v1033_v39  ;;  %v2963_v18 = vadd.f32 %v1455_v19, %v1406_v40  ;;  %2259 = vrcp.f32 %v1598_v1 }
 0x163   : > { %v1311_v55 = vpop.f32.mrf.mxu0  ;;  %v2256_v30 = vpop.eup %2255  ;;  %v1602_v56 = vld [vmem:[#allocation3 + $0x78] sm:$0xff] }
 0x164   : > { %v1360_v11 = vpop.f32.mrf.mxu1  ;;  %1686 = vperm.xlu0 %2102, %v2256_v30   ;;  %v2258_v7 = vpop.eup %2257  ;;  %2261 = vrcp.f32 %v1602_v56 }
 0x165   : > { %v2965_v2 = vadd.f32 %v1360_v11, %v1311_v55 }
 0x168   : > { %v2260_v20 = vpop.eup %2259  ;;  %v1409_v5 = vpop.f32.mrf.mxu2 }
 0x169   : > { %v1458_v8 = vpop.f32.mrf.mxu3  ;;  %1676 = vperm.xlu2 %2104, %v2260_v20   ;;  %1681 = vperm.xlu1 %2103, %v2258_v7   ;;  %v1601_v41 = vld [vmem:[#allocation3 + $0x70] sm:$0xff] }
 0x16a   : > { %v2967_v42 = vadd.f32 %v1458_v8, %v1409_v5  ;;  %2263 = vrcp.f32 %v1601_v41  ;;  %v2262_v57 = vpop.eup %2261 }
 0x16b   : > { %v1313_v62 = vpop.f32.mrf.mxu0 }
 0x16c   : > { %v1362_v29 = vpop.f32.mrf.mxu1 }
 0x16d   : > { %v1363_v33 = vadd.f32 %v1362_v29, %v1313_v62 }
 0x170   : > { %v2264_v34 = vpop.eup %2263  ;;  %v1411_v36 = vpop.f32.mrf.mxu2 }
 0x171   : > { %v1460_v46 = vpop.f32.mrf.mxu3  ;;  %1691 = vperm.xlu2 %2104, %v2264_v34   ;;  %1696 = vperm.xlu1 %2103, %v2262_v57  }
 0x172   : > { %v1461_v54 = vadd.f32 %v1460_v46, %v1411_v36 }
 0x173   : > { %v1316_v45 = vpop.f32.mrf.mxu0 }
 0x174   : > { %v1365_v63 = vpop.f32.mrf.mxu1 }
 0x175   : > { %v2969_v9 = vadd.f32 %v1365_v63, %v1316_v45 }
 0x178   : > { %v1414_v3 = vpop.f32.mrf.mxu2 }
 0x179   : > { %v1463_v52 = vpop.f32.mrf.mxu3 }
 0x17a   : > { %v2971_v4 = vadd.f32 %v1463_v52, %v1414_v3 }
 0x17b   : > { %v2973_v49 = vpop.f32.mrf.mxu0 }
 0x17c   : > { %v2975_v24 = vpop.f32.mrf.mxu1 }
 0x17d   : > { %v1368_v3 = vadd.f32 %v2975_v24, %v2973_v49 }
 0x180   : > { %v2977_v10 = vpop.f32.mrf.mxu2 }
 0x181   : > { %v2979_v13 = vpop.f32.mrf.mxu3 }
 0x182   : > { %v1466_v52 = vadd.f32 %v2979_v13, %v2977_v10 }
 0x183   : > { %v1321_v47 = vpop.f32.mrf.mxu0 }
 0x184   : > { %v1370_v16 = vpop.f32.mrf.mxu1 }
 0x188   : > { %v1419_v28 = vpop.f32.mrf.mxu2 }
 0x189   : > { %v1468_v6 = vpop.f32.mrf.mxu3 }
 0x18a   : > { %v1469_v11 = vadd.f32 %v1468_v6, %v1419_v28 }
 0x18b   : > { %v2981_v32 = vpop.f32.mrf.mxu0 }
 0x18c   : > { %v2983_v15 = vpop.f32.mrf.mxu1 }
 0x190   : > { %v2985_v50 = vpop.f32.mrf.mxu2 }
 0x191   : > { %v2987_v58 = vpop.f32.mrf.mxu3 }
 0x193   : > { %v2989_v22 = vpop.f32.mrf.mxu0 }
 0x194   : > { %v2991_v12 = vpop.f32.mrf.mxu1 }
 0x198   : > { %v2993_v27 = vpop.f32.mrf.mxu2 }
 0x199   : > { %v2995_v38 = vpop.f32.mrf.mxu3 }
 0x19b   : > { %v1328_v21 = vpop.f32.mrf.mxu0 }
 0x19c   : > { %v1377_v59 = vpop.f32.mrf.mxu1 }
 0x19d   : > { %v1378_v36 = vadd.f32 %v1377_v59, %v1328_v21 }
 0x1a0   : > { %v1426_v31 = vpop.f32.mrf.mxu2 }
 0x1a1   : > { %v1475_v53 = vpop.f32.mrf.mxu3 }
 0x1a2   : > { %v1476_v46 = vadd.f32 %v1475_v53, %v1426_v31  ;;  %v1474_v31 = vadd.f32 %v2995_v38, %v2993_v27 }
 0x1a3   : > { %v1627_v26 = vpop.permute.xlu2 %1626  ;;  %v3017_v19 = vpop.f32.mrf.mxu0 }
 0x1a4   : > { %v1701_v60 = vmul.f32 %v1627_v26, %v2942_v0  ;;  %v1702_v17 = vmul.f32 %v1627_v26, %v2946_v25  ;;  %v3019_v14 = vpop.f32.mrf.mxu1 }
 0x1a6   : > { %1733 = vst [vmem:[%s3001_s27 + $0x10] sm:$0xff] %v1701_v60 }
 0x1a7   : > { %1734 = vst [vmem:[%s3001_s27 + $0x18] sm:$0xff] %v1702_v17 }
 0x1a8   : > { %v3021_v61 = vpop.f32.mrf.mxu2 }
 0x1a9   : > { %v3023_v1 = vpop.f32.mrf.mxu3 }
 0x1aa   : > { %v1632_v44 = vpop.permute.xlu0 %1631 }
 0x1ab   : > { %v1703_v0 = vmul.f32 %v1632_v44, %v1356_v51  ;;  %v1704_v37 = vmul.f32 %v1632_v44, %v1454_v35  ;;  %v1622_v39 = vpop.permute.xlu1 %1621  ;;  %v1333_v56 = vpop.f32.mrf.mxu0 }
 0x1ac   : > { %v1699_v25 = vmul.f32 %v1622_v39, %v2935_v48  ;;  %v1700_v40 = vmul.f32 %v1622_v39, %v2940_v23  ;;  %v1371_v23 = vadd.f32 %v1370_v16, %v1321_v47  ;;  %v1382_v20 = vpop.f32.mrf.mxu1 }
 0x1ad   : > { %1735 = vst [vmem:[%s3001_s27 + $0x20] sm:$0xff] %v1703_v0 }
 0x1ae   : > { %1736 = vst [vmem:[%s3001_s27 + $0x28] sm:$0xff] %v1704_v37 }
 0x1af   : > { %1731 = vst [vmem:[%s3001_s27] sm:$0xff] %v1699_v25 }
 0x1b0   : > { %1732 = vst [vmem:[%s3001_s27 + $0x8] sm:$0xff] %v1700_v40  ;;  %v1431_v5 = vpop.f32.mrf.mxu2 }
 0x1b1   : > { %v1480_v62 = vpop.f32.mrf.mxu3 }
 0x1b2   : > { %v1481_v25 = vadd.f32 %v1480_v62, %v1431_v5 }
 0x1b3   : > { %v1647_v55 = vpop.permute.xlu2 %1646  ;;  %v1336_v16 = vpop.f32.mrf.mxu0 }
 0x1b4   : > { %v1709_v48 = vmul.f32 %v1647_v55, %v1363_v33  ;;  %v1710_v30 = vmul.f32 %v1647_v55, %v1461_v54  ;;  %v1385_v28 = vpop.f32.mrf.mxu1 }
 0x1b5   : > { %v1386_v24 = vadd.f32 %v1385_v28, %v1336_v16 }
 0x1b6   : > { %1741 = vst [vmem:[%s3001_s27 + $0x50] sm:$0xff] %v1709_v48 }
 0x1b7   : > { %1742 = vst [vmem:[%s3001_s27 + $0x58] sm:$0xff] %v1710_v30 }
 0x1b8   : > { %v1434_v17 = vpop.f32.mrf.mxu2 }
 0x1b9   : > { %v1483_v21 = vpop.f32.mrf.mxu3 }
 0x1ba   : > { %v1484_v10 = vadd.f32 %v1483_v21, %v1434_v17 }
 0x1bb   : > { %v1662_v7 = vpop.permute.xlu2 %1661  ;;  %v1338_v55 = vpop.f32.mrf.mxu0 }
 0x1bc   : > { %v1715_v8 = vmul.f32 %v1662_v7, %v1371_v23  ;;  %v1716_v41 = vmul.f32 %v1662_v7, %v1469_v11  ;;  %v1387_v48 = vpop.f32.mrf.mxu1 }
 0x1bd   : > { %v1642_v29 = vpop.permute.xlu0 %1641  ;;  %v1388_v11 = vadd.f32 %v1387_v48, %v1338_v55 }
 0x1be   : > { %1747 = vst [vmem:[%s3001_s27 + $0x80] sm:$0xff] %v1715_v8  ;;  %v1707_v57 = vmul.f32 %v1642_v29, %v2965_v2  ;;  %v1708_v34 = vmul.f32 %v1642_v29, %v2967_v42 }
 0x1bf   : > { %1748 = vst [vmem:[%s3001_s27 + $0x88] sm:$0xff] %v1716_v41 }
 0x1c0   : > { %1739 = vst [vmem:[%s3001_s27 + $0x40] sm:$0xff] %v1707_v57  ;;  %v1436_v30 = vpop.f32.mrf.mxu2 }
 0x1c1   : > { %1740 = vst [vmem:[%s3001_s27 + $0x48] sm:$0xff] %v1708_v34  ;;  %v1485_v23 = vpop.f32.mrf.mxu3 }
 0x1c3   : > { %v1677_v45 = vpop.permute.xlu2 %1676  ;;  %v1637_v63 = vpop.permute.xlu1 %1636 }
 0x1c4   : > { %v1721_v2 = vmul.f32 %v1677_v45, %v1378_v36  ;;  %v1722_v47 = vmul.f32 %v1677_v45, %v1476_v46  ;;  %v1705_v60 = vmul.f32 %v1637_v63, %v2960_v43  ;;  %v1706_v49 = vmul.f32 %v1637_v63, %v2963_v18 }
 0x1c5   : > { %v1657_v42 = vpop.permute.xlu0 %1656  ;;  %v1376_v43 = vadd.f32 %v2991_v12, %v2989_v22  ;;  %v1373_v22 = vadd.f32 %v2983_v15, %v2981_v32  ;;  %v1471_v12 = vadd.f32 %v2987_v58, %v2985_v50  ;;  %v1381_v32 = vadd.f32 %v3019_v14, %v3017_v19 }
 0x1c6   : > { %1753 = vst [vmem:[%s3001_s27 + $0xb0] sm:$0xff] %v1721_v2  ;;  %v1713_v6 = vmul.f32 %v1657_v42, %v1368_v3  ;;  %v1714_v26 = vmul.f32 %v1657_v42, %v1466_v52  ;;  %v1479_v15 = vadd.f32 %v3023_v1, %v3021_v61 }
 0x1c7   : > { %1754 = vst [vmem:[%s3001_s27 + $0xb8] sm:$0xff] %v1722_v47 }
 0x1c8   : > { %1745 = vst [vmem:[%s3001_s27 + $0x70] sm:$0xff] %v1713_v6 }
 0x1c9   : > { %1746 = vst [vmem:[%s3001_s27 + $0x78] sm:$0xff] %v1714_v26 }
 0x1ca   : > { %1737 = vst [vmem:[%s3001_s27 + $0x30] sm:$0xff] %v1705_v60 }
 0x1cb   : > { %1738 = vst [vmem:[%s3001_s27 + $0x38] sm:$0xff] %v1706_v49  ;;  %v1692_v13 = vpop.permute.xlu2 %1691  ;;  %v1652_v59 = vpop.permute.xlu1 %1651 }
 0x1cc   : > { %v1727_v18 = vmul.f32 %v1692_v13, %v1386_v24  ;;  %v1728_v51 = vmul.f32 %v1692_v13, %v1484_v10  ;;  %v1711_v0 = vmul.f32 %v1652_v59, %v2969_v9  ;;  %v1712_v37 = vmul.f32 %v1652_v59, %v2971_v4 }
 0x1cd   : > { %v1672_v35 = vpop.permute.xlu0 %1671  ;;  %v1383_v9 = vadd.f32 %v1382_v20, %v1333_v56  ;;  %v1486_v56 = vadd.f32 %v1485_v23, %v1436_v30 }
 0x1ce   : > { %1759 = vst [vmem:[%s3001_s27 + $0xe0] sm:$0xff] %v1727_v18  ;;  %v1719_v53 = vmul.f32 %v1672_v35, %v1376_v43  ;;  %v1720_v44 = vmul.f32 %v1672_v35, %v1474_v31 }
 0x1cf   : > { %1760 = vst [vmem:[%s3001_s27 + $0xe8] sm:$0xff] %v1728_v51 }
 0x1d0   : > { %1751 = vst [vmem:[%s3001_s27 + $0xa0] sm:$0xff] %v1719_v53 }
 0x1d1   : > { %1752 = vst [vmem:[%s3001_s27 + $0xa8] sm:$0xff] %v1720_v44 }
 0x1d2   : > { %1743 = vst [vmem:[%s3001_s27 + $0x60] sm:$0xff] %v1711_v0 }
 0x1d3   : > { %1744 = vst [vmem:[%s3001_s27 + $0x68] sm:$0xff] %v1712_v37  ;;  %v1667_v27 = vpop.permute.xlu1 %1666 }
 0x1d4   : > { %v1717_v38 = vmul.f32 %v1667_v27, %v1373_v22  ;;  %v1718_v39 = vmul.f32 %v1667_v27, %v1471_v12 }
 0x1d6   : > { %v1687_v4 = vpop.permute.xlu0 %1686  ;;  %1749 = vst [vmem:[%s3001_s27 + $0x90] sm:$0xff] %v1717_v38 }
 0x1d7   : > { %v1725_v40 = vmul.f32 %v1687_v4, %v1383_v9  ;;  %v1726_v33 = vmul.f32 %v1687_v4, %v1481_v25  ;;  %1750 = vst [vmem:[%s3001_s27 + $0x98] sm:$0xff] %v1718_v39 }
 0x1d9   : > { %1757 = vst [vmem:[%s3001_s27 + $0xd0] sm:$0xff] %v1725_v40 }
 0x1da   : > { %1758 = vst [vmem:[%s3001_s27 + $0xd8] sm:$0xff] %v1726_v33 }
 0x1db   : > { %v1682_v50 = vpop.permute.xlu1 %1681 }
 0x1dc   : > { %v1723_v58 = vmul.f32 %v1682_v50, %v1381_v32  ;;  %v1724_v54 = vmul.f32 %v1682_v50, %v1479_v15 }
 0x1de   : > { %1755 = vst [vmem:[%s3001_s27 + $0xc0] sm:$0xff] %v1723_v58 }
 0x1df   : > { %1756 = vst [vmem:[%s3001_s27 + $0xc8] sm:$0xff] %v1724_v54 }
 0x1e3   : > { %v1697_v7 = vpop.permute.xlu1 %1696 }
 0x1e4   : > { %v1729_v20 = vmul.f32 %v1697_v7, %v1388_v11  ;;  %v1730_v19 = vmul.f32 %v1697_v7, %v1486_v56 }
 0x1e6   : > { %1761 = vst [vmem:[%s3001_s27 + $0xf0] sm:$0xff] %v1729_v20 }
 0x1e7   : > { %1762 = vst [vmem:[%s3001_s27 + $0xf8] sm:$0xff] %v1730_v19 }
 0x1e8 PF: > { %s15_s20 = sadd.s32 1, %s2287_s20   ;;  %s3088_s18 = smov %s2283_s19 }
 0x1e9   : > { %p12_p6 = scmp.ge.s32.totalorder %s15_s20, 4   ;;  %s3089_s19 = smov %s3091_s21 }
 0x1eb   :  { %14 = sbr.rel (!%p12_p6) target bundleno = 2 (0x2), region = 90 }

// kernel: encoder_forward.7
= control target key start
LH: loop header
LB: loop body
LE: loop exit
PB: predicated region body
PF: predicated region fallthrough
CT: control target
= control target key end

     0   :  { %s3093_s18 = smov 0   ;;  %s3095_s19 = smov 0   ;;  %s4286_s0 = inlined_call_operand.vmem [shape: s8[256,256], index: 0, kind: input, shape index: {}]   ;;  %s4287_s1 = inlined_call_operand.vmem [shape: s8[256,256], index: 1, kind: input, shape index: {}]   ;;  %s4288_s2 = inlined_call_operand.vmem [shape: f32[1,256], index: 2, kind: input, shape index: {}]   ;;  %s4289_s3 = inlined_call_operand.vmem [shape: f32[256,1], index: 3, kind: input, shape index: {}]   ;;  %s4290_s4 = inlined_call_operand.vmem [shape: bf16[256,512], index: 4, kind: input, shape index: {}]   ;;  %s4291_s5 = inlined_call_operand.vmem [shape: f32[256,512], index: 5, kind: output, shape index: {}]  }
   0x1   :  { %s3097_s20 = smov 0  }
   0x2 LB: > { %s27_s21 = sadd.s32 1, %s3055_s19  ;;  %p2511_p0 = scmp.ge.s32.totalorder %s3059_s20, 1  ;;  %s3059_s20 = sphi %s3097_s20, %s15_s20   ;;  %s3055_s19 = sphi %s3095_s19, %s4293_s19   ;;  %s3051_s18 = sphi %s3093_s18, %s4292_s18  }
   0x3   : > { %p29_p1 = scmp.ge.s32.totalorder %s27_s21, 2  ;;  %p260_p2 = scmp.lt.s32.totalorder %s3059_s20, 3 }
   0x5   : > { %s4295_s21 = smov (%p29_p1, %s27_s21), 0  ;;  %p261_p3 = pnand %p2511_p0, %p260_p2 }
   0x6   : > { %s2518_s22 = sshll.u32 (!%p261_p3), %s3051_s18, 4  ;;  %s2512_s27 = sshll.u32 (!%p261_p3), %s3051_s18, 2 }
   0x7   : > { %264 = sbr.rel (%p261_p3) target bundleno = 591 (0x24f), region = 40  ;;  %p349_p4 = scmp.lt.s32.totalorder (!%p261_p3), %s2518_s22, 31 }
   0x8   : > { %p321_p5 = scmp.lt.s32.totalorder (!%p261_p3), %s2512_s27, 7 }
   0xc   : > { %v3061_v0 = vmov 0   ;;  %s4297_s22 = smov (!%p349_p4, %s2518_s22), 31  ;;  %s4299_s27 = smov (!%p321_p5, %s2512_s27), 7  ;;  %v597_v23 = vld [vmem:[%s4288_s2] sm:$0x3]  ;;  %vm436_vm0 = vcmask 7168  }
   0xd   : > { %2875 = vset.pattern.permute.xlu1 %v3061_v0  ;;  %2874 = vset.pattern.permute.xlu0 %v3061_v0  ;;  %s2519_s23 = sshll.u32 %s4297_s22, 3  ;;  %s2781_s28 = sshll.u32 %s4299_s27, 4  ;;  %v3174_v28 = vperm.slane %v597_v23, 0  ;;  %v3176_v29 = vperm.slane %v597_v23, 1  ;;  %v2637_v35 = vld [vmem:[%s4290_s4 + $0xe0] sm:$0xf] }
   0xe   : > { %2876 = vset.pattern.permute.xlu2 %v3061_v0  ;;  %s3120_s26 = scalar_lea.vmem %s4289_s3, %s2519_s23  ;;  %s3142_s6 = scalar_lea.vmem %s4286_s0, %s2781_s28  ;;  %v2814_v36 = vld [vmem:[%s4290_s4 + $0xec] sm:$0xf0]  ;;  %v2765_v37 = vld [vmem:[%s4290_s4 + $0x1e0] sm:$0xf]  ;;  %v2812_v43 = vld [vmem:[%s4290_s4 + $0xe4] sm:$0xf] }
   0xf   : > { %v637_v1 = vld [vmem:[%s3120_s26 + $0x10] sm:$0xff]  ;;  %v635_v2 = vld [vmem:[%s3120_s26] sm:$0xff]  ;;  %v638_v4 = vld [vmem:[%s3120_s26 + $0x18] sm:$0xff]  ;;  %s3147_s9 = scalar_lea.vmem %s4287_s1, %s2781_s28  ;;  %v2638_v41 = vor.u32 %v2814_v36, %v2637_v35  ;;  %s2783_s30 = sshll.u32 %s4297_s22, 5 }
  0x10   : > { %663 = vperm.xlu1 %2875, %v637_v1   ;;  %653 = vperm.xlu0 %2874, %v635_v2   ;;  %v639_v3 = vld [vmem:[%s3120_s26 + $0x20] sm:$0xff]  ;;  %v636_v5 = vld [vmem:[%s3120_s26 + $0x8] sm:$0xff]  ;;  %v642_v7 = vld [vmem:[%s3120_s26 + $0x38] sm:$0xff] }
  0x11   : > { %673 = vperm.xlu2 %2876, %v639_v3   ;;  %v640_v6 = vld [vmem:[%s3120_s26 + $0x28] sm:$0xff]  ;;  %v641_v8 = vld [vmem:[%s3120_s26 + $0x30] sm:$0xff]  ;;  %v643_v9 = vld [vmem:[%s3120_s26 + $0x40] sm:$0xff]  ;;  %1548 = vmatpush.bf16.msra.mxu0 %v2638_v41 }
  0x12   : > { %v645_v10 = vld [vmem:[%s3120_s26 + $0x50] sm:$0xff]  ;;  %v644_v11 = vld [vmem:[%s3120_s26 + $0x48] sm:$0xff]  ;;  %v646_v12 = vld [vmem:[%s3120_s26 + $0x58] sm:$0xff] }
  0x13   : > { %v648_v13 = vld [vmem:[%s3120_s26 + $0x68] sm:$0xff]  ;;  %v647_v14 = vld [vmem:[%s3120_s26 + $0x60] sm:$0xff]  ;;  %v649_v15 = vld [vmem:[%s3120_s26 + $0x70] sm:$0xff] }
  0x14   : > { %v650_v16 = vld [vmem:[%s3120_s26 + $0x78] sm:$0xff]  ;;  %v3150_v17 = vld [vmem:[%s3142_s6 + $0x10] sm:$0xff]  ;;  %v3169_v26 = vld [vmem:[%s3142_s6] sm:$0xff] }
  0x15   : > { %v3153_v18 = vld [vmem:[%s3142_s6 + $0x18] sm:$0xff]  ;;  %v3156_v19 = vld [vmem:[%s3147_s9 + $0x10] sm:$0xff]  ;;  %v469_v21 = vunpack.c.0.s8 %v3150_v17  ;;  %v3172_v27 = vld [vmem:[%s3142_s6 + $0x8] sm:$0xff]  ;;  %v465_v39 = vunpack.c.2.s8 %v3169_v26  ;;  %v461_v55 = vunpack.c.0.s8 %v3169_v26  ;;  %v463_v62 = vunpack.c.1.s8 %v3169_v26 }
  0x16   : > { %v3159_v20 = vld [vmem:[%s3147_s9 + $0x18] sm:$0xff]  ;;  %v470_v22 = vunpack.c.0.s8 %v3153_v18  ;;  %v541_v24 = vunpack.c.0.s8 %v3156_v19  ;;  %v3179_v32 = vld [vmem:[%s3147_s9] sm:$0xff]  ;;  %v3182_v33 = vld [vmem:[%s3147_s9 + $0x8] sm:$0xff]  ;;  %v466_v40 = vunpack.c.2.s8 %v3172_v27  ;;  %v462_v56 = vunpack.c.0.s8 %v3172_v27 }
  0x17   : > { %v542_v25 = vunpack.c.0.s8 %v3159_v20  ;;  %v501_v30 = vcvt.s32.f32 %v469_v21  ;;  %v2846_v42 = vld [vmem:[%s4290_s4 + $0x1ec] sm:$0xf0]  ;;  %v2639_v44 = vld [vmem:[%s4290_s4 + $0xf0] sm:$0xf0]  ;;  %v2844_v47 = vld [vmem:[%s4290_s4 + $0x1e4] sm:$0xf]  ;;  %v537_v51 = vunpack.c.2.s8 %v3179_v32  ;;  %v538_v54 = vunpack.c.2.s8 %v3182_v33 }
  0x18   : > { %668 = vperm.xlu1 %2875, %v638_v4   ;;  %658 = vperm.xlu0 %2874, %v636_v5   ;;  %v502_v31 = vcvt.s32.f32 %v470_v22  ;;  %v573_v34 = vcvt.s32.f32 %v541_v24  ;;  %v2766_v45 = vor.u32 %v2846_v42, %v2765_v37  ;;  %v2642_v46 = vor.u32 %v2812_v43, %v2639_v44  ;;  %v2767_v48 = vld [vmem:[%s4290_s4 + $0x1f0] sm:$0xf0]  ;;  %v2810_v21 = vld [vmem:[%s4290_s4 + $0xcc] sm:$0xf0]  ;;  %v2749_v22 = vld [vmem:[%s4290_s4 + $0x1c0] sm:$0xf] }
  0x19   : > { %678 = vperm.xlu2 %2876, %v640_v6   ;;  %v574_v38 = vcvt.s32.f32 %v542_v25  ;;  %v611_v49 = vmul.f32 %v3174_v28, %v501_v30  ;;  %v2770_v52 = vor.u32 %v2844_v47, %v2767_v48  ;;  %v533_v57 = vunpack.c.0.s8 %v3179_v32  ;;  %v2842_v30 = vld [vmem:[%s4290_s4 + $0x1cc] sm:$0xf0]  ;;  %v2840_v36 = vld [vmem:[%s4290_s4 + $0x1c4] sm:$0xf]  ;;  %v2751_v37 = vld [vmem:[%s4290_s4 + $0x1d0] sm:$0xf0] }
  0x1a   : > { %v612_v50 = vmul.f32 %v3176_v29, %v502_v31  ;;  %1597 = vmatpush.bf16.msra.mxu1 %v2766_v45  ;;  %1646 = vmatpush.bf16.msra.mxu2 %v2642_v46  ;;  %v497_v60 = vcvt.s32.f32 %v465_v39  ;;  %v498_v61 = vcvt.s32.f32 %v466_v40  ;;  %v464_v63 = vunpack.c.1.s8 %v3172_v27  ;;  %v2808_v31 = vld [vmem:[%s4290_s4 + $0xc4] sm:$0xf]  ;;  %v2605_v44 = vld [vmem:[%s4290_s4 + $0xa0] sm:$0xf]  ;;  %v2806_v45 = vld [vmem:[%s4290_s4 + $0xac] sm:$0xf0] }
  0x1b   : > { %1695 = vmatpush.bf16.msra.mxu3 %v2770_v52  ;;  %v3219_v2 = vcvt.s32.f32 %v537_v51  ;;  %v534_v3 = vunpack.c.0.s8 %v3182_v33  ;;  %v3222_v4 = vcvt.s32.f32 %v538_v54  ;;  %v493_v5 = vcvt.s32.f32 %v461_v55  ;;  %v2733_v46 = vld [vmem:[%s4290_s4 + $0x1a0] sm:$0xf]  ;;  %v2838_v51 = vld [vmem:[%s4290_s4 + $0x1ac] sm:$0xf0]  ;;  %v2804_v52 = vld [vmem:[%s4290_s4 + $0xa4] sm:$0xf] }
  0x1c   : > { %v494_v6 = vcvt.s32.f32 %v462_v56  ;;  %v467_v23 = vunpack.c.3.s8 %v3169_v26  ;;  %v468_v24 = vunpack.c.3.s8 %v3172_v27  ;;  %v539_v26 = vunpack.c.3.s8 %v3179_v32 }
  0x1d   : > { %v3254_v35 = vcvt.s32.f32 %v534_v3  ;;  %v540_v27 = vunpack.c.3.s8 %v3182_v33  ;;  %v2750_v39 = vor.u32 %v2842_v30, %v2749_v22  ;;  %v2754_v41 = vor.u32 %v2840_v36, %v2751_v37 }
  0x1e   : > { %v3268_v42 = vmul.f32 %v3176_v29, %v494_v6  ;;  %v499_v47 = vcvt.s32.f32 %v467_v23  ;;  %v500_v48 = vcvt.s32.f32 %v468_v24  ;;  %v3298_v54 = vcvt.s32.f32 %v539_v26 }
  0x1f   : > { %1598 = vmatpush.bf16.msra.mxu1 %v2750_v39  ;;  %v3300_v55 = vcvt.s32.f32 %v540_v27  ;;  %1696 = vmatpush.bf16.msra.mxu3 %v2754_v41  ;;  %v2734_v56 = vor.u32 %v2838_v51, %v2733_v46  ;;  %v475_v6 = vunpack.c.3.s8 %v3150_v17  ;;  %v547_v22 = vunpack.c.3.s8 %v3156_v19  ;;  %v3328_v41 = vld [vmem:[%s3142_s6 + $0x28] sm:$0xff] }
  0x20   : > { %688 = vperm.xlu1 %2875, %v642_v7   ;;  %683 = vperm.xlu0 %2874, %v641_v8   ;;  %v3224_v7 = vcvt.s32.f32 %v533_v57  ;;  %v548_v23 = vunpack.c.3.s8 %v3159_v20  ;;  %v3319_v26 = vmul.f32 %v3174_v28, %v499_v47  ;;  %v3322_v27 = vmul.f32 %v3176_v29, %v500_v48  ;;  %v3340_v48 = vld [vmem:[%s3147_s9 + $0x28] sm:$0xff] }
  0x21   : > { %693 = vperm.xlu2 %2876, %v643_v9   ;;  %v507_v36 = vcvt.s32.f32 %v475_v6  ;;  %v3335_v46 = vcvt.s32.f32 %v547_v22  ;;  %v478_v51 = vunpack.c.0.s8 %v3328_v41 }
  0x23   : > { %1599 = vmatpush.bf16.msra.mxu1 %v2734_v56 }
  0x28   : > { %703 = vperm.xlu1 %2875, %v645_v10   ;;  %698 = vperm.xlu0 %2874, %v644_v11   ;;  %v3227_v10 = vmul.f32 %v3174_v28, %v497_v60  ;;  %v3230_v11 = vmul.f32 %v3176_v29, %v498_v61  ;;  %v471_v61 = vunpack.c.1.s8 %v3150_v17 }
  0x29   : > { %708 = vperm.xlu2 %2876, %v646_v12   ;;  %v495_v12 = vcvt.s32.f32 %v463_v62  ;;  %v472_v62 = vunpack.c.1.s8 %v3153_v18 }
  0x2b   : > { %v3275_v43 = vmul.f32 %v3174_v28, %v495_v12 }
  0x30   : > { %718 = vperm.xlu1 %2875, %v648_v13   ;;  %713 = vperm.xlu0 %2874, %v647_v14   ;;  %v496_v13 = vcvt.s32.f32 %v464_v63  ;;  %v535_v14 = vunpack.c.1.s8 %v3179_v32  ;;  %v543_v63 = vunpack.c.1.s8 %v3156_v19 }
  0x31   : > { %723 = vperm.xlu2 %2876, %v649_v15   ;;  %v536_v15 = vunpack.c.1.s8 %v3182_v33 }
  0x32   : > { %v3270_v32 = vcvt.s32.f32 %v535_v14  ;;  %v504_v14 = vcvt.s32.f32 %v472_v62 }
  0x33   : > { %v3272_v33 = vcvt.s32.f32 %v536_v15  ;;  %v575_v15 = vcvt.s32.f32 %v543_v63  ;;  %v510_v63 = vcvt.s32.f32 %v478_v51 }
  0x34   : > { %v614_v30 = vmul.f32 %v3176_v29, %v504_v14 }
  0x38   : > { %728 = vperm.xlu0 %2874, %v650_v16   ;;  %v2621_v16 = vld [vmem:[%s4290_s4 + $0xc0] sm:$0xf] }
  0x39   : > { %v2622_v25 = vor.u32 %v2810_v21, %v2621_v16 }
  0x3b   : > { %1549 = vmatpush.bf16.msra.mxu0 %v2622_v25 }
  0x6b   : > { %v674_v53 = vpop.permute.xlu2 %673 }
  0x6c   : > { %v739_v58 = vmul.f32 %v674_v53, %v573_v34  ;;  %v740_v59 = vmul.f32 %v674_v53, %v574_v38  ;;  %v2623_v34 = vld [vmem:[%s4290_s4 + $0xd0] sm:$0xf0]  ;;  %v3265_v38 = vmul.f32 %v3174_v28, %v493_v5 }
  0x6d   : > { %v2626_v40 = vor.u32 %v2808_v31, %v2623_v34  ;;  %v2607_v53 = vld [vmem:[%s4290_s4 + $0xb0] sm:$0xf0] }
  0x6e   : > { %v771_v0 = vadd.f32 %v739_v58, %v611_v49  ;;  %v772_v1 = vadd.f32 %v740_v59, %v612_v50  ;;  %v3287_v49 = vmul.f32 %v3176_v29, %v496_v13  ;;  %v2606_v50 = vor.u32 %v2806_v45, %v2605_v44  ;;  %v2836_v58 = vld [vmem:[%s4290_s4 + $0x1a4] sm:$0xf]  ;;  %v2735_v59 = vld [vmem:[%s4290_s4 + $0x1b0] sm:$0xf0] }
  0x6f   : > { %1647 = vmatpush.bf16.msra.mxu2 %v2626_v40  ;;  %v2610_v57 = vor.u32 %v2804_v52, %v2607_v53  ;;  %v2738_v5 = vor.u32 %v2836_v58, %v2735_v59  ;;  %v503_v13 = vcvt.s32.f32 %v471_v61  ;;  %v3325_v40 = vld [vmem:[%s3142_s6 + $0x20] sm:$0xff]  ;;  %v3342_v52 = vcvt.s32.f32 %v548_v23 }
  0x70   : > { %v803_v8 = vmul.f32 0.5, %v771_v0  ;;  %v804_v9 = vmul.f32 0.5, %v772_v1  ;;  %v544_v0 = vunpack.c.1.s8 %v3159_v20  ;;  %1550 = vmatpush.bf16.msra.mxu0 %v2606_v50  ;;  %v3331_v44 = vld [vmem:[%s3147_s9 + $0x20] sm:$0xff]  ;;  %v477_v47 = vunpack.c.0.s8 %v3325_v40 }
  0x71   : > { %1697 = vmatpush.bf16.msra.mxu3 %v2738_v5  ;;  %v613_v25 = vmul.f32 %v3174_v28, %v503_v13  ;;  %v550_v58 = vunpack.c.0.s8 %v3340_v48 }
  0x72   : > { %2877 = vtanh.f32 %v803_v8  ;;  %v476_v8 = vunpack.c.3.s8 %v3153_v18  ;;  %v576_v21 = vcvt.s32.f32 %v544_v0  ;;  %v509_v62 = vcvt.s32.f32 %v477_v47 }
  0x73   : > { %2879 = vtanh.f32 %v804_v9  ;;  %v679_v12 = vpop.permute.xlu2 %678  ;;  %1648 = vmatpush.bf16.msra.mxu2 %v2610_v57  ;;  %v549_v57 = vunpack.c.0.s8 %v3331_v44  ;;  %v3347_v0 = vmul.f32 %v3174_v28, %v507_v36  ;;  %v546_v47 = vunpack.c.2.s8 %v3159_v20 }
  0x74   : > { %v741_v31 = vmul.f32 %v679_v12, %v575_v15  ;;  %v742_v34 = vmul.f32 %v679_v12, %v576_v21  ;;  %v3333_v45 = vcvt.s32.f32 %v476_v8  ;;  %v619_v12 = vmul.f32 %v3174_v28, %v509_v62 }
  0x75   : > { %v581_v8 = vcvt.s32.f32 %v549_v57 }
  0x76   : > { %v773_v39 = vadd.f32 %v741_v31, %v613_v25  ;;  %v774_v50 = vadd.f32 %v742_v34, %v614_v30  ;;  %v473_v25 = vunpack.c.2.s8 %v3150_v17  ;;  %v474_v30 = vunpack.c.2.s8 %v3153_v18 }
  0x78   : > { %v2878_v60 = vpop.eup %2877  ;;  %v805_v56 = vmul.f32 0.5, %v773_v39  ;;  %v806_v61 = vmul.f32 0.5, %v774_v50 }
  0x79   : > { %v2880_v1 = vpop.eup %2879  ;;  %v867_v3 = vadd.f32 1.0, %v2878_v60 }
  0x7a   : > { %v868_v9 = vadd.f32 1.0, %v2880_v1  ;;  %2881 = vtanh.f32 %v805_v56 }
  0x7b   : > { %v899_v16 = vmul.f32 0.5, %v867_v3  ;;  %2883 = vtanh.f32 %v806_v61 }
  0x7c   : > { %v900_v24 = vmul.f32 0.5, %v868_v9  ;;  %v582_v9 = vcvt.s32.f32 %v550_v58 }
  0x7d   : > { %v939_v37 = vmul.f32 1.442695, %v899_v16 }
  0x7e   : > { %v941_v53 = vmul.f32 1.442695, %v900_v24 }
  0x7f   : > { %2885 = vpow2.f32 %v939_v37  ;;  %v545_v37 = vunpack.c.2.s8 %v3156_v19 }
  0x80   : > { %2887 = vpow2.f32 %v941_v53  ;;  %v2882_v34 = vpop.eup %2881 }
  0x81   : > { %v869_v51 = vadd.f32 1.0, %v2882_v34  ;;  %v2884_v17 = vpop.eup %2883 }
  0x82   : > { %v664_v59 = vpop.permute.xlu1 %663  ;;  %v654_v60 = vpop.permute.xlu0 %653 }
  0x83   : > { %v735_v1 = vmul.f32 %v664_v59, %v3219_v2  ;;  %v736_v3 = vmul.f32 %v664_v59, %v3222_v4  ;;  %v731_v5 = vmul.f32 %v654_v60, %v3224_v7  ;;  %v732_v6 = vmul.f32 %v654_v60, %v3254_v35  ;;  %v694_v2 = vpop.permute.xlu2 %693  ;;  %v2589_v35 = vld [vmem:[%s4290_s4 + $0x80] sm:$0xf] }
  0x84   : > { %v620_v4 = vmul.f32 %v3176_v29, %v510_v63  ;;  %v747_v7 = vmul.f32 %v694_v2, %v581_v8  ;;  %v748_v21 = vmul.f32 %v694_v2, %v582_v9  ;;  %v870_v60 = vadd.f32 1.0, %v2884_v17 }
  0x85   : > { %v767_v13 = vadd.f32 %v735_v1, %v3227_v10  ;;  %v768_v14 = vadd.f32 %v736_v3, %v3230_v11  ;;  %v763_v15 = vadd.f32 %v731_v5, %v3265_v38  ;;  %v764_v16 = vadd.f32 %v732_v6, %v3268_v42  ;;  %v2802_v10 = vld [vmem:[%s4290_s4 + $0x8c] sm:$0xf0]  ;;  %v3373_v59 = vpop.eup %2885 }
  0x86   : > { %v779_v23 = vadd.f32 %v747_v7, %v619_v12  ;;  %v780_v24 = vadd.f32 %v748_v21, %v620_v4  ;;  %v2590_v31 = vor.u32 %v2802_v10, %v2589_v35  ;;  %v901_v19 = vmul.f32 0.5, %v869_v51  ;;  %v3377_v62 = vpop.eup %2887 }
  0x87   : > { %v799_v11 = vmul.f32 0.5, %v767_v13  ;;  %v800_v22 = vmul.f32 0.5, %v768_v14  ;;  %v795_v38 = vmul.f32 0.5, %v763_v15  ;;  %v796_v42 = vmul.f32 0.5, %v764_v16 }
  0x88   : > { %v811_v50 = vmul.f32 0.5, %v779_v23  ;;  %1551 = vmatpush.bf16.msra.mxu0 %v2590_v31  ;;  %v812_v58 = vmul.f32 0.5, %v780_v24  ;;  %v902_v63 = vmul.f32 0.5, %v870_v60  ;;  %v505_v3 = vcvt.s32.f32 %v473_v25 }
  0x89   : > { %2889 = vtanh.f32 %v799_v11  ;;  %v506_v5 = vcvt.s32.f32 %v474_v30  ;;  %v577_v9 = vcvt.s32.f32 %v545_v37  ;;  %v943_v14 = vmul.f32 1.442695, %v901_v19 }
  0x8a   : > { %2891 = vtanh.f32 %v800_v22  ;;  %v669_v36 = vpop.permute.xlu1 %668  ;;  %v659_v39 = vpop.permute.xlu0 %658  ;;  %v945_v21 = vmul.f32 1.442695, %v902_v63  ;;  %v615_v34 = vmul.f32 %v3174_v28, %v505_v3  ;;  %v2830_v3 = vld [vmem:[%s4290_s4 + $0x16c] sm:$0xf0] }
  0x8b   : > { %2893 = vtanh.f32 %v795_v38  ;;  %v737_v53 = vmul.f32 %v669_v36, %v3298_v54  ;;  %v738_v56 = vmul.f32 %v669_v36, %v3300_v55  ;;  %v733_v18 = vmul.f32 %v659_v39, %v3270_v32 }
  0x8c   : > { %2895 = vtanh.f32 %v796_v42  ;;  %v734_v57 = vmul.f32 %v659_v39, %v3272_v33  ;;  %v618_v32 = vmul.f32 %v3176_v29, %v3333_v45 }
  0x8d   : > { %v769_v20 = vadd.f32 %v737_v53, %v3319_v26  ;;  %v770_v61 = vadd.f32 %v738_v56, %v3322_v27  ;;  %v765_v54 = vadd.f32 %v733_v18, %v3275_v43  ;;  %2897 = vtanh.f32 %v811_v50  ;;  %v2800_v53 = vld [vmem:[%s4290_s4 + $0x84] sm:$0xf]  ;;  %v2591_v56 = vld [vmem:[%s4290_s4 + $0x90] sm:$0xf0] }
  0x8e   : > { %v766_v55 = vadd.f32 %v734_v57, %v3287_v49  ;;  %v578_v27 = vcvt.s32.f32 %v546_v47  ;;  %2899 = vtanh.f32 %v812_v58  ;;  %v2832_v58 = vld [vmem:[%s4290_s4 + $0x184] sm:$0xf] }
  0x8f   : > { %v2890_v33 = vpop.eup %2889  ;;  %v801_v1 = vmul.f32 0.5, %v769_v20  ;;  %v802_v26 = vmul.f32 0.5, %v770_v61  ;;  %v797_v43 = vmul.f32 0.5, %v765_v54  ;;  %v2719_v54 = vld [vmem:[%s4290_s4 + $0x190] sm:$0xf0] }
  0x90   : > { %v2892_v6 = vpop.eup %2891  ;;  %v863_v8 = vadd.f32 1.0, %v2890_v33  ;;  %v798_v45 = vmul.f32 0.5, %v766_v55  ;;  %v2573_v55 = vld [vmem:[%s4290_s4 + $0x60] sm:$0xf] }
  0x91   : > { %v2894_v12 = vpop.eup %2893  ;;  %v864_v13 = vadd.f32 1.0, %v2892_v6  ;;  %2901 = vtanh.f32 %v801_v1  ;;  %v2701_v1 = vld [vmem:[%s4290_s4 + $0x160] sm:$0xf] }
  0x92   : > { %v2896_v49 = vpop.eup %2895  ;;  %v895_v15 = vmul.f32 0.5, %v863_v8  ;;  %v859_v16 = vadd.f32 1.0, %v2894_v12  ;;  %v689_v2 = vpop.permute.xlu1 %688  ;;  %2903 = vtanh.f32 %v802_v26 }
  0x93   : > { %v896_v4 = vmul.f32 0.5, %v864_v13  ;;  %v860_v7 = vadd.f32 1.0, %v2896_v49  ;;  %v745_v35 = vmul.f32 %v689_v2, %v3335_v46  ;;  %v2898_v10 = vpop.eup %2897  ;;  %v746_v38 = vmul.f32 %v689_v2, %v3342_v52  ;;  %v684_v25 = vpop.permute.xlu0 %683  ;;  %v2717_v46 = vld [vmem:[%s4290_s4 + $0x180] sm:$0xf]  ;;  %v2834_v52 = vld [vmem:[%s4290_s4 + $0x18c] sm:$0xf0] }
  0x94   : > { %v931_v11 = vmul.f32 1.442695, %v895_v15  ;;  %v891_v22 = vmul.f32 0.5, %v859_v16  ;;  %2905 = vtanh.f32 %v797_v43  ;;  %v875_v24 = vadd.f32 1.0, %v2898_v10  ;;  %v2900_v36 = vpop.eup %2899  ;;  %v2828_v43 = vld [vmem:[%s4290_s4 + $0x164] sm:$0xf] }
  0x95   : > { %v933_v42 = vmul.f32 1.442695, %v896_v4  ;;  %v892_v23 = vmul.f32 0.5, %v860_v7  ;;  %2907 = vpow2.f32 %v943_v14  ;;  %v777_v30 = vadd.f32 %v745_v35, %v3347_v0  ;;  %v2703_v49 = vld [vmem:[%s4290_s4 + $0x170] sm:$0xf0] }
  0x96   : > { %v778_v31 = vadd.f32 %v746_v38, %v618_v32  ;;  %v923_v39 = vmul.f32 1.442695, %v891_v22  ;;  %2909 = vpow2.f32 %v945_v21  ;;  %v907_v50 = vmul.f32 0.5, %v875_v24  ;;  %v2798_v32 = vld [vmem:[%s4290_s4 + $0x6c] sm:$0xf0] }
  0x97   : > { %v2902_v37 = vpop.eup %2901  ;;  %2911 = vpow2.f32 %v931_v11  ;;  %v809_v47 = vmul.f32 0.5, %v777_v30  ;;  %v616_v0 = vmul.f32 %v3176_v29, %v506_v5  ;;  %v743_v51 = vmul.f32 %v684_v25, %v577_v9  ;;  %v2796_v9 = vld [vmem:[%s4290_s4 + $0x64] sm:$0xf] }
  0x98   : > { %2913 = vpow2.f32 %v933_v42  ;;  %v925_v17 = vmul.f32 1.442695, %v892_v23  ;;  %v865_v18 = vadd.f32 1.0, %v2902_v37  ;;  %v810_v57 = vmul.f32 0.5, %v778_v31  ;;  %v2904_v60 = vpop.eup %2903 }
  0x99   : > { %2915 = vtanh.f32 %v798_v45  ;;  %v744_v19 = vmul.f32 %v684_v25, %v578_v27  ;;  %v775_v20 = vadd.f32 %v743_v51, %v615_v34  ;;  %v2718_v61 = vor.u32 %v2834_v52, %v2717_v46  ;;  %v2575_v27 = vld [vmem:[%s4290_s4 + $0x70] sm:$0xf0] }
  0x9a   : > { %v2906_v33 = vpop.eup %2905  ;;  %2917 = vpow2.f32 %v923_v39  ;;  %v955_v63 = vmul.f32 1.442695, %v907_v50  ;;  %v866_v6 = vadd.f32 1.0, %v2904_v60  ;;  %v897_v13 = vmul.f32 0.5, %v865_v18 }
  0x9b   : > { %v3418_v5 = vpop.eup %2907  ;;  %2919 = vtanh.f32 %v809_v47  ;;  %v776_v8 = vadd.f32 %v744_v19, %v616_v0  ;;  %v807_v26 = vmul.f32 0.5, %v775_v20  ;;  %1600 = vmatpush.bf16.msra.mxu1 %v2718_v61  ;;  %v2594_v14 = vor.u32 %v2800_v53, %v2591_v56  ;;  %v709_v47 = vpop.permute.xlu2 %708 }
  0x9c   : > { %v3426_v12 = vpop.eup %2909  ;;  %2921 = vpow2.f32 %v925_v17  ;;  %v861_v16 = vadd.f32 1.0, %v2906_v33  ;;  %v876_v45 = vadd.f32 1.0, %v2900_v36  ;;  %v2722_v2 = vor.u32 %v2832_v58, %v2719_v54 }
  0x9d   : > { %v3434_v15 = vpop.eup %2911  ;;  %2923 = vtanh.f32 %v810_v57  ;;  %v808_v7 = vmul.f32 0.5, %v776_v8  ;;  %1649 = vmatpush.bf16.msra.mxu2 %v2594_v14  ;;  %v2574_v21 = vor.u32 %v2798_v32, %v2573_v55  ;;  %v2702_v35 = vor.u32 %v2830_v3, %v2701_v1  ;;  %v704_v14 = vpop.permute.xlu1 %703 }
  0x9e   : > { %v3436_v4 = vpop.eup %2913  ;;  %2925 = vpow2.f32 %v955_v63  ;;  %v898_v11 = vmul.f32 0.5, %v866_v6  ;;  %1698 = vmatpush.bf16.msra.mxu3 %v2722_v2  ;;  %v2578_v22 = vor.u32 %v2796_v9, %v2575_v27  ;;  %v2706_v38 = vor.u32 %v2828_v43, %v2703_v49 }
  0x9f   : > { %v2916_v10 = vpop.eup %2915  ;;  %2927 = vtanh.f32 %v807_v26  ;;  %v935_v23 = vmul.f32 1.442695, %v897_v13  ;;  %1552 = vmatpush.bf16.msra.mxu0 %v2574_v21  ;;  %1601 = vmatpush.bf16.msra.mxu1 %v2702_v35  ;;  %v483_v25 = vunpack.c.3.s8 %v3325_v40  ;;  %v484_v30 = vunpack.c.3.s8 %v3328_v41 }
  0xa0   : > { %v3438_v42 = vpop.eup %2917  ;;  %v862_v24 = vadd.f32 1.0, %v2916_v10  ;;  %v893_v34 = vmul.f32 0.5, %v861_v16  ;;  %v555_v46 = vunpack.c.3.s8 %v3331_v44  ;;  %v556_v36 = vunpack.c.3.s8 %v3340_v48 }
  0xa1   : > { %v2920_v31 = vpop.eup %2919  ;;  %v481_v39 = vunpack.c.2.s8 %v3325_v40  ;;  %2929 = vtanh.f32 %v808_v7  ;;  %1650 = vmatpush.bf16.msra.mxu2 %v2578_v22  ;;  %v515_v0 = vcvt.s32.f32 %v483_v25  ;;  %v516_v53 = vcvt.s32.f32 %v484_v30 }
  0xa2   : > { %v3445_v50 = vpop.eup %2921  ;;  %v894_v52 = vmul.f32 0.5, %v862_v24  ;;  %v873_v37 = vadd.f32 1.0, %v2920_v31  ;;  %1699 = vmatpush.bf16.msra.mxu3 %v2706_v38  ;;  %v587_v56 = vcvt.s32.f32 %v555_v46  ;;  %v588_v17 = vcvt.s32.f32 %v556_v36  ;;  %v2557_v38 = vld [vmem:[%s4290_s4 + $0x40] sm:$0xf]  ;;  %v2794_v31 = vld [vmem:[%s4290_s4 + $0x4c] sm:$0xf0] }
  0xa3   : > { %v2924_v51 = vpop.eup %2923  ;;  %v482_v18 = vunpack.c.2.s8 %v3328_v41  ;;  %2931 = vpow2.f32 %v935_v23  ;;  %v937_v58 = vmul.f32 1.442695, %v898_v11  ;;  %v927_v61 = vmul.f32 1.442695, %v893_v34  ;;  %v2685_v34 = vld [vmem:[%s4290_s4 + $0x140] sm:$0xf] }
  0xa4   : > { %v3448_v57 = vpop.eup %2925  ;;  %v874_v60 = vadd.f32 1.0, %v2924_v51  ;;  %v905_v19 = vmul.f32 0.5, %v873_v37  ;;  %v929_v54 = vmul.f32 1.442695, %v894_v52  ;;  %v625_v55 = vmul.f32 %v3174_v28, %v515_v0  ;;  %v2826_v52 = vld [vmem:[%s4290_s4 + $0x14c] sm:$0xf0] }
  0xa5   : > { %v2928_v20 = vpop.eup %2927  ;;  %v753_v32 = vmul.f32 %v709_v47, %v587_v56  ;;  %v626_v63 = vmul.f32 %v3176_v29, %v516_v53  ;;  %v754_v1 = vmul.f32 %v709_v47, %v588_v17  ;;  %v513_v3 = vcvt.s32.f32 %v481_v39  ;;  %v699_v47 = vpop.permute.xlu0 %698  ;;  %v2824_v56 = vld [vmem:[%s4290_s4 + $0x144] sm:$0xf]  ;;  %v2687_v17 = vld [vmem:[%s4290_s4 + $0x150] sm:$0xf0] }
  0xa6   : > { %v906_v33 = vmul.f32 0.5, %v874_v60  ;;  %v951_v6 = vmul.f32 1.442695, %v905_v19  ;;  %v871_v8 = vadd.f32 1.0, %v2928_v20  ;;  %v514_v26 = vcvt.s32.f32 %v482_v18 }
  0xa7   : > { %v553_v9 = vunpack.c.2.s8 %v3331_v44  ;;  %v2930_v27 = vpop.eup %2929  ;;  %2933 = vpow2.f32 %v937_v58  ;;  %v3453_v13 = vmul.f32 0.5, %v876_v45  ;;  %v554_v43 = vunpack.c.2.s8 %v3340_v48 }
  0xa8   : > { %2935 = vpow2.f32 %v927_v61  ;;  %v953_v49 = vmul.f32 1.442695, %v906_v33  ;;  %v785_v16 = vadd.f32 %v753_v32, %v625_v55  ;;  %v3458_v21 = vadd.f32 %v754_v1, %v626_v63  ;;  %v2790_v63 = vld [vmem:[%s4290_s4 + $0x2c] sm:$0xf0]  ;;  %v2669_v1 = vld [vmem:[%s4290_s4 + $0x120] sm:$0xf] }
  0xa9   : > { %v585_v2 = vcvt.s32.f32 %v553_v9  ;;  %v3456_v7 = vpop.eup %2931  ;;  %2937 = vpow2.f32 %v929_v54  ;;  %v586_v35 = vcvt.s32.f32 %v554_v43  ;;  %v623_v10 = vmul.f32 %v3174_v28, %v513_v3  ;;  %v3508_v3 = vld [vmem:[%s3142_s6 + $0x30] sm:$0xff] }
  0xaa   : > { %2939 = vpow2.f32 %v951_v6  ;;  %v903_v11 = vmul.f32 0.5, %v871_v8  ;;  %v624_v45 = vmul.f32 %v3176_v29, %v514_v26  ;;  %v872_v23 = vadd.f32 1.0, %v2930_v27  ;;  %v2822_v27 = vld [vmem:[%s4290_s4 + $0x12c] sm:$0xf0]  ;;  %v2543_v43 = vld [vmem:[%s4290_s4 + $0x30] sm:$0xf0] }
  0xab   : > { %v751_v22 = vmul.f32 %v704_v14, %v585_v2  ;;  %v752_v24 = vmul.f32 %v704_v14, %v586_v35  ;;  %v479_v25 = vunpack.c.1.s8 %v3325_v40  ;;  %v480_v30 = vunpack.c.1.s8 %v3328_v41  ;;  %v2792_v40 = vld [vmem:[%s4290_s4 + $0x44] sm:$0xf] }
  0xac   : > { %2941 = vpow2.f32 %v953_v49  ;;  %v817_v46 = vmul.f32 0.5, %v785_v16  ;;  %v551_v39 = vunpack.c.1.s8 %v3331_v44  ;;  %v552_v53 = vunpack.c.1.s8 %v3340_v48  ;;  %v2559_v44 = vld [vmem:[%s4290_s4 + $0x50] sm:$0xf0]  ;;  %v2541_v48 = vld [vmem:[%s4290_s4 + $0x20] sm:$0xf] }
  0xad   : > { %v783_v36 = vadd.f32 %v751_v22, %v623_v10  ;;  %v3480_v41 = vpop.eup %2933  ;;  %v784_v37 = vadd.f32 %v752_v24, %v624_v45  ;;  %v511_v0 = vcvt.s32.f32 %v479_v25  ;;  %v512_v51 = vcvt.s32.f32 %v480_v30  ;;  %v2788_v14 = vld [vmem:[%s4290_s4 + $0x24] sm:$0xf]  ;;  %v2671_v10 = vld [vmem:[%s4290_s4 + $0x130] sm:$0xf0] }
  0xae   : > { %v3492_v18 = vpop.eup %2935  ;;  %v947_v58 = vmul.f32 1.442695, %v903_v11  ;;  %v583_v19 = vcvt.s32.f32 %v551_v39  ;;  %v2558_v20 = vor.u32 %v2794_v31, %v2557_v38  ;;  %v584_v55 = vcvt.s32.f32 %v552_v53  ;;  %v2820_v35 = vld [vmem:[%s4290_s4 + $0x124] sm:$0xf] }
  0xaf   : > { %v815_v60 = vmul.f32 0.5, %v783_v36  ;;  %v3497_v61 = vpop.eup %2937  ;;  %v816_v54 = vmul.f32 0.5, %v784_v37  ;;  %v621_v32 = vmul.f32 %v3174_v28, %v511_v0  ;;  %v622_v33 = vmul.f32 %v3176_v29, %v512_v51  ;;  %v3542_v36 = vld [vmem:[%s3147_s9 + $0x38] sm:$0xff] }
  0xb0   : > { %v3510_v6 = vpop.eup %2939  ;;  %v749_v8 = vmul.f32 %v699_v47, %v583_v19  ;;  %1553 = vmatpush.bf16.msra.mxu0 %v2558_v20  ;;  %v2686_v26 = vor.u32 %v2826_v52, %v2685_v34  ;;  %v2562_v9 = vor.u32 %v2792_v40, %v2559_v44  ;;  %v904_v49 = vmul.f32 0.5, %v872_v23  ;;  %v3534_v23 = vld [vmem:[%s3142_s6 + $0x38] sm:$0xff]  ;;  %v3539_v34 = vld [vmem:[%s3147_s9 + $0x30] sm:$0xff]  ;;  %s4048_s6 = scalar_lea.vmem %s4291_s5, %s2783_s30 }
  0xb1   : > { %2943 = vtanh.f32 %v815_v60  ;;  %v750_v16 = vmul.f32 %v699_v47, %v584_v55  ;;  %v2690_v2 = vor.u32 %v2824_v56, %v2687_v17  ;;  %v1009_v22 = vadd.f32 %v3436_v4, %v3434_v15  ;;  %v724_v60 = vpop.permute.xlu2 %723 }
  0xb2   : > { %2945 = vtanh.f32 %v816_v54  ;;  %v3527_v11 = vpop.eup %2941  ;;  %v781_v45 = vadd.f32 %v749_v8, %v621_v32  ;;  %1602 = vmatpush.bf16.msra.mxu1 %v2686_v26  ;;  %1651 = vmatpush.bf16.msra.mxu2 %v2562_v9  ;;  %v1003_v38 = vadd.f32 %v3445_v50, %v3438_v42  ;;  %v489_v24 = vunpack.c.2.s8 %v3508_v3 }
  0xb3   : > { %v818_v25 = vmul.f32 0.5, %v3458_v21  ;;  %2947 = vtanh.f32 %v817_v46  ;;  %v782_v30 = vadd.f32 %v750_v16, %v622_v33  ;;  %1700 = vmatpush.bf16.msra.mxu3 %v2690_v2  ;;  %v2542_v31 = vor.u32 %v2790_v63, %v2541_v48  ;;  %1010 = vadd.xlane.f32.xlu0 %v1009_v22 }
  0xb4   : > { %v813_v39 = vmul.f32 0.5, %v781_v45  ;;  %1004 = vadd.xlane.f32.xlu1 %v1003_v38  ;;  %v2670_v52 = vor.u32 %v2822_v27, %v2669_v1  ;;  %v2546_v40 = vor.u32 %v2788_v14, %v2543_v43  ;;  %v2674_v37 = vor.u32 %v2820_v35, %v2671_v10 }
  0xb5   : > { %2949 = vpow2.f32 %v947_v58  ;;  %v949_v47 = vmul.f32 1.442695, %v904_v49  ;;  %v814_v0 = vmul.f32 0.5, %v782_v30  ;;  %1554 = vmatpush.bf16.msra.mxu0 %v2542_v31  ;;  %v490_v21 = vunpack.c.2.s8 %v3534_v23 }
  0xb6   : > { %2951 = vtanh.f32 %v813_v39  ;;  %1603 = vmatpush.bf16.msra.mxu1 %v2670_v52  ;;  %1652 = vmatpush.bf16.msra.mxu2 %v2546_v40  ;;  %v521_v51 = vcvt.s32.f32 %v489_v24  ;;  %v561_v53 = vunpack.c.2.s8 %v3539_v34  ;;  %v562_v44 = vunpack.c.2.s8 %v3542_v36  ;;  %v719_v24 = vpop.permute.xlu1 %718 }
  0xb7   : > { %v2944_v46 = vpop.eup %2943  ;;  %v3548_v17 = vmul.f32 1.442695, %v3453_v13  ;;  %2953 = vtanh.f32 %v818_v25  ;;  %1701 = vmatpush.bf16.msra.mxu3 %v2674_v37  ;;  %v522_v19 = vcvt.s32.f32 %v490_v21  ;;  %v487_v26 = vunpack.c.1.s8 %v3508_v3 }
  0xb8   : > { %v2946_v56 = vpop.eup %2945  ;;  %v879_v58 = vadd.f32 1.0, %v2944_v46  ;;  %2955 = vtanh.f32 %v814_v0  ;;  %v593_v48 = vcvt.s32.f32 %v561_v53  ;;  %v594_v54 = vcvt.s32.f32 %v562_v44 }
  0xb9   : > { %v880_v20 = vadd.f32 1.0, %v2946_v56  ;;  %v3550_v55 = vpop.eup %2947  ;;  %2957 = vpow2.f32 %v949_v47  ;;  %v631_v33 = vmul.f32 %v3174_v28, %v521_v51  ;;  %v632_v63 = vmul.f32 %v3176_v29, %v522_v19  ;;  %v2525_v19 = vld [vmem:[%s4290_s4] sm:$0xf] }
  0xba   : > { %v911_v32 = vmul.f32 0.5, %v879_v58  ;;  %v759_v13 = vmul.f32 %v724_v60, %v593_v48  ;;  %v760_v8 = vmul.f32 %v724_v60, %v594_v54  ;;  %v488_v14 = vunpack.c.1.s8 %v3534_v23 }
  0xbb   : > { %v912_v1 = vmul.f32 0.5, %v880_v20  ;;  %v3555_v9 = vpop.eup %2949  ;;  %v559_v43 = vunpack.c.1.s8 %v3539_v34  ;;  %v560_v49 = vunpack.c.1.s8 %v3542_v36  ;;  %v519_v45 = vcvt.s32.f32 %v487_v26  ;;  %v714_v26 = vpop.permute.xlu0 %713 }
  0xbc   : > { %v963_v27 = vmul.f32 1.442695, %v911_v32  ;;  %v2952_v16 = vpop.eup %2951  ;;  %v791_v35 = vadd.f32 %v759_v13, %v631_v33  ;;  %v792_v10 = vadd.f32 %v760_v8, %v632_v63  ;;  %v520_v25 = vcvt.s32.f32 %v488_v14  ;;  %v2786_v33 = vld [vmem:[%s4290_s4 + $0xc] sm:$0xf0]  ;;  %v2653_v63 = vld [vmem:[%s4290_s4 + $0x100] sm:$0xf] }
  0xbd   : > { %v965_v2 = vmul.f32 1.442695, %v912_v1  ;;  %v3560_v22 = vpop.eup %2953  ;;  %v877_v38 = vadd.f32 1.0, %v2952_v16  ;;  %v591_v30 = vcvt.s32.f32 %v559_v43  ;;  %v592_v40 = vcvt.s32.f32 %v560_v49  ;;  %v2818_v1 = vld [vmem:[%s4290_s4 + $0x10c] sm:$0xf0] }
  0xbe   : > { %2959 = vpow2.f32 %v963_v27  ;;  %v2956_v31 = vpop.eup %2955  ;;  %v823_v39 = vmul.f32 0.5, %v791_v35  ;;  %v824_v52 = vmul.f32 0.5, %v792_v10  ;;  %v629_v21 = vmul.f32 %v3174_v28, %v519_v45  ;;  %v2784_v43 = vld [vmem:[%s4290_s4 + $0x4] sm:$0xf]  ;;  %v2527_v49 = vld [vmem:[%s4290_s4 + $0x10] sm:$0xf0] }
  0xbf   : > { %2961 = vpow2.f32 %v965_v2  ;;  %v3562_v37 = vpop.eup %2957  ;;  %v878_v47 = vadd.f32 1.0, %v2956_v31  ;;  %v909_v0 = vmul.f32 0.5, %v877_v38  ;;  %v630_v46 = vmul.f32 %v3176_v29, %v520_v25  ;;  %v2816_v38 = vld [vmem:[%s4290_s4 + $0x104] sm:$0xf] }
  0xc0   : > { %2963 = vtanh.f32 %v823_v39  ;;  %v757_v51 = vmul.f32 %v719_v24, %v591_v30  ;;  %v758_v53 = vmul.f32 %v719_v24, %v592_v40  ;;  %v485_v44 = vunpack.c.0.s8 %v3508_v3  ;;  %v2655_v24 = vld [vmem:[%s4290_s4 + $0x110] sm:$0xf0]  ;;  %v2813_v39 = vld [vmem:[%s4290_s4 + $0xec] sm:$0xf] }
  0xc1   : > { %v910_v56 = vmul.f32 0.5, %v878_v47  ;;  %v959_v58 = vmul.f32 1.442695, %v909_v0  ;;  %2965 = vtanh.f32 %v824_v52  ;;  %v486_v60 = vunpack.c.0.s8 %v3534_v23  ;;  %v2647_v52 = vld [vmem:[%s4290_s4 + $0xf8] sm:$0xf0] }
  0xc2   : > { %v789_v20 = vadd.f32 %v757_v51, %v629_v21  ;;  %v790_v48 = vadd.f32 %v758_v53, %v630_v46  ;;  %v517_v54 = vcvt.s32.f32 %v485_v44  ;;  %v557_v32 = vunpack.c.0.s8 %v3539_v34  ;;  %v2845_v46 = vld [vmem:[%s4290_s4 + $0x1ec] sm:$0xf]  ;;  %v2775_v51 = vld [vmem:[%s4290_s4 + $0x1f8] sm:$0xf0] }
  0xc3   : > { %2967 = vpow2.f32 %v959_v58  ;;  %v961_v8 = vmul.f32 1.442695, %v910_v56  ;;  %v518_v27 = vcvt.s32.f32 %v486_v60  ;;  %v558_v14 = vunpack.c.0.s8 %v3542_v36 }
  0xc4   : > { %v3581_v13 = vpop.eup %2959  ;;  %v821_v2 = vmul.f32 0.5, %v789_v20  ;;  %v822_v35 = vmul.f32 0.5, %v790_v48  ;;  %v589_v10 = vcvt.s32.f32 %v557_v32  ;;  %v627_v45 = vmul.f32 %v3174_v28, %v517_v54 }
  0xc5   : > { %v3590_v16 = vpop.eup %2961  ;;  %2969 = vpow2.f32 %v961_v8  ;;  %v590_v25 = vcvt.s32.f32 %v558_v14  ;;  %v628_v30 = vmul.f32 %v3176_v29, %v518_v27  ;;  %v2526_v31 = vor.u32 %v2786_v33, %v2525_v19 }
  0xc6   : > { %v2964_v40 = vpop.eup %2963  ;;  %2971 = vtanh.f32 %v821_v2  ;;  %v755_v47 = vmul.f32 %v714_v26, %v589_v10  ;;  %v2654_v0 = vor.u32 %v2818_v1, %v2653_v63  ;;  %v2530_v21 = vor.u32 %v2784_v43, %v2527_v49 }
  0xc7   : > { %v2966_v53 = vpop.eup %2965  ;;  %v887_v44 = vadd.f32 1.0, %v2964_v40  ;;  %2973 = vtanh.f32 %v822_v35  ;;  %v756_v56 = vmul.f32 %v714_v26, %v590_v25  ;;  %1555 = vmatpush.bf16.msra.mxu0 %v2526_v31  ;;  %v2658_v58 = vor.u32 %v2816_v38, %v2655_v24  ;;  %v2645_v25 = vld [vmem:[%s4290_s4 + $0xe8] sm:$0xf] }
  0xc8   : > { %v888_v60 = vadd.f32 1.0, %v2966_v53  ;;  %v787_v19 = vadd.f32 %v755_v47, %v627_v45  ;;  %1604 = vmatpush.bf16.msra.mxu1 %v2654_v0  ;;  %1653 = vmatpush.bf16.msra.mxu2 %v2530_v21  ;;  %v3614_v20 = vpack.c.bf16 %v3497_v61, %v3445_v50  ;;  %v2650_v48 = vor.u32 %v2813_v39, %v2647_v52  ;;  %v2773_v39 = vld [vmem:[%s4290_s4 + $0x1e8] sm:$0xf]  ;;  %v2847_v52 = vld [vmem:[%s4290_s4 + $0x1f4] sm:$0xf0] }
  0xc9   : > { %v3616_v54 = vpop.eup %2967  ;;  %v919_v32 = vmul.f32 0.5, %v887_v44  ;;  %v788_v33 = vadd.f32 %v756_v56, %v628_v30  ;;  %1702 = vmatpush.bf16.msra.mxu3 %v2658_v58  ;;  %v2778_v63 = vor.u32 %v2845_v46, %v2775_v51  ;;  %v1006_v1 = vadd.f32 %v3497_v61, %v3492_v18  ;;  %v2809_v44 = vld [vmem:[%s4290_s4 + $0xcc] sm:$0xf]  ;;  %v2631_v56 = vld [vmem:[%s4290_s4 + $0xd8] sm:$0xf0] }
  0xca   : > { %v920_v8 = vmul.f32 0.5, %v888_v60  ;;  %v819_v26 = vmul.f32 0.5, %v787_v19  ;;  %v3622_v27 = vpack.c.bf16 %v3492_v18, %v3438_v42  ;;  %v1015_v50 = vadd.f32 %v3377_v62, %v3373_v59 }
  0xcb   : > { %v3626_v14 = vpop.eup %2969  ;;  %v979_v43 = vmul.f32 1.442695, %v919_v32  ;;  %v820_v49 = vmul.f32 0.5, %v788_v33  ;;  %1605 = vmatmul.bf16.vlgmr.msra.gmra.mxu1 %v3614_v20  ;;  %v491_v2 = vunpack.c.3.s8 %v3508_v3  ;;  %v492_v61 = vunpack.c.3.s8 %v3534_v23  ;;  %1007 = vadd.xlane.f32.xlu2 %v1006_v1  ;;  %v729_v3 = vpop.permute.xlu0 %728 }
  0xcc   : > { %1842 = vmatpush.bf16.msrb.mxu2 %v2650_v48  ;;  %v2972_v35 = vpop.eup %2971  ;;  %v981_v10 = vmul.f32 1.442695, %v920_v8  ;;  %2975 = vtanh.f32 %v819_v26  ;;  %1703 = vmatmul.bf16.vlgmr.msra.gmra.mxu3 %v3614_v20  ;;  %v563_v42 = vunpack.c.3.s8 %v3539_v34  ;;  %v564_v18 = vunpack.c.3.s8 %v3542_v36  ;;  %v2815_v34 = vld [vmem:[%s4290_s4 + $0xf4] sm:$0xf0]  ;;  %v2759_v48 = vld [vmem:[%s4290_s4 + $0x1d8] sm:$0xf0] }
  0xcd   : > { %1891 = vmatpush.bf16.msrb.mxu3 %v2778_v63  ;;  %v2974_v45 = vpop.eup %2973  ;;  %2977 = vpow2.f32 %v979_v43  ;;  %v885_v38 = vadd.f32 1.0, %v2972_v35  ;;  %1556 = vmatmul.bf16.vlgmr.msra.gmra.mxu0 %v3622_v27  ;;  %v523_v24 = vcvt.s32.f32 %v491_v2  ;;  %v524_v23 = vcvt.s32.f32 %v492_v61  ;;  %v2629_v26 = vld [vmem:[%s4290_s4 + $0xc8] sm:$0xf] }
  0xce   : > { %1654 = vmatmul.bf16.vlgmr.msra.gmra.mxu2 %v3622_v27  ;;  %2979 = vpow2.f32 %v981_v10  ;;  %v886_v36 = vadd.f32 1.0, %v2974_v45  ;;  %1016 = vadd.xlane.f32.xlu1 %v1015_v50  ;;  %v595_v30 = vcvt.s32.f32 %v563_v42  ;;  %v596_v31 = vcvt.s32.f32 %v564_v18  ;;  %v2811_v50 = vld [vmem:[%s4290_s4 + $0xd4] sm:$0xf0]  ;;  %v2757_v35 = vld [vmem:[%s4290_s4 + $0x1c8] sm:$0xf] }
  0xcf   : > { %v917_v40 = vmul.f32 0.5, %v885_v38  ;;  %2981 = vtanh.f32 %v820_v49  ;;  %v633_v47 = vmul.f32 %v3174_v28, %v523_v24  ;;  %v634_v0 = vmul.f32 %v3176_v29, %v524_v23  ;;  %v2841_v29 = vld [vmem:[%s4290_s4 + $0x1cc] sm:$0xf]  ;;  %v2843_v10 = vld [vmem:[%s4290_s4 + $0x1d4] sm:$0xf0] }
  0xd0   : > { %v918_v21 = vmul.f32 0.5, %v886_v36  ;;  %v761_v46 = vmul.f32 %v729_v3, %v595_v30  ;;  %v762_v51 = vmul.f32 %v729_v3, %v596_v31  ;;  %v2646_v53 = vor.u32 %v2815_v34, %v2645_v25  ;;  %v2615_v38 = vld [vmem:[%s4290_s4 + $0xb8] sm:$0xf0]  ;;  %v2837_v25 = vld [vmem:[%s4290_s4 + $0x1ac] sm:$0xf] }
  0xd1   : > { %v975_v58 = vmul.f32 1.442695, %v917_v40  ;;  %v2774_v60 = vor.u32 %v2847_v52, %v2773_v39  ;;  %v1021_v19 = vadd.f32 %v3562_v37, %v3555_v9  ;;  %v1012_v28 = vadd.f32 %v3480_v41, %v3456_v7  ;;  %v2743_v34 = vld [vmem:[%s4290_s4 + $0x1b8] sm:$0xf0]  ;;  %v2613_v52 = vld [vmem:[%s4290_s4 + $0xa8] sm:$0xf] }
  0xd2   : > { %v2976_v32 = vpop.eup %2975  ;;  %v977_v33 = vmul.f32 1.442695, %v918_v21  ;;  %v793_v63 = vadd.f32 %v761_v46, %v633_v47  ;;  %v794_v1 = vadd.f32 %v762_v51, %v634_v0  ;;  %1744 = vmatpush.bf16.msrb.mxu0 %v2646_v53  ;;  %v1024_v8 = vadd.f32 %v3527_v11, %v3510_v6  ;;  %v2807_v40 = vld [vmem:[%s4290_s4 + $0xb4] sm:$0xf0]  ;;  %v2741_v51 = vld [vmem:[%s4290_s4 + $0x1a8] sm:$0xf] }
  0xd3   : > { %v3674_v43 = vpop.eup %2977  ;;  %2983 = vpow2.f32 %v3548_v17  ;;  %v881_v49 = vadd.f32 1.0, %v3550_v55  ;;  %v883_v2 = vadd.f32 1.0, %v2976_v32  ;;  %1793 = vmatpush.bf16.msrb.mxu1 %v2774_v60  ;;  %1022 = vadd.xlane.f32.xlu0 %v1021_v19  ;;  %v2634_v61 = vor.u32 %v2809_v44, %v2631_v56  ;;  %v2805_v55 = vld [vmem:[%s4290_s4 + $0xac] sm:$0xf]  ;;  %v2839_v53 = vld [vmem:[%s4290_s4 + $0x1b4] sm:$0xf0] }
  0xd4   : > { %v3684_v42 = vpop.eup %2979  ;;  %2985 = vpow2.f32 %v975_v58  ;;  %v825_v18 = vmul.f32 0.5, %v793_v63  ;;  %v826_v45 = vmul.f32 0.5, %v794_v1  ;;  %1013 = vadd.xlane.f32.xlu2 %v1012_v28  ;;  %v2762_v17 = vor.u32 %v2841_v29, %v2759_v48 }
  0xd5   : > { %v2982_v3 = vpop.eup %2981  ;;  %v882_v24 = vadd.f32 1.0, %v3560_v22  ;;  %2987 = vpow2.f32 %v977_v33  ;;  %v915_v23 = vmul.f32 0.5, %v883_v2  ;;  %1843 = vmatpush.bf16.msrb.mxu2 %v2634_v61  ;;  %v2630_v30 = vor.u32 %v2811_v50, %v2629_v26 }
  0xd6   : > { %v884_v36 = vadd.f32 1.0, %v2982_v3  ;;  %2989 = vtanh.f32 %v825_v18  ;;  %1025 = vadd.xlane.f32.xlu1 %v1024_v8  ;;  %1892 = vmatpush.bf16.msrb.mxu3 %v2762_v17  ;;  %v1030_v22 = vadd.f32 %v3626_v14, %v3616_v54  ;;  %v2758_v39 = vor.u32 %v2843_v10, %v2757_v35  ;;  %v2833_v10 = vld [vmem:[%s4290_s4 + $0x18c] sm:$0xf]  ;;  %v2727_v18 = vld [vmem:[%s4290_s4 + $0x198] sm:$0xf0] }
  0xd7   : > { %v971_v31 = vmul.f32 1.442695, %v915_v23  ;;  %2991 = vtanh.f32 %v826_v45  ;;  %v1018_v0 = vadd.f32 %v3426_v12, %v3418_v5  ;;  %1745 = vmatpush.bf16.msrb.mxu0 %v2630_v30  ;;  %v2618_v21 = vor.u32 %v2805_v55, %v2615_v38  ;;  %v2597_v38 = vld [vmem:[%s4290_s4 + $0x88] sm:$0xf]  ;;  %v2803_v3 = vld [vmem:[%s4290_s4 + $0x94] sm:$0xf0] }
  0xd8   : > { %v916_v47 = vmul.f32 0.5, %v884_v36  ;;  %v2746_v46 = vor.u32 %v2837_v25, %v2743_v34  ;;  %v913_v56 = vmul.f32 0.5, %v881_v49  ;;  %v914_v58 = vmul.f32 0.5, %v882_v24  ;;  %1794 = vmatpush.bf16.msrb.mxu1 %v2758_v39  ;;  %v2725_v34 = vld [vmem:[%s4290_s4 + $0x188] sm:$0xf] }
  0xd9   : > { %v3715_v44 = vpop.eup %2983  ;;  %2993 = vpow2.f32 %v971_v31  ;;  %v3719_v60 = vpack.c.bf16 %v3480_v41, %v3436_v4  ;;  %v1033_v29 = vadd.f32 %v3590_v16, %v3581_v13  ;;  %1844 = vmatpush.bf16.msrb.mxu2 %v2618_v21  ;;  %v2614_v48 = vor.u32 %v2807_v40, %v2613_v52  ;;  %v2835_v36 = vld [vmem:[%s4290_s4 + $0x194] sm:$0xf0] }
  0xda   : > { %v2986_v19 = vpop.eup %2985  ;;  %v973_v28 = vmul.f32 1.442695, %v916_v47  ;;  %1893 = vmatpush.bf16.msrb.mxu3 %v2746_v46  ;;  %v3725_v32 = vadd.f32 %v3684_v42, %v3674_v43  ;;  %v3730_v4 = vpack.c.bf16 %v3456_v7, %v3434_v15  ;;  %v2742_v41 = vor.u32 %v2839_v53, %v2741_v51  ;;  %v2801_v15 = vld [vmem:[%s4290_s4 + $0x8c] sm:$0xf]  ;;  %v2599_v7 = vld [vmem:[%s4290_s4 + $0x98] sm:$0xf0] }
  0xdb   : > { %v2988_v33 = vpop.eup %2987  ;;  %1610 = vmatmul.bf16.gmra.mxu1 %v3719_v60  ;;  %1031 = vadd.xlane.f32.xlu0 %v1030_v22  ;;  %v967_v8 = vmul.f32 1.442695, %v913_v56  ;;  %v969_v26 = vmul.f32 1.442695, %v914_v58  ;;  %v2602_v35 = vor.u32 %v2801_v15, %v2599_v7  ;;  %v1027_v17 = vadd.f32 %v3715_v44, %v3448_v57 }
  0xdc   : > { %v2990_v63 = vpop.eup %2989  ;;  %2995 = vpow2.f32 %v973_v28  ;;  %1708 = vmatmul.bf16.gmra.mxu3 %v3719_v60  ;;  %1019 = vadd.xlane.f32.xlu2 %v1018_v0  ;;  %v2730_v55 = vor.u32 %v2833_v10, %v2727_v18  ;;  %v2598_v25 = vor.u32 %v2803_v3, %v2597_v38  ;;  %v1042_v22 = vadd.f32 %v2988_v33, %v2986_v19 }
  0xdd   : > { %v2992_v1 = vpop.eup %2991  ;;  %v889_v50 = vadd.f32 1.0, %v2990_v63  ;;  %1561 = vmatmul.bf16.gmra.mxu0 %v3730_v4  ;;  %1795 = vmatpush.bf16.msrb.mxu1 %v2742_v41  ;;  %2997 = vpow2.f32 %v967_v8  ;;  %v2726_v39 = vor.u32 %v2835_v36, %v2725_v34  ;;  %v3771_v46 = vpack.c.bf16 %v3426_v12, %v3377_v62  ;;  %v2797_v62 = vld [vmem:[%s4290_s4 + $0x6c] sm:$0xf]  ;;  %v2709_v41 = vld [vmem:[%s4290_s4 + $0x168] sm:$0xf] }
  0xde   : > { %1659 = vmatmul.bf16.gmra.mxu2 %v3730_v4  ;;  %v890_v49 = vadd.f32 1.0, %v2992_v1  ;;  %1034 = vadd.xlane.f32.xlu1 %v1033_v29  ;;  %2999 = vpow2.f32 %v969_v26  ;;  %v2799_v29 = vld [vmem:[%s4290_s4 + $0x74] sm:$0xf0]  ;;  %v3816_v8 = vpack.c.bf16 %v3527_v11, %v3562_v37  ;;  %v3820_v26 = vpack.c.bf16 %v3510_v6, %v3555_v9  ;;  %v2567_v11 = vld [vmem:[%s4290_s4 + $0x58] sm:$0xf0] }
  0xdf   : > { %1746 = vmatpush.bf16.msrb.mxu0 %v2614_v48  ;;  %v2994_v2 = vpop.eup %2993  ;;  %v921_v61 = vmul.f32 0.5, %v889_v50  ;;  %1845 = vmatpush.bf16.msrb.mxu2 %v2602_v35  ;;  %v2831_v63 = vld [vmem:[%s4290_s4 + $0x174] sm:$0xf0]  ;;  %v2825_v6 = vld [vmem:[%s4290_s4 + $0x14c] sm:$0xf]  ;;  %v3852_v10 = vpack.c.bf16 %v3626_v14, %v3715_v44  ;;  %v3856_v18 = vpack.c.bf16 %v3616_v54, %v3448_v57  ;;  %v3062_v36 = vmov 0.0  }
  0xe0   : > { %v922_v45 = vmul.f32 0.5, %v890_v49  ;;  %v3755_v24 = vpack.c.bf16 %v2986_v19, %v2994_v2  ;;  %1894 = vmatpush.bf16.msrb.mxu3 %v2730_v55  ;;  %v3781_v19 = vpack.c.bf16 %v3418_v5, %v3373_v59  ;;  %v2583_v59 = vld [vmem:[%s4290_s4 + $0x78] sm:$0xf0]  ;;  %v2829_v5 = vld [vmem:[%s4290_s4 + $0x16c] sm:$0xf]  ;;  %v2710_v1 = vor.u32 %v2831_v63, %v2709_v41  ;;  %439 = vst.msk [vmem:[#allocation3 + $0x10] sm:$0xff] %vm436_vm0, %v3062_v36 }
  0xe1   : > { %v983_v23 = vmul.f32 1.442695, %v921_v61  ;;  %1796 = vmatpush.bf16.msrb.mxu1 %v2726_v39  ;;  %v2586_v12 = vor.u32 %v2797_v62, %v2583_v59  ;;  %v2695_v37 = vld [vmem:[%s4290_s4 + $0x158] sm:$0xf0]  ;;  %v2565_v50 = vld [vmem:[%s4290_s4 + $0x48] sm:$0xf] }
  0xe2   : > { %v2996_v30 = vpop.eup %2995  ;;  %v985_v31 = vmul.f32 1.442695, %v922_v45  ;;  %v2795_v49 = vld [vmem:[%s4290_s4 + $0x54] sm:$0xf0]  ;;  %v2698_v15 = vor.u32 %v2825_v6, %v2695_v37  ;;  %v2789_v45 = vld [vmem:[%s4290_s4 + $0x2c] sm:$0xf] }
  0xe3   : > { %3001 = vpow2.f32 %v983_v23  ;;  %v1039_v52 = vadd.f32 %v2996_v30, %v2994_v2  ;;  %1747 = vmatpush.bf16.msrb.mxu0 %v2598_v25  ;;  %v3763_v40 = vpack.c.bf16 %v2988_v33, %v2996_v30  ;;  %v3765_v47 = vpop.eup %2997  ;;  %1846 = vmatpush.bf16.msrb.mxu2 %v2586_v12  ;;  %v2566_v7 = vor.u32 %v2795_v49, %v2565_v50  ;;  %v2693_v2 = vld [vmem:[%s4290_s4 + $0x148] sm:$0xf]  ;;  %v2827_v61 = vld [vmem:[%s4290_s4 + $0x154] sm:$0xf0]  ;;  %v2551_v14 = vld [vmem:[%s4290_s4 + $0x38] sm:$0xf0] }
  0xe4   : > { %3003 = vpow2.f32 %v985_v31  ;;  %1028 = vadd.xlane.f32.xlu2 %v1027_v17  ;;  %v3767_v0 = vpop.eup %2999  ;;  %v2694_v35 = vor.u32 %v2827_v61, %v2693_v2  ;;  %v2821_v57 = vld [vmem:[%s4290_s4 + $0x12c] sm:$0xf]  ;;  %v2554_v54 = vor.u32 %v2789_v45, %v2551_v14  ;;  %v2679_v44 = vld [vmem:[%s4290_s4 + $0x138] sm:$0xf0]  ;;  %v2549_v17 = vld [vmem:[%s4290_s4 + $0x28] sm:$0xf]  ;;  %v3902_v31 = vpack.c.bf16 %v3765_v47, %v3581_v13 }
  0xe5   : > { %1040 = vadd.xlane.f32.xlu0 %v1039_v52  ;;  %v1036_v53 = vadd.f32 %v3767_v0, %v3765_v47  ;;  %1797 = vmatpush.bf16.msrb.mxu1 %v2710_v1  ;;  %v2791_v55 = vld [vmem:[%s4290_s4 + $0x34] sm:$0xf0]  ;;  %v2682_v38 = vor.u32 %v2821_v57, %v2679_v44  ;;  %v2677_v23 = vld [vmem:[%s4290_s4 + $0x128] sm:$0xf]  ;;  %437 = vst.msk [vmem:[#allocation3] sm:$0xff] %vm436_vm0, %v3062_v36 }
  0xe6   : > { %1043 = vadd.xlane.f32.xlu1 %v1042_v22  ;;  %v2550_v3 = vor.u32 %v2791_v55, %v2549_v17  ;;  %v2823_v25 = vld [vmem:[%s4290_s4 + $0x134] sm:$0xf0]  ;;  %438 = vst.msk [vmem:[#allocation3 + $0x8] sm:$0xff] %vm436_vm0, %v3062_v36  ;;  %v3896_v30 = vpack.c.bf16 %v3767_v0, %v3590_v16  ;;  %v2785_v13 = vld [vmem:[%s4290_s4 + $0xc] sm:$0xf] }
  0xe7   : > { %v2678_v34 = vor.u32 %v2823_v25, %v2677_v23  ;;  %440 = vst.msk [vmem:[#allocation3 + $0x18] sm:$0xff] %vm436_vm0, %v3062_v36  ;;  %v2535_v16 = vld [vmem:[%s4290_s4 + $0x18] sm:$0xf0]  ;;  %v2817_v39 = vld [vmem:[%s4290_s4 + $0x10c] sm:$0xf] }
  0xe8   : > { %441 = vst.msk [vmem:[#allocation3 + $0x20] sm:$0xff] %vm436_vm0, %v3062_v36  ;;  %v2538_v22 = vor.u32 %v2785_v13, %v2535_v16  ;;  %v2663_v52 = vld [vmem:[%s4290_s4 + $0x118] sm:$0xf0]  ;;  %v2533_v0 = vld [vmem:[%s4290_s4 + $0x8] sm:$0xf] }
  0xe9   : > { %v3002_v21 = vpop.eup %3001  ;;  %1798 = vmatpush.bf16.msrb.mxu1 %v2694_v35  ;;  %442 = vst.msk [vmem:[#allocation3 + $0x28] sm:$0xff] %vm436_vm0, %v3062_v36  ;;  %v2666_v47 = vor.u32 %v2817_v39, %v2663_v52  ;;  %v2819_v59 = vld [vmem:[%s4290_s4 + $0x114] sm:$0xf0] }
  0xea   : > { %v3004_v51 = vpop.eup %3003  ;;  %v3776_v56 = vpack.c.bf16 %v3002_v21, %v3674_v43  ;;  %v2711_v43 = vld [vmem:[%s4290_s4 + $0x178] sm:$0xf0]  ;;  %443 = vst.msk [vmem:[#allocation3 + $0x30] sm:$0xff] %vm436_vm0, %v3062_v36 }
  0xeb   : > { %1615 = vmatmul.bf16.gmra.mxu1 %v3771_v46  ;;  %v1048_v58 = vadd.f32 %v3004_v51, %v3002_v21  ;;  %v3784_v28 = vpack.c.bf16 %v3004_v51, %v3684_v42  ;;  %v2581_v42 = vld [vmem:[%s4290_s4 + $0x68] sm:$0xf]  ;;  %v2714_v48 = vor.u32 %v2829_v5, %v2711_v43  ;;  %444 = vst.msk [vmem:[#allocation3 + $0x38] sm:$0xff] %vm436_vm0, %v3062_v36  ;;  %v2787_v21 = vld [vmem:[%s4290_s4 + $0x14] sm:$0xf0] }
  0xec   : > { %1713 = vmatmul.bf16.gmra.mxu3 %v3771_v46  ;;  %1037 = vadd.xlane.f32.xlu2 %v1036_v53  ;;  %v2582_v33 = vor.u32 %v2799_v29, %v2581_v42  ;;  %445 = vst.msk [vmem:[#allocation3 + $0x40] sm:$0xff] %vm436_vm0, %v3062_v36  ;;  %v2661_v51 = vld [vmem:[%s4290_s4 + $0x108] sm:$0xf]  ;;  %v989_v53 = vld [vmem:[#allocation3 + $0x10] sm:$0xff]  ;;  %v2534_v62 = vor.u32 %v2787_v21, %v2533_v0 }
  0xed   : > { %1049 = vadd.xlane.f32.xlu0 %v1048_v58  ;;  %1566 = vmatmul.bf16.gmra.mxu0 %v3781_v19  ;;  %446 = vst.msk [vmem:[#allocation3 + $0x48] sm:$0xff] %vm436_vm0, %v3062_v36  ;;  %v987_v58 = vld [vmem:[#allocation3] sm:$0xff]  ;;  %v2662_v5 = vor.u32 %v2819_v59, %v2661_v51  ;;  %v988_v1 = vld [vmem:[#allocation3 + $0x8] sm:$0xff] }
  0xee   : > { %1664 = vmatmul.bf16.gmra.mxu2 %v3781_v19  ;;  %1895 = vmatpush.bf16.msrb.mxu3 %v2714_v48  ;;  %447 = vst.msk [vmem:[#allocation3 + $0x50] sm:$0xff] %vm436_vm0, %v3062_v36  ;;  %v990_v49 = vld [vmem:[#allocation3 + $0x18] sm:$0xff] }
  0xef   : > { %1748 = vmatpush.bf16.msrb.mxu0 %v2582_v33  ;;  %1799 = vmatpush.bf16.msrb.mxu1 %v2678_v34  ;;  %448 = vst.msk [vmem:[#allocation3 + $0x58] sm:$0xff] %vm436_vm0, %v3062_v36 }
  0xf0   : > { %449 = vst.msk [vmem:[#allocation3 + $0x60] sm:$0xff] %vm436_vm0, %v3062_v36 }
  0xf1   : > { %450 = vst.msk [vmem:[#allocation3 + $0x68] sm:$0xff] %vm436_vm0, %v3062_v36  ;;  %v993_v50 = vld [vmem:[#allocation3 + $0x30] sm:$0xff] }
  0xf2   : > { %1896 = vmatpush.bf16.msrb.mxu3 %v2698_v15  ;;  %451 = vst.msk [vmem:[#allocation3 + $0x70] sm:$0xff] %vm436_vm0, %v3062_v36  ;;  %v994_v61 = vld [vmem:[#allocation3 + $0x38] sm:$0xff] }
  0xf3   : > { %1749 = vmatpush.bf16.msrb.mxu0 %v2566_v7  ;;  %452 = vst.msk [vmem:[#allocation3 + $0x78] sm:$0xff] %vm436_vm0, %v3062_v36  ;;  %1800 = vmatpush.bf16.msrb.mxu1 %v2662_v5 }
  0xf4   : > { %1046 = vadd.xlane.f32.xlu2 %v3725_v32  ;;  %v2793_v32 = vld [vmem:[%s4290_s4 + $0x4c] sm:$0xf] }
  0xf5   : > { %v2570_v9 = vor.u32 %v2793_v32, %v2567_v11  ;;  %v991_v11 = vld [vmem:[#allocation3 + $0x20] sm:$0xff]  ;;  %v997_v13 = vld [vmem:[#allocation3 + $0x50] sm:$0xff] }
  0xf6   : > { %1897 = vmatpush.bf16.msrb.mxu3 %v2682_v38  ;;  %v996_v38 = vld [vmem:[#allocation3 + $0x48] sm:$0xff] }
  0xf7   : > { %1847 = vmatpush.bf16.msrb.mxu2 %v2570_v9  ;;  %1750 = vmatpush.bf16.msrb.mxu0 %v2550_v3  ;;  %v992_v3 = vld [vmem:[#allocation3 + $0x28] sm:$0xff]  ;;  %v999_v59 = vld [vmem:[#allocation3 + $0x60] sm:$0xff] }
  0xfa   : > { %1898 = vmatpush.bf16.msrb.mxu3 %v2666_v47 }
  0xfb   : > { %1620 = vmatmul.bf16.gmra.mxu1 %v3816_v8  ;;  %1848 = vmatpush.bf16.msrb.mxu2 %v2554_v54 }
  0xfc   : > { %1718 = vmatmul.bf16.gmra.mxu3 %v3816_v8  ;;  %1751 = vmatpush.bf16.msrb.mxu0 %v2534_v62  ;;  %v995_v62 = vld [vmem:[#allocation3 + $0x40] sm:$0xff] }
  0xfd   : > { %1571 = vmatmul.bf16.gmra.mxu0 %v3820_v26 }
  0xfe   : > { %1669 = vmatmul.bf16.gmra.mxu2 %v3820_v26 }
  0xff   : > { %1849 = vmatpush.bf16.msrb.mxu2 %v2538_v22 }
 0x10b   : > { %1625 = vmatmul.bf16.gmra.mxu1 %v3852_v10 }
 0x10c   : > { %1723 = vmatmul.bf16.gmra.mxu3 %v3852_v10 }
 0x10d   : > { %1576 = vmatmul.bf16.gmra.mxu0 %v3856_v18 }
 0x10e   : > { %1674 = vmatmul.bf16.gmra.mxu2 %v3856_v18 }
 0x11b   : > { %1630 = vmatmul.bf16.gmra.mxu1 %v3896_v30 }
 0x11c   : > { %1728 = vmatmul.bf16.gmra.mxu3 %v3896_v30 }
 0x11d   : > { %1581 = vmatmul.bf16.gmra.mxu0 %v3902_v31 }
 0x11e   : > { %1679 = vmatmul.bf16.gmra.mxu2 %v3902_v31 }
 0x126   : > { %v1011_v12 = vpop.xlane.xlu0 %1010 }
 0x127   : > { %v1005_v43 = vpop.xlane.xlu1 %1004  ;;  %v1053_v42 = vadd.f32 %v1011_v12, %v989_v53 }
 0x128   : > { %v1051_v29 = vadd.f32 %v1005_v43, %v987_v58 }
 0x129   : > { %1070 = vst.msk [vmem:[#allocation3 + $0x10] sm:$0xff] %vm436_vm0, %v1053_v42  ;;  %v1000_v42 = vld [vmem:[#allocation3 + $0x68] sm:$0xff] }
 0x12a   : > { %1068 = vst.msk [vmem:[#allocation3] sm:$0xff] %vm436_vm0, %v1051_v29 }
 0x12b   : > { %1635 = vmatmul.bf16.gmra.mxu1 %v3763_v40 }
 0x12c   : > { %1733 = vmatmul.bf16.gmra.mxu3 %v3763_v40 }
 0x12d   : > { %1586 = vmatmul.bf16.gmra.mxu0 %v3755_v24 }
 0x12e   : > { %1684 = vmatmul.bf16.gmra.mxu2 %v3755_v24 }
 0x130   : > { %v2137_v48 = vld [vmem:[#allocation3 + $0x10] sm:$0xff] }
 0x131   : > { %3005 = vrcp.f32 %v2137_v48  ;;  %v2135_v33 = vld [vmem:[#allocation3] sm:$0xff] }
 0x132   : > { %3007 = vrcp.f32 %v2135_v33 }
 0x137   : > { %v3006_v41 = vpop.eup %3005 }
 0x138   : > { %v3008_v63 = vpop.eup %3007  ;;  %2179 = vperm.xlu0 %2874, %v3006_v41  }
 0x139   : > { %2169 = vperm.xlu1 %2875, %v3008_v63  }
 0x13b   : > { %1640 = vmatmul.bf16.gmra.mxu1 %v3784_v28 }
 0x13c   : > { %1738 = vmatmul.bf16.gmra.mxu3 %v3784_v28 }
 0x13d   : > { %1591 = vmatmul.bf16.gmra.mxu0 %v3776_v56 }
 0x13e   : > { %1689 = vmatmul.bf16.gmra.mxu2 %v3776_v56  ;;  %v1008_v32 = vpop.xlane.xlu2 %1007 }
 0x13f   : > { %v1052_v6 = vadd.f32 %v1008_v32, %v988_v1 }
 0x141   : > { %v1017_v9 = vpop.xlane.xlu1 %1016  ;;  %1069 = vst.msk [vmem:[#allocation3 + $0x8] sm:$0xff] %vm436_vm0, %v1052_v6 }
 0x142   : > { %v1055_v37 = vadd.f32 %v1017_v9, %v991_v11 }
 0x144   : > { %1072 = vst.msk [vmem:[#allocation3 + $0x20] sm:$0xff] %vm436_vm0, %v1055_v37 }
 0x146   : > { %v1023_v15 = vpop.xlane.xlu0 %1022 }
 0x147   : > { %v1057_v7 = vadd.f32 %v1023_v15, %v993_v50  ;;  %v1014_v2 = vpop.xlane.xlu2 %1013 }
 0x148   : > { %v1054_v35 = vadd.f32 %v1014_v2, %v990_v49  ;;  %v1606_v45 = vpop.f32.mrf.mxu1  ;;  %v2136_v57 = vld [vmem:[#allocation3 + $0x8] sm:$0xff]  ;;  %v1002_v2 = vld [vmem:[#allocation3 + $0x78] sm:$0xff] }
 0x149   : > { %1074 = vst.msk [vmem:[#allocation3 + $0x30] sm:$0xff] %vm436_vm0, %v1057_v7  ;;  %v1026_v14 = vpop.xlane.xlu1 %1025  ;;  %3009 = vrcp.f32 %v2136_v57  ;;  %v998_v7 = vld [vmem:[#allocation3 + $0x58] sm:$0xff] }
 0x14a   : > { %1071 = vst.msk [vmem:[#allocation3 + $0x18] sm:$0xff] %vm436_vm0, %v1054_v35  ;;  %v1058_v54 = vadd.f32 %v1026_v14, %v994_v61  ;;  %v1557_v44 = vpop.f32.mrf.mxu0 }
 0x14b   : > { %v3952_v17 = vadd.f32 %v1606_v45, %v1557_v44  ;;  %1801 = vmatmul.bf16.vlgmr.msrb.gmra.mxu1 %v3614_v20  ;;  %v2139_v55 = vld [vmem:[#allocation3 + $0x20] sm:$0xff] }
 0x14c   : > { %1075 = vst.msk [vmem:[#allocation3 + $0x38] sm:$0xff] %vm436_vm0, %v1058_v54  ;;  %1899 = vmatmul.bf16.vlgmr.msrb.gmra.mxu3 %v3614_v20  ;;  %3011 = vrcp.f32 %v2139_v55 }
 0x14d   : > { %1752 = vmatmul.bf16.vlgmr.msrb.gmra.mxu0 %v3622_v27 }
 0x14e   : > { %1850 = vmatmul.bf16.vlgmr.msrb.gmra.mxu2 %v3622_v27  ;;  %v1032_v23 = vpop.xlane.xlu0 %1031 }
 0x14f   : > { %v1704_v25 = vpop.f32.mrf.mxu3  ;;  %v1060_v34 = vadd.f32 %v1032_v23, %v996_v38  ;;  %v1020_v36 = vpop.xlane.xlu2 %1019 }
 0x150   : > { %v3010_v16 = vpop.eup %3009  ;;  %v1056_v22 = vadd.f32 %v1020_v36, %v992_v3  ;;  %v1608_v52 = vpop.f32.mrf.mxu1  ;;  %v2141_v5 = vld [vmem:[#allocation3 + $0x30] sm:$0xff] }
 0x151   : > { %v1655_v39 = vpop.f32.mrf.mxu2  ;;  %1077 = vst.msk [vmem:[#allocation3 + $0x48] sm:$0xff] %vm436_vm0, %v1060_v34  ;;  %v1035_v20 = vpop.xlane.xlu1 %1034  ;;  %2174 = vperm.xlu2 %2876, %v3010_v16   ;;  %v2138_v0 = vld [vmem:[#allocation3 + $0x18] sm:$0xff] }
 0x152   : > { %v3960_v47 = vadd.f32 %v1704_v25, %v1655_v39  ;;  %v3012_v21 = vpop.eup %3011  ;;  %1073 = vst.msk [vmem:[#allocation3 + $0x28] sm:$0xff] %vm436_vm0, %v1056_v22  ;;  %v1061_v27 = vadd.f32 %v1035_v20, %v997_v13  ;;  %v1559_v51 = vpop.f32.mrf.mxu0  ;;  %3013 = vrcp.f32 %v2138_v0  ;;  %v1001_v13 = vld [vmem:[#allocation3 + $0x70] sm:$0xff] }
 0x153   : > { %v3963_v53 = vadd.f32 %v1608_v52, %v1559_v51  ;;  %2189 = vperm.xlu0 %2874, %v3012_v21   ;;  %v2142_v58 = vld [vmem:[#allocation3 + $0x38] sm:$0xff] }
 0x154   : > { %1078 = vst.msk [vmem:[#allocation3 + $0x50] sm:$0xff] %vm436_vm0, %v1061_v27  ;;  %3015 = vrcp.f32 %v2142_v58 }
 0x155   : > { %3017 = vrcp.f32 %v2141_v5 }
 0x157   : > { %v1706_v12 = vpop.f32.mrf.mxu3  ;;  %v1029_v43 = vpop.xlane.xlu2 %1028 }
 0x158   : > { %v3014_v29 = vpop.eup %3013  ;;  %v1041_v48 = vpop.xlane.xlu0 %1040  ;;  %v1059_v33 = vadd.f32 %v1029_v43, %v995_v62  ;;  %v2144_v61 = vld [vmem:[#allocation3 + $0x48] sm:$0xff] }
 0x159   : > { %v1657_v41 = vpop.f32.mrf.mxu2  ;;  %v1063_v63 = vadd.f32 %v1041_v48, %v999_v59  ;;  %v1044_v32 = vpop.xlane.xlu1 %1043  ;;  %2184 = vperm.xlu1 %2875, %v3014_v29   ;;  %v2140_v6 = vld [vmem:[#allocation3 + $0x28] sm:$0xff] }
 0x15a   : > { %v3966_v1 = vadd.f32 %v1706_v12, %v1657_v41  ;;  %v1611_v11 = vpop.f32.mrf.mxu1  ;;  %v3016_v9 = vpop.eup %3015  ;;  %1076 = vst.msk [vmem:[#allocation3 + $0x40] sm:$0xff] %vm436_vm0, %v1059_v33  ;;  %v1064_v37 = vadd.f32 %v1044_v32, %v1000_v42  ;;  %3019 = vrcp.f32 %v2140_v6 }
 0x15b   : > { %v1562_v50 = vpop.f32.mrf.mxu0  ;;  %1080 = vst.msk [vmem:[#allocation3 + $0x60] sm:$0xff] %vm436_vm0, %v1063_v63  ;;  %2204 = vperm.xlu0 %2874, %v3016_v9   ;;  %1806 = vmatmul.bf16.gmra.mxu1 %v3719_v60  ;;  %v2145_v15 = vld [vmem:[#allocation3 + $0x50] sm:$0xff]  ;;  %v3018_v35 = vpop.eup %3017 }
 0x15c   : > { %v3970_v49 = vadd.f32 %v1611_v11, %v1562_v50  ;;  %1081 = vst.msk [vmem:[#allocation3 + $0x68] sm:$0xff] %vm436_vm0, %v1064_v37  ;;  %1904 = vmatmul.bf16.gmra.mxu3 %v3719_v60  ;;  %3021 = vrcp.f32 %v2145_v15 }
 0x15d   : > { %1757 = vmatmul.bf16.gmra.mxu0 %v3730_v4  ;;  %3023 = vrcp.f32 %v2144_v61 }
 0x15e   : > { %1855 = vmatmul.bf16.gmra.mxu2 %v3730_v4 }
 0x15f   : > { %v1709_v45 = vpop.f32.mrf.mxu3  ;;  %v1038_v14 = vpop.xlane.xlu2 %1037 }
 0x160   : > { %v3020_v57 = vpop.eup %3019  ;;  %v1050_v54 = vpop.xlane.xlu0 %1049  ;;  %v1062_v44 = vadd.f32 %v1038_v14, %v998_v7 }
 0x161   : > { %v1660_v55 = vpop.f32.mrf.mxu2  ;;  %v1066_v38 = vadd.f32 %v1050_v54, %v1002_v2  ;;  %2194 = vperm.xlu2 %2876, %v3020_v57   ;;  %2199 = vperm.xlu1 %2875, %v3018_v35   ;;  %v2143_v60 = vld [vmem:[#allocation3 + $0x40] sm:$0xff] }
 0x162   : > { %v3977_v3 = vadd.f32 %v1709_v45, %v1660_v55  ;;  %v1613_v23 = vpop.f32.mrf.mxu1  ;;  %v3022_v25 = vpop.eup %3021  ;;  %1079 = vst.msk [vmem:[#allocation3 + $0x58] sm:$0xff] %vm436_vm0, %v1062_v44  ;;  %3025 = vrcp.f32 %v2143_v60  ;;  %v2147_v16 = vld [vmem:[#allocation3 + $0x60] sm:$0xff] }
 0x163   : > { %v1564_v4 = vpop.f32.mrf.mxu0  ;;  %1083 = vst.msk [vmem:[#allocation3 + $0x78] sm:$0xff] %vm436_vm0, %v1066_v38  ;;  %2219 = vperm.xlu0 %2874, %v3022_v25   ;;  %v2148_v36 = vld [vmem:[#allocation3 + $0x68] sm:$0xff]  ;;  %v3024_v22 = vpop.eup %3023 }
 0x164   : > { %v3981_v34 = vadd.f32 %v1613_v23, %v1564_v4  ;;  %3027 = vrcp.f32 %v2148_v36 }
 0x165   : > { %3029 = vrcp.f32 %v2147_v16 }
 0x167   : > { %v1711_v39 = vpop.f32.mrf.mxu3  ;;  %v1047_v52 = vpop.xlane.xlu2 %1046 }
 0x168   : > { %v3026_v20 = vpop.eup %3025  ;;  %v1065_v0 = vadd.f32 %v1047_v52, %v1001_v13 }
 0x169   : > { %v1662_v21 = vpop.f32.mrf.mxu2  ;;  %2209 = vperm.xlu2 %2876, %v3026_v20   ;;  %2214 = vperm.xlu1 %2875, %v3024_v22   ;;  %v2146_v58 = vld [vmem:[#allocation3 + $0x58] sm:$0xff] }
 0x16a   : > { %v3983_v27 = vadd.f32 %v1711_v39, %v1662_v21  ;;  %v1616_v51 = vpop.f32.mrf.mxu1  ;;  %v3028_v62 = vpop.eup %3027  ;;  %1082 = vst.msk [vmem:[#allocation3 + $0x70] sm:$0xff] %vm436_vm0, %v1065_v0  ;;  %3031 = vrcp.f32 %v2146_v58  ;;  %v2150_v12 = vld [vmem:[#allocation3 + $0x78] sm:$0xff] }
 0x16b   : > { %v1567_v59 = vpop.f32.mrf.mxu0  ;;  %2234 = vperm.xlu0 %2874, %v3028_v62   ;;  %1811 = vmatmul.bf16.gmra.mxu1 %v3771_v46  ;;  %v3030_v43 = vpop.eup %3029  ;;  %3033 = vrcp.f32 %v2150_v12 }
 0x16c   : > { %v3986_v5 = vadd.f32 %v1616_v51, %v1567_v59  ;;  %1909 = vmatmul.bf16.gmra.mxu3 %v3771_v46 }
 0x16d   : > { %1762 = vmatmul.bf16.gmra.mxu0 %v3781_v19 }
 0x16e   : > { %1860 = vmatmul.bf16.gmra.mxu2 %v3781_v19 }
 0x16f   : > { %v1714_v42 = vpop.f32.mrf.mxu3 }
 0x170   : > { %v3032_v29 = vpop.eup %3031 }
 0x171   : > { %v1665_v48 = vpop.f32.mrf.mxu2  ;;  %2224 = vperm.xlu2 %2876, %v3032_v29   ;;  %2229 = vperm.xlu1 %2875, %v3030_v43   ;;  %v2149_v41 = vld [vmem:[#allocation3 + $0x70] sm:$0xff]  ;;  %v3034_v46 = vpop.eup %3033 }
 0x172   : > { %v1618_v33 = vpop.f32.mrf.mxu1  ;;  %v3992_v63 = vadd.f32 %v1714_v42, %v1665_v48  ;;  %3035 = vrcp.f32 %v2149_v41 }
 0x173   : > { %v1569_v32 = vpop.f32.mrf.mxu0 }
 0x174   : > { %v3994_v11 = vadd.f32 %v1618_v33, %v1569_v32 }
 0x177   : > { %v1716_v6 = vpop.f32.mrf.mxu3 }
 0x178   : > { %v3036_v9 = vpop.eup %3035 }
 0x179   : > { %v1667_v19 = vpop.f32.mrf.mxu2  ;;  %2239 = vperm.xlu2 %2876, %v3036_v9   ;;  %2244 = vperm.xlu1 %2875, %v3034_v46  }
 0x17a   : > { %v1621_v37 = vpop.f32.mrf.mxu1  ;;  %v3996_v50 = vadd.f32 %v1716_v6, %v1667_v19 }
 0x17b   : > { %v1572_v15 = vpop.f32.mrf.mxu0  ;;  %1816 = vmatmul.bf16.gmra.mxu1 %v3816_v8 }
 0x17c   : > { %v3998_v7 = vadd.f32 %v1621_v37, %v1572_v15  ;;  %1914 = vmatmul.bf16.gmra.mxu3 %v3816_v8 }
 0x17d   : > { %1767 = vmatmul.bf16.gmra.mxu0 %v3820_v26 }
 0x17e   : > { %1865 = vmatmul.bf16.gmra.mxu2 %v3820_v26 }
 0x17f   : > { %v1719_v2 = vpop.f32.mrf.mxu3 }
 0x181   : > { %v1670_v61 = vpop.f32.mrf.mxu2 }
 0x182   : > { %v1623_v35 = vpop.f32.mrf.mxu1  ;;  %v4004_v45 = vadd.f32 %v1719_v2, %v1670_v61 }
 0x183   : > { %v1574_v14 = vpop.f32.mrf.mxu0 }
 0x184   : > { %v4006_v57 = vadd.f32 %v1623_v35, %v1574_v14 }
 0x187   : > { %v1721_v54 = vpop.f32.mrf.mxu3 }
 0x189   : > { %v1672_v44 = vpop.f32.mrf.mxu2 }
 0x18a   : > { %v4008_v55 = vpop.f32.mrf.mxu1  ;;  %v4010_v38 = vadd.f32 %v1721_v54, %v1672_v44 }
 0x18b   : > { %v4012_v23 = vpop.f32.mrf.mxu0  ;;  %1821 = vmatmul.bf16.gmra.mxu1 %v3852_v10 }
 0x18c   : > { %1919 = vmatmul.bf16.gmra.mxu3 %v3852_v10 }
 0x18d   : > { %1772 = vmatmul.bf16.gmra.mxu0 %v3856_v18 }
 0x18e   : > { %1870 = vmatmul.bf16.gmra.mxu2 %v3856_v18 }
 0x18f   : > { %v4018_v8 = vpop.f32.mrf.mxu3 }
 0x191   : > { %v4020_v26 = vpop.f32.mrf.mxu2 }
 0x192   : > { %v1628_v60 = vpop.f32.mrf.mxu1  ;;  %v1725_v19 = vadd.f32 %v4018_v8, %v4020_v26 }
 0x193   : > { %v1579_v25 = vpop.f32.mrf.mxu0 }
 0x194   : > { %v4022_v4 = vadd.f32 %v1628_v60, %v1579_v25 }
 0x197   : > { %v1726_v36 = vpop.f32.mrf.mxu3 }
 0x199   : > { %v1677_v13 = vpop.f32.mrf.mxu2 }
 0x19a   : > { %v4024_v16 = vpop.f32.mrf.mxu1  ;;  %v4026_v22 = vadd.f32 %v1726_v36, %v1677_v13 }
 0x19b   : > { %v4028_v10 = vpop.f32.mrf.mxu0  ;;  %1826 = vmatmul.bf16.gmra.mxu1 %v3896_v30 }
 0x19c   : > { %1924 = vmatmul.bf16.gmra.mxu3 %v3896_v30 }
 0x19d   : > { %1777 = vmatmul.bf16.gmra.mxu0 %v3902_v31 }
 0x19e   : > { %1875 = vmatmul.bf16.gmra.mxu2 %v3902_v31 }
 0x19f   : > { %v4034_v18 = vpop.f32.mrf.mxu3 }
 0x1a1   : > { %v4036_v39 = vpop.f32.mrf.mxu2 }
 0x1a2   : > { %v4038_v52 = vpop.f32.mrf.mxu1 }
 0x1a3   : > { %v1584_v20 = vpop.f32.mrf.mxu0 }
 0x1a4   : > { %v1634_v44 = vadd.f32 %v4038_v52, %v1584_v20 }
 0x1a7   : > { %v1731_v0 = vpop.f32.mrf.mxu3 }
 0x1a9   : > { %v1682_v21 = vpop.f32.mrf.mxu2 }
 0x1aa   : > { %v4041_v51 = vpop.f32.mrf.mxu1  ;;  %v4053_v31 = vpop.permute.xlu0 %2179 }
 0x1ab   : > { %v4043_v58 = vpop.f32.mrf.mxu0  ;;  %v4050_v30 = vpop.permute.xlu2 %2174  ;;  %1831 = vmatmul.bf16.gmra.mxu1 %v3763_v40  ;;  %v2255_v12 = vmul.f32 %v4053_v31, %v3970_v49  ;;  %v2256_v42 = vmul.f32 %v4053_v31, %v3977_v3 }
 0x1ac   : > { %v2251_v62 = vmul.f32 %v4050_v30, %v3963_v53  ;;  %v2252_v59 = vmul.f32 %v4050_v30, %v3966_v1  ;;  %1929 = vmatmul.bf16.gmra.mxu3 %v3763_v40  ;;  %v4062_v43 = vpop.permute.xlu1 %2169 }
 0x1ad   : > { %1782 = vmatmul.bf16.gmra.mxu0 %v3755_v24  ;;  %v2247_v53 = vmul.f32 %v4062_v43, %v3952_v17  ;;  %v2248_v1 = vmul.f32 %v4062_v43, %v3960_v47  ;;  %2319 = vst [vmem:[%s4048_s6 + $0x40] sm:$0xff] %v2255_v12 }
 0x1ae   : > { %2315 = vst [vmem:[%s4048_s6 + $0x20] sm:$0xff] %v2251_v62  ;;  %1880 = vmatmul.bf16.gmra.mxu2 %v3755_v24 }
 0x1af   : > { %2316 = vst [vmem:[%s4048_s6 + $0x28] sm:$0xff] %v2252_v59  ;;  %v4072_v40 = vpop.f32.mrf.mxu3 }
 0x1b0   : > { %2320 = vst [vmem:[%s4048_s6 + $0x48] sm:$0xff] %v2256_v42 }
 0x1b1   : > { %v4077_v49 = vpop.f32.mrf.mxu2  ;;  %2311 = vst [vmem:[%s4048_s6] sm:$0xff] %v2247_v53 }
 0x1b2   : > { %v4079_v29 = vpop.f32.mrf.mxu1  ;;  %2312 = vst [vmem:[%s4048_s6 + $0x8] sm:$0xff] %v2248_v1 }
 0x1b3   : > { %v4082_v3 = vpop.f32.mrf.mxu0 }
 0x1b7   : > { %v4086_v24 = vpop.f32.mrf.mxu3 }
 0x1b9   : > { %v4088_v17 = vpop.f32.mrf.mxu2 }
 0x1ba   : > { %v1641_v48 = vpop.f32.mrf.mxu1 }
 0x1bb   : > { %v1592_v33 = vpop.f32.mrf.mxu0  ;;  %v4090_v41 = vpop.permute.xlu2 %2194  ;;  %1836 = vmatmul.bf16.gmra.mxu1 %v3784_v28 }
 0x1bc   : > { %v2267_v47 = vmul.f32 %v4090_v41, %v3994_v11  ;;  %v2268_v32 = vmul.f32 %v4090_v41, %v3996_v50  ;;  %1934 = vmatmul.bf16.gmra.mxu3 %v3784_v28  ;;  %v1627_v11 = vadd.f32 %v4008_v55, %v4012_v23  ;;  %v1732_v55 = vadd.f32 %v1731_v0, %v1682_v21 }
 0x1bd   : > { %1787 = vmatmul.bf16.gmra.mxu0 %v3776_v56  ;;  %v1642_v12 = vadd.f32 %v1641_v48, %v1592_v33 }
 0x1be   : > { %2331 = vst [vmem:[%s4048_s6 + $0xa0] sm:$0xff] %v2267_v47  ;;  %1885 = vmatmul.bf16.gmra.mxu2 %v3776_v56  ;;  %v1730_v47 = vadd.f32 %v4034_v18, %v4036_v39 }
 0x1bf   : > { %2332 = vst [vmem:[%s4048_s6 + $0xa8] sm:$0xff] %v2268_v32  ;;  %v1739_v46 = vpop.f32.mrf.mxu3 }
 0x1c1   : > { %v1690_v6 = vpop.f32.mrf.mxu2 }
 0x1c2   : > { %v4102_v9 = vpop.f32.mrf.mxu1 }
 0x1c3   : > { %v4108_v28 = vpop.f32.mrf.mxu0  ;;  %v4110_v37 = vpop.permute.xlu2 %2209 }
 0x1c4   : > { %v2279_v50 = vmul.f32 %v4110_v37, %v1627_v11  ;;  %v2280_v56 = vmul.f32 %v4110_v37, %v1725_v19 }
 0x1c5   : > { %v4114_v15 = vpop.permute.xlu0 %2189 }
 0x1c6   : > { %2343 = vst [vmem:[%s4048_s6 + $0x100] sm:$0xff] %v2279_v50  ;;  %v2263_v2 = vmul.f32 %v4114_v15, %v3986_v5  ;;  %v2264_v61 = vmul.f32 %v4114_v15, %v3992_v63 }
 0x1c7   : > { %2344 = vst [vmem:[%s4048_s6 + $0x108] sm:$0xff] %v2280_v56  ;;  %v4122_v35 = vpop.f32.mrf.mxu3 }
 0x1c8   : > { %2327 = vst [vmem:[%s4048_s6 + $0x80] sm:$0xff] %v2263_v2 }
 0x1c9   : > { %2328 = vst [vmem:[%s4048_s6 + $0x88] sm:$0xff] %v2264_v61  ;;  %v4126_v14 = vpop.f32.mrf.mxu2 }
 0x1ca   : > { %v1802_v54 = vpop.f32.mrf.mxu1 }
 0x1cb   : > { %v1753_v23 = vpop.f32.mrf.mxu0  ;;  %v4129_v8 = vpop.permute.xlu2 %2224 }
 0x1cc   : > { %v1803_v5 = vadd.f32 %v1802_v54, %v1753_v23  ;;  %v4131_v63 = vpop.permute.xlu1 %2184  ;;  %v2291_v26 = vmul.f32 %v4129_v8, %v1634_v44  ;;  %v2292_v60 = vmul.f32 %v4129_v8, %v1732_v55  ;;  %v1737_v54 = vadd.f32 %v4086_v24, %v4088_v17 }
 0x1cd   : > { %v4136_v36 = vpop.permute.xlu0 %2204  ;;  %v2259_v20 = vmul.f32 %v4131_v63, %v3981_v34  ;;  %v2260_v21 = vmul.f32 %v4131_v63, %v3983_v27  ;;  %v1632_v27 = vadd.f32 %v4024_v16, %v4028_v10 }
 0x1ce   : > { %v2249_v25 = vmul.f32 %v4062_v43, %v1803_v5  ;;  %2355 = vst [vmem:[%s4048_s6 + $0x160] sm:$0xff] %v2291_v26  ;;  %v2275_v13 = vmul.f32 %v4136_v36, %v4006_v57  ;;  %v2276_v52 = vmul.f32 %v4136_v36, %v4010_v38  ;;  %v1740_v38 = vadd.f32 %v1739_v46, %v1690_v6 }
 0x1cf   : > { %v1900_v0 = vpop.f32.mrf.mxu3  ;;  %2356 = vst [vmem:[%s4048_s6 + $0x168] sm:$0xff] %v2292_v60  ;;  %v1637_v26 = vadd.f32 %v4041_v51, %v4043_v58 }
 0x1d0   : > { %2313 = vst [vmem:[%s4048_s6 + $0x10] sm:$0xff] %v2249_v25 }
 0x1d1   : > { %2339 = vst [vmem:[%s4048_s6 + $0xe0] sm:$0xff] %v2275_v13  ;;  %v1851_v62 = vpop.f32.mrf.mxu2 }
 0x1d2   : > { %v1804_v59 = vpop.f32.mrf.mxu1  ;;  %2340 = vst [vmem:[%s4048_s6 + $0xe8] sm:$0xff] %v2276_v52  ;;  %v1901_v57 = vadd.f32 %v1900_v0, %v1851_v62 }
 0x1d3   : > { %v1755_v42 = vpop.f32.mrf.mxu0  ;;  %2323 = vst [vmem:[%s4048_s6 + $0x60] sm:$0xff] %v2259_v20  ;;  %v4152_v34 = vpop.permute.xlu2 %2239 }
 0x1d4   : > { %v1805_v53 = vadd.f32 %v1804_v59, %v1755_v42  ;;  %v4154_v1 = vpop.permute.xlu1 %2199  ;;  %2324 = vst [vmem:[%s4048_s6 + $0x68] sm:$0xff] %v2260_v21  ;;  %v2250_v48 = vmul.f32 %v4062_v43, %v1901_v57  ;;  %v2303_v33 = vmul.f32 %v4152_v34, %v1642_v12  ;;  %v2304_v46 = vmul.f32 %v4152_v34, %v1740_v38 }
 0x1d5   : > { %v4165_v6 = vpop.permute.xlu0 %2219  ;;  %v2271_v18 = vmul.f32 %v4154_v1, %v3998_v7  ;;  %v2272_v39 = vmul.f32 %v4154_v1, %v4004_v45  ;;  %v1639_v7 = vadd.f32 %v4079_v29, %v4082_v3  ;;  %v1742_v59 = vadd.f32 %v4122_v35, %v4126_v14 }
 0x1d6   : > { %v2253_v32 = vmul.f32 %v4050_v30, %v1805_v53  ;;  %2314 = vst [vmem:[%s4048_s6 + $0x18] sm:$0xff] %v2250_v48  ;;  %v2287_v11 = vmul.f32 %v4165_v6, %v1632_v27  ;;  %v2288_v16 = vmul.f32 %v4165_v6, %v1730_v47 }
 0x1d7   : > { %v1902_v10 = vpop.f32.mrf.mxu3  ;;  %2367 = vst [vmem:[%s4048_s6 + $0x1c0] sm:$0xff] %v2303_v33 }
 0x1d8   : > { %2317 = vst [vmem:[%s4048_s6 + $0x30] sm:$0xff] %v2253_v32 }
 0x1d9   : > { %2368 = vst [vmem:[%s4048_s6 + $0x1c8] sm:$0xff] %v2304_v46  ;;  %v1853_v43 = vpop.f32.mrf.mxu2 }
 0x1da   : > { %v1807_v19 = vpop.f32.mrf.mxu1  ;;  %2351 = vst [vmem:[%s4048_s6 + $0x140] sm:$0xff] %v2287_v11  ;;  %v1903_v50 = vadd.f32 %v1902_v10, %v1853_v43 }
 0x1db   : > { %v1758_v56 = vpop.f32.mrf.mxu0  ;;  %2352 = vst [vmem:[%s4048_s6 + $0x148] sm:$0xff] %v2288_v16 }
 0x1dc   : > { %v1808_v2 = vadd.f32 %v1807_v19, %v1758_v56  ;;  %v4179_v61 = vpop.permute.xlu1 %2214  ;;  %2335 = vst [vmem:[%s4048_s6 + $0xc0] sm:$0xff] %v2271_v18  ;;  %v2254_v45 = vmul.f32 %v4050_v30, %v1903_v50 }
 0x1dd   : > { %2336 = vst [vmem:[%s4048_s6 + $0xc8] sm:$0xff] %v2272_v39  ;;  %v4189_v55 = vpop.permute.xlu0 %2234  ;;  %v2283_v29 = vmul.f32 %v4179_v61, %v4022_v4  ;;  %v2284_v3 = vmul.f32 %v4179_v61, %v4026_v22  ;;  %v1735_v4 = vadd.f32 %v4072_v40, %v4077_v49 }
 0x1de   : > { %v2257_v44 = vmul.f32 %v4053_v31, %v1808_v2  ;;  %2318 = vst [vmem:[%s4048_s6 + $0x38] sm:$0xff] %v2254_v45  ;;  %v2299_v23 = vmul.f32 %v4189_v55, %v1639_v7  ;;  %v2300_v5 = vmul.f32 %v4189_v55, %v1737_v54 }
 0x1df   : > { %v1905_v30 = vpop.f32.mrf.mxu3  ;;  %2347 = vst [vmem:[%s4048_s6 + $0x120] sm:$0xff] %v2283_v29 }
 0x1e0   : > { %2321 = vst [vmem:[%s4048_s6 + $0x50] sm:$0xff] %v2257_v44 }
 0x1e1   : > { %2363 = vst [vmem:[%s4048_s6 + $0x1a0] sm:$0xff] %v2299_v23  ;;  %v1856_v24 = vpop.f32.mrf.mxu2 }
 0x1e2   : > { %2364 = vst [vmem:[%s4048_s6 + $0x1a8] sm:$0xff] %v2300_v5  ;;  %v1809_v17 = vpop.f32.mrf.mxu1  ;;  %v1906_v60 = vadd.f32 %v1905_v30, %v1856_v24 }
 0x1e3   : > { %v1760_v25 = vpop.f32.mrf.mxu0  ;;  %2348 = vst [vmem:[%s4048_s6 + $0x128] sm:$0xff] %v2284_v3 }
 0x1e4   : > { %v1810_v22 = vadd.f32 %v1809_v17, %v1760_v25  ;;  %v4207_v13 = vpop.permute.xlu1 %2229  ;;  %v2258_v52 = vmul.f32 %v4053_v31, %v1906_v60  ;;  %v1644_v31 = vadd.f32 %v4102_v9, %v4108_v28 }
 0x1e5   : > { %v2295_v20 = vmul.f32 %v4207_v13, %v1637_v26  ;;  %v2296_v21 = vmul.f32 %v4207_v13, %v1735_v4 }
 0x1e6   : > { %v2261_v0 = vmul.f32 %v4131_v63, %v1810_v22  ;;  %2322 = vst [vmem:[%s4048_s6 + $0x58] sm:$0xff] %v2258_v52 }
 0x1e7   : > { %v1907_v51 = vpop.f32.mrf.mxu3  ;;  %2359 = vst [vmem:[%s4048_s6 + $0x180] sm:$0xff] %v2295_v20 }
 0x1e8   : > { %2325 = vst [vmem:[%s4048_s6 + $0x70] sm:$0xff] %v2261_v0 }
 0x1e9   : > { %2360 = vst [vmem:[%s4048_s6 + $0x188] sm:$0xff] %v2296_v21  ;;  %v1858_v58 = vpop.f32.mrf.mxu2 }
 0x1ea   : > { %v1812_v40 = vpop.f32.mrf.mxu1  ;;  %v1908_v49 = vadd.f32 %v1907_v51, %v1858_v58 }
 0x1eb   : > { %v1763_v62 = vpop.f32.mrf.mxu0 }
 0x1ec   : > { %v1813_v12 = vadd.f32 %v1812_v40, %v1763_v62  ;;  %v4221_v57 = vpop.permute.xlu1 %2244  ;;  %v2262_v42 = vmul.f32 %v4131_v63, %v1908_v49 }
 0x1ed   : > { %v2307_v38 = vmul.f32 %v4221_v57, %v1644_v31  ;;  %v2308_v27 = vmul.f32 %v4221_v57, %v1742_v59 }
 0x1ee   : > { %v2265_v53 = vmul.f32 %v4114_v15, %v1813_v12  ;;  %2326 = vst [vmem:[%s4048_s6 + $0x78] sm:$0xff] %v2262_v42 }
 0x1ef   : > { %v1910_v9 = vpop.f32.mrf.mxu3  ;;  %2371 = vst [vmem:[%s4048_s6 + $0x1e0] sm:$0xff] %v2307_v38 }
 0x1f0   : > { %2329 = vst [vmem:[%s4048_s6 + $0x90] sm:$0xff] %v2265_v53 }
 0x1f1   : > { %2372 = vst [vmem:[%s4048_s6 + $0x1e8] sm:$0xff] %v2308_v27  ;;  %v1861_v28 = vpop.f32.mrf.mxu2 }
 0x1f2   : > { %v1814_v35 = vpop.f32.mrf.mxu1  ;;  %v1911_v14 = vadd.f32 %v1910_v9, %v1861_v28 }
 0x1f3   : > { %v1765_v48 = vpop.f32.mrf.mxu0 }
 0x1f4   : > { %v1815_v63 = vadd.f32 %v1814_v35, %v1765_v48  ;;  %v2266_v33 = vmul.f32 %v4114_v15, %v1911_v14 }
 0x1f6   : > { %v2269_v47 = vmul.f32 %v4090_v41, %v1815_v63  ;;  %2330 = vst [vmem:[%s4048_s6 + $0x98] sm:$0xff] %v2266_v33 }
 0x1f7   : > { %v1912_v32 = vpop.f32.mrf.mxu3 }
 0x1f8   : > { %2333 = vst [vmem:[%s4048_s6 + $0xb0] sm:$0xff] %v2269_v47 }
 0x1f9   : > { %v1863_v46 = vpop.f32.mrf.mxu2 }
 0x1fa   : > { %v1817_v11 = vpop.f32.mrf.mxu1  ;;  %v1913_v16 = vadd.f32 %v1912_v32, %v1863_v46 }
 0x1fb   : > { %v1768_v10 = vpop.f32.mrf.mxu0 }
 0x1fc   : > { %v1818_v18 = vadd.f32 %v1817_v11, %v1768_v10  ;;  %v2270_v39 = vmul.f32 %v4090_v41, %v1913_v16 }
 0x1fe   : > { %v2273_v43 = vmul.f32 %v4154_v1, %v1818_v18  ;;  %2334 = vst [vmem:[%s4048_s6 + $0xb8] sm:$0xff] %v2270_v39 }
 0x1ff   : > { %v1915_v19 = vpop.f32.mrf.mxu3 }
 0x200   : > { %2337 = vst [vmem:[%s4048_s6 + $0xd0] sm:$0xff] %v2273_v43 }
 0x201   : > { %v1866_v15 = vpop.f32.mrf.mxu2 }
 0x202   : > { %v1819_v50 = vpop.f32.mrf.mxu1  ;;  %v1916_v56 = vadd.f32 %v1915_v19, %v1866_v15 }
 0x203   : > { %v1770_v2 = vpop.f32.mrf.mxu0 }
 0x204   : > { %v1820_v7 = vadd.f32 %v1819_v50, %v1770_v2  ;;  %v2274_v54 = vmul.f32 %v4154_v1, %v1916_v56 }
 0x206   : > { %v2277_v45 = vmul.f32 %v4136_v36, %v1820_v7  ;;  %2338 = vst [vmem:[%s4048_s6 + $0xd8] sm:$0xff] %v2274_v54 }
 0x207   : > { %v1917_v44 = vpop.f32.mrf.mxu3 }
 0x208   : > { %2341 = vst [vmem:[%s4048_s6 + $0xf0] sm:$0xff] %v2277_v45 }
 0x209   : > { %v1868_v41 = vpop.f32.mrf.mxu2 }
 0x20a   : > { %v1822_v23 = vpop.f32.mrf.mxu1  ;;  %v1918_v5 = vadd.f32 %v1917_v44, %v1868_v41 }
 0x20b   : > { %v1773_v29 = vpop.f32.mrf.mxu0 }
 0x20c   : > { %v1823_v3 = vadd.f32 %v1822_v23, %v1773_v29  ;;  %v2278_v30 = vmul.f32 %v4136_v36, %v1918_v5 }
 0x20e   : > { %v2281_v24 = vmul.f32 %v4110_v37, %v1823_v3  ;;  %2342 = vst [vmem:[%s4048_s6 + $0xf8] sm:$0xff] %v2278_v30 }
 0x20f   : > { %v1920_v17 = vpop.f32.mrf.mxu3 }
 0x210   : > { %2345 = vst [vmem:[%s4048_s6 + $0x110] sm:$0xff] %v2281_v24 }
 0x211   : > { %v1871_v1 = vpop.f32.mrf.mxu2 }
 0x212   : > { %v1824_v26 = vpop.f32.mrf.mxu1  ;;  %v1921_v60 = vadd.f32 %v1920_v17, %v1871_v1 }
 0x213   : > { %v1775_v25 = vpop.f32.mrf.mxu0 }
 0x214   : > { %v1825_v4 = vadd.f32 %v1824_v26, %v1775_v25  ;;  %v2282_v22 = vmul.f32 %v4110_v37, %v1921_v60 }
 0x216   : > { %v2285_v52 = vmul.f32 %v4179_v61, %v1825_v4  ;;  %2346 = vst [vmem:[%s4048_s6 + $0x118] sm:$0xff] %v2282_v22 }
 0x217   : > { %v1922_v20 = vpop.f32.mrf.mxu3 }
 0x218   : > { %2349 = vst [vmem:[%s4048_s6 + $0x130] sm:$0xff] %v2285_v52 }
 0x219   : > { %v1873_v36 = vpop.f32.mrf.mxu2 }
 0x21a   : > { %v1827_v0 = vpop.f32.mrf.mxu1  ;;  %v1923_v21 = vadd.f32 %v1922_v20, %v1873_v36 }
 0x21b   : > { %v1778_v51 = vpop.f32.mrf.mxu0 }
 0x21c   : > { %v1828_v58 = vadd.f32 %v1827_v0, %v1778_v51  ;;  %v2286_v40 = vmul.f32 %v4179_v61, %v1923_v21 }
 0x21e   : > { %v2289_v31 = vmul.f32 %v4165_v6, %v1828_v58  ;;  %2350 = vst [vmem:[%s4048_s6 + $0x138] sm:$0xff] %v2286_v40 }
 0x21f   : > { %v1925_v49 = vpop.f32.mrf.mxu3 }
 0x220   : > { %2353 = vst [vmem:[%s4048_s6 + $0x150] sm:$0xff] %v2289_v31 }
 0x221   : > { %v1876_v37 = vpop.f32.mrf.mxu2 }
 0x222   : > { %v1829_v62 = vpop.f32.mrf.mxu1  ;;  %v1926_v59 = vadd.f32 %v1925_v49, %v1876_v37 }
 0x223   : > { %v1780_v12 = vpop.f32.mrf.mxu0 }
 0x224   : > { %v1830_v42 = vadd.f32 %v1829_v62, %v1780_v12  ;;  %v2290_v38 = vmul.f32 %v4165_v6, %v1926_v59 }
 0x226   : > { %v2293_v53 = vmul.f32 %v4129_v8, %v1830_v42  ;;  %2354 = vst [vmem:[%s4048_s6 + $0x158] sm:$0xff] %v2290_v38 }
 0x227   : > { %v1927_v27 = vpop.f32.mrf.mxu3 }
 0x228   : > { %2357 = vst [vmem:[%s4048_s6 + $0x170] sm:$0xff] %v2293_v53 }
 0x229   : > { %v1878_v61 = vpop.f32.mrf.mxu2 }
 0x22a   : > { %v1832_v9 = vpop.f32.mrf.mxu1  ;;  %v1928_v28 = vadd.f32 %v1927_v27, %v1878_v61 }
 0x22b   : > { %v1783_v35 = vpop.f32.mrf.mxu0 }
 0x22c   : > { %v1833_v14 = vadd.f32 %v1832_v9, %v1783_v35  ;;  %v2294_v48 = vmul.f32 %v4129_v8, %v1928_v28 }
 0x22e   : > { %v2297_v63 = vmul.f32 %v4207_v13, %v1833_v14  ;;  %2358 = vst [vmem:[%s4048_s6 + $0x178] sm:$0xff] %v2294_v48 }
 0x22f   : > { %v1930_v33 = vpop.f32.mrf.mxu3 }
 0x230   : > { %2361 = vst [vmem:[%s4048_s6 + $0x190] sm:$0xff] %v2297_v63 }
 0x231   : > { %v1881_v6 = vpop.f32.mrf.mxu2 }
 0x232   : > { %v1834_v47 = vpop.f32.mrf.mxu1  ;;  %v1931_v32 = vadd.f32 %v1930_v33, %v1881_v6 }
 0x233   : > { %v1785_v46 = vpop.f32.mrf.mxu0 }
 0x234   : > { %v1835_v11 = vadd.f32 %v1834_v47, %v1785_v46  ;;  %v2298_v16 = vmul.f32 %v4207_v13, %v1931_v32 }
 0x236   : > { %v2301_v10 = vmul.f32 %v4189_v55, %v1835_v11  ;;  %2362 = vst [vmem:[%s4048_s6 + $0x198] sm:$0xff] %v2298_v16 }
 0x237   : > { %v1932_v18 = vpop.f32.mrf.mxu3 }
 0x238   : > { %2365 = vst [vmem:[%s4048_s6 + $0x1b0] sm:$0xff] %v2301_v10 }
 0x239   : > { %v1883_v8 = vpop.f32.mrf.mxu2 }
 0x23a   : > { %v1837_v39 = vpop.f32.mrf.mxu1  ;;  %v1933_v43 = vadd.f32 %v1932_v18, %v1883_v8 }
 0x23b   : > { %v1788_v19 = vpop.f32.mrf.mxu0 }
 0x23c   : > { %v1838_v15 = vadd.f32 %v1837_v39, %v1788_v19  ;;  %v2302_v50 = vmul.f32 %v4189_v55, %v1933_v43 }
 0x23e   : > { %v2305_v56 = vmul.f32 %v4152_v34, %v1838_v15  ;;  %2366 = vst [vmem:[%s4048_s6 + $0x1b8] sm:$0xff] %v2302_v50 }
 0x23f   : > { %v1935_v13 = vpop.f32.mrf.mxu3 }
 0x240   : > { %2369 = vst [vmem:[%s4048_s6 + $0x1d0] sm:$0xff] %v2305_v56 }
 0x241   : > { %v1886_v2 = vpop.f32.mrf.mxu2 }
 0x242   : > { %v1839_v7 = vpop.f32.mrf.mxu1  ;;  %v1936_v54 = vadd.f32 %v1935_v13, %v1886_v2 }
 0x243   : > { %v1790_v45 = vpop.f32.mrf.mxu0 }
 0x244   : > { %v1840_v44 = vadd.f32 %v1839_v7, %v1790_v45  ;;  %v2306_v41 = vmul.f32 %v4152_v34, %v1936_v54 }
 0x246   : > { %v2309_v23 = vmul.f32 %v4221_v57, %v1840_v44  ;;  %2370 = vst [vmem:[%s4048_s6 + $0x1d8] sm:$0xff] %v2306_v41 }
 0x247   : > { %v1937_v5 = vpop.f32.mrf.mxu3 }
 0x248   : > { %2373 = vst [vmem:[%s4048_s6 + $0x1f0] sm:$0xff] %v2309_v23 }
 0x249   : > { %v1888_v29 = vpop.f32.mrf.mxu2 }
 0x24a   : > { %v1938_v55 = vadd.f32 %v1937_v5, %v1888_v29 }
 0x24c   : > { %v2310_v3 = vmul.f32 %v4221_v57, %v1938_v55 }
 0x24e   : > { %2374 = vst [vmem:[%s4048_s6 + $0x1f8] sm:$0xff] %v2310_v3 }
 0x24f PF: > { %s15_s20 = sadd.s32 1, %s3059_s20   ;;  %s4292_s18 = smov %s3055_s19 }
 0x250   : > { %p12_p6 = scmp.ge.s32.totalorder %s15_s20, 4   ;;  %s4293_s19 = smov %s4295_s21 }
 0x252   :  { %14 = sbr.rel (!%p12_p6) target bundleno = 2 (0x2), region = 90 }

// kernel: encoder_forward.10
= control target key start
LH: loop header
LB: loop body
LE: loop exit
PB: predicated region body
PF: predicated region fallthrough
CT: control target
= control target key end

     0   :  { %s1180_s24 = smov 0   ;;  %s1478_s0 = inlined_call_operand.vmem [shape: f32[256,256], index: 0, kind: input, shape index: {}]   ;;  %s1479_s1 = inlined_call_operand.vmem [shape: bf16[256,128], index: 1, kind: input, shape index: {}]   ;;  %s1480_s2 = inlined_call_operand.vmem [shape: f32[1,128], index: 2, kind: input, shape index: {}]   ;;  %s1481_s3 = inlined_call_operand.vmem [shape: f32[128,2], index: 3, kind: input, shape index: {}]   ;;  %s1482_s4 = inlined_call_operand.vmem [shape: f32[1,2], index: 4, kind: input, shape index: {}]   ;;  %s1483_s5 = inlined_call_operand.vmem [shape: bf16[256,128], index: 5, kind: output, shape index: {0}]   ;;  %s1484_s6 = inlined_call_operand.vmem [shape: f32[256,1], index: 6, kind: output, shape index: {1}]   ;;  %s1485_s7 = inlined_call_operand.vmem [shape: f32[256,1], index: 7, kind: output, shape index: {2}]  }
   0x1 LB: > { %s944_s25 = sadd.s32 4294967295, %s1137_s24   ;;  %p948_p0 = scmp.ge.s32.totalorder %s1137_s24, 1  ;;  %s1137_s24 = sphi %s1180_s24, %s18_s24  }
   0x2   : > { %p244_p1 = scmp.lt.s32.totalorder %s1137_s24, 3 }
   0x4   : > { %p245_p2 = pnand %p948_p0, %p244_p1 }
   0x5   : > { %s949_s15 = sshll.u32 (!%p245_p2), %s944_s25, 4  ;;  %s1139_s22 = smov (!%p245_p2), 127  }
   0x6   : > { %248 = sbr.rel (%p245_p2) target bundleno = 513 (0x201), region = 40  ;;  %p288_p3 = scmp.lt.s32.totalorder (!%p245_p2), %s949_s15, 31 }
   0xb   : > { %v1032_v0 = vld [vmem:[%s1479_s1 + $0x38] sm:$0xff]  ;;  %v1031_v2 = vld [vmem:[%s1479_s1 + $0x30] sm:$0xff]  ;;  %v1030_v4 = vld [vmem:[%s1479_s1 + $0x28] sm:$0xff]  ;;  %s1487_s15 = smov (!%p288_p3, %s949_s15), 31  ;;  %vm723_vm0 = vcmask 7168  }
   0xc   : > { %v1040_v1 = vld [vmem:[%s1479_s1 + $0x78] sm:$0xff]  ;;  %492 = vmatpush.bf16.msra.mxu0 %v1032_v0  ;;  %1088 = vmatpush.bf16.msra.mxu3 %v1032_v0  ;;  %v1039_v3 = vld [vmem:[%s1479_s1 + $0x70] sm:$0xff]  ;;  %v1038_v5 = vld [vmem:[%s1479_s1 + $0x68] sm:$0xff]  ;;  %s1024_s29 = sshll.u32 %s1487_s15, 4  ;;  %s953_s10 = sshll.u32 %s1487_s15, 2 }
   0xd   : > { %541 = vmatpush.bf16.msra.mxu1 %v1040_v1  ;;  %v1029_v6 = vld [vmem:[%s1479_s1 + $0x20] sm:$0xff]  ;;  %v1028_v8 = vld [vmem:[%s1479_s1 + $0x18] sm:$0xff]  ;;  %v1027_v10 = vld [vmem:[%s1479_s1 + $0x10] sm:$0xff]  ;;  %s1233_s11 = scalar_lea.vmem %s1478_s0, %s1024_s29  ;;  %s1335_s14 = scalar_lea.vmem %s1483_s5, %s953_s10 }
   0xe   : > { %v1037_v7 = vld [vmem:[%s1479_s1 + $0x60] sm:$0xff]  ;;  %v1036_v9 = vld [vmem:[%s1479_s1 + $0x58] sm:$0xff]  ;;  %v1035_v11 = vld [vmem:[%s1479_s1 + $0x50] sm:$0xff]  ;;  %s955_s16 = sshll.u32 %s1487_s15, 3 }
   0xf   : > { %v1026_v12 = vld [vmem:[%s1479_s1 + $0x8] sm:$0xff]  ;;  %v1025_v14 = vld [vmem:[%s1479_s1] sm:$0xff]  ;;  %v314_v16 = vld [vmem:[%s1233_s11 + $0x10] sm:$0xff]  ;;  %s1370_s21 = scalar_lea.vmem %s1484_s6, %s955_s16  ;;  %s1441_s26 = scalar_lea.vmem %s1485_s7, %s955_s16 }
  0x10   : > { %493 = vmatpush.bf16.msra.mxu0 %v1031_v2  ;;  %1089 = vmatpush.bf16.msra.mxu3 %v1031_v2  ;;  %v1034_v13 = vld [vmem:[%s1479_s1 + $0x48] sm:$0xff]  ;;  %v312_v15 = vld [vmem:[%s1233_s11] sm:$0xff]  ;;  %v338_v18 = vld [vmem:[%s1233_s11 + $0xd0] sm:$0xff] }
  0x11   : > { %542 = vmatpush.bf16.msra.mxu1 %v1039_v3  ;;  %v336_v17 = vld [vmem:[%s1233_s11 + $0xc0] sm:$0xff]  ;;  %v313_v20 = vld [vmem:[%s1233_s11 + $0x8] sm:$0xff]  ;;  %v315_v21 = vld [vmem:[%s1233_s11 + $0x18] sm:$0xff]  ;;  %v344_v22 = vpack.c.bf16 %v314_v16, %v312_v15 }
  0x12   : > { %v1033_v19 = vld [vmem:[%s1479_s1 + $0x40] sm:$0xff]  ;;  %v356_v23 = vpack.c.bf16 %v338_v18, %v336_v17  ;;  %v345_v24 = vpack.c.bf16 %v315_v21, %v313_v20  ;;  %v318_v26 = vld [vmem:[%s1233_s11 + $0x30] sm:$0xff]  ;;  %v317_v29 = vld [vmem:[%s1233_s11 + $0x28] sm:$0xff] }
  0x13   : > { %v316_v25 = vld [vmem:[%s1233_s11 + $0x20] sm:$0xff]  ;;  %v342_v28 = vld [vmem:[%s1233_s11 + $0xf0] sm:$0xff]  ;;  %v319_v30 = vld [vmem:[%s1233_s11 + $0x38] sm:$0xff] }
  0x14   : > { %494 = vmatpush.bf16.msra.mxu0 %v1030_v4  ;;  %1090 = vmatpush.bf16.msra.mxu3 %v1030_v4  ;;  %v340_v27 = vld [vmem:[%s1233_s11 + $0xe0] sm:$0xff]  ;;  %v346_v31 = vpack.c.bf16 %v318_v26, %v316_v25  ;;  %v347_v33 = vpack.c.bf16 %v319_v30, %v317_v29  ;;  %v322_v35 = vld [vmem:[%s1233_s11 + $0x50] sm:$0xff]  ;;  %v337_v36 = vld [vmem:[%s1233_s11 + $0xc8] sm:$0xff] }
  0x15   : > { %543 = vmatpush.bf16.msra.mxu1 %v1038_v5  ;;  %v358_v32 = vpack.c.bf16 %v342_v28, %v340_v27  ;;  %v320_v34 = vld [vmem:[%s1233_s11 + $0x40] sm:$0xff]  ;;  %v339_v37 = vld [vmem:[%s1233_s11 + $0xd8] sm:$0xff]  ;;  %v321_v38 = vld [vmem:[%s1233_s11 + $0x48] sm:$0xff] }
  0x16   : > { %v323_v39 = vld [vmem:[%s1233_s11 + $0x58] sm:$0xff]  ;;  %v348_v40 = vpack.c.bf16 %v322_v35, %v320_v34  ;;  %v357_v41 = vpack.c.bf16 %v339_v37, %v337_v36  ;;  %v324_v43 = vld [vmem:[%s1233_s11 + $0x60] sm:$0xff]  ;;  %v326_v44 = vld [vmem:[%s1233_s11 + $0x70] sm:$0xff] }
  0x17   : > { %v349_v42 = vpack.c.bf16 %v323_v39, %v321_v38  ;;  %v341_v45 = vld [vmem:[%s1233_s11 + $0xe8] sm:$0xff]  ;;  %v343_v46 = vld [vmem:[%s1233_s11 + $0xf8] sm:$0xff]  ;;  %v350_v49 = vpack.c.bf16 %v326_v44, %v324_v43  ;;  %v652_v53 = vld [vmem:[%s1481_s3 + $0x70] sm:$0xff] }
  0x18   : > { %495 = vmatpush.bf16.msra.mxu0 %v1029_v6  ;;  %1091 = vmatpush.bf16.msra.mxu3 %v1029_v6  ;;  %v325_v47 = vld [vmem:[%s1233_s11 + $0x68] sm:$0xff]  ;;  %v327_v48 = vld [vmem:[%s1233_s11 + $0x78] sm:$0xff]  ;;  %v359_v50 = vpack.c.bf16 %v343_v46, %v341_v45  ;;  %v650_v55 = vld [vmem:[%s1481_s3 + $0x60] sm:$0xff] }
  0x19   : > { %544 = vmatpush.bf16.msra.mxu1 %v1037_v7  ;;  %v351_v51 = vpack.c.bf16 %v327_v48, %v325_v47  ;;  %v653_v52 = vld [vmem:[%s1481_s3 + $0x78] sm:$0xff]  ;;  %v651_v54 = vld [vmem:[%s1481_s3 + $0x68] sm:$0xff]  ;;  %v328_v57 = vld [vmem:[%s1233_s11 + $0x80] sm:$0xff] }
  0x1a   : > { %658 = vmatpush.msra.mxu2 %v653_v52  ;;  %v649_v56 = vld [vmem:[%s1481_s3 + $0x58] sm:$0xff]  ;;  %v330_v58 = vld [vmem:[%s1233_s11 + $0x90] sm:$0xff]  ;;  %v329_v60 = vld [vmem:[%s1233_s11 + $0x88] sm:$0xff] }
  0x1b   : > { %v648_v59 = vld [vmem:[%s1481_s3 + $0x50] sm:$0xff]  ;;  %v331_v61 = vld [vmem:[%s1233_s11 + $0x98] sm:$0xff]  ;;  %v647_v62 = vld [vmem:[%s1481_s3 + $0x48] sm:$0xff]  ;;  %v352_v63 = vpack.c.bf16 %v330_v58, %v328_v57 }
  0x1c   : > { %496 = vmatpush.bf16.msra.mxu0 %v1028_v8  ;;  %1092 = vmatpush.bf16.msra.mxu3 %v1028_v8  ;;  %v353_v0 = vpack.c.bf16 %v331_v61, %v329_v60  ;;  %v645_v2 = vld [vmem:[%s1481_s3 + $0x38] sm:$0xff]  ;;  %v643_v4 = vld [vmem:[%s1481_s3 + $0x28] sm:$0xff]  ;;  %v332_v6 = vld [vmem:[%s1233_s11 + $0xa0] sm:$0xff] }
  0x1d   : > { %545 = vmatpush.bf16.msra.mxu1 %v1036_v9  ;;  %659 = vmatpush.msra.mxu2 %v652_v53  ;;  %v333_v8 = vld [vmem:[%s1233_s11 + $0xa8] sm:$0xff]  ;;  %v638_v15 = vld [vmem:[%s1481_s3] sm:$0xff] }
  0x1e   : > { %v1327_v16 = vld [vmem:[%s1480_s2] ss:$0 sm:$0xff] }
  0x1f   : > { %660 = vmatpush.msra.mxu2 %v651_v54 }
  0x20   : > { %497 = vmatpush.bf16.msra.mxu0 %v1027_v10  ;;  %1093 = vmatpush.bf16.msra.mxu3 %v1027_v10 }
  0x21   : > { %546 = vmatpush.bf16.msra.mxu1 %v1035_v11  ;;  %661 = vmatpush.msra.mxu2 %v650_v55 }
  0x23   : > { %662 = vmatpush.msra.mxu2 %v649_v56 }
  0x24   : > { %498 = vmatpush.bf16.msra.mxu0 %v1026_v12  ;;  %1094 = vmatpush.bf16.msra.mxu3 %v1026_v12  ;;  %v641_v12 = vld [vmem:[%s1481_s3 + $0x18] sm:$0xff] }
  0x25   : > { %547 = vmatpush.bf16.msra.mxu1 %v1034_v13  ;;  %663 = vmatpush.msra.mxu2 %v648_v59 }
  0x27   : > { %664 = vmatpush.msra.mxu2 %v647_v62 }
  0x28   : > { %499 = vmatpush.bf16.msra.mxu0 %v1025_v14  ;;  %1095 = vmatpush.bf16.msra.mxu3 %v1025_v14  ;;  %v639_v14 = vld [vmem:[%s1481_s3 + $0x8] sm:$0xff] }
  0x29   : > { %548 = vmatpush.bf16.msra.mxu1 %v1033_v19 }
  0x2b   : > { %500 = vmatmul.bf16.vlgmr.msra.gmra.mxu0 %v344_v22  ;;  %530 = vmatmul.bf16.vlgmr.msra.gmra.mxu3 %v356_v23 }
  0x2c   : > { %1096 = vmatpush.bf16.msrb.mxu3 %v1040_v1  ;;  %549 = vmatmul.bf16.vlgmr.msra.gmra.mxu1 %v345_v24  ;;  %v646_v1 = vld [vmem:[%s1481_s3 + $0x40] sm:$0xff] }
  0x2d   : > { %665 = vmatpush.msra.mxu2 %v646_v1 }
  0x2f   : > { %666 = vmatpush.msra.mxu2 %v645_v2 }
  0x30   : > { %1097 = vmatpush.bf16.msrb.mxu3 %v1039_v3  ;;  %v644_v3 = vld [vmem:[%s1481_s3 + $0x30] sm:$0xff] }
  0x31   : > { %667 = vmatpush.msra.mxu2 %v644_v3 }
  0x33   : > { %668 = vmatpush.msra.mxu2 %v643_v4 }
  0x34   : > { %1098 = vmatpush.bf16.msrb.mxu3 %v1038_v5  ;;  %v642_v5 = vld [vmem:[%s1481_s3 + $0x20] sm:$0xff] }
  0x35   : > { %669 = vmatpush.msra.mxu2 %v642_v5 }
  0x37   : > { %670 = vmatpush.msra.mxu2 %v641_v12 }
  0x38   : > { %1099 = vmatpush.bf16.msrb.mxu3 %v1037_v7  ;;  %v334_v7 = vld [vmem:[%s1233_s11 + $0xb0] sm:$0xff] }
  0x39   : > { %v354_v10 = vpack.c.bf16 %v334_v7, %v332_v6 }
  0x3b   : > { %505 = vmatmul.bf16.gmra.mxu0 %v346_v31  ;;  %535 = vmatmul.bf16.gmra.mxu3 %v358_v32 }
  0x3c   : > { %1100 = vmatpush.bf16.msrb.mxu3 %v1036_v9  ;;  %554 = vmatmul.bf16.gmra.mxu1 %v347_v33  ;;  %v335_v9 = vld [vmem:[%s1233_s11 + $0xb8] sm:$0xff] }
  0x40   : > { %1101 = vmatpush.bf16.msrb.mxu3 %v1035_v11  ;;  %v355_v11 = vpack.c.bf16 %v335_v9, %v333_v8 }
  0x44   : > { %1102 = vmatpush.bf16.msrb.mxu3 %v1034_v13  ;;  %v640_v13 = vld [vmem:[%s1481_s3 + $0x10] sm:$0xff] }
  0x45   : > { %671 = vmatpush.msra.mxu2 %v640_v13 }
  0x47   : > { %672 = vmatpush.msra.mxu2 %v639_v14 }
  0x48   : > { %1103 = vmatpush.bf16.msrb.mxu3 %v1033_v19 }
  0x49   : > { %673 = vmatpush.msra.mxu2 %v638_v15 }
  0x4b   : > { %510 = vmatmul.bf16.gmra.mxu0 %v348_v40  ;;  %579 = vmatmul.bf16.vlgmr.msrb.gmra.mxu3 %v357_v41 }
  0x4c   : > { %559 = vmatmul.bf16.gmra.mxu1 %v349_v42  ;;  %1104 = vmatpush.msra.mxu3 %v653_v52 }
  0x4e   : > { %1105 = vmatpush.msra.mxu3 %v652_v53 }
  0x50   : > { %1106 = vmatpush.msra.mxu3 %v651_v54 }
  0x52   : > { %1107 = vmatpush.msra.mxu3 %v650_v55 }
  0x54   : > { %1108 = vmatpush.msra.mxu3 %v649_v56 }
  0x56   : > { %1109 = vmatpush.msra.mxu3 %v648_v59 }
  0x58   : > { %1110 = vmatpush.msra.mxu3 %v647_v62 }
  0x5a   : > { %1111 = vmatpush.msra.mxu3 %v646_v1 }
  0x5b   : > { %515 = vmatmul.bf16.gmra.mxu0 %v350_v49  ;;  %584 = vmatmul.bf16.gmra.mxu3 %v359_v50 }
  0x5c   : > { %564 = vmatmul.bf16.gmra.mxu1 %v351_v51  ;;  %1112 = vmatpush.msra.mxu3 %v645_v2 }
  0x5e   : > { %1113 = vmatpush.msra.mxu3 %v644_v3 }
  0x60   : > { %1114 = vmatpush.msra.mxu3 %v643_v4 }
  0x62   : > { %1115 = vmatpush.msra.mxu3 %v642_v5 }
  0x64   : > { %1116 = vmatpush.msra.mxu3 %v641_v12 }
  0x66   : > { %1117 = vmatpush.msra.mxu3 %v640_v13 }
  0x68   : > { %1118 = vmatpush.msra.mxu3 %v639_v14 }
  0x6a   : > { %1119 = vmatpush.msra.mxu3 %v638_v15 }
  0x6b   : > { %520 = vmatmul.bf16.gmra.mxu0 %v352_v63 }
  0x6c   : > { %569 = vmatmul.bf16.gmra.mxu1 %v353_v0 }
  0x7b   : > { %525 = vmatmul.bf16.gmra.mxu0 %v354_v10 }
  0x7c   : > { %574 = vmatmul.bf16.gmra.mxu1 %v355_v11 }
  0xa8   : > { %v501_v17 = vpop.f32.mrf.mxu0 }
  0xa9   : > { %v502_v18 = vadd.f32 %v1327_v16, %v501_v17  ;;  %v550_v19 = vpop.f32.mrf.mxu1 }
  0xab   : > { %v551_v20 = vadd.f32 %v550_v19, %v502_v18 }
  0xad   : > { %v590_v21 = vmax.f32 %v551_v20, 0.0 }
  0xae   : > { %v531_v22 = vpop.f32.mrf.mxu3 }
  0xaf   : > { %674 = vmatmul.f32.vlgmr.msra.gmra.mxu2 %v590_v21  ;;  %v532_v47 = vadd.f32 %v1327_v16, %v531_v22 }
  0xb0   : > { %v503_v23 = vpop.f32.mrf.mxu0 }
  0xb1   : > { %v504_v24 = vadd.f32 %v1327_v16, %v503_v23  ;;  %v552_v25 = vpop.f32.mrf.mxu1 }
  0xb3   : > { %v553_v26 = vadd.f32 %v552_v25, %v504_v24 }
  0xb5   : > { %v591_v27 = vmax.f32 %v553_v26, 0.0 }
  0xb6   : > { %v533_v28 = vpop.f32.mrf.mxu3 }
  0xb7   : > { %v1044_v29 = vpack.c.bf16 %v591_v27, %v590_v21  ;;  %677 = vmatmul.f32.gmra.mxu2 %v591_v27  ;;  %v534_v56 = vadd.f32 %v1327_v16, %v533_v28 }
  0xb8   : > { %v506_v30 = vpop.f32.mrf.mxu0 }
  0xb9   : > { %1045 = vst [vmem:[%s1335_s14] sm:$0xff] %v1044_v29   ;;  %v507_v31 = vadd.f32 %v1327_v16, %v506_v30  ;;  %v555_v32 = vpop.f32.mrf.mxu1 }
  0xbb   : > { %v556_v33 = vadd.f32 %v555_v32, %v507_v31 }
  0xbd   : > { %v592_v34 = vmax.f32 %v556_v33, 0.0 }
  0xbe   : > { %v536_v35 = vpop.f32.mrf.mxu3 }
  0xbf   : > { %680 = vmatmul.f32.gmra.mxu2 %v592_v34  ;;  %v537_v3 = vadd.f32 %v1327_v16, %v536_v35 }
  0xc0   : > { %v508_v36 = vpop.f32.mrf.mxu0 }
  0xc1   : > { %v509_v37 = vadd.f32 %v1327_v16, %v508_v36  ;;  %v557_v38 = vpop.f32.mrf.mxu1 }
  0xc3   : > { %v558_v39 = vadd.f32 %v557_v38, %v509_v37 }
  0xc5   : > { %v593_v40 = vmax.f32 %v558_v39, 0.0 }
  0xc6   : > { %v538_v41 = vpop.f32.mrf.mxu3 }
  0xc7   : > { %v1049_v42 = vpack.c.bf16 %v593_v40, %v592_v34  ;;  %683 = vmatmul.f32.gmra.mxu2 %v593_v40  ;;  %v539_v12 = vadd.f32 %v1327_v16, %v538_v41 }
  0xc8   : > { %v511_v43 = vpop.f32.mrf.mxu0 }
  0xc9   : > { %1081 = vst [vmem:[%s1335_s14 + $0x8] sm:$0xff] %v1049_v42   ;;  %v512_v44 = vadd.f32 %v1327_v16, %v511_v43  ;;  %v560_v45 = vpop.f32.mrf.mxu1  ;;  %v1363_v42 = vld [vmem:[%s1482_s4] ss:$0 sm:$0xff] }
  0xcb   : > { %v561_v46 = vadd.f32 %v560_v45, %v512_v44 }
  0xcd   : > { %v594_v48 = vmax.f32 %v561_v46, 0.0 }
  0xce   : > { %v580_v49 = vpop.f32.mrf.mxu3 }
  0xcf   : > { %v581_v50 = vadd.f32 %v580_v49, %v532_v47  ;;  %686 = vmatmul.f32.gmra.mxu2 %v594_v48 }
  0xd0   : > { %v513_v51 = vpop.f32.mrf.mxu0 }
  0xd1   : > { %v602_v52 = vmax.f32 %v581_v50, 0.0  ;;  %v514_v53 = vadd.f32 %v1327_v16, %v513_v51  ;;  %v562_v54 = vpop.f32.mrf.mxu1 }
  0xd3   : > { %v563_v55 = vadd.f32 %v562_v54, %v514_v53  ;;  %710 = vmatmul.f32.vlgmr.msra.gmra.mxu3 %v602_v52 }
  0xd5   : > { %v595_v57 = vmax.f32 %v563_v55, 0.0 }
  0xd6   : > { %v582_v58 = vpop.f32.mrf.mxu3 }
  0xd7   : > { %v1054_v59 = vpack.c.bf16 %v595_v57, %v594_v48  ;;  %v583_v60 = vadd.f32 %v582_v58, %v534_v56  ;;  %689 = vmatmul.f32.gmra.mxu2 %v595_v57 }
  0xd8   : > { %v516_v61 = vpop.f32.mrf.mxu0 }
  0xd9   : > { %1082 = vst [vmem:[%s1335_s14 + $0x10] sm:$0xff] %v1054_v59   ;;  %v603_v62 = vmax.f32 %v583_v60, 0.0  ;;  %v517_v63 = vadd.f32 %v1327_v16, %v516_v61  ;;  %v565_v0 = vpop.f32.mrf.mxu1 }
  0xdb   : > { %v1074_v1 = vpack.c.bf16 %v603_v62, %v602_v52  ;;  %v566_v2 = vadd.f32 %v565_v0, %v517_v63  ;;  %713 = vmatmul.f32.gmra.mxu3 %v603_v62 }
  0xdd   : > { %1086 = vst [vmem:[%s1335_s14 + $0x30] sm:$0xff] %v1074_v1   ;;  %v596_v4 = vmax.f32 %v566_v2, 0.0 }
  0xde   : > { %v585_v5 = vpop.f32.mrf.mxu3 }
  0xdf   : > { %v586_v6 = vadd.f32 %v585_v5, %v537_v3  ;;  %692 = vmatmul.f32.gmra.mxu2 %v596_v4 }
  0xe0   : > { %v518_v7 = vpop.f32.mrf.mxu0 }
  0xe1   : > { %v604_v8 = vmax.f32 %v586_v6, 0.0  ;;  %v519_v9 = vadd.f32 %v1327_v16, %v518_v7  ;;  %v567_v10 = vpop.f32.mrf.mxu1 }
  0xe3   : > { %v568_v11 = vadd.f32 %v567_v10, %v519_v9  ;;  %716 = vmatmul.f32.gmra.mxu3 %v604_v8 }
  0xe5   : > { %v597_v13 = vmax.f32 %v568_v11, 0.0 }
  0xe6   : > { %v587_v14 = vpop.f32.mrf.mxu3 }
  0xe7   : > { %v1059_v15 = vpack.c.bf16 %v597_v13, %v596_v4  ;;  %v588_v17 = vadd.f32 %v587_v14, %v539_v12  ;;  %695 = vmatmul.f32.gmra.mxu2 %v597_v13 }
  0xe8   : > { %v521_v18 = vpop.f32.mrf.mxu0 }
  0xe9   : > { %1083 = vst [vmem:[%s1335_s14 + $0x18] sm:$0xff] %v1059_v15   ;;  %v605_v19 = vmax.f32 %v588_v17, 0.0  ;;  %v522_v20 = vadd.f32 %v1327_v16, %v521_v18  ;;  %v570_v21 = vpop.f32.mrf.mxu1 }
  0xeb   : > { %v1079_v22 = vpack.c.bf16 %v605_v19, %v604_v8  ;;  %v571_v23 = vadd.f32 %v570_v21, %v522_v20  ;;  %719 = vmatmul.f32.gmra.mxu3 %v605_v19 }
  0xed   : > { %1087 = vst [vmem:[%s1335_s14 + $0x38] sm:$0xff] %v1079_v22   ;;  %v598_v24 = vmax.f32 %v571_v23, 0.0 }
  0xef   : > { %698 = vmatmul.f32.gmra.mxu2 %v598_v24 }
  0xf0   : > { %v523_v25 = vpop.f32.mrf.mxu0 }
  0xf1   : > { %v524_v26 = vadd.f32 %v1327_v16, %v523_v25  ;;  %v572_v27 = vpop.f32.mrf.mxu1 }
  0xf3   : > { %v573_v28 = vadd.f32 %v572_v27, %v524_v26 }
  0xf5   : > { %v599_v29 = vmax.f32 %v573_v28, 0.0 }
  0xf7   : > { %v1064_v30 = vpack.c.bf16 %v599_v29, %v598_v24  ;;  %701 = vmatmul.f32.gmra.mxu2 %v599_v29 }
  0xf8   : > { %v526_v31 = vpop.f32.mrf.mxu0 }
  0xf9   : > { %1084 = vst [vmem:[%s1335_s14 + $0x20] sm:$0xff] %v1064_v30   ;;  %v527_v32 = vadd.f32 %v1327_v16, %v526_v31  ;;  %v575_v33 = vpop.f32.mrf.mxu1 }
  0xfb   : > { %v576_v34 = vadd.f32 %v575_v33, %v527_v32 }
  0xfd   : > { %v600_v35 = vmax.f32 %v576_v34, 0.0 }
  0xff   : > { %704 = vmatmul.f32.gmra.mxu2 %v600_v35 }
 0x100   : > { %v528_v36 = vpop.f32.mrf.mxu0 }
 0x101   : > { %v529_v37 = vadd.f32 %v1327_v16, %v528_v36  ;;  %v577_v38 = vpop.f32.mrf.mxu1 }
 0x103   : > { %v578_v39 = vadd.f32 %v577_v38, %v529_v37 }
 0x105   : > { %v601_v40 = vmax.f32 %v578_v39, 0.0 }
 0x107   : > { %v1069_v41 = vpack.c.bf16 %v601_v40, %v600_v35  ;;  %707 = vmatmul.f32.gmra.mxu2 %v601_v40 }
 0x109   : > { %1085 = vst [vmem:[%s1335_s14 + $0x28] sm:$0xff] %v1069_v41  }
 0x132   : > { %v675_v16 = vpop.f32.mrf.mxu2 }
 0x133   : > { %v676_v43 = vadd.f32 %v1363_v42, %v675_v16 }
 0x135   : > { %724 = vst.msk [vmem:[%s1370_s21] sm:$0xff] %vm723_vm0, %v676_v43  ;;  %756 = vrot.lane.b32.xlu0 %v676_v43, %s1139_s22 }
 0x13a   : > { %v678_v44 = vpop.f32.mrf.mxu2 }
 0x13b   : > { %v679_v45 = vadd.f32 %v1363_v42, %v678_v44 }
 0x13d   : > { %725 = vst.msk [vmem:[%s1370_s21 + $0x8] sm:$0xff] %vm723_vm0, %v679_v45  ;;  %758 = vrot.lane.b32.xlu0 %v679_v45, %s1139_s22 }
 0x142   : > { %v681_v46 = vpop.f32.mrf.mxu2 }
 0x143   : > { %v682_v47 = vadd.f32 %v1363_v42, %v681_v46 }
 0x145   : > { %726 = vst.msk [vmem:[%s1370_s21 + $0x10] sm:$0xff] %vm723_vm0, %v682_v47  ;;  %760 = vrot.lane.b32.xlu1 %v682_v47, %s1139_s22 }
 0x14a   : > { %v684_v48 = vpop.f32.mrf.mxu2 }
 0x14b   : > { %v685_v49 = vadd.f32 %v1363_v42, %v684_v48 }
 0x14d   : > { %727 = vst.msk [vmem:[%s1370_s21 + $0x18] sm:$0xff] %vm723_vm0, %v685_v49  ;;  %762 = vrot.lane.b32.xlu1 %v685_v49, %s1139_s22 }
 0x152   : > { %v687_v50 = vpop.f32.mrf.mxu2 }
 0x153   : > { %v688_v51 = vadd.f32 %v1363_v42, %v687_v50 }
 0x155   : > { %728 = vst.msk [vmem:[%s1370_s21 + $0x20] sm:$0xff] %vm723_vm0, %v688_v51  ;;  %764 = vrot.lane.b32.xlu2 %v688_v51, %s1139_s22 }
 0x156   : > { %v711_v52 = vpop.f32.mrf.mxu3 }
 0x157   : > { %v712_v53 = vadd.f32 %v1363_v42, %v711_v52 }
 0x159   : > { %736 = vst.msk [vmem:[%s1370_s21 + $0x60] sm:$0xff] %vm723_vm0, %v712_v53  ;;  %780 = vrot.lane.b32.xlu0 %v712_v53, %s1139_s22 }
 0x15a   : > { %v690_v54 = vpop.f32.mrf.mxu2 }
 0x15b   : > { %v691_v55 = vadd.f32 %v1363_v42, %v690_v54 }
 0x15d   : > { %729 = vst.msk [vmem:[%s1370_s21 + $0x28] sm:$0xff] %vm723_vm0, %v691_v55  ;;  %766 = vrot.lane.b32.xlu2 %v691_v55, %s1139_s22 }
 0x15e   : > { %v714_v56 = vpop.f32.mrf.mxu3 }
 0x15f   : > { %v715_v57 = vadd.f32 %v1363_v42, %v714_v56 }
 0x161   : > { %737 = vst.msk [vmem:[%s1370_s21 + $0x68] sm:$0xff] %vm723_vm0, %v715_v57 }
 0x162   : > { %v693_v58 = vpop.f32.mrf.mxu2 }
 0x163   : > { %v694_v59 = vadd.f32 %v1363_v42, %v693_v58 }
 0x165   : > { %730 = vst.msk [vmem:[%s1370_s21 + $0x30] sm:$0xff] %vm723_vm0, %v694_v59  ;;  %768 = vrot.lane.b32.xlu0 %v694_v59, %s1139_s22 }
 0x166   : > { %v717_v60 = vpop.f32.mrf.mxu3 }
 0x167   : > { %v718_v61 = vadd.f32 %v1363_v42, %v717_v60 }
 0x169   : > { %738 = vst.msk [vmem:[%s1370_s21 + $0x70] sm:$0xff] %vm723_vm0, %v718_v61 }
 0x16a   : > { %v696_v62 = vpop.f32.mrf.mxu2 }
 0x16b   : > { %v697_v63 = vadd.f32 %v1363_v42, %v696_v62 }
 0x16d   : > { %731 = vst.msk [vmem:[%s1370_s21 + $0x38] sm:$0xff] %vm723_vm0, %v697_v63  ;;  %770 = vrot.lane.b32.xlu1 %v697_v63, %s1139_s22 }
 0x16e   : > { %v720_v0 = vpop.f32.mrf.mxu3 }
 0x16f   : > { %v721_v1 = vadd.f32 %v1363_v42, %v720_v0 }
 0x171   : > { %739 = vst.msk [vmem:[%s1370_s21 + $0x78] sm:$0xff] %vm723_vm0, %v721_v1 }
 0x172   : > { %v699_v2 = vpop.f32.mrf.mxu2 }
 0x173   : > { %v700_v3 = vadd.f32 %v1363_v42, %v699_v2 }
 0x175   : > { %732 = vst.msk [vmem:[%s1370_s21 + $0x40] sm:$0xff] %vm723_vm0, %v700_v3  ;;  %772 = vrot.lane.b32.xlu2 %v700_v3, %s1139_s22 }
 0x17a   : > { %v702_v4 = vpop.f32.mrf.mxu2 }
 0x17b   : > { %v703_v5 = vadd.f32 %v1363_v42, %v702_v4 }
 0x17d   : > { %733 = vst.msk [vmem:[%s1370_s21 + $0x48] sm:$0xff] %vm723_vm0, %v703_v5  ;;  %774 = vrot.lane.b32.xlu0 %v703_v5, %s1139_s22 }
 0x182   : > { %v705_v6 = vpop.f32.mrf.mxu2 }
 0x183   : > { %v706_v7 = vadd.f32 %v1363_v42, %v705_v6 }
 0x185   : > { %734 = vst.msk [vmem:[%s1370_s21 + $0x50] sm:$0xff] %vm723_vm0, %v706_v7  ;;  %776 = vrot.lane.b32.xlu1 %v706_v7, %s1139_s22  ;;  %786 = vrot.lane.b32.xlu0 %v721_v1, %s1139_s22 }
 0x18a   : > { %v708_v8 = vpop.f32.mrf.mxu2 }
 0x18b   : > { %v709_v9 = vadd.f32 %v1363_v42, %v708_v8 }
 0x18d   : > { %735 = vst.msk [vmem:[%s1370_s21 + $0x58] sm:$0xff] %vm723_vm0, %v709_v9  ;;  %778 = vrot.lane.b32.xlu2 %v709_v9, %s1139_s22  ;;  %782 = vrot.lane.b32.xlu1 %v715_v57, %s1139_s22 }
 0x195   : > { %784 = vrot.lane.b32.xlu2 %v718_v61, %s1139_s22 }
 0x1a7   : > { %v757_v10 = vpop.permute.xlu0 %756 }
 0x1a8   : > { %804 = vst.msk [vmem:[%s1441_s26] sm:$0xff] %vm723_vm0, %v757_v10 }
 0x1af   : > { %v765_v11 = vpop.permute.xlu2 %764  ;;  %v759_v12 = vpop.permute.xlu0 %758 }
 0x1b0   : > { %808 = vst.msk [vmem:[%s1441_s26 + $0x20] sm:$0xff] %vm723_vm0, %v765_v11 }
 0x1b1   : > { %805 = vst.msk [vmem:[%s1441_s26 + $0x8] sm:$0xff] %vm723_vm0, %v759_v12 }
 0x1b7   : > { %v767_v13 = vpop.permute.xlu2 %766  ;;  %v761_v14 = vpop.permute.xlu1 %760 }
 0x1b8   : > { %809 = vst.msk [vmem:[%s1441_s26 + $0x28] sm:$0xff] %vm723_vm0, %v767_v13 }
 0x1b9   : > { %806 = vst.msk [vmem:[%s1441_s26 + $0x10] sm:$0xff] %vm723_vm0, %v761_v14 }
 0x1bf   : > { %v763_v15 = vpop.permute.xlu1 %762 }
 0x1c0   : > { %807 = vst.msk [vmem:[%s1441_s26 + $0x18] sm:$0xff] %vm723_vm0, %v763_v15 }
 0x1cb   : > { %v781_v17 = vpop.permute.xlu0 %780 }
 0x1cc   : > { %816 = vst.msk [vmem:[%s1441_s26 + $0x60] sm:$0xff] %vm723_vm0, %v781_v17 }
 0x1cf   : > { %v773_v18 = vpop.permute.xlu2 %772 }
 0x1d0   : > { %812 = vst.msk [vmem:[%s1441_s26 + $0x40] sm:$0xff] %vm723_vm0, %v773_v18 }
 0x1d7   : > { %v769_v19 = vpop.permute.xlu0 %768 }
 0x1d8   : > { %810 = vst.msk [vmem:[%s1441_s26 + $0x30] sm:$0xff] %vm723_vm0, %v769_v19 }
 0x1df   : > { %v771_v20 = vpop.permute.xlu1 %770 }
 0x1e0   : > { %811 = vst.msk [vmem:[%s1441_s26 + $0x38] sm:$0xff] %vm723_vm0, %v771_v20 }
 0x1e7   : > { %v779_v21 = vpop.permute.xlu2 %778 }
 0x1e8   : > { %815 = vst.msk [vmem:[%s1441_s26 + $0x58] sm:$0xff] %vm723_vm0, %v779_v21 }
 0x1ef   : > { %v785_v22 = vpop.permute.xlu2 %784  ;;  %v775_v23 = vpop.permute.xlu0 %774 }
 0x1f0   : > { %818 = vst.msk [vmem:[%s1441_s26 + $0x70] sm:$0xff] %vm723_vm0, %v785_v22 }
 0x1f1   : > { %813 = vst.msk [vmem:[%s1441_s26 + $0x48] sm:$0xff] %vm723_vm0, %v775_v23 }
 0x1f7   : > { %v777_v24 = vpop.permute.xlu1 %776  ;;  %v787_v25 = vpop.permute.xlu0 %786 }
 0x1f8   : > { %814 = vst.msk [vmem:[%s1441_s26 + $0x50] sm:$0xff] %vm723_vm0, %v777_v24 }
 0x1f9   : > { %819 = vst.msk [vmem:[%s1441_s26 + $0x78] sm:$0xff] %vm723_vm0, %v787_v25 }
 0x1ff   : > { %v783_v26 = vpop.permute.xlu1 %782 }
 0x200   : > { %817 = vst.msk [vmem:[%s1441_s26 + $0x68] sm:$0xff] %vm723_vm0, %v783_v26 }
 0x201 PF: > { %s18_s24 = sadd.s32 1, %s1137_s24  }
 0x202   : > { %p15_p4 = scmp.ge.s32.totalorder %s18_s24, 4  }
 0x204   :  { %17 = sbr.rel (!%p15_p4) target bundleno = 1 (0x1), region = 94 }

// kernel: encoder_forward.11
= control target key start
LH: loop header
LB: loop body
LE: loop exit
PB: predicated region body
PF: predicated region fallthrough
CT: control target
= control target key end

     0   :  { %s1974_s18 = smov 0   ;;  %s1976_s19 = smov 0   ;;  %s2508_s0 = inlined_call_operand.vmem [shape: s8[256,256], index: 0, kind: input, shape index: {}]   ;;  %s2509_s1 = inlined_call_operand.vmem [shape: s8[256,256], index: 1, kind: input, shape index: {}]   ;;  %s2510_s2 = inlined_call_operand.vmem [shape: f32[1,256], index: 2, kind: input, shape index: {}]   ;;  %s2511_s3 = inlined_call_operand.vmem [shape: f32[256,1], index: 3, kind: input, shape index: {}]   ;;  %s2512_s4 = inlined_call_operand.vmem [shape: bf16[256,128], index: 4, kind: input, shape index: {}]   ;;  %s2513_s5 = inlined_call_operand.vmem [shape: f32[256,128], index: 5, kind: output, shape index: {}]  }
   0x1   :  { %s1978_s20 = smov 0  }
   0x2 LB: > { %s27_s21 = sadd.s32 1, %s1936_s19  ;;  %p1618_p0 = scmp.ge.s32.totalorder %s1940_s20, 1  ;;  %s1940_s20 = sphi %s1978_s20, %s15_s20   ;;  %s1936_s19 = sphi %s1976_s19, %s2515_s19   ;;  %s1932_s18 = sphi %s1974_s18, %s2514_s18  }
   0x3   : > { %p29_p1 = scmp.ge.s32.totalorder %s27_s21, 2  ;;  %p259_p2 = scmp.lt.s32.totalorder %s1940_s20, 3 }
   0x5   : > { %s2517_s21 = smov (%p29_p1, %s27_s21), 0  ;;  %p260_p3 = pnand %p1618_p0, %p259_p2 }
   0x6   : > { %s1625_s22 = sshll.u32 (!%p260_p3), %s1932_s18, 4  ;;  %s1619_s27 = sshll.u32 (!%p260_p3), %s1932_s18, 2 }
   0x7   : > { %263 = sbr.rel (%p260_p3) target bundleno = 486 (0x1e6), region = 40  ;;  %p346_p4 = scmp.lt.s32.totalorder (!%p260_p3), %s1625_s22, 31 }
   0x8   : > { %p318_p5 = scmp.lt.s32.totalorder (!%p260_p3), %s1619_s27, 7 }
   0xc   : > { %v1942_v0 = vmov 0   ;;  %s2519_s22 = smov (!%p346_p4, %s1625_s22), 31  ;;  %s2521_s27 = smov (!%p318_p5, %s1619_s27), 7  ;;  %v544_v19 = vld [vmem:[%s2510_s2] sm:$0x3]  ;;  %vm383_vm0 = vcmask 7168  }
   0xd   : > { %1757 = vset.pattern.permute.xlu2 %v1942_v0  ;;  %1756 = vset.pattern.permute.xlu1 %v1942_v0  ;;  %s1626_s23 = sshll.u32 %s2519_s22, 3  ;;  %s1695_s28 = sshll.u32 %s2521_s27, 4  ;;  %v2055_v26 = vperm.slane %v544_v19, 0  ;;  %v2063_v31 = vperm.slane %v544_v19, 1 }
   0xe   : > { %1755 = vset.pattern.permute.xlu0 %v1942_v0  ;;  %s2003_s26 = scalar_lea.vmem %s2511_s3, %s1626_s23  ;;  %s2025_s6 = scalar_lea.vmem %s2508_s0, %s1695_s28 }
   0xf   : > { %v592_v1 = vld [vmem:[%s2003_s26 + $0x50] sm:$0xff]  ;;  %v590_v2 = vld [vmem:[%s2003_s26 + $0x40] sm:$0xff]  ;;  %v593_v4 = vld [vmem:[%s2003_s26 + $0x58] sm:$0xff]  ;;  %s2030_s9 = scalar_lea.vmem %s2509_s1, %s1695_s28 }
  0x10   : > { %v582_v3 = vld [vmem:[%s2003_s26] sm:$0xff]  ;;  %650 = vperm.xlu2 %1757, %v592_v1   ;;  %640 = vperm.xlu0 %1755, %v590_v2   ;;  %v591_v5 = vld [vmem:[%s2003_s26 + $0x48] sm:$0xff]  ;;  %v584_v8 = vld [vmem:[%s2003_s26 + $0x10] sm:$0xff] }
  0x11   : > { %600 = vperm.xlu1 %1756, %v582_v3   ;;  %v583_v6 = vld [vmem:[%s2003_s26 + $0x8] sm:$0xff]  ;;  %v594_v7 = vld [vmem:[%s2003_s26 + $0x60] sm:$0xff]  ;;  %v585_v9 = vld [vmem:[%s2003_s26 + $0x18] sm:$0xff] }
  0x12   : > { %v587_v10 = vld [vmem:[%s2003_s26 + $0x28] sm:$0xff]  ;;  %v586_v12 = vld [vmem:[%s2003_s26 + $0x20] sm:$0xff]  ;;  %v588_v13 = vld [vmem:[%s2003_s26 + $0x30] sm:$0xff] }
  0x13   : > { %v595_v11 = vld [vmem:[%s2003_s26 + $0x68] sm:$0xff]  ;;  %v596_v14 = vld [vmem:[%s2003_s26 + $0x70] sm:$0xff]  ;;  %v597_v15 = vld [vmem:[%s2003_s26 + $0x78] sm:$0xff] }
  0x14   : > { %v589_v16 = vld [vmem:[%s2003_s26 + $0x38] sm:$0xff]  ;;  %v2033_v17 = vld [vmem:[%s2025_s6 + $0x20] sm:$0xff]  ;;  %v2036_v18 = vld [vmem:[%s2025_s6 + $0x28] sm:$0xff] }
  0x15   : > { %v428_v20 = vunpack.c.2.s8 %v2033_v17  ;;  %v2043_v21 = vld [vmem:[%s2030_s9 + $0x20] sm:$0xff]  ;;  %v429_v22 = vunpack.c.2.s8 %v2036_v18  ;;  %v2047_v23 = vld [vmem:[%s2030_s9 + $0x28] sm:$0xff]  ;;  %v2050_v24 = vld [vmem:[%s2025_s6 + $0x30] sm:$0xff]  ;;  %v430_v28 = vunpack.c.3.s8 %v2033_v17  ;;  %v431_v29 = vunpack.c.3.s8 %v2036_v18 }
  0x16   : > { %v2053_v25 = vld [vmem:[%s2025_s6 + $0x38] sm:$0xff]  ;;  %v500_v27 = vunpack.c.2.s8 %v2043_v21  ;;  %v2061_v30 = vld [vmem:[%s2030_s9 + $0x30] sm:$0xff]  ;;  %v501_v33 = vunpack.c.2.s8 %v2047_v23  ;;  %v432_v34 = vunpack.c.0.s8 %v2050_v24  ;;  %v502_v37 = vunpack.c.3.s8 %v2043_v21  ;;  %v2101_v2 = vld [vmem:[%s2025_s6] sm:$0xff] }
  0x17   : > { %v460_v32 = vcvt.s32.f32 %v428_v20  ;;  %v2068_v35 = vld [vmem:[%s2030_s9 + $0x38] sm:$0xff]  ;;  %v461_v36 = vcvt.s32.f32 %v429_v22  ;;  %v503_v38 = vunpack.c.3.s8 %v2047_v23  ;;  %v433_v39 = vunpack.c.0.s8 %v2053_v25  ;;  %v2077_v46 = vld [vmem:[%s2025_s6 + $0x10] sm:$0xff] }
  0x18   : > { %655 = vperm.xlu2 %1757, %v593_v4   ;;  %645 = vperm.xlu0 %1755, %v591_v5   ;;  %v504_v40 = vunpack.c.0.s8 %v2061_v30  ;;  %v424_v41 = vunpack.c.0.s8 %v2033_v17  ;;  %v532_v42 = vcvt.s32.f32 %v500_v27  ;;  %v462_v43 = vcvt.s32.f32 %v430_v28  ;;  %v2082_v51 = vld [vmem:[%s2025_s6 + $0x18] sm:$0xff]  ;;  %v2086_v56 = vld [vmem:[%s2030_s9 + $0x10] sm:$0xff] }
  0x19   : > { %605 = vperm.xlu1 %1756, %v583_v6   ;;  %v463_v44 = vcvt.s32.f32 %v431_v29  ;;  %v505_v45 = vunpack.c.0.s8 %v2068_v35  ;;  %v533_v47 = vcvt.s32.f32 %v501_v33  ;;  %v570_v48 = vmul.f32 %v2055_v26, %v460_v32  ;;  %v2093_v61 = vld [vmem:[%s2030_s9 + $0x18] sm:$0xff]  ;;  %v2126_v29 = vld [vmem:[%s2030_s9 + $0x8] sm:$0xff] }
  0x1a   : > { %v464_v49 = vcvt.s32.f32 %v432_v34  ;;  %v425_v50 = vunpack.c.0.s8 %v2036_v18  ;;  %v571_v52 = vmul.f32 %v2063_v31, %v461_v36  ;;  %v534_v53 = vcvt.s32.f32 %v502_v37  ;;  %v1704_v32 = vld [vmem:[%s2512_s4 + $0x38] sm:$0xff] }
  0x1b   : > { %v535_v54 = vcvt.s32.f32 %v503_v38  ;;  %v465_v55 = vcvt.s32.f32 %v433_v39  ;;  %v2088_v57 = vcvt.s32.f32 %v504_v40  ;;  %v456_v58 = vcvt.s32.f32 %v424_v41  ;;  %v1712_v33 = vld [vmem:[%s2512_s4 + $0x78] sm:$0xff]  ;;  %1191 = vmatpush.bf16.msra.mxu0 %v1704_v32  ;;  %1713 = vmatpush.bf16.msra.mxu2 %v1704_v32 }
  0x1c   : > { %v496_v59 = vunpack.c.0.s8 %v2043_v21  ;;  %v418_v60 = vunpack.c.1.s8 %v2077_v46  ;;  %v572_v62 = vmul.f32 %v2055_v26, %v462_v43  ;;  %v573_v63 = vmul.f32 %v2063_v31, %v463_v44  ;;  %1240 = vmatpush.bf16.msra.mxu1 %v1712_v33  ;;  %1721 = vmatpush.bf16.msra.mxu3 %v1712_v33 }
  0x1d   : > { %v2097_v0 = vcvt.s32.f32 %v505_v45  ;;  %v419_v1 = vunpack.c.1.s8 %v2082_v51  ;;  %v2104_v4 = vmul.f32 %v2055_v26, %v464_v49  ;;  %v457_v5 = vcvt.s32.f32 %v425_v50 }
  0x1e   : > { %v497_v6 = vunpack.c.0.s8 %v2047_v23  ;;  %v408_v19 = vunpack.c.0.s8 %v2101_v2  ;;  %v481_v45 = vunpack.c.0.s8 %v2126_v29  ;;  %v498_v50 = vunpack.c.1.s8 %v2043_v21 }
  0x1f   : > { %v451_v27 = vcvt.s32.f32 %v419_v1  ;;  %v2137_v36 = vmul.f32 %v2063_v31, %v457_v5  ;;  %v492_v21 = vunpack.c.2.s8 %v2086_v56 }
  0x20   : > { %660 = vperm.xlu2 %1757, %v594_v7   ;;  %610 = vperm.xlu0 %1755, %v584_v8   ;;  %v490_v7 = vunpack.c.1.s8 %v2086_v56  ;;  %v2109_v8 = vld [vmem:[%s2025_s6 + $0x8] sm:$0xff]  ;;  %v2134_v34 = vcvt.s32.f32 %v497_v6  ;;  %v440_v44 = vcvt.s32.f32 %v408_v19  ;;  %v410_v19 = vunpack.c.1.s8 %v2101_v2  ;;  %s2479_s6 = scalar_lea.vmem %s2513_s5, %s1626_s23 }
  0x21   : > { %615 = vperm.xlu1 %1756, %v585_v9   ;;  %v409_v28 = vunpack.c.0.s8 %v2109_v8 }
  0x22   : > { %v2139_v37 = vcvt.s32.f32 %v490_v7  ;;  %v2162_v5 = vmul.f32 %v2055_v26, %v440_v44  ;;  %v1703_v7 = vld [vmem:[%s2512_s4 + $0x30] sm:$0xff]  ;;  %v1710_v44 = vld [vmem:[%s2512_s4 + $0x68] sm:$0xff] }
  0x23   : > { %v441_v49 = vcvt.s32.f32 %v409_v28  ;;  %1192 = vmatpush.bf16.msra.mxu0 %v1703_v7  ;;  %1714 = vmatpush.bf16.msra.mxu2 %v1703_v7  ;;  %v413_v7 = vunpack.c.2.s8 %v2109_v8 }
  0x28   : > { %625 = vperm.xlu2 %1757, %v587_v10   ;;  %665 = vperm.xlu0 %1755, %v595_v11   ;;  %v2112_v11 = vmul.f32 %v2063_v31, %v465_v55  ;;  %v499_v55 = vunpack.c.1.s8 %v2047_v23  ;;  %v1711_v23 = vld [vmem:[%s2512_s4 + $0x70] sm:$0xff] }
  0x29   : > { %620 = vperm.xlu1 %1756, %v586_v12   ;;  %v491_v12 = vunpack.c.1.s8 %v2093_v61  ;;  %1241 = vmatpush.bf16.msra.mxu1 %v1711_v23 }
  0x2a   : > { %1722 = vmatpush.bf16.msra.mxu3 %v1711_v23 }
  0x2b   : > { %v2142_v41 = vcvt.s32.f32 %v491_v12  ;;  %v2176_v12 = vcvt.s32.f32 %v499_v55  ;;  %v442_v55 = vcvt.s32.f32 %v410_v19 }
  0x2d   : > { %1242 = vmatpush.bf16.msra.mxu1 %v1710_v44 }
  0x2e   : > { %1723 = vmatpush.bf16.msra.mxu3 %v1710_v44  ;;  %v445_v44 = vcvt.s32.f32 %v413_v7 }
  0x30   : > { %630 = vperm.xlu2 %1757, %v588_v13   ;;  %670 = vperm.xlu0 %1755, %v596_v14   ;;  %v2116_v13 = vld [vmem:[%s2030_s9] sm:$0xff]  ;;  %v2118_v14 = vcvt.s32.f32 %v496_v59 }
  0x31   : > { %675 = vperm.xlu1 %1756, %v597_v15   ;;  %v2121_v15 = vmul.f32 %v2055_v26, %v456_v58  ;;  %v480_v38 = vunpack.c.0.s8 %v2116_v13  ;;  %v420_v58 = vunpack.c.2.s8 %v2077_v46  ;;  %v484_v23 = vunpack.c.2.s8 %v2116_v13 }
  0x38   : > { %635 = vperm.xlu0 %1755, %v589_v16   ;;  %v450_v16 = vcvt.s32.f32 %v418_v60 }
  0x3a   : > { %v2146_v43 = vmul.f32 %v2055_v26, %v450_v16  ;;  %v452_v16 = vcvt.s32.f32 %v420_v58 }
  0x6a   : > { %v651_v3 = vpop.permute.xlu2 %650 }
  0x6b   : > { %v698_v9 = vmul.f32 %v651_v3, %v532_v42  ;;  %v699_v10 = vmul.f32 %v651_v3, %v533_v47  ;;  %v426_v42 = vunpack.c.1.s8 %v2033_v17  ;;  %v427_v47 = vunpack.c.1.s8 %v2036_v18 }
  0x6c   : > { %v2154_v17 = vcvt.s32.f32 %v480_v38  ;;  %v421_v18 = vunpack.c.2.s8 %v2082_v51  ;;  %v2159_v3 = vcvt.s32.f32 %v481_v45 }
  0x6d   : > { %v730_v20 = vadd.f32 %v698_v9, %v570_v48  ;;  %v731_v22 = vadd.f32 %v699_v10, %v571_v52  ;;  %v2151_v48 = vmul.f32 %v2063_v31, %v451_v27  ;;  %v458_v1 = vcvt.s32.f32 %v426_v42  ;;  %v1702_v42 = vld [vmem:[%s2512_s4 + $0x28] sm:$0xff] }
  0x6e   : > { %v459_v6 = vcvt.s32.f32 %v427_v47  ;;  %v2172_v9 = vmul.f32 %v2063_v31, %v441_v49  ;;  %v2174_v10 = vcvt.s32.f32 %v498_v50  ;;  %v482_v47 = vunpack.c.1.s8 %v2116_v13  ;;  %1193 = vmatpush.bf16.msra.mxu0 %v1702_v42  ;;  %1715 = vmatpush.bf16.msra.mxu2 %v1702_v42 }
  0x6f   : > { %v762_v39 = vmul.f32 0.5, %v730_v20  ;;  %v763_v40 = vmul.f32 0.5, %v731_v22  ;;  %v411_v20 = vunpack.c.1.s8 %v2109_v8  ;;  %v483_v49 = vunpack.c.1.s8 %v2126_v29 }
  0x70   : > { %v2184_v38 = vmul.f32 %v2063_v31, %v459_v6 }
  0x71   : > { %1758 = vtanh.f32 %v762_v39  ;;  %v493_v39 = vunpack.c.2.s8 %v2093_v61  ;;  %v443_v58 = vcvt.s32.f32 %v411_v20  ;;  %v2212_v20 = vcvt.s32.f32 %v482_v47 }
  0x72   : > { %1760 = vtanh.f32 %v763_v40  ;;  %v656_v52 = vpop.permute.xlu2 %655  ;;  %v2187_v40 = vcvt.s32.f32 %v492_v21  ;;  %v2201_v21 = vmul.f32 %v2055_v26, %v452_v16  ;;  %v2217_v16 = vmul.f32 %v2055_v26, %v442_v55 }
  0x73   : > { %v700_v59 = vmul.f32 %v656_v52, %v534_v53  ;;  %v701_v60 = vmul.f32 %v656_v52, %v535_v54  ;;  %v2206_v19 = vcvt.s32.f32 %v493_v39 }
  0x75   : > { %v732_v53 = vadd.f32 %v700_v59, %v572_v62  ;;  %v733_v54 = vadd.f32 %v701_v60, %v573_v63  ;;  %v2181_v62 = vmul.f32 %v2055_v26, %v458_v1  ;;  %v453_v63 = vcvt.s32.f32 %v421_v18 }
  0x76   : > { %v412_v18 = vunpack.c.2.s8 %v2101_v2 }
  0x77   : > { %v1759_v22 = vpop.eup %1758  ;;  %v764_v27 = vmul.f32 0.5, %v732_v53  ;;  %v765_v28 = vmul.f32 0.5, %v733_v54 }
  0x78   : > { %v1761_v32 = vpop.eup %1760  ;;  %v826_v33 = vadd.f32 1.0, %v1759_v22  ;;  %v2214_v22 = vcvt.s32.f32 %v483_v49  ;;  %v414_v49 = vunpack.c.3.s8 %v2101_v2 }
  0x79   : > { %v827_v45 = vadd.f32 1.0, %v1761_v32  ;;  %1762 = vtanh.f32 %v764_v27  ;;  %v2220_v32 = vmul.f32 %v2063_v31, %v443_v58 }
  0x7a   : > { %v858_v50 = vmul.f32 0.5, %v826_v33  ;;  %1764 = vtanh.f32 %v765_v28  ;;  %v661_v52 = vpop.permute.xlu2 %660  ;;  %v485_v33 = vunpack.c.2.s8 %v2126_v29 }
  0x7b   : > { %v859_v59 = vmul.f32 0.5, %v827_v45  ;;  %v702_v60 = vmul.f32 %v661_v52, %v2088_v57  ;;  %v703_v1 = vmul.f32 %v661_v52, %v2097_v0  ;;  %v2209_v57 = vmul.f32 %v2063_v31, %v453_v63  ;;  %v1701_v63 = vld [vmem:[%s2512_s4 + $0x20] sm:$0xff] }
  0x7c   : > { %v910_v6 = vmul.f32 1.442695, %v858_v50  ;;  %v2229_v45 = vcvt.s32.f32 %v484_v23  ;;  %v415_v50 = vunpack.c.3.s8 %v2109_v8  ;;  %1194 = vmatpush.bf16.msra.mxu0 %v1701_v63  ;;  %1716 = vmatpush.bf16.msra.mxu2 %v1701_v63  ;;  %v1700_v8 = vld [vmem:[%s2512_s4 + $0x18] sm:$0xff] }
  0x7d   : > { %v912_v53 = vmul.f32 1.442695, %v859_v59  ;;  %v734_v54 = vadd.f32 %v702_v60, %v2104_v4  ;;  %v735_v0 = vadd.f32 %v703_v1, %v2112_v11  ;;  %v444_v4 = vcvt.s32.f32 %v412_v18  ;;  %v1709_v11 = vld [vmem:[%s2512_s4 + $0x60] sm:$0xff]  ;;  %v1708_v23 = vld [vmem:[%s2512_s4 + $0x58] sm:$0xff] }
  0x7e   : > { %1766 = vpow2.f32 %v910_v6  ;;  %v486_v60 = vunpack.c.3.s8 %v2116_v13  ;;  %1243 = vmatpush.bf16.msra.mxu1 %v1709_v11  ;;  %1724 = vmatpush.bf16.msra.mxu3 %v1709_v11 }
  0x7f   : > { %v1763_v27 = vpop.eup %1762  ;;  %v766_v28 = vmul.f32 0.5, %v734_v54  ;;  %1768 = vpow2.f32 %v912_v53  ;;  %v767_v55 = vmul.f32 0.5, %v735_v0 }
  0x80   : > { %v1765_v39 = vpop.eup %1764  ;;  %v828_v42 = vadd.f32 1.0, %v1763_v27  ;;  %1195 = vmatpush.bf16.msra.mxu0 %v1700_v8  ;;  %1717 = vmatpush.bf16.msra.mxu2 %v1700_v8 }
  0x81   : > { %v829_v47 = vadd.f32 1.0, %v1765_v39  ;;  %1770 = vtanh.f32 %v766_v28 }
  0x82   : > { %v860_v52 = vmul.f32 0.5, %v828_v42  ;;  %v641_v58 = vpop.permute.xlu0 %640  ;;  %v626_v59 = vpop.permute.xlu2 %625  ;;  %1772 = vtanh.f32 %v767_v55  ;;  %1244 = vmatpush.bf16.msra.mxu1 %v1708_v23  ;;  %1725 = vmatpush.bf16.msra.mxu3 %v1708_v23 }
  0x83   : > { %v861_v1 = vmul.f32 0.5, %v829_v47  ;;  %v694_v18 = vmul.f32 %v641_v58, %v2118_v14  ;;  %v695_v6 = vmul.f32 %v641_v58, %v2134_v34  ;;  %v688_v2 = vmul.f32 %v626_v59, %v2139_v37  ;;  %v601_v7 = vpop.permute.xlu1 %600 }
  0x84   : > { %v914_v53 = vmul.f32 1.442695, %v860_v52  ;;  %v689_v13 = vmul.f32 %v626_v59, %v2142_v41  ;;  %v678_v54 = vmul.f32 %v601_v7, %v2154_v17  ;;  %v679_v14 = vmul.f32 %v601_v7, %v2159_v3  ;;  %v2249_v28 = vpop.eup %1766 }
  0x85   : > { %v916_v0 = vmul.f32 1.442695, %v861_v1  ;;  %v726_v34 = vadd.f32 %v694_v18, %v2121_v15  ;;  %v727_v37 = vadd.f32 %v695_v6, %v2137_v36  ;;  %v720_v27 = vadd.f32 %v688_v2, %v2146_v43  ;;  %v2254_v3 = vpop.eup %1768 }
  0x86   : > { %v721_v63 = vadd.f32 %v689_v13, %v2151_v48  ;;  %v710_v41 = vadd.f32 %v678_v54, %v2162_v5  ;;  %v487_v17 = vunpack.c.3.s8 %v2126_v29  ;;  %1774 = vpow2.f32 %v914_v53 }
  0x87   : > { %v758_v15 = vmul.f32 0.5, %v726_v34  ;;  %v759_v36 = vmul.f32 0.5, %v727_v37  ;;  %v752_v11 = vmul.f32 0.5, %v720_v27  ;;  %v2256_v43 = vpop.eup %1770  ;;  %1776 = vpow2.f32 %v916_v0 }
  0x88   : > { %v753_v39 = vmul.f32 0.5, %v721_v63  ;;  %v711_v42 = vadd.f32 %v679_v14, %v2172_v9  ;;  %v2259_v47 = vcvt.s32.f32 %v485_v33  ;;  %v742_v48 = vmul.f32 0.5, %v710_v41 }
  0x89   : > { %1778 = vtanh.f32 %v758_v15  ;;  %v2262_v29 = vmul.f32 %v2055_v26, %v444_v4  ;;  %v446_v5 = vcvt.s32.f32 %v414_v49  ;;  %v2265_v58 = vmul.f32 %v2063_v31, %v445_v44  ;;  %v2273_v4 = vpop.eup %1772 }
  0x8a   : > { %1780 = vtanh.f32 %v759_v36  ;;  %v646_v52 = vpop.permute.xlu0 %645  ;;  %v631_v55 = vpop.permute.xlu2 %630  ;;  %v447_v59 = vcvt.s32.f32 %v415_v50  ;;  %v2267_v1 = vcvt.s32.f32 %v486_v60  ;;  %v2271_v6 = vcvt.s32.f32 %v487_v17  ;;  %v1699_v60 = vld [vmem:[%s2512_s4 + $0x10] sm:$0xff]  ;;  %v1706_v17 = vld [vmem:[%s2512_s4 + $0x48] sm:$0xff] }
  0x8b   : > { %1782 = vtanh.f32 %v752_v11  ;;  %v696_v9 = vmul.f32 %v646_v52, %v2174_v10  ;;  %v697_v33 = vmul.f32 %v646_v52, %v2176_v12  ;;  %v606_v18 = vpop.permute.xlu1 %605  ;;  %v743_v49 = vmul.f32 0.5, %v711_v42  ;;  %1196 = vmatpush.bf16.msra.mxu0 %v1699_v60  ;;  %1718 = vmatpush.bf16.msra.mxu2 %v1699_v60 }
  0x8c   : > { %1784 = vtanh.f32 %v753_v39  ;;  %v690_v2 = vmul.f32 %v631_v55, %v2187_v40  ;;  %v691_v44 = vmul.f32 %v631_v55, %v2206_v19  ;;  %v2277_v7 = vpop.eup %1774  ;;  %v2282_v12 = vmul.f32 %v2055_v26, %v446_v5  ;;  %v1707_v40 = vld [vmem:[%s2512_s4 + $0x50] sm:$0xff] }
  0x8d   : > { %1786 = vtanh.f32 %v742_v48  ;;  %v728_v50 = vadd.f32 %v696_v9, %v2181_v62  ;;  %v729_v10 = vadd.f32 %v697_v33, %v2184_v38  ;;  %v2290_v8 = vpop.eup %1776  ;;  %v680_v62 = vmul.f32 %v606_v18, %v2212_v20  ;;  %1245 = vmatpush.bf16.msra.mxu1 %v1707_v40  ;;  %1726 = vmatpush.bf16.msra.mxu3 %v1707_v40 }
  0x8e   : > { %v722_v19 = vadd.f32 %v690_v2, %v2201_v21  ;;  %v723_v23 = vadd.f32 %v691_v44, %v2209_v57  ;;  %v2296_v38 = vmul.f32 %v2063_v31, %v447_v59  ;;  %v681_v14 = vmul.f32 %v606_v18, %v2214_v22  ;;  %v1698_v22 = vld [vmem:[%s2512_s4 + $0x8] sm:$0xff] }
  0x8f   : > { %v1779_v53 = vpop.eup %1778  ;;  %v760_v13 = vmul.f32 0.5, %v728_v50  ;;  %v761_v54 = vmul.f32 0.5, %v729_v10  ;;  %v434_v0 = vunpack.c.1.s8 %v2050_v24  ;;  %1788 = vtanh.f32 %v743_v49  ;;  %1197 = vmatpush.bf16.msra.mxu0 %v1698_v22  ;;  %1719 = vmatpush.bf16.msra.mxu2 %v1698_v22 }
  0x90   : > { %v1781_v34 = vpop.eup %1780  ;;  %v822_v37 = vadd.f32 1.0, %v1779_v53  ;;  %v754_v21 = vmul.f32 0.5, %v722_v19  ;;  %v755_v27 = vmul.f32 0.5, %v723_v23  ;;  %v712_v63 = vadd.f32 %v680_v62, %v2217_v16 }
  0x91   : > { %v1783_v57 = vpop.eup %1782  ;;  %v823_v20 = vadd.f32 1.0, %v1781_v34  ;;  %1790 = vtanh.f32 %v760_v13  ;;  %v435_v41 = vunpack.c.1.s8 %v2053_v25  ;;  %v713_v39 = vadd.f32 %v681_v14, %v2220_v32  ;;  %1246 = vmatpush.bf16.msra.mxu1 %v1706_v17  ;;  %1727 = vmatpush.bf16.msra.mxu3 %v1706_v17 }
  0x92   : > { %v1785_v15 = vpop.eup %1784  ;;  %v854_v36 = vmul.f32 0.5, %v822_v37  ;;  %v816_v11 = vadd.f32 1.0, %v1783_v57  ;;  %1792 = vtanh.f32 %v761_v54  ;;  %v744_v16 = vmul.f32 0.5, %v712_v63  ;;  %v611_v52 = vpop.permute.xlu0 %610 }
  0x93   : > { %v1787_v42 = vpop.eup %1786  ;;  %v855_v48 = vmul.f32 0.5, %v823_v20  ;;  %v817_v5 = vadd.f32 1.0, %v1785_v15  ;;  %1794 = vtanh.f32 %v754_v21  ;;  %v506_v49 = vunpack.c.1.s8 %v2061_v30  ;;  %v616_v63 = vpop.permute.xlu1 %615 }
  0x94   : > { %v902_v55 = vmul.f32 1.442695, %v854_v36  ;;  %v848_v59 = vmul.f32 0.5, %v816_v11  ;;  %v806_v9 = vadd.f32 1.0, %v1787_v42  ;;  %1796 = vtanh.f32 %v755_v27 }
  0x95   : > { %v904_v33 = vmul.f32 1.442695, %v855_v48  ;;  %v849_v18 = vmul.f32 0.5, %v817_v5  ;;  %1798 = vtanh.f32 %v744_v16  ;;  %v1789_v32 = vpop.eup %1788  ;;  %v745_v50 = vmul.f32 0.5, %v713_v39 }
  0x96   : > { %v890_v2 = vmul.f32 1.442695, %v848_v59  ;;  %v838_v44 = vmul.f32 0.5, %v806_v9  ;;  %v682_v10 = vmul.f32 %v611_v52, %v2229_v45  ;;  %1800 = vpow2.f32 %v902_v55 }
  0x97   : > { %v1791_v60 = vpop.eup %1790  ;;  %v892_v40 = vmul.f32 1.442695, %v849_v18  ;;  %v807_v19 = vadd.f32 1.0, %v1789_v32  ;;  %v683_v23 = vmul.f32 %v611_v52, %v2259_v47  ;;  %1802 = vpow2.f32 %v904_v33 }
  0x98   : > { %v1793_v62 = vpop.eup %1792  ;;  %v870_v53 = vmul.f32 1.442695, %v838_v44  ;;  %v824_v13 = vadd.f32 1.0, %v1791_v60  ;;  %v466_v54 = vcvt.s32.f32 %v434_v0  ;;  %1804 = vpow2.f32 %v890_v2  ;;  %v1697_v0 = vld [vmem:[%s2512_s4] sm:$0xff] }
  0x99   : > { %v1795_v14 = vpop.eup %1794  ;;  %v839_v34 = vmul.f32 0.5, %v807_v19  ;;  %v825_v37 = vadd.f32 1.0, %v1793_v62  ;;  %v714_v21 = vadd.f32 %v682_v10, %v2262_v29  ;;  %1806 = vpow2.f32 %v892_v40  ;;  %v1705_v29 = vld [vmem:[%s2512_s4 + $0x40] sm:$0xff]  ;;  %1198 = vmatpush.bf16.msra.mxu0 %v1697_v0  ;;  %1720 = vmatpush.bf16.msra.mxu2 %v1697_v0 }
  0x9a   : > { %v1797_v27 = vpop.eup %1796  ;;  %v856_v45 = vmul.f32 0.5, %v824_v13  ;;  %v818_v57 = vadd.f32 1.0, %v1795_v14  ;;  %v715_v20 = vadd.f32 %v683_v23, %v2265_v58  ;;  %1808 = vtanh.f32 %v745_v50  ;;  %1247 = vmatpush.bf16.msra.mxu1 %v1705_v29  ;;  %1728 = vmatpush.bf16.msra.mxu3 %v1705_v29  ;;  %v666_v10 = vpop.permute.xlu0 %665 }
  0x9b   : > { %v1799_v22 = vpop.eup %1798  ;;  %v872_v47 = vmul.f32 1.442695, %v839_v34  ;;  %v857_v17 = vmul.f32 0.5, %v825_v37  ;;  %v819_v15 = vadd.f32 1.0, %v1797_v27  ;;  %1810 = vpow2.f32 %v870_v53 }
  0x9c   : > { %v906_v36 = vmul.f32 1.442695, %v856_v45  ;;  %v850_v11 = vmul.f32 0.5, %v818_v57  ;;  %v808_v39 = vadd.f32 1.0, %v1799_v22  ;;  %v2320_v42 = vpop.eup %1800  ;;  %v746_v5 = vmul.f32 0.5, %v714_v21 }
  0x9d   : > { %v908_v58 = vmul.f32 1.442695, %v857_v17  ;;  %v851_v48 = vmul.f32 0.5, %v819_v15  ;;  %v684_v16 = vmul.f32 %v616_v63, %v2267_v1  ;;  %v2323_v52 = vpop.eup %1802  ;;  %1812 = vpow2.f32 %v872_v47  ;;  %v621_v17 = vpop.permute.xlu1 %620 }
  0x9e   : > { %v894_v55 = vmul.f32 1.442695, %v850_v11  ;;  %v840_v59 = vmul.f32 0.5, %v808_v39  ;;  %v685_v9 = vmul.f32 %v616_v63, %v2271_v6  ;;  %v2326_v33 = vpop.eup %1804  ;;  %1814 = vpow2.f32 %v906_v36 }
  0x9f   : > { %v747_v18 = vmul.f32 0.5, %v715_v20  ;;  %v716_v32 = vadd.f32 %v684_v16, %v2282_v12  ;;  %v467_v1 = vcvt.s32.f32 %v435_v41  ;;  %v2331_v2 = vpop.eup %1806  ;;  %1816 = vpow2.f32 %v908_v58 }
  0xa0   : > { %v896_v44 = vmul.f32 1.442695, %v851_v48  ;;  %v717_v50 = vadd.f32 %v685_v9, %v2296_v38  ;;  %v507_v6 = vunpack.c.1.s8 %v2068_v35  ;;  %v1809_v60 = vpop.eup %1808  ;;  %1818 = vpow2.f32 %v894_v55 }
  0xa1   : > { %v748_v40 = vmul.f32 0.5, %v716_v32  ;;  %v538_v19 = vcvt.s32.f32 %v506_v49  ;;  %v576_v12 = vmul.f32 %v2055_v26, %v466_v54  ;;  %v2338_v23 = vpop.eup %1810  ;;  %v809_v41 = vadd.f32 1.0, %v1809_v60 }
  0xa2   : > { %v874_v62 = vmul.f32 1.442695, %v840_v59  ;;  %v749_v53 = vmul.f32 0.5, %v717_v50  ;;  %v539_v13 = vcvt.s32.f32 %v507_v6  ;;  %1820 = vtanh.f32 %v746_v5 }
  0xa3   : > { %v577_v38 = vmul.f32 %v2063_v31, %v467_v1  ;;  %v704_v14 = vmul.f32 %v666_v10, %v538_v19  ;;  %v416_v34 = vunpack.c.0.s8 %v2077_v46  ;;  %v2342_v37 = vpop.eup %1812  ;;  %v841_v21 = vmul.f32 0.5, %v809_v41 }
  0xa4   : > { %1822 = vtanh.f32 %v747_v18  ;;  %v705_v27 = vmul.f32 %v666_v10, %v539_v13  ;;  %v417_v49 = vunpack.c.0.s8 %v2082_v51  ;;  %v2345_v54 = vpop.eup %1814  ;;  %v488_v20 = vunpack.c.0.s8 %v2086_v56 }
  0xa5   : > { %1824 = vtanh.f32 %v748_v40  ;;  %v736_v45 = vadd.f32 %v704_v14, %v576_v12  ;;  %v448_v57 = vcvt.s32.f32 %v416_v34  ;;  %v2348_v63 = vpop.eup %1816  ;;  %v876_v22 = vmul.f32 1.442695, %v841_v21 }
  0xa6   : > { %1826 = vtanh.f32 %v749_v53  ;;  %v737_v47 = vadd.f32 %v705_v27, %v577_v38  ;;  %v449_v15 = vcvt.s32.f32 %v417_v49  ;;  %v2350_v0 = vpop.eup %1818  ;;  %v489_v29 = vunpack.c.0.s8 %v2093_v61 }
  0xa7   : > { %1828 = vpow2.f32 %v896_v44  ;;  %v520_v36 = vcvt.s32.f32 %v488_v20  ;;  %v558_v11 = vmul.f32 %v2055_v26, %v448_v57  ;;  %v950_v39 = vadd.f32 %v2342_v37, %v2338_v23 }
  0xa8   : > { %1830 = vpow2.f32 %v874_v62  ;;  %v1821_v58 = vpop.eup %1820  ;;  %v768_v48 = vmul.f32 0.5, %v736_v45  ;;  %v521_v5 = vcvt.s32.f32 %v489_v29  ;;  %v559_v16 = vmul.f32 %v2063_v31, %v449_v15  ;;  %v671_v29 = vpop.permute.xlu0 %670 }
  0xa9   : > { %v686_v55 = vmul.f32 %v621_v17, %v520_v36  ;;  %1832 = vpow2.f32 %v876_v22  ;;  %v810_v9 = vadd.f32 1.0, %v1821_v58  ;;  %v769_v18 = vmul.f32 0.5, %v737_v47  ;;  %951 = vadd.xlane.f32.xlu1 %v950_v39 }
  0xaa   : > { %v1823_v59 = vpop.eup %1822  ;;  %v436_v32 = vunpack.c.2.s8 %v2050_v24  ;;  %v687_v50 = vmul.f32 %v621_v17, %v521_v5  ;;  %v437_v6 = vunpack.c.2.s8 %v2053_v25  ;;  %v508_v12 = vunpack.c.2.s8 %v2061_v30 }
  0xab   : > { %v1825_v1 = vpop.eup %1824  ;;  %v811_v44 = vadd.f32 1.0, %v1823_v59  ;;  %v718_v10 = vadd.f32 %v686_v55, %v558_v11  ;;  %v842_v40 = vmul.f32 0.5, %v810_v9  ;;  %v509_v41 = vunpack.c.2.s8 %v2068_v35 }
  0xac   : > { %v1827_v60 = vpop.eup %1826  ;;  %v812_v19 = vadd.f32 1.0, %v1825_v1  ;;  %v719_v38 = vadd.f32 %v687_v50, %v559_v16  ;;  %1834 = vtanh.f32 %v768_v48  ;;  %v468_v45 = vcvt.s32.f32 %v436_v32  ;;  %v676_v50 = vpop.permute.xlu1 %675 }
  0xad   : > { %v2361_v62 = vpop.eup %1828  ;;  %v843_v53 = vmul.f32 0.5, %v811_v44  ;;  %v813_v13 = vadd.f32 1.0, %v1827_v60  ;;  %v750_v14 = vmul.f32 0.5, %v718_v10  ;;  %v878_v21 = vmul.f32 1.442695, %v842_v40 }
  0xae   : > { %v2363_v34 = vpop.eup %1830  ;;  %v844_v27 = vmul.f32 0.5, %v812_v19  ;;  %v751_v20 = vmul.f32 0.5, %v719_v38  ;;  %v469_v22 = vcvt.s32.f32 %v437_v6  ;;  %v540_v47 = vcvt.s32.f32 %v508_v12 }
  0xaf   : > { %v845_v49 = vmul.f32 0.5, %v813_v13  ;;  %1836 = vtanh.f32 %v750_v14  ;;  %v1833_v57 = vpop.eup %1832  ;;  %v541_v17 = vcvt.s32.f32 %v509_v41  ;;  %v880_v15 = vmul.f32 1.442695, %v843_v53 }
  0xb0   : > { %1838 = vtanh.f32 %v769_v18  ;;  %v882_v36 = vmul.f32 1.442695, %v844_v27  ;;  %v578_v39 = vmul.f32 %v2055_v26, %v468_v45  ;;  %v438_v58 = vunpack.c.3.s8 %v2050_v24 }
  0xb1   : > { %1840 = vpow2.f32 %v878_v21  ;;  %v884_v11 = vmul.f32 1.442695, %v845_v49  ;;  %v439_v48 = vunpack.c.3.s8 %v2053_v25  ;;  %v579_v16 = vmul.f32 %v2063_v31, %v469_v22 }
  0xb2   : > { %v2368_v5 = vpop.eup %1834  ;;  %1842 = vtanh.f32 %v751_v20  ;;  %v706_v55 = vmul.f32 %v671_v29, %v540_v47  ;;  %v707_v59 = vmul.f32 %v671_v29, %v541_v17  ;;  %v470_v18 = vcvt.s32.f32 %v438_v58 }
  0xb3   : > { %1844 = vpow2.f32 %v880_v15  ;;  %v471_v32 = vcvt.s32.f32 %v439_v48  ;;  %v510_v1 = vunpack.c.3.s8 %v2061_v30  ;;  %v2373_v44 = vadd.f32 1.0, %v2256_v43 }
  0xb4   : > { %1846 = vpow2.f32 %v882_v36  ;;  %v511_v10 = vunpack.c.3.s8 %v2068_v35  ;;  %v580_v60 = vmul.f32 %v2055_v26, %v470_v18  ;;  %v738_v12 = vadd.f32 %v706_v55, %v578_v39  ;;  %v636_v39 = vpop.permute.xlu0 %635 }
  0xb5   : > { %v1837_v9 = vpop.eup %1836  ;;  %1848 = vpow2.f32 %v884_v11  ;;  %v542_v6 = vcvt.s32.f32 %v510_v1  ;;  %v739_v41 = vadd.f32 %v707_v59, %v579_v16  ;;  %v1055_v30 = vpack.c.bf16 %v2345_v54, %v2320_v42 }
  0xb6   : > { %v814_v24 = vadd.f32 1.0, %v1837_v9  ;;  %v2375_v25 = vpop.eup %1838  ;;  %v543_v43 = vcvt.s32.f32 %v511_v10  ;;  %v581_v53 = vmul.f32 %v2063_v31, %v471_v32  ;;  %v1048_v38 = vpack.c.bf16 %v1833_v57, %v2342_v37 }
  0xb7   : > { %v2379_v40 = vpop.eup %1840  ;;  %v708_v13 = vmul.f32 %v676_v50, %v542_v6  ;;  %1219 = vmatmul.bf16.vlgmr.msra.gmra.mxu2 %v1055_v30  ;;  %v1056_v35 = vpack.c.bf16 %v2348_v63, %v2323_v52  ;;  %v953_v27 = vadd.f32 %v1833_v57, %v2363_v34  ;;  %v1047_v49 = vpack.c.bf16 %v2363_v34, %v2338_v23 }
  0xb8   : > { %v846_v19 = vmul.f32 0.5, %v814_v24  ;;  %v1843_v14 = vpop.eup %1842  ;;  %v709_v22 = vmul.f32 %v676_v50, %v543_v43  ;;  %1248 = vmatmul.bf16.vlgmr.msra.gmra.mxu1 %v1048_v38  ;;  %v422_v17 = vunpack.c.3.s8 %v2077_v46  ;;  %v423_v15 = vunpack.c.3.s8 %v2082_v51 }
  0xb9   : > { %v2390_v45 = vpop.eup %1844  ;;  %v815_v20 = vadd.f32 1.0, %v1843_v14  ;;  %v740_v47 = vadd.f32 %v708_v13, %v580_v60  ;;  %1268 = vmatmul.bf16.vlgmr.msra.gmra.mxu3 %v1056_v35  ;;  %954 = vadd.xlane.f32.xlu2 %v953_v27  ;;  %v494_v57 = vunpack.c.3.s8 %v2086_v56  ;;  %v495_v29 = vunpack.c.3.s8 %v2093_v61 }
  0xba   : > { %v886_v21 = vmul.f32 1.442695, %v846_v19  ;;  %v2393_v37 = vpop.eup %1846  ;;  %v741_v36 = vadd.f32 %v709_v22, %v581_v53  ;;  %1199 = vmatmul.bf16.vlgmr.msra.gmra.mxu0 %v1047_v49  ;;  %v454_v58 = vcvt.s32.f32 %v422_v17  ;;  %v455_v48 = vcvt.s32.f32 %v423_v15 }
  0xbb   : > { %v1849_v23 = vpop.eup %1848  ;;  %v847_v34 = vmul.f32 0.5, %v815_v20  ;;  %v772_v11 = vmul.f32 0.5, %v740_v47  ;;  %v526_v46 = vcvt.s32.f32 %v494_v57  ;;  %v527_v16 = vcvt.s32.f32 %v495_v29 }
  0xbc   : > { %1850 = vpow2.f32 %v886_v21  ;;  %v956_v55 = vadd.f32 %v2390_v45, %v2379_v40  ;;  %v770_v9 = vmul.f32 0.5, %v738_v12  ;;  %v773_v51 = vmul.f32 0.5, %v741_v36 }
  0xbd   : > { %v888_v59 = vmul.f32 1.442695, %v847_v34  ;;  %1852 = vtanh.f32 %v772_v11  ;;  %v771_v56 = vmul.f32 0.5, %v739_v41  ;;  %v564_v61 = vmul.f32 %v2055_v26, %v454_v58 }
  0xbe   : > { %v565_v18 = vmul.f32 %v2063_v31, %v455_v48  ;;  %v692_v32 = vmul.f32 %v636_v39, %v526_v46  ;;  %957 = vadd.xlane.f32.xlu0 %v956_v55  ;;  %v831_v1 = vadd.f32 1.0, %v2273_v4  ;;  %v693_v24 = vmul.f32 %v636_v39, %v527_v16 }
  0xbf   : > { %1854 = vpow2.f32 %v888_v59  ;;  %v959_v50 = vadd.f32 %v1849_v23, %v2393_v37  ;;  %v832_v60 = vadd.f32 1.0, %v2368_v5  ;;  %v862_v26 = vmul.f32 0.5, %v2373_v44 }
  0xc0   : > { %1856 = vtanh.f32 %v773_v51  ;;  %v724_v6 = vadd.f32 %v692_v32, %v564_v61  ;;  %v725_v19 = vadd.f32 %v693_v24, %v565_v18  ;;  %v863_v41 = vmul.f32 0.5, %v831_v1 }
  0xc1   : > { %1858 = vtanh.f32 %v770_v9  ;;  %960 = vadd.xlane.f32.xlu2 %v959_v50  ;;  %v833_v4 = vadd.f32 1.0, %v2375_v25  ;;  %v968_v53 = vadd.f32 %v2361_v62, %v2350_v0  ;;  %v864_v38 = vmul.f32 0.5, %v832_v60 }
  0xc2   : > { %v2404_v10 = vpop.eup %1850  ;;  %1860 = vtanh.f32 %v771_v56  ;;  %v756_v31 = vmul.f32 0.5, %v724_v6  ;;  %v757_v30 = vmul.f32 0.5, %v725_v19  ;;  %v918_v14 = vmul.f32 1.442695, %v862_v26 }
  0xc3   : > { %v1853_v12 = vpop.eup %1852  ;;  %v1057_v44 = vpack.c.bf16 %v2277_v7, %v2249_v28  ;;  %v920_v35 = vmul.f32 1.442695, %v863_v41  ;;  %v865_v27 = vmul.f32 0.5, %v833_v4  ;;  %v1050_v20 = vpack.c.bf16 %v1849_v23, %v2390_v45 }
  0xc4   : > { %v836_v43 = vadd.f32 1.0, %v1853_v12  ;;  %1862 = vtanh.f32 %v756_v31  ;;  %v1058_v17 = vpack.c.bf16 %v2290_v8, %v2254_v3  ;;  %v965_v15 = vadd.f32 %v2331_v2, %v2326_v33 }
  0xc5   : > { %v2411_v13 = vpop.eup %1854  ;;  %1864 = vtanh.f32 %v757_v30  ;;  %v922_v57 = vmul.f32 1.442695, %v864_v38  ;;  %v1049_v34 = vpack.c.bf16 %v2393_v37, %v2379_v40  ;;  %v924_v23 = vmul.f32 1.442695, %v865_v27 }
  0xc6   : > { %v1857_v5 = vpop.eup %1856  ;;  %969 = vadd.xlane.f32.xlu0 %v968_v53  ;;  %v962_v21 = vadd.f32 %v2411_v13, %v2404_v10  ;;  %v868_v47 = vmul.f32 0.5, %v836_v43  ;;  %1866 = vpow2.f32 %v918_v14  ;;  %v977_v39 = vadd.f32 %v2348_v63, %v2345_v54 }
  0xc7   : > { %v1859_v25 = vpop.eup %1858  ;;  %v837_v49 = vadd.f32 1.0, %v1857_v5  ;;  %1224 = vmatmul.bf16.gmra.mxu2 %v1057_v44  ;;  %1868 = vpow2.f32 %v920_v35  ;;  %v1943_v40 = vmov 0.0   ;;  %v974_v56 = vadd.f32 %v2323_v52, %v2320_v42 }
  0xc8   : > { %v1861_v22 = vpop.eup %1860  ;;  %963 = vadd.xlane.f32.xlu1 %v962_v21  ;;  %1253 = vmatmul.bf16.gmra.mxu1 %v1050_v20  ;;  %v834_v36 = vadd.f32 1.0, %v1859_v25  ;;  %v930_v48 = vmul.f32 1.442695, %v868_v47  ;;  %1870 = vpow2.f32 %v922_v57  ;;  %384 = vst.msk [vmem:[#allocation3] sm:$0xff] %vm383_vm0, %v1943_v40  ;;  %v1052_v19 = vpack.c.bf16 %v2331_v2, %v2411_v13 }
  0xc9   : > { %v869_v29 = vmul.f32 0.5, %v837_v49  ;;  %1273 = vmatmul.bf16.gmra.mxu3 %v1058_v17  ;;  %966 = vadd.xlane.f32.xlu2 %v965_v15  ;;  %v835_v11 = vadd.f32 1.0, %v1861_v22  ;;  %385 = vst.msk [vmem:[#allocation3 + $0x8] sm:$0xff] %vm383_vm0, %v1943_v40  ;;  %1872 = vpow2.f32 %v924_v23  ;;  %v983_v12 = vadd.f32 %v2290_v8, %v2277_v7 }
  0xca   : > { %v1863_v45 = vpop.eup %1862  ;;  %1204 = vmatmul.bf16.gmra.mxu0 %v1049_v34  ;;  %v866_v37 = vmul.f32 0.5, %v834_v36  ;;  %386 = vst.msk [vmem:[#allocation3 + $0x10] sm:$0xff] %vm383_vm0, %v1943_v40  ;;  %1874 = vpow2.f32 %v930_v48  ;;  %v1051_v4 = vpack.c.bf16 %v2326_v33, %v2404_v10  ;;  %v980_v33 = vadd.f32 %v2254_v3, %v2249_v28 }
  0xcb   : > { %v1865_v58 = vpop.eup %1864  ;;  %v820_v46 = vadd.f32 1.0, %v1863_v45  ;;  %v932_v16 = vmul.f32 1.442695, %v869_v29  ;;  %v867_v9 = vmul.f32 0.5, %v835_v11  ;;  %387 = vst.msk [vmem:[#allocation3 + $0x18] sm:$0xff] %vm383_vm0, %v1943_v40 }
  0xcc   : > { %v821_v55 = vadd.f32 1.0, %v1865_v58  ;;  %v1867_v54 = vpop.eup %1866  ;;  %388 = vst.msk [vmem:[#allocation3 + $0x20] sm:$0xff] %vm383_vm0, %v1943_v40  ;;  %v926_v32 = vmul.f32 1.442695, %v866_v37 }
  0xcd   : > { %v852_v59 = vmul.f32 0.5, %v820_v46  ;;  %v1869_v61 = vpop.eup %1868  ;;  %1876 = vpow2.f32 %v932_v16  ;;  %389 = vst.msk [vmem:[#allocation3 + $0x28] sm:$0xff] %vm383_vm0, %v1943_v40  ;;  %v928_v24 = vmul.f32 1.442695, %v867_v9 }
  0xce   : > { %978 = vadd.xlane.f32.xlu0 %v977_v39  ;;  %v853_v51 = vmul.f32 0.5, %v821_v55  ;;  %v1871_v1 = vpop.eup %1870  ;;  %390 = vst.msk [vmem:[#allocation3 + $0x30] sm:$0xff] %vm383_vm0, %v1943_v40  ;;  %v986_v50 = vadd.f32 %v1869_v61, %v1867_v54 }
  0xcf   : > { %v898_v63 = vmul.f32 1.442695, %v852_v59  ;;  %391 = vst.msk [vmem:[#allocation3 + $0x38] sm:$0xff] %vm383_vm0, %v1943_v40  ;;  %v1873_v42 = vpop.eup %1872  ;;  %v1059_v6 = vpack.c.bf16 %v1871_v1, %v1867_v54  ;;  %v934_v14 = vld [vmem:[#allocation3] sm:$0xff] }
  0xd0   : > { %v900_v18 = vmul.f32 1.442695, %v853_v51  ;;  %392 = vst.msk [vmem:[#allocation3 + $0x40] sm:$0xff] %vm383_vm0, %v1943_v40  ;;  %v1875_v52 = vpop.eup %1874  ;;  %v1060_v31 = vpack.c.bf16 %v1873_v42, %v1869_v61  ;;  %v989_v5 = vadd.f32 %v1873_v42, %v1871_v1  ;;  %v935_v28 = vld [vmem:[#allocation3 + $0x8] sm:$0xff] }
  0xd1   : > { %1878 = vpow2.f32 %v898_v63  ;;  %975 = vadd.xlane.f32.xlu2 %v974_v56  ;;  %393 = vst.msk [vmem:[#allocation3 + $0x48] sm:$0xff] %vm383_vm0, %v1943_v40  ;;  %v936_v27 = vld [vmem:[#allocation3 + $0x10] sm:$0xff] }
  0xd2   : > { %1880 = vpow2.f32 %v900_v18  ;;  %394 = vst.msk [vmem:[#allocation3 + $0x50] sm:$0xff] %vm383_vm0, %v1943_v40  ;;  %v937_v20 = vld [vmem:[#allocation3 + $0x18] sm:$0xff] }
  0xd3   : > { %1882 = vpow2.f32 %v926_v32  ;;  %v1877_v60 = vpop.eup %1876  ;;  %395 = vst.msk [vmem:[#allocation3 + $0x58] sm:$0xff] %vm383_vm0, %v1943_v40  ;;  %v938_v29 = vld [vmem:[#allocation3 + $0x20] sm:$0xff] }
  0xd4   : > { %1884 = vpow2.f32 %v928_v24  ;;  %396 = vst.msk [vmem:[#allocation3 + $0x60] sm:$0xff] %vm383_vm0, %v1943_v40  ;;  %v995_v7 = vadd.f32 %v1877_v60, %v1875_v52  ;;  %v939_v36 = vld [vmem:[#allocation3 + $0x28] sm:$0xff] }
  0xd5   : > { %397 = vst.msk [vmem:[#allocation3 + $0x68] sm:$0xff] %vm383_vm0, %v1943_v40  ;;  %v940_v17 = vld [vmem:[#allocation3 + $0x30] sm:$0xff] }
  0xd6   : > { %987 = vadd.xlane.f32.xlu0 %v986_v50  ;;  %398 = vst.msk [vmem:[#allocation3 + $0x70] sm:$0xff] %vm383_vm0, %v1943_v40 }
  0xd7   : > { %v1879_v26 = vpop.eup %1878  ;;  %1229 = vmatmul.bf16.gmra.mxu2 %v1059_v6  ;;  %399 = vst.msk [vmem:[#allocation3 + $0x78] sm:$0xff] %vm383_vm0, %v1943_v40  ;;  %v942_v59 = vld [vmem:[#allocation3 + $0x40] sm:$0xff] }
  0xd8   : > { %v1881_v41 = vpop.eup %1880  ;;  %1258 = vmatmul.bf16.gmra.mxu1 %v1052_v19  ;;  %v1053_v38 = vpack.c.bf16 %v1879_v26, %v2350_v0  ;;  %v943_v46 = vld [vmem:[#allocation3 + $0x48] sm:$0xff] }
  0xd9   : > { %1278 = vmatmul.bf16.gmra.mxu3 %v1060_v31  ;;  %984 = vadd.xlane.f32.xlu2 %v983_v12  ;;  %v971_v2 = vadd.f32 %v1881_v41, %v1879_v26  ;;  %v1883_v30 = vpop.eup %1882  ;;  %v1054_v53 = vpack.c.bf16 %v1881_v41, %v2361_v62 }
  0xda   : > { %1209 = vmatmul.bf16.gmra.mxu0 %v1051_v4  ;;  %v1885_v8 = vpop.eup %1884  ;;  %v1061_v10 = vpack.c.bf16 %v1875_v52, %v1883_v30  ;;  %v945_v50 = vld [vmem:[#allocation3 + $0x58] sm:$0xff] }
  0xdb   : > { %972 = vadd.xlane.f32.xlu1 %v971_v2  ;;  %v992_v43 = vadd.f32 %v1885_v8, %v1883_v30  ;;  %v1062_v13 = vpack.c.bf16 %v1877_v60, %v1885_v8  ;;  %v946_v61 = vld [vmem:[#allocation3 + $0x60] sm:$0xff]  ;;  %v941_v60 = vld [vmem:[#allocation3 + $0x38] sm:$0xff] }
  0xde   : > { %996 = vadd.xlane.f32.xlu0 %v995_v7  ;;  %v949_v12 = vld [vmem:[#allocation3 + $0x78] sm:$0xff]  ;;  %v948_v7 = vld [vmem:[#allocation3 + $0x70] sm:$0xff] }
  0xe1   : > { %993 = vadd.xlane.f32.xlu2 %v992_v43 }
  0xe3   : > { %981 = vadd.xlane.f32.xlu1 %v980_v33 }
  0xe7   : > { %1234 = vmatmul.bf16.gmra.mxu2 %v1061_v10  ;;  %v944_v10 = vld [vmem:[#allocation3 + $0x50] sm:$0xff] }
  0xe8   : > { %1263 = vmatmul.bf16.gmra.mxu1 %v1054_v53 }
  0xe9   : > { %1283 = vmatmul.bf16.gmra.mxu3 %v1062_v13 }
  0xea   : > { %1214 = vmatmul.bf16.gmra.mxu0 %v1053_v38 }
  0xeb   : > { %990 = vadd.xlane.f32.xlu1 %v989_v5 }
 0x11c   : > { %v952_v44 = vpop.xlane.xlu1 %951 }
 0x11d   : > { %v998_v21 = vadd.f32 %v952_v44, %v934_v14 }
 0x11f   : > { %1015 = vst.msk [vmem:[#allocation3] sm:$0xff] %vm383_vm0, %v998_v21 }
 0x126   : > { %v1340_v25 = vld [vmem:[#allocation3] sm:$0xff] }
 0x127   : > { %1886 = vrcp.f32 %v1340_v25 }
 0x12c   : > { %v955_v35 = vpop.xlane.xlu2 %954 }
 0x12d   : > { %v1887_v3 = vpop.eup %1886  ;;  %v999_v62 = vadd.f32 %v955_v35, %v935_v28  ;;  %v947_v28 = vld [vmem:[#allocation3 + $0x68] sm:$0xff] }
 0x12e   : > { %1374 = vperm.xlu1 %1756, %v1887_v3  }
 0x12f   : > { %1016 = vst.msk [vmem:[#allocation3 + $0x8] sm:$0xff] %vm383_vm0, %v999_v62 }
 0x131   : > { %v958_v0 = vpop.xlane.xlu0 %957 }
 0x132   : > { %v1000_v49 = vadd.f32 %v958_v0, %v936_v27 }
 0x134   : > { %1017 = vst.msk [vmem:[#allocation3 + $0x10] sm:$0xff] %vm383_vm0, %v1000_v49  ;;  %v961_v22 = vpop.xlane.xlu2 %960 }
 0x135   : > { %v1001_v47 = vadd.f32 %v961_v22, %v937_v20 }
 0x136   : > { %v1341_v15 = vld [vmem:[#allocation3 + $0x8] sm:$0xff] }
 0x137   : > { %1018 = vst.msk [vmem:[#allocation3 + $0x18] sm:$0xff] %vm383_vm0, %v1001_v47  ;;  %1888 = vrcp.f32 %v1341_v15 }
 0x139   : > { %v970_v57 = vpop.xlane.xlu0 %969 }
 0x13a   : > { %v1004_v34 = vadd.f32 %v970_v57, %v940_v17  ;;  %v1200_v57 = vpop.f32.mrf.mxu0 }
 0x13b   : > { %v964_v45 = vpop.xlane.xlu1 %963  ;;  %v1342_v23 = vld [vmem:[#allocation3 + $0x10] sm:$0xff] }
 0x13c   : > { %1021 = vst.msk [vmem:[#allocation3 + $0x30] sm:$0xff] %vm383_vm0, %v1004_v34  ;;  %v1002_v11 = vadd.f32 %v964_v45, %v938_v29  ;;  %1890 = vrcp.f32 %v1342_v23  ;;  %v967_v39 = vpop.xlane.xlu2 %966  ;;  %v1249_v29 = vpop.f32.mrf.mxu1 }
 0x13d   : > { %v1889_v58 = vpop.eup %1888  ;;  %v1003_v48 = vadd.f32 %v967_v39, %v939_v36  ;;  %v1220_v45 = vpop.f32.mrf.mxu2 }
 0x13e   : > { %1019 = vst.msk [vmem:[#allocation3 + $0x20] sm:$0xff] %vm383_vm0, %v1002_v11  ;;  %1379 = vperm.xlu2 %1757, %v1889_v58   ;;  %v1343_v16 = vld [vmem:[#allocation3 + $0x18] sm:$0xff]  ;;  %v1269_v23 = vpop.f32.mrf.mxu3 }
 0x13f   : > { %1020 = vst.msk [vmem:[#allocation3 + $0x28] sm:$0xff] %vm383_vm0, %v1003_v48  ;;  %1892 = vrcp.f32 %v1343_v16 }
 0x141   : > { %v979_v55 = vpop.xlane.xlu0 %978 }
 0x142   : > { %v1891_v40 = vpop.eup %1890  ;;  %v1007_v37 = vadd.f32 %v979_v55, %v943_v46  ;;  %v1202_v36 = vpop.f32.mrf.mxu0 }
 0x143   : > { %1384 = vperm.xlu0 %1755, %v1891_v40   ;;  %v1346_v9 = vld [vmem:[#allocation3 + $0x30] sm:$0xff] }
 0x144   : > { %1024 = vst.msk [vmem:[#allocation3 + $0x48] sm:$0xff] %vm383_vm0, %v1007_v37  ;;  %v976_v51 = vpop.xlane.xlu2 %975  ;;  %1894 = vrcp.f32 %v1346_v9  ;;  %v1251_v34 = vpop.f32.mrf.mxu1 }
 0x145   : > { %v1344_v54 = vld [vmem:[#allocation3 + $0x20] sm:$0xff]  ;;  %v1893_v63 = vpop.eup %1892  ;;  %v1006_v56 = vadd.f32 %v976_v51, %v942_v59  ;;  %v1222_v58 = vpop.f32.mrf.mxu2  ;;  %v1252_v37 = vadd.f32 %v1251_v34, %v1202_v36 }
 0x146   : > { %1896 = vrcp.f32 %v1344_v54  ;;  %1389 = vperm.xlu1 %1756, %v1893_v63   ;;  %v1345_v18 = vld [vmem:[#allocation3 + $0x28] sm:$0xff]  ;;  %v1271_v48 = vpop.f32.mrf.mxu3  ;;  %v1250_v63 = vadd.f32 %v1249_v29, %v1200_v57 }
 0x147   : > { %1023 = vst.msk [vmem:[#allocation3 + $0x40] sm:$0xff] %vm383_vm0, %v1006_v56  ;;  %1898 = vrcp.f32 %v1345_v18 }
 0x149   : > { %v988_v32 = vpop.xlane.xlu0 %987 }
 0x14a   : > { %v1010_v1 = vadd.f32 %v988_v32, %v946_v61  ;;  %v1895_v24 = vpop.eup %1894  ;;  %v1205_v39 = vpop.f32.mrf.mxu0 }
 0x14b   : > { %v1349_v42 = vld [vmem:[#allocation3 + $0x48] sm:$0xff] }
 0x14c   : > { %v1897_v52 = vpop.eup %1896  ;;  %1027 = vst.msk [vmem:[#allocation3 + $0x60] sm:$0xff] %vm383_vm0, %v1010_v1  ;;  %v985_v6 = vpop.xlane.xlu2 %984  ;;  %1900 = vrcp.f32 %v1349_v42 }
 0x14d   : > { %1394 = vperm.xlu0 %1755, %v1897_v52   ;;  %v1899_v19 = vpop.eup %1898  ;;  %v1009_v26 = vadd.f32 %v985_v6, %v945_v50  ;;  %v1254_v11 = vpop.f32.mrf.mxu1 }
 0x14e   : > { %v973_v31 = vpop.xlane.xlu1 %972  ;;  %1399 = vperm.xlu2 %1757, %v1899_v19   ;;  %1404 = vperm.xlu1 %1756, %v1895_v24   ;;  %v1348_v41 = vld [vmem:[#allocation3 + $0x40] sm:$0xff]  ;;  %v2470_v55 = vpop.f32.mrf.mxu2  ;;  %v1270_v19 = vadd.f32 %v1269_v23, %v1220_v45 }
 0x14f   : > { %1026 = vst.msk [vmem:[#allocation3 + $0x58] sm:$0xff] %vm383_vm0, %v1009_v26  ;;  %v1005_v4 = vadd.f32 %v973_v31, %v941_v60  ;;  %1902 = vrcp.f32 %v1348_v41  ;;  %v2472_v40 = vpop.f32.mrf.mxu3 }
 0x151   : > { %v997_v2 = vpop.xlane.xlu0 %996  ;;  %1022 = vst.msk [vmem:[#allocation3 + $0x38] sm:$0xff] %vm383_vm0, %v1005_v4  ;;  %v1255_v4 = vadd.f32 %v1254_v11, %v1205_v39 }
 0x152   : > { %v1013_v30 = vadd.f32 %v997_v2, %v949_v12  ;;  %v1901_v43 = vpop.eup %1900  ;;  %v1207_v16 = vpop.f32.mrf.mxu0 }
 0x153   : > { %v1352_v8 = vld [vmem:[#allocation3 + $0x60] sm:$0xff] }
 0x154   : > { %1030 = vst.msk [vmem:[#allocation3 + $0x78] sm:$0xff] %vm383_vm0, %v1013_v30  ;;  %v994_v33 = vpop.xlane.xlu2 %993  ;;  %1904 = vrcp.f32 %v1352_v8 }
 0x155   : > { %v1903_v53 = vpop.eup %1902  ;;  %v1012_v13 = vadd.f32 %v994_v33, %v948_v7  ;;  %v1256_v46 = vpop.f32.mrf.mxu1 }
 0x156   : > { %v982_v38 = vpop.xlane.xlu1 %981  ;;  %1414 = vperm.xlu2 %1757, %v1903_v53   ;;  %1419 = vperm.xlu1 %1756, %v1901_v43   ;;  %v1351_v5 = vld [vmem:[#allocation3 + $0x58] sm:$0xff]  ;;  %v1227_v56 = vpop.f32.mrf.mxu2  ;;  %v1257_v7 = vadd.f32 %v1256_v46, %v1207_v16 }
 0x157   : > { %1029 = vst.msk [vmem:[#allocation3 + $0x70] sm:$0xff] %vm383_vm0, %v1012_v13  ;;  %v1008_v14 = vadd.f32 %v982_v38, %v944_v10  ;;  %1906 = vrcp.f32 %v1351_v5  ;;  %v1276_v61 = vpop.f32.mrf.mxu3 }
 0x158   : > { %v1347_v44 = vld [vmem:[#allocation3 + $0x38] sm:$0xff]  ;;  %v1277_v8 = vadd.f32 %v1276_v61, %v1227_v56 }
 0x159   : > { %1025 = vst.msk [vmem:[#allocation3 + $0x50] sm:$0xff] %vm383_vm0, %v1008_v14  ;;  %1908 = vrcp.f32 %v1347_v44 }
 0x15a   : > { %v1905_v25 = vpop.eup %1904  ;;  %v1210_v54 = vpop.f32.mrf.mxu0 }
 0x15b   : > { %v1355_v21 = vld [vmem:[#allocation3 + $0x78] sm:$0xff] }
 0x15c   : > { %1910 = vrcp.f32 %v1355_v21 }
 0x15d   : > { %v1907_v3 = vpop.eup %1906  ;;  %v1259_v51 = vpop.f32.mrf.mxu1 }
 0x15e   : > { %v991_v35 = vpop.xlane.xlu1 %990  ;;  %1429 = vperm.xlu2 %1757, %v1907_v3   ;;  %1434 = vperm.xlu1 %1756, %v1905_v25   ;;  %v1354_v62 = vld [vmem:[#allocation3 + $0x70] sm:$0xff]  ;;  %v1230_v50 = vpop.f32.mrf.mxu2  ;;  %v1260_v44 = vadd.f32 %v1259_v51, %v1210_v54 }
 0x15f   : > { %v1909_v27 = vpop.eup %1908  ;;  %v1011_v0 = vadd.f32 %v991_v35, %v947_v28  ;;  %1912 = vrcp.f32 %v1354_v62  ;;  %v1279_v52 = vpop.f32.mrf.mxu3 }
 0x160   : > { %1409 = vperm.xlu0 %1755, %v1909_v27   ;;  %v1350_v49 = vld [vmem:[#allocation3 + $0x50] sm:$0xff] }
 0x161   : > { %1028 = vst.msk [vmem:[#allocation3 + $0x68] sm:$0xff] %vm383_vm0, %v1011_v0  ;;  %1914 = vrcp.f32 %v1350_v49  ;;  %v1272_v49 = vadd.f32 %v1271_v48, %v1222_v58  ;;  %v1275_v48 = vadd.f32 %v2472_v40, %v2470_v55 }
 0x162   : > { %v1911_v20 = vpop.eup %1910  ;;  %v1212_v24 = vpop.f32.mrf.mxu0 }
 0x165   : > { %v1913_v22 = vpop.eup %1912  ;;  %v1261_v1 = vpop.f32.mrf.mxu1 }
 0x166   : > { %1444 = vperm.xlu2 %1757, %v1913_v22   ;;  %1449 = vperm.xlu1 %1756, %v1911_v20   ;;  %v1262_v42 = vadd.f32 %v1261_v1, %v1212_v24  ;;  %v1232_v12 = vpop.f32.mrf.mxu2 }
 0x167   : > { %v1915_v47 = vpop.eup %1914  ;;  %v1281_v41 = vpop.f32.mrf.mxu3 }
 0x168   : > { %1424 = vperm.xlu0 %1755, %v1915_v47   ;;  %v1353_v17 = vld [vmem:[#allocation3 + $0x68] sm:$0xff] }
 0x169   : > { %1916 = vrcp.f32 %v1353_v17 }
 0x16a   : > { %v1215_v38 = vpop.f32.mrf.mxu0 }
 0x16d   : > { %v1264_v13 = vpop.f32.mrf.mxu1 }
 0x16e   : > { %v1235_v5 = vpop.f32.mrf.mxu2  ;;  %v1265_v25 = vadd.f32 %v1264_v13, %v1215_v38 }
 0x16f   : > { %v1917_v15 = vpop.eup %1916  ;;  %v1284_v14 = vpop.f32.mrf.mxu3 }
 0x170   : > { %1439 = vperm.xlu0 %1755, %v1917_v15   ;;  %v1285_v28 = vadd.f32 %v1284_v14, %v1235_v5  ;;  %v1280_v15 = vadd.f32 %v1279_v52, %v1230_v50 }
 0x172   : > { %v1217_v47 = vpop.f32.mrf.mxu0 }
 0x175   : > { %v1266_v17 = vpop.f32.mrf.mxu1 }
 0x176   : > { %v1267_v29 = vadd.f32 %v1266_v17, %v1217_v47  ;;  %v1237_v23 = vpop.f32.mrf.mxu2 }
 0x177   : > { %v1286_v11 = vpop.f32.mrf.mxu3 }
 0x178   : > { %v1287_v39 = vadd.f32 %v1286_v11, %v1237_v23 }
 0x198   : > { %v1380_v59 = vpop.permute.xlu2 %1379 }
 0x199   : > { %v1453_v9 = vmul.f32 %v1380_v59, %v1252_v37  ;;  %v1282_v59 = vadd.f32 %v1281_v41, %v1232_v12 }
 0x19b   : > { %1469 = vst [vmem:[%s2479_s6 + $0x8] sm:$0xff] %v1453_v9 }
 0x1a0   : > { %v1375_v18 = vpop.permute.xlu1 %1374 }
 0x1a1   : > { %v1452_v32 = vmul.f32 %v1375_v18, %v1250_v63 }
 0x1a3   : > { %1468 = vst [vmem:[%s2479_s6] sm:$0xff] %v1452_v32 }
 0x1a8   : > { %v1400_v6 = vpop.permute.xlu2 %1399 }
 0x1a9   : > { %v1457_v60 = vmul.f32 %v1400_v6, %v1262_v42 }
 0x1ab   : > { %1473 = vst [vmem:[%s2479_s6 + $0x28] sm:$0xff] %v1457_v60 }
 0x1b0   : > { %v1415_v26 = vpop.permute.xlu2 %1414 }
 0x1b1   : > { %v1460_v31 = vmul.f32 %v1415_v26, %v1270_v19 }
 0x1b3   : > { %1476 = vst [vmem:[%s2479_s6 + $0x40] sm:$0xff] %v1460_v31 }
 0x1b5   : > { %v1385_v2 = vpop.permute.xlu0 %1384 }
 0x1b6   : > { %v1454_v30 = vmul.f32 %v1385_v2, %v1255_v4 }
 0x1b8   : > { %1470 = vst [vmem:[%s2479_s6 + $0x10] sm:$0xff] %v1454_v30  ;;  %v1430_v43 = vpop.permute.xlu2 %1429  ;;  %v1390_v33 = vpop.permute.xlu1 %1389 }
 0x1b9   : > { %v1463_v10 = vmul.f32 %v1430_v43, %v1277_v8  ;;  %v1455_v53 = vmul.f32 %v1390_v33, %v1257_v7 }
 0x1bb   : > { %1479 = vst [vmem:[%s2479_s6 + $0x58] sm:$0xff] %v1463_v10 }
 0x1bc   : > { %1471 = vst [vmem:[%s2479_s6 + $0x18] sm:$0xff] %v1455_v53 }
 0x1bf   : > { %v1395_v21 = vpop.permute.xlu0 %1394 }
 0x1c0   : > { %v1456_v3 = vmul.f32 %v1395_v21, %v1260_v44  ;;  %v1445_v35 = vpop.permute.xlu2 %1444  ;;  %v1405_v62 = vpop.permute.xlu1 %1404 }
 0x1c1   : > { %v1466_v27 = vmul.f32 %v1445_v35, %v1285_v28  ;;  %v1458_v0 = vmul.f32 %v1405_v62, %v1265_v25 }
 0x1c2   : > { %1472 = vst [vmem:[%s2479_s6 + $0x20] sm:$0xff] %v1456_v3 }
 0x1c3   : > { %1482 = vst [vmem:[%s2479_s6 + $0x70] sm:$0xff] %v1466_v27 }
 0x1c4   : > { %1474 = vst [vmem:[%s2479_s6 + $0x30] sm:$0xff] %v1458_v0 }
 0x1c8   : > { %v1420_v20 = vpop.permute.xlu1 %1419 }
 0x1c9   : > { %v1461_v22 = vmul.f32 %v1420_v20, %v1272_v49 }
 0x1cb   : > { %1477 = vst [vmem:[%s2479_s6 + $0x48] sm:$0xff] %v1461_v22 }
 0x1d0   : > { %v1435_v57 = vpop.permute.xlu1 %1434 }
 0x1d1   : > { %v1464_v34 = vmul.f32 %v1435_v57, %v1280_v15 }
 0x1d2   : > { %v1410_v36 = vpop.permute.xlu0 %1409 }
 0x1d3   : > { %v1459_v45 = vmul.f32 %v1410_v36, %v1267_v29  ;;  %1480 = vst [vmem:[%s2479_s6 + $0x60] sm:$0xff] %v1464_v34 }
 0x1d5   : > { %1475 = vst [vmem:[%s2479_s6 + $0x38] sm:$0xff] %v1459_v45 }
 0x1d8   : > { %v1450_v58 = vpop.permute.xlu1 %1449 }
 0x1d9   : > { %v1467_v46 = vmul.f32 %v1450_v58, %v1287_v39 }
 0x1da   : > { %v1425_v16 = vpop.permute.xlu0 %1424 }
 0x1db   : > { %v1462_v37 = vmul.f32 %v1425_v16, %v1275_v48  ;;  %1483 = vst [vmem:[%s2479_s6 + $0x78] sm:$0xff] %v1467_v46 }
 0x1dd   : > { %1478 = vst [vmem:[%s2479_s6 + $0x50] sm:$0xff] %v1462_v37 }
 0x1e2   : > { %v1440_v9 = vpop.permute.xlu0 %1439 }
 0x1e3   : > { %v1465_v51 = vmul.f32 %v1440_v9, %v1282_v59 }
 0x1e5   : > { %1481 = vst [vmem:[%s2479_s6 + $0x68] sm:$0xff] %v1465_v51 }
 0x1e6 PF: > { %s15_s20 = sadd.s32 1, %s1940_s20   ;;  %s2514_s18 = smov %s1936_s19 }
 0x1e7   : > { %p12_p6 = scmp.ge.s32.totalorder %s15_s20, 4   ;;  %s2515_s19 = smov %s2517_s21 }
 0x1e9   :  { %14 = sbr.rel (!%p12_p6) target bundleno = 2 (0x2), region = 90 }

</bundles_post_ra>
